<compile_context>
chip_gen: v7x
topology: tpu7x:2x2x1
jax: 0.10.0
libtpu: 0.0.40
codegen_flags: <defaults>
</compile_context>

<pallas_src>
import functools

import jax
import jax.numpy as jnp
from jax.experimental import pallas as pl
from jax.experimental.pallas import tpu as pltpu

EPS = 1e-5


def _make_agg(c, groups):
    """(C, C) block-diagonal 0/1 matrix aggregating channels within a group."""
    cpg = c // groups
    row_g = jnp.arange(c)[:, None] // cpg
    col_g = jnp.arange(c)[None, :] // cpg
    return (row_g == col_g).astype(jnp.float32)


def _gn_relu(y, gamma, beta, agg, cpg, B, HW):
    """Per-sample GroupNorm (biased var, eps=1e-5) + ReLU.

    y: (C, B*HW) f32, channels-first, B samples contiguous along lanes.
    Stats are per (group, sample); all math in f32.
    """
    ysq = y * y
    cols = []
    for b in range(B):                       # per-sample channel sums (lane-aligned slices)
        sl = slice(b * HW, (b + 1) * HW)
        cols.append(jnp.sum(y[:, sl], axis=1, keepdims=True))
    for b in range(B):                       # per-sample channel square-sums
        sl = slice(b * HW, (b + 1) * HW)
        cols.append(jnp.sum(ysq[:, sl], axis=1, keepdims=True))
    stats = jnp.concatenate(cols, axis=1)                               # (C, 2B)
    gstats = jnp.dot(agg, stats, preferred_element_type=jnp.float32) * (1.0 / float(cpg * HW))
    mean = gstats[:, :B]                                                # (C, B)
    var = jnp.maximum(gstats[:, B:] - mean * mean, 0.0)
    inv = jax.lax.rsqrt(var + EPS)
    scale = inv * gamma                                                 # (C, B)
    shift = beta - mean * scale                                         # (C, B)
    outs = []
    for b in range(B):
        sl = slice(b * HW, (b + 1) * HW)
        outs.append(jnp.maximum(y[:, sl] * scale[:, b:b + 1] + shift[:, b:b + 1], 0.0))
    return jnp.concatenate(outs, axis=1) if B > 1 else outs[0]


def cc_kernel(x_ref, w1_ref, g1_ref, b1_ref, w2_ref, g2_ref, b2_ref,
              w3_ref, g3_ref, b3_ref, mask_ref, aggm_ref, aggo_ref, o_ref, *,
              H, W, B, groups_mid, groups_out):
    HW = H * W
    LANES = B * HW
    c1 = w1_ref.shape[0]
    cin = w1_ref.shape[1]
    cout = w3_ref.shape[0]
    cpg_mid = c1 // groups_mid
    cpg_out = cout // groups_out

    x = x_ref[...]                       # (Cin, B*HW) f32, channels-first
    masks = mask_ref[...]                # (8, B*HW) f32 0/1 boundary masks (hoisted)
    agg_mid = aggm_ref[...]              # (C1, C1)   group aggregation (hoisted)
    agg_out = aggo_ref[...]              # (Cout, Cout)

    # --- stage 1: 1x1 conv ---
    w1t = w1_ref[...]                    # (C1, Cin) f32
    if cin <= 8:
        # tiny-K path: rank-1 broadcast FMAs on the VPU (MXU K=cin would be ~empty)
        y = w1t[:, 0:1] * x[0:1, :]
        for c in range(1, cin):
            y = y + w1t[:, c:c + 1] * x[c:c + 1, :]
    else:
        # TODO(synk): for very large Cin (>=1024) tile this contraction over a K grid
        # axis with an f32 accumulator so the input block stays double-bufferable.
        y = jnp.dot(w1t.astype(jnp.bfloat16), x.astype(jnp.bfloat16),
                    preferred_element_type=jnp.float32)                 # (C1, B*HW)
    y = _gn_relu(y, g1_ref[...], b1_ref[...], agg_mid, cpg_mid, B, HW)

    # --- stage 2: 3x3 conv (stride 1, pad 1) as 3 dy tap-group matmuls, f32 accumulate ---
    acc = None
    mi = 0
    for gi, dy in enumerate((-1, 0, 1)):
        taps = []
        for dx in (-1, 0, 1):
            s = dy * W + dx
            if s == 0:
                t = y
            else:
                # roll along the packed lane axis; lanes that wrap across a sample
                # boundary are exactly the ones the boundary mask zeros out.
                t = pltpu.roll(y, shift=(-s) % LANES, axis=1) * masks[mi:mi + 1, :]
                mi += 1
            taps.append(t.astype(jnp.bfloat16))
        col_g = jnp.concatenate(taps, axis=0)                           # (3*C1, B*HW) bf16
        part = jnp.dot(w2_ref[gi], col_g, preferred_element_type=jnp.float32)
        acc = part if acc is None else acc + part
    y = _gn_relu(acc, g2_ref[...], b2_ref[...], agg_mid, cpg_mid, B, HW)

    # --- stage 3: 1x1 conv ---
    y = jnp.dot(w3_ref[...], y.astype(jnp.bfloat16),
                preferred_element_type=jnp.float32)                     # (Cout, B*HW)
    y = _gn_relu(y, g3_ref[...], b3_ref[...], agg_out, cpg_out, B, HW)

    # lane-dense store: (Cout, B*HW), B*HW a multiple of 128
    o_ref[...] = y.astype(o_ref.dtype)


def channel_compression(x_nchw, params, *, batch_tile=8):
    """x_nchw: (N, C_in, H, W) float32. Returns (N, C_out, H, W)."""
    w1, g1, b1, w2, g2, b2, w3, g3, b3 = params
    n, cin, h, w = x_nchw.shape
    c1 = w1.shape[1]
    cout = w3.shape[1]
    groups_mid = min(32, c1 // 4)
    groups_out = min(32, cout // 4)
    hw = h * w
    assert c1 % groups_mid == 0 and cout % groups_out == 0
    assert hw % 128 == 0, "H*W must be a multiple of 128 for lane-dense tiles"
    # TODO(synk): pad H*W to a multiple of 128 (masking GN denominators and taps) for
    # production shapes that violate the assert above.

    B = max(1, min(batch_tile, n))           # samples per grid step
    n_pad = -(-n // B) * B
    steps = n_pad // B
    lanes = B * hw

    # Channels-first global layout (Cin, N*HW): one XLA transpose pass on input/output;
    # everything inside the kernel is then lane-dense.
    x3 = x_nchw.reshape(n, cin, hw)
    if n_pad != n:
        x3 = jnp.pad(x3, ((0, n_pad - n), (0, 0), (0, 0)))
    x_cf = jnp.transpose(x3, (1, 0, 2)).reshape(cin, n_pad * hw)

    # One-off weight re-layout (bf16 for the MXU operands).
    w1t = jnp.transpose(w1)                                             # (C1, Cin) f32
    w2g = jnp.stack([jnp.transpose(w2[ky].reshape(3 * c1, c1))
                     for ky in range(3)]).astype(jnp.bfloat16)          # (3, C1, 3*C1)
    w3t = jnp.transpose(w3).astype(jnp.bfloat16)                        # (Cout, C1)
    g1c, b1c = g1.reshape(c1, 1), b1.reshape(c1, 1)
    g2c, b2c = g2.reshape(c1, 1), b2.reshape(c1, 1)
    g3c, b3c = g3.reshape(cout, 1), b3.reshape(cout, 1)

    # 3x3 boundary masks for the 8 non-center taps (hoisted, tiled across B samples).
    pos = jnp.arange(hw)
    hh, ww = pos // w, pos % w
    rows = []
    for dy in (-1, 0, 1):
        for dx in (-1, 0, 1):
            if dy == 0 and dx == 0:
                continue
            valid = jnp.ones((hw,), jnp.bool_)
            if dy < 0:
                valid = valid & (hh >= -dy)
            if dy > 0:
                valid = valid & (hh < h - dy)
            if dx < 0:
                valid = valid & (ww >= -dx)
            if dx > 0:
                valid = valid & (ww < w - dx)
            rows.append(valid)
    mask = jnp.tile(jnp.stack(rows).astype(jnp.float32), (1, B))        # (8, B*HW)

    agg_mid = _make_agg(c1, groups_mid)
    agg_out = _make_agg(cout, groups_out)

    kernel = functools.partial(cc_kernel, H=h, W=w, B=B,
                               groups_mid=groups_mid, groups_out=groups_out)

    flops = int(2 * n_pad * hw * (cin * c1 + 9 * c1 * c1 + c1 * cout))
    bytes_accessed = int(4 * n_pad * hw * (cin + cout)
                         + 2 * (9 * c1 * c1 + cout * c1) + 4 * c1 * cin)
    vmem_est = (4 * lanes * (2 * cin + 2 * cout + 8 + 5 * c1)       # blocks + f32 temps
                + 2 * lanes * 3 * c1                                # bf16 tap-group col
                + 4 * (c1 * cin + c1 * c1 + cout * cout + 4 * (c1 + cout))
                + 2 * (9 * c1 * c1 + cout * c1))
    vmem_limit = int(min(100 * 1024 * 1024, max(32 * 1024 * 1024, 2 * vmem_est)))

    const2 = lambda i: (0, 0)

    out_flat = pl.pallas_call(
        kernel,
        out_shape=jax.ShapeDtypeStruct((cout, n_pad * hw), jnp.float32),
        grid_spec=pltpu.PrefetchScalarGridSpec(
            num_scalar_prefetch=0,
            grid=(steps,),
            in_specs=[
                pl.BlockSpec((cin, lanes), lambda i: (0, i)),           # x (channels-first)
                pl.BlockSpec((c1, cin), const2),                        # w1t
                pl.BlockSpec((c1, 1), const2),                          # gamma1
                pl.BlockSpec((c1, 1), const2),                          # beta1
                pl.BlockSpec((3, c1, 3 * c1), lambda i: (0, 0, 0)),     # w2 (per-dy groups)
                pl.BlockSpec((c1, 1), const2),                          # gamma2
                pl.BlockSpec((c1, 1), const2),                          # beta2
                pl.BlockSpec((cout, c1), const2),                       # w3t
                pl.BlockSpec((cout, 1), const2),                        # gamma3
                pl.BlockSpec((cout, 1), const2),                        # beta3
                pl.BlockSpec((8, lanes), const2),                       # boundary masks
                pl.BlockSpec((c1, c1), const2),                         # agg (mid)
                pl.BlockSpec((cout, cout), const2),                     # agg (out)
            ],
            out_specs=pl.BlockSpec((cout, lanes), lambda i: (0, i)),
        ),
        compiler_params=pltpu.CompilerParams(
            dimension_semantics=("parallel",),       # independent batch tiles
            vmem_limit_bytes=vmem_limit),
        cost_estimate=pl.CostEstimate(
            flops=flops,
            transcendentals=int(n_pad * (2 * c1 + cout)),
            bytes_accessed=bytes_accessed),
    )(x_cf, w1t, g1c, b1c, w2g, g2c, b2c, w3t, g3c, b3c, mask, agg_mid, agg_out)
    # TODO(synk): for v7x with tiny N, add a second 'parallel' axis splitting H with a
    # 1-row halo so both TensorCores have work even when steps == 1.

    out = jnp.transpose(out_flat.reshape(cout, n_pad, hw), (1, 0, 2))[:n]
    return out.reshape(n, cout, h, w)


def reference(x_nchw, params):
    """Pure-JAX f32 reference matching PyTorch semantics (for validation)."""
    w1, g1, b1, w2, g2, b2, w3, g3, b3 = params

    def gn_relu(y, gamma, beta, groups):
        n, h, w, c = y.shape
        yg = y.reshape(n, h, w, groups, c // groups)
        mean = yg.mean(axis=(1, 2, 4), keepdims=True)
        var = yg.var(axis=(1, 2, 4), keepdims=True)
        yn = ((yg - mean) / jnp.sqrt(var + EPS)).reshape(n, h, w, c)
        yn = yn * gamma.reshape(1, 1, 1, c) + beta.reshape(1, 1, 1, c)
        return jnp.maximum(yn, 0.0)

    x = jnp.transpose(x_nchw, (0, 2, 3, 1))  # NHWC
    y = jnp.einsum('nhwc,cd->nhwd', x, w1)
    y = gn_relu(y, g1, b1, min(32, w1.shape[1] // 4))
    y = jax.lax.conv_general_dilated(
        y, w2, window_strides=(1, 1), padding=((1, 1), (1, 1)),
        dimension_numbers=('NHWC', 'HWIO', 'NHWC'))
    y = gn_relu(y, g2, b2, min(32, w2.shape[3] // 4))
    y = jnp.einsum('nhwc,cd->nhwd', y, w3)
    y = gn_relu(y, g3, b3, min(32, w3.shape[1] // 4))
    return jnp.transpose(y, (0, 3, 1, 2))


def init_params(key, in_c, out_c=64):
    # intermediate_c per the PyTorch module
    intermediate_c = in_c // 4 if in_c >= 256 else 64
    ks = jax.random.split(key, 9)
    w1 = 0.1 * jax.random.normal(ks[0], (in_c, intermediate_c), jnp.float32)
    g1 = 1.0 + 0.1 * jax.random.normal(ks[1], (1, intermediate_c), jnp.float32)
    b1 = 0.1 * jax.random.normal(ks[2], (1, intermediate_c), jnp.float32)
    # 3x3 conv weight stored HWIO: (kh, kw, in, out)
    w2 = 0.05 * jax.random.normal(ks[3], (3, 3, intermediate_c, intermediate_c), jnp.float32)
    g2 = 1.0 + 0.1 * jax.random.normal(ks[4], (1, intermediate_c), jnp.float32)
    b2 = 0.1 * jax.random.normal(ks[5], (1, intermediate_c), jnp.float32)
    w3 = 0.1 * jax.random.normal(ks[6], (intermediate_c, out_c), jnp.float32)
    g3 = 1.0 + 0.1 * jax.random.normal(ks[7], (1, out_c), jnp.float32)
    b3 = 0.1 * jax.random.normal(ks[8], (1, out_c), jnp.float32)
    return (w1, g1, b1, w2, g2, b2, w3, g3, b3)


if __name__ == "__main__":
    key = jax.random.PRNGKey(0)
    kx, kp = jax.random.split(key)

    N, IN_C, H, W = 2, 4, 16, 16
    OUT_C = 64
    x = jax.random.normal(kx, (N, IN_C, H, W), jnp.float32)
    params = init_params(kp, IN_C, OUT_C)

    out = channel_compression(x, params)
    out = jax.block_until_ready(out)

    ref = jax.block_until_ready(reference(x, params))
    assert out.shape == (N, OUT_C, H, W), out.shape
    # Kernel runs its matmuls on the MXU in bf16 (f32 accumulate, f32 GroupNorm);
    # the reference is full f32, so the comparison tolerance is bf16-level.
    assert jnp.allclose(out, ref, atol=5e-2, rtol=5e-2), (
        float(jnp.max(jnp.abs(out - ref))))

    print("KERNEL_OK")
</pallas_src>

<mosaic_0001>
module attributes {stable_mosaic.version = 11 : i64} {
  func.func @cc_kernel(%arg0: i32, %arg1: memref<4x512xf32, #tpu.memory_space<vmem>>, %arg2: memref<64x4xf32, #tpu.memory_space<vmem>>, %arg3: memref<64x1xf32, #tpu.memory_space<vmem>>, %arg4: memref<64x1xf32, #tpu.memory_space<vmem>>, %arg5: memref<3x64x192xbf16, #tpu.memory_space<vmem>>, %arg6: memref<64x1xf32, #tpu.memory_space<vmem>>, %arg7: memref<64x1xf32, #tpu.memory_space<vmem>>, %arg8: memref<64x64xbf16, #tpu.memory_space<vmem>>, %arg9: memref<64x1xf32, #tpu.memory_space<vmem>>, %arg10: memref<64x1xf32, #tpu.memory_space<vmem>>, %arg11: memref<8x512xf32, #tpu.memory_space<vmem>>, %arg12: memref<64x64xf32, #tpu.memory_space<vmem>>, %arg13: memref<64x64xf32, #tpu.memory_space<vmem>>, %arg14: memref<64x512xf32, #tpu.memory_space<vmem>>) attributes {dimension_semantics = [#tpu.dimension_semantics<parallel>], iteration_bounds = array<i64: 1>, scalar_prefetch = 0 : i64, scratch_operands = 0 : i64, tpu.core_type = #tpu.core_type<tc>, window_params = [{transform_indices = @transform_0, window_bounds = array<i64: 4, 512>}, {pipeline_mode = #tpu.pipeline_mode<synchronous>, transform_indices = @transform_1, window_bounds = array<i64: 64, 4>}, {pipeline_mode = #tpu.pipeline_mode<synchronous>, transform_indices = @transform_2, window_bounds = array<i64: 64, 1>}, {pipeline_mode = #tpu.pipeline_mode<synchronous>, transform_indices = @transform_3, window_bounds = array<i64: 64, 1>}, {pipeline_mode = #tpu.pipeline_mode<synchronous>, transform_indices = @transform_4, window_bounds = array<i64: 3, 64, 192>}, {pipeline_mode = #tpu.pipeline_mode<synchronous>, transform_indices = @transform_5, window_bounds = array<i64: 64, 1>}, {pipeline_mode = #tpu.pipeline_mode<synchronous>, transform_indices = @transform_6, window_bounds = array<i64: 64, 1>}, {pipeline_mode = #tpu.pipeline_mode<synchronous>, transform_indices = @transform_7, window_bounds = array<i64: 64, 64>}, {pipeline_mode = #tpu.pipeline_mode<synchronous>, transform_indices = @transform_8, window_bounds = array<i64: 64, 1>}, {pipeline_mode = #tpu.pipeline_mode<synchronous>, transform_indices = @transform_9, window_bounds = array<i64: 64, 1>}, {pipeline_mode = #tpu.pipeline_mode<synchronous>, transform_indices = @transform_10, window_bounds = array<i64: 8, 512>}, {pipeline_mode = #tpu.pipeline_mode<synchronous>, transform_indices = @transform_11, window_bounds = array<i64: 64, 64>}, {pipeline_mode = #tpu.pipeline_mode<synchronous>, transform_indices = @transform_12, window_bounds = array<i64: 64, 64>}, {transform_indices = @transform_13, window_bounds = array<i64: 64, 512>}]} {
    %c0 = arith.constant 0 : index
    %c0_0 = arith.constant 0 : index
    %0 = vector.load %arg1[%c0, %c0_0] : memref<4x512xf32, #tpu.memory_space<vmem>>, vector<4x512xf32>
    %c0_1 = arith.constant 0 : index
    %c0_2 = arith.constant 0 : index
    %1 = vector.load %arg11[%c0_1, %c0_2] : memref<8x512xf32, #tpu.memory_space<vmem>>, vector<8x512xf32>
    %c0_3 = arith.constant 0 : index
    %c0_4 = arith.constant 0 : index
    %2 = vector.load %arg12[%c0_3, %c0_4] : memref<64x64xf32, #tpu.memory_space<vmem>>, vector<64x64xf32>
    %c0_5 = arith.constant 0 : index
    %c0_6 = arith.constant 0 : index
    %3 = vector.load %arg13[%c0_5, %c0_6] : memref<64x64xf32, #tpu.memory_space<vmem>>, vector<64x64xf32>
    %c0_7 = arith.constant 0 : index
    %c0_8 = arith.constant 0 : index
    %4 = vector.load %arg2[%c0_7, %c0_8] : memref<64x4xf32, #tpu.memory_space<vmem>>, vector<64x4xf32>
    %5 = vector.extract_strided_slice %4 {offsets = [0, 0], sizes = [64, 1], strides = [1, 1]} : vector<64x4xf32> to vector<64x1xf32>
    %6 = vector.extract_strided_slice %0 {offsets = [0, 0], sizes = [1, 512], strides = [1, 1]} : vector<4x512xf32> to vector<1x512xf32>
    %7 = vector.broadcast %5 : vector<64x1xf32> to vector<64x512xf32>
    %8 = vector.broadcast %6 : vector<1x512xf32> to vector<64x512xf32>
    %9 = arith.mulf %7, %8 : vector<64x512xf32>
    %10 = vector.extract_strided_slice %4 {offsets = [0, 1], sizes = [64, 1], strides = [1, 1]} : vector<64x4xf32> to vector<64x1xf32>
    %11 = vector.extract_strided_slice %0 {offsets = [1, 0], sizes = [1, 512], strides = [1, 1]} : vector<4x512xf32> to vector<1x512xf32>
    %12 = vector.broadcast %10 : vector<64x1xf32> to vector<64x512xf32>
    %13 = vector.broadcast %11 : vector<1x512xf32> to vector<64x512xf32>
    %14 = arith.mulf %12, %13 : vector<64x512xf32>
    %15 = arith.addf %9, %14 : vector<64x512xf32>
    %16 = vector.extract_strided_slice %4 {offsets = [0, 2], sizes = [64, 1], strides = [1, 1]} : vector<64x4xf32> to vector<64x1xf32>
    %17 = vector.extract_strided_slice %0 {offsets = [2, 0], sizes = [1, 512], strides = [1, 1]} : vector<4x512xf32> to vector<1x512xf32>
    %18 = vector.broadcast %16 : vector<64x1xf32> to vector<64x512xf32>
    %19 = vector.broadcast %17 : vector<1x512xf32> to vector<64x512xf32>
    %20 = arith.mulf %18, %19 : vector<64x512xf32>
    %21 = arith.addf %15, %20 : vector<64x512xf32>
    %22 = vector.extract_strided_slice %4 {offsets = [0, 3], sizes = [64, 1], strides = [1, 1]} : vector<64x4xf32> to vector<64x1xf32>
    %23 = vector.extract_strided_slice %0 {offsets = [3, 0], sizes = [1, 512], strides = [1, 1]} : vector<4x512xf32> to vector<1x512xf32>
    %24 = vector.broadcast %22 : vector<64x1xf32> to vector<64x512xf32>
    %25 = vector.broadcast %23 : vector<1x512xf32> to vector<64x512xf32>
    %26 = arith.mulf %24, %25 : vector<64x512xf32>
    %27 = arith.addf %21, %26 : vector<64x512xf32>
    %c0_9 = arith.constant 0 : index
    %c0_10 = arith.constant 0 : index
    %28 = vector.load %arg3[%c0_9, %c0_10] : memref<64x1xf32, #tpu.memory_space<vmem>>, vector<64x1xf32>
    %c0_11 = arith.constant 0 : index
    %c0_12 = arith.constant 0 : index
    %29 = vector.load %arg4[%c0_11, %c0_12] : memref<64x1xf32, #tpu.memory_space<vmem>>, vector<64x1xf32>
    %30 = arith.mulf %27, %27 : vector<64x512xf32>
    %31 = vector.extract_strided_slice %27 {offsets = [0, 0], sizes = [64, 256], strides = [1, 1]} : vector<64x512xf32> to vector<64x256xf32>
    %cst = arith.constant dense<0.000000e+00> : vector<64xf32>
    %32 = vector.multi_reduction <add>, %31, %cst [1] : vector<64x256xf32> to vector<64xf32>
    %33 = vector.shape_cast %32 : vector<64xf32> to vector<64x1xf32>
    %34 = vector.extract_strided_slice %27 {offsets = [0, 256], sizes = [64, 256], strides = [1, 1]} : vector<64x512xf32> to vector<64x256xf32>
    %cst_13 = arith.constant dense<0.000000e+00> : vector<64xf32>
    %35 = vector.multi_reduction <add>, %34, %cst_13 [1] : vector<64x256xf32> to vector<64xf32>
    %36 = vector.shape_cast %35 : vector<64xf32> to vector<64x1xf32>
    %37 = vector.extract_strided_slice %30 {offsets = [0, 0], sizes = [64, 256], strides = [1, 1]} : vector<64x512xf32> to vector<64x256xf32>
    %cst_14 = arith.constant dense<0.000000e+00> : vector<64xf32>
    %38 = vector.multi_reduction <add>, %37, %cst_14 [1] : vector<64x256xf32> to vector<64xf32>
    %39 = vector.shape_cast %38 : vector<64xf32> to vector<64x1xf32>
    %40 = vector.extract_strided_slice %30 {offsets = [0, 256], sizes = [64, 256], strides = [1, 1]} : vector<64x512xf32> to vector<64x256xf32>
    %cst_15 = arith.constant dense<0.000000e+00> : vector<64xf32>
    %41 = vector.multi_reduction <add>, %40, %cst_15 [1] : vector<64x256xf32> to vector<64xf32>
    %42 = vector.shape_cast %41 : vector<64xf32> to vector<64x1xf32>
    %43 = tpu.concatenate %33, %36, %39, %42 in 1 : vector<64x1xf32>, vector<64x1xf32>, vector<64x1xf32>, vector<64x1xf32> -> vector<64x4xf32>
    %cst_16 = arith.constant dense<0.000000e+00> : vector<64x4xf32>
    %44 = tpu.matmul %2, %43, %cst_16 {dimension_numbers = #tpu.dot_dimension_numbers<[1], [0], [0], [1], [0, 0, 1, 1], [], []>} : vector<64x64xf32>, vector<64x4xf32>, vector<64x4xf32> -> vector<64x4xf32>
    %cst_17 = arith.constant 9.765625E-4 : f32
    %45 = vector.broadcast %cst_17 : f32 to vector<64x4xf32>
    %46 = arith.mulf %44, %45 : vector<64x4xf32>
    %47 = vector.extract_strided_slice %46 {offsets = [0, 0], sizes = [64, 2], strides = [1, 1]} : vector<64x4xf32> to vector<64x2xf32>
    %48 = vector.extract_strided_slice %46 {offsets = [0, 2], sizes = [64, 2], strides = [1, 1]} : vector<64x4xf32> to vector<64x2xf32>
    %49 = arith.mulf %47, %47 : vector<64x2xf32>
    %50 = arith.subf %48, %49 : vector<64x2xf32>
    %cst_18 = arith.constant 0.000000e+00 : f32
    %51 = vector.broadcast %cst_18 : f32 to vector<64x2xf32>
    %52 = arith.maximumf %50, %51 : vector<64x2xf32>
    %cst_19 = arith.constant 9.99999974E-6 : f32
    %53 = vector.broadcast %cst_19 : f32 to vector<64x2xf32>
    %54 = arith.addf %52, %53 : vector<64x2xf32>
    %55 = math.rsqrt %54 : vector<64x2xf32>
    %56 = vector.broadcast %28 : vector<64x1xf32> to vector<64x2xf32>
    %57 = arith.mulf %55, %56 : vector<64x2xf32>
    %58 = arith.mulf %47, %57 : vector<64x2xf32>
    %59 = vector.broadcast %29 : vector<64x1xf32> to vector<64x2xf32>
    %60 = arith.subf %59, %58 : vector<64x2xf32>
    %61 = vector.extract_strided_slice %27 {offsets = [0, 0], sizes = [64, 256], strides = [1, 1]} : vector<64x512xf32> to vector<64x256xf32>
    %62 = vector.extract_strided_slice %57 {offsets = [0, 0], sizes = [64, 1], strides = [1, 1]} : vector<64x2xf32> to vector<64x1xf32>
    %63 = vector.broadcast %62 : vector<64x1xf32> to vector<64x256xf32>
    %64 = arith.mulf %61, %63 : vector<64x256xf32>
    %65 = vector.extract_strided_slice %60 {offsets = [0, 0], sizes = [64, 1], strides = [1, 1]} : vector<64x2xf32> to vector<64x1xf32>
    %66 = vector.broadcast %65 : vector<64x1xf32> to vector<64x256xf32>
    %67 = arith.addf %64, %66 : vector<64x256xf32>
    %cst_20 = arith.constant 0.000000e+00 : f32
    %68 = vector.broadcast %cst_20 : f32 to vector<64x256xf32>
    %69 = arith.maximumf %67, %68 : vector<64x256xf32>
    %70 = vector.extract_strided_slice %27 {offsets = [0, 256], sizes = [64, 256], strides = [1, 1]} : vector<64x512xf32> to vector<64x256xf32>
    %71 = vector.extract_strided_slice %57 {offsets = [0, 1], sizes = [64, 1], strides = [1, 1]} : vector<64x2xf32> to vector<64x1xf32>
    %72 = vector.broadcast %71 : vector<64x1xf32> to vector<64x256xf32>
    %73 = arith.mulf %70, %72 : vector<64x256xf32>
    %74 = vector.extract_strided_slice %60 {offsets = [0, 1], sizes = [64, 1], strides = [1, 1]} : vector<64x2xf32> to vector<64x1xf32>
    %75 = vector.broadcast %74 : vector<64x1xf32> to vector<64x256xf32>
    %76 = arith.addf %73, %75 : vector<64x256xf32>
    %cst_21 = arith.constant 0.000000e+00 : f32
    %77 = vector.broadcast %cst_21 : f32 to vector<64x256xf32>
    %78 = arith.maximumf %76, %77 : vector<64x256xf32>
    %79 = tpu.concatenate %69, %78 in 1 : vector<64x256xf32>, vector<64x256xf32> -> vector<64x512xf32>
    %c17_i32 = arith.constant 17 : i32
    %80 = tpu.dynamic_rotate %79 by %c17_i32 dim 1 : vector<64x512xf32>, i32 -> vector<64x512xf32>
    %81 = vector.extract_strided_slice %1 {offsets = [0, 0], sizes = [1, 512], strides = [1, 1]} : vector<8x512xf32> to vector<1x512xf32>
    %82 = vector.broadcast %81 : vector<1x512xf32> to vector<64x512xf32>
    %83 = arith.mulf %80, %82 : vector<64x512xf32>
    %84 = arith.truncf %83 : vector<64x512xf32> to vector<64x512xbf16>
    %c16_i32 = arith.constant 16 : i32
    %85 = tpu.dynamic_rotate %79 by %c16_i32 dim 1 : vector<64x512xf32>, i32 -> vector<64x512xf32>
    %86 = vector.extract_strided_slice %1 {offsets = [1, 0], sizes = [1, 512], strides = [1, 1]} : vector<8x512xf32> to vector<1x512xf32>
    %87 = vector.broadcast %86 : vector<1x512xf32> to vector<64x512xf32>
    %88 = arith.mulf %85, %87 : vector<64x512xf32>
    %89 = arith.truncf %88 : vector<64x512xf32> to vector<64x512xbf16>
    %c15_i32 = arith.constant 15 : i32
    %90 = tpu.dynamic_rotate %79 by %c15_i32 dim 1 : vector<64x512xf32>, i32 -> vector<64x512xf32>
    %91 = vector.extract_strided_slice %1 {offsets = [2, 0], sizes = [1, 512], strides = [1, 1]} : vector<8x512xf32> to vector<1x512xf32>
    %92 = vector.broadcast %91 : vector<1x512xf32> to vector<64x512xf32>
    %93 = arith.mulf %90, %92 : vector<64x512xf32>
    %94 = arith.truncf %93 : vector<64x512xf32> to vector<64x512xbf16>
    %95 = tpu.concatenate %84, %89, %94 in 0 : vector<64x512xbf16>, vector<64x512xbf16>, vector<64x512xbf16> -> vector<192x512xbf16>
    %c0_22 = arith.constant 0 : index
    %c0_23 = arith.constant 0 : index
    %c0_24 = arith.constant 0 : index
    %96 = vector.load %arg5[%c0_22, %c0_23, %c0_24] : memref<3x64x192xbf16, #tpu.memory_space<vmem>>, vector<1x64x192xbf16>
    %97 = vector.shape_cast %96 : vector<1x64x192xbf16> to vector<64x192xbf16>
    %cst_25 = arith.constant dense<0.000000e+00> : vector<64x512xf32>
    %98 = tpu.matmul %97, %95, %cst_25 {dimension_numbers = #tpu.dot_dimension_numbers<[1], [0], [0], [1], [0, 0, 1, 1], [], []>} : vector<64x192xbf16>, vector<192x512xbf16>, vector<64x512xf32> -> vector<64x512xf32>
    %c1_i32 = arith.constant 1 : i32
    %99 = tpu.dynamic_rotate %79 by %c1_i32 dim 1 : vector<64x512xf32>, i32 -> vector<64x512xf32>
    %100 = vector.extract_strided_slice %1 {offsets = [3, 0], sizes = [1, 512], strides = [1, 1]} : vector<8x512xf32> to vector<1x512xf32>
    %101 = vector.broadcast %100 : vector<1x512xf32> to vector<64x512xf32>
    %102 = arith.mulf %99, %101 : vector<64x512xf32>
    %103 = arith.truncf %102 : vector<64x512xf32> to vector<64x512xbf16>
    %104 = arith.truncf %79 : vector<64x512xf32> to vector<64x512xbf16>
    %c511_i32 = arith.constant 511 : i32
    %105 = tpu.dynamic_rotate %79 by %c511_i32 dim 1 : vector<64x512xf32>, i32 -> vector<64x512xf32>
    %106 = vector.extract_strided_slice %1 {offsets = [4, 0], sizes = [1, 512], strides = [1, 1]} : vector<8x512xf32> to vector<1x512xf32>
    %107 = vector.broadcast %106 : vector<1x512xf32> to vector<64x512xf32>
    %108 = arith.mulf %105, %107 : vector<64x512xf32>
    %109 = arith.truncf %108 : vector<64x512xf32> to vector<64x512xbf16>
    %110 = tpu.concatenate %103, %104, %109 in 0 : vector<64x512xbf16>, vector<64x512xbf16>, vector<64x512xbf16> -> vector<192x512xbf16>
    %c1 = arith.constant 1 : index
    %c0_26 = arith.constant 0 : index
    %c0_27 = arith.constant 0 : index
    %111 = vector.load %arg5[%c1, %c0_26, %c0_27] : memref<3x64x192xbf16, #tpu.memory_space<vmem>>, vector<1x64x192xbf16>
    %112 = vector.shape_cast %111 : vector<1x64x192xbf16> to vector<64x192xbf16>
    %cst_28 = arith.constant dense<0.000000e+00> : vector<64x512xf32>
    %113 = tpu.matmul %112, %110, %cst_28 {dimension_numbers = #tpu.dot_dimension_numbers<[1], [0], [0], [1], [0, 0, 1, 1], [], []>} : vector<64x192xbf16>, vector<192x512xbf16>, vector<64x512xf32> -> vector<64x512xf32>
    %114 = arith.addf %98, %113 : vector<64x512xf32>
    %c497_i32 = arith.constant 497 : i32
    %115 = tpu.dynamic_rotate %79 by %c497_i32 dim 1 : vector<64x512xf32>, i32 -> vector<64x512xf32>
    %116 = vector.extract_strided_slice %1 {offsets = [5, 0], sizes = [1, 512], strides = [1, 1]} : vector<8x512xf32> to vector<1x512xf32>
    %117 = vector.broadcast %116 : vector<1x512xf32> to vector<64x512xf32>
    %118 = arith.mulf %115, %117 : vector<64x512xf32>
    %119 = arith.truncf %118 : vector<64x512xf32> to vector<64x512xbf16>
    %c496_i32 = arith.constant 496 : i32
    %120 = tpu.dynamic_rotate %79 by %c496_i32 dim 1 : vector<64x512xf32>, i32 -> vector<64x512xf32>
    %121 = vector.extract_strided_slice %1 {offsets = [6, 0], sizes = [1, 512], strides = [1, 1]} : vector<8x512xf32> to vector<1x512xf32>
    %122 = vector.broadcast %121 : vector<1x512xf32> to vector<64x512xf32>
    %123 = arith.mulf %120, %122 : vector<64x512xf32>
    %124 = arith.truncf %123 : vector<64x512xf32> to vector<64x512xbf16>
    %c495_i32 = arith.constant 495 : i32
    %125 = tpu.dynamic_rotate %79 by %c495_i32 dim 1 : vector<64x512xf32>, i32 -> vector<64x512xf32>
    %126 = vector.extract_strided_slice %1 {offsets = [7, 0], sizes = [1, 512], strides = [1, 1]} : vector<8x512xf32> to vector<1x512xf32>
    %127 = vector.broadcast %126 : vector<1x512xf32> to vector<64x512xf32>
    %128 = arith.mulf %125, %127 : vector<64x512xf32>
    %129 = arith.truncf %128 : vector<64x512xf32> to vector<64x512xbf16>
    %130 = tpu.concatenate %119, %124, %129 in 0 : vector<64x512xbf16>, vector<64x512xbf16>, vector<64x512xbf16> -> vector<192x512xbf16>
    %c2 = arith.constant 2 : index
    %c0_29 = arith.constant 0 : index
    %c0_30 = arith.constant 0 : index
    %131 = vector.load %arg5[%c2, %c0_29, %c0_30] : memref<3x64x192xbf16, #tpu.memory_space<vmem>>, vector<1x64x192xbf16>
    %132 = vector.shape_cast %131 : vector<1x64x192xbf16> to vector<64x192xbf16>
    %cst_31 = arith.constant dense<0.000000e+00> : vector<64x512xf32>
    %133 = tpu.matmul %132, %130, %cst_31 {dimension_numbers = #tpu.dot_dimension_numbers<[1], [0], [0], [1], [0, 0, 1, 1], [], []>} : vector<64x192xbf16>, vector<192x512xbf16>, vector<64x512xf32> -> vector<64x512xf32>
    %134 = arith.addf %114, %133 : vector<64x512xf32>
    %c0_32 = arith.constant 0 : index
    %c0_33 = arith.constant 0 : index
    %135 = vector.load %arg6[%c0_32, %c0_33] : memref<64x1xf32, #tpu.memory_space<vmem>>, vector<64x1xf32>
    %c0_34 = arith.constant 0 : index
    %c0_35 = arith.constant 0 : index
    %136 = vector.load %arg7[%c0_34, %c0_35] : memref<64x1xf32, #tpu.memory_space<vmem>>, vector<64x1xf32>
    %137 = arith.mulf %134, %134 : vector<64x512xf32>
    %138 = vector.extract_strided_slice %134 {offsets = [0, 0], sizes = [64, 256], strides = [1, 1]} : vector<64x512xf32> to vector<64x256xf32>
    %cst_36 = arith.constant dense<0.000000e+00> : vector<64xf32>
    %139 = vector.multi_reduction <add>, %138, %cst_36 [1] : vector<64x256xf32> to vector<64xf32>
    %140 = vector.shape_cast %139 : vector<64xf32> to vector<64x1xf32>
    %141 = vector.extract_strided_slice %134 {offsets = [0, 256], sizes = [64, 256], strides = [1, 1]} : vector<64x512xf32> to vector<64x256xf32>
    %cst_37 = arith.constant dense<0.000000e+00> : vector<64xf32>
    %142 = vector.multi_reduction <add>, %141, %cst_37 [1] : vector<64x256xf32> to vector<64xf32>
    %143 = vector.shape_cast %142 : vector<64xf32> to vector<64x1xf32>
    %144 = vector.extract_strided_slice %137 {offsets = [0, 0], sizes = [64, 256], strides = [1, 1]} : vector<64x512xf32> to vector<64x256xf32>
    %cst_38 = arith.constant dense<0.000000e+00> : vector<64xf32>
    %145 = vector.multi_reduction <add>, %144, %cst_38 [1] : vector<64x256xf32> to vector<64xf32>
    %146 = vector.shape_cast %145 : vector<64xf32> to vector<64x1xf32>
    %147 = vector.extract_strided_slice %137 {offsets = [0, 256], sizes = [64, 256], strides = [1, 1]} : vector<64x512xf32> to vector<64x256xf32>
    %cst_39 = arith.constant dense<0.000000e+00> : vector<64xf32>
    %148 = vector.multi_reduction <add>, %147, %cst_39 [1] : vector<64x256xf32> to vector<64xf32>
    %149 = vector.shape_cast %148 : vector<64xf32> to vector<64x1xf32>
    %150 = tpu.concatenate %140, %143, %146, %149 in 1 : vector<64x1xf32>, vector<64x1xf32>, vector<64x1xf32>, vector<64x1xf32> -> vector<64x4xf32>
    %cst_40 = arith.constant dense<0.000000e+00> : vector<64x4xf32>
    %151 = tpu.matmul %2, %150, %cst_40 {dimension_numbers = #tpu.dot_dimension_numbers<[1], [0], [0], [1], [0, 0, 1, 1], [], []>} : vector<64x64xf32>, vector<64x4xf32>, vector<64x4xf32> -> vector<64x4xf32>
    %cst_41 = arith.constant 9.765625E-4 : f32
    %152 = vector.broadcast %cst_41 : f32 to vector<64x4xf32>
    %153 = arith.mulf %151, %152 : vector<64x4xf32>
    %154 = vector.extract_strided_slice %153 {offsets = [0, 0], sizes = [64, 2], strides = [1, 1]} : vector<64x4xf32> to vector<64x2xf32>
    %155 = vector.extract_strided_slice %153 {offsets = [0, 2], sizes = [64, 2], strides = [1, 1]} : vector<64x4xf32> to vector<64x2xf32>
    %156 = arith.mulf %154, %154 : vector<64x2xf32>
    %157 = arith.subf %155, %156 : vector<64x2xf32>
    %cst_42 = arith.constant 0.000000e+00 : f32
    %158 = vector.broadcast %cst_42 : f32 to vector<64x2xf32>
    %159 = arith.maximumf %157, %158 : vector<64x2xf32>
    %cst_43 = arith.constant 9.99999974E-6 : f32
    %160 = vector.broadcast %cst_43 : f32 to vector<64x2xf32>
    %161 = arith.addf %159, %160 : vector<64x2xf32>
    %162 = math.rsqrt %161 : vector<64x2xf32>
    %163 = vector.broadcast %135 : vector<64x1xf32> to vector<64x2xf32>
    %164 = arith.mulf %162, %163 : vector<64x2xf32>
    %165 = arith.mulf %154, %164 : vector<64x2xf32>
    %166 = vector.broadcast %136 : vector<64x1xf32> to vector<64x2xf32>
    %167 = arith.subf %166, %165 : vector<64x2xf32>
    %168 = vector.extract_strided_slice %134 {offsets = [0, 0], sizes = [64, 256], strides = [1, 1]} : vector<64x512xf32> to vector<64x256xf32>
    %169 = vector.extract_strided_slice %164 {offsets = [0, 0], sizes = [64, 1], strides = [1, 1]} : vector<64x2xf32> to vector<64x1xf32>
    %170 = vector.broadcast %169 : vector<64x1xf32> to vector<64x256xf32>
    %171 = arith.mulf %168, %170 : vector<64x256xf32>
    %172 = vector.extract_strided_slice %167 {offsets = [0, 0], sizes = [64, 1], strides = [1, 1]} : vector<64x2xf32> to vector<64x1xf32>
    %173 = vector.broadcast %172 : vector<64x1xf32> to vector<64x256xf32>
    %174 = arith.addf %171, %173 : vector<64x256xf32>
    %cst_44 = arith.constant 0.000000e+00 : f32
    %175 = vector.broadcast %cst_44 : f32 to vector<64x256xf32>
    %176 = arith.maximumf %174, %175 : vector<64x256xf32>
    %177 = vector.extract_strided_slice %134 {offsets = [0, 256], sizes = [64, 256], strides = [1, 1]} : vector<64x512xf32> to vector<64x256xf32>
    %178 = vector.extract_strided_slice %164 {offsets = [0, 1], sizes = [64, 1], strides = [1, 1]} : vector<64x2xf32> to vector<64x1xf32>
    %179 = vector.broadcast %178 : vector<64x1xf32> to vector<64x256xf32>
    %180 = arith.mulf %177, %179 : vector<64x256xf32>
    %181 = vector.extract_strided_slice %167 {offsets = [0, 1], sizes = [64, 1], strides = [1, 1]} : vector<64x2xf32> to vector<64x1xf32>
    %182 = vector.broadcast %181 : vector<64x1xf32> to vector<64x256xf32>
    %183 = arith.addf %180, %182 : vector<64x256xf32>
    %cst_45 = arith.constant 0.000000e+00 : f32
    %184 = vector.broadcast %cst_45 : f32 to vector<64x256xf32>
    %185 = arith.maximumf %183, %184 : vector<64x256xf32>
    %186 = tpu.concatenate %176, %185 in 1 : vector<64x256xf32>, vector<64x256xf32> -> vector<64x512xf32>
    %c0_46 = arith.constant 0 : index
    %c0_47 = arith.constant 0 : index
    %187 = vector.load %arg8[%c0_46, %c0_47] : memref<64x64xbf16, #tpu.memory_space<vmem>>, vector<64x64xbf16>
    %188 = arith.truncf %186 : vector<64x512xf32> to vector<64x512xbf16>
    %cst_48 = arith.constant dense<0.000000e+00> : vector<64x512xf32>
    %189 = tpu.matmul %187, %188, %cst_48 {dimension_numbers = #tpu.dot_dimension_numbers<[1], [0], [0], [1], [0, 0, 1, 1], [], []>} : vector<64x64xbf16>, vector<64x512xbf16>, vector<64x512xf32> -> vector<64x512xf32>
    %c0_49 = arith.constant 0 : index
    %c0_50 = arith.constant 0 : index
    %190 = vector.load %arg9[%c0_49, %c0_50] : memref<64x1xf32, #tpu.memory_space<vmem>>, vector<64x1xf32>
    %c0_51 = arith.constant 0 : index
    %c0_52 = arith.constant 0 : index
    %191 = vector.load %arg10[%c0_51, %c0_52] : memref<64x1xf32, #tpu.memory_space<vmem>>, vector<64x1xf32>
    %192 = arith.mulf %189, %189 : vector<64x512xf32>
    %193 = vector.extract_strided_slice %189 {offsets = [0, 0], sizes = [64, 256], strides = [1, 1]} : vector<64x512xf32> to vector<64x256xf32>
    %cst_53 = arith.constant dense<0.000000e+00> : vector<64xf32>
    %194 = vector.multi_reduction <add>, %193, %cst_53 [1] : vector<64x256xf32> to vector<64xf32>
    %195 = vector.shape_cast %194 : vector<64xf32> to vector<64x1xf32>
    %196 = vector.extract_strided_slice %189 {offsets = [0, 256], sizes = [64, 256], strides = [1, 1]} : vector<64x512xf32> to vector<64x256xf32>
    %cst_54 = arith.constant dense<0.000000e+00> : vector<64xf32>
    %197 = vector.multi_reduction <add>, %196, %cst_54 [1] : vector<64x256xf32> to vector<64xf32>
    %198 = vector.shape_cast %197 : vector<64xf32> to vector<64x1xf32>
    %199 = vector.extract_strided_slice %192 {offsets = [0, 0], sizes = [64, 256], strides = [1, 1]} : vector<64x512xf32> to vector<64x256xf32>
    %cst_55 = arith.constant dense<0.000000e+00> : vector<64xf32>
    %200 = vector.multi_reduction <add>, %199, %cst_55 [1] : vector<64x256xf32> to vector<64xf32>
    %201 = vector.shape_cast %200 : vector<64xf32> to vector<64x1xf32>
    %202 = vector.extract_strided_slice %192 {offsets = [0, 256], sizes = [64, 256], strides = [1, 1]} : vector<64x512xf32> to vector<64x256xf32>
    %cst_56 = arith.constant dense<0.000000e+00> : vector<64xf32>
    %203 = vector.multi_reduction <add>, %202, %cst_56 [1] : vector<64x256xf32> to vector<64xf32>
    %204 = vector.shape_cast %203 : vector<64xf32> to vector<64x1xf32>
    %205 = tpu.concatenate %195, %198, %201, %204 in 1 : vector<64x1xf32>, vector<64x1xf32>, vector<64x1xf32>, vector<64x1xf32> -> vector<64x4xf32>
    %cst_57 = arith.constant dense<0.000000e+00> : vector<64x4xf32>
    %206 = tpu.matmul %3, %205, %cst_57 {dimension_numbers = #tpu.dot_dimension_numbers<[1], [0], [0], [1], [0, 0, 1, 1], [], []>} : vector<64x64xf32>, vector<64x4xf32>, vector<64x4xf32> -> vector<64x4xf32>
    %cst_58 = arith.constant 9.765625E-4 : f32
    %207 = vector.broadcast %cst_58 : f32 to vector<64x4xf32>
    %208 = arith.mulf %206, %207 : vector<64x4xf32>
    %209 = vector.extract_strided_slice %208 {offsets = [0, 0], sizes = [64, 2], strides = [1, 1]} : vector<64x4xf32> to vector<64x2xf32>
    %210 = vector.extract_strided_slice %208 {offsets = [0, 2], sizes = [64, 2], strides = [1, 1]} : vector<64x4xf32> to vector<64x2xf32>
    %211 = arith.mulf %209, %209 : vector<64x2xf32>
    %212 = arith.subf %210, %211 : vector<64x2xf32>
    %cst_59 = arith.constant 0.000000e+00 : f32
    %213 = vector.broadcast %cst_59 : f32 to vector<64x2xf32>
    %214 = arith.maximumf %212, %213 : vector<64x2xf32>
    %cst_60 = arith.constant 9.99999974E-6 : f32
    %215 = vector.broadcast %cst_60 : f32 to vector<64x2xf32>
    %216 = arith.addf %214, %215 : vector<64x2xf32>
    %217 = math.rsqrt %216 : vector<64x2xf32>
    %218 = vector.broadcast %190 : vector<64x1xf32> to vector<64x2xf32>
    %219 = arith.mulf %217, %218 : vector<64x2xf32>
    %220 = arith.mulf %209, %219 : vector<64x2xf32>
    %221 = vector.broadcast %191 : vector<64x1xf32> to vector<64x2xf32>
    %222 = arith.subf %221, %220 : vector<64x2xf32>
    %223 = vector.extract_strided_slice %189 {offsets = [0, 0], sizes = [64, 256], strides = [1, 1]} : vector<64x512xf32> to vector<64x256xf32>
    %224 = vector.extract_strided_slice %219 {offsets = [0, 0], sizes = [64, 1], strides = [1, 1]} : vector<64x2xf32> to vector<64x1xf32>
    %225 = vector.broadcast %224 : vector<64x1xf32> to vector<64x256xf32>
    %226 = arith.mulf %223, %225 : vector<64x256xf32>
    %227 = vector.extract_strided_slice %222 {offsets = [0, 0], sizes = [64, 1], strides = [1, 1]} : vector<64x2xf32> to vector<64x1xf32>
    %228 = vector.broadcast %227 : vector<64x1xf32> to vector<64x256xf32>
    %229 = arith.addf %226, %228 : vector<64x256xf32>
    %cst_61 = arith.constant 0.000000e+00 : f32
    %230 = vector.broadcast %cst_61 : f32 to vector<64x256xf32>
    %231 = arith.maximumf %229, %230 : vector<64x256xf32>
    %232 = vector.extract_strided_slice %189 {offsets = [0, 256], sizes = [64, 256], strides = [1, 1]} : vector<64x512xf32> to vector<64x256xf32>
    %233 = vector.extract_strided_slice %219 {offsets = [0, 1], sizes = [64, 1], strides = [1, 1]} : vector<64x2xf32> to vector<64x1xf32>
    %234 = vector.broadcast %233 : vector<64x1xf32> to vector<64x256xf32>
    %235 = arith.mulf %232, %234 : vector<64x256xf32>
    %236 = vector.extract_strided_slice %222 {offsets = [0, 1], sizes = [64, 1], strides = [1, 1]} : vector<64x2xf32> to vector<64x1xf32>
    %237 = vector.broadcast %236 : vector<64x1xf32> to vector<64x256xf32>
    %238 = arith.addf %235, %237 : vector<64x256xf32>
    %cst_62 = arith.constant 0.000000e+00 : f32
    %239 = vector.broadcast %cst_62 : f32 to vector<64x256xf32>
    %240 = arith.maximumf %238, %239 : vector<64x256xf32>
    %241 = tpu.concatenate %231, %240 in 1 : vector<64x256xf32>, vector<64x256xf32> -> vector<64x512xf32>
    %c0_63 = arith.constant 0 : index
    %c0_64 = arith.constant 0 : index
    %242 = vector.load %arg14[%c0_63, %c0_64] : memref<64x512xf32, #tpu.memory_space<vmem>>, vector<64x512xf32>
    tpu.vector_store %arg14[%c0_63, %c0_64], %241 {strides = array<i32>} : memref<64x512xf32, #tpu.memory_space<vmem>>, vector<64x512xf32>,
    return
  }
  func.func @transform_0(%arg0: i32) -> (i32, i32) {
    %c0_i32 = arith.constant 0 : i32
    %c0_i32_0 = arith.constant 0 : i32
    return %c0_i32, %arg0 : i32, i32
  }
  func.func @transform_1(%arg0: i32) -> (i32, i32) {
    %c0_i32 = arith.constant 0 : i32
    %c0_i32_0 = arith.constant 0 : i32
    %c0_i32_1 = arith.constant 0 : i32
    return %c0_i32, %c0_i32_0 : i32, i32
  }
  func.func @transform_2(%arg0: i32) -> (i32, i32) {
    %c0_i32 = arith.constant 0 : i32
    %c0_i32_0 = arith.constant 0 : i32
    %c0_i32_1 = arith.constant 0 : i32
    return %c0_i32, %c0_i32_0 : i32, i32
  }
  func.func @transform_3(%arg0: i32) -> (i32, i32) {
    %c0_i32 = arith.constant 0 : i32
    %c0_i32_0 = arith.constant 0 : i32
    %c0_i32_1 = arith.constant 0 : i32
    return %c0_i32, %c0_i32_0 : i32, i32
  }
  func.func @transform_4(%arg0: i32) -> (i32, i32, i32) {
    %c0_i32 = arith.constant 0 : i32
    %c0_i32_0 = arith.constant 0 : i32
    %c0_i32_1 = arith.constant 0 : i32
    %c0_i32_2 = arith.constant 0 : i32
    return %c0_i32, %c0_i32_0, %c0_i32_1 : i32, i32, i32
  }
  func.func @transform_5(%arg0: i32) -> (i32, i32) {
    %c0_i32 = arith.constant 0 : i32
    %c0_i32_0 = arith.constant 0 : i32
    %c0_i32_1 = arith.constant 0 : i32
    return %c0_i32, %c0_i32_0 : i32, i32
  }
  func.func @transform_6(%arg0: i32) -> (i32, i32) {
    %c0_i32 = arith.constant 0 : i32
    %c0_i32_0 = arith.constant 0 : i32
    %c0_i32_1 = arith.constant 0 : i32
    return %c0_i32, %c0_i32_0 : i32, i32
  }
  func.func @transform_7(%arg0: i32) -> (i32, i32) {
    %c0_i32 = arith.constant 0 : i32
    %c0_i32_0 = arith.constant 0 : i32
    %c0_i32_1 = arith.constant 0 : i32
    return %c0_i32, %c0_i32_0 : i32, i32
  }
  func.func @transform_8(%arg0: i32) -> (i32, i32) {
    %c0_i32 = arith.constant 0 : i32
    %c0_i32_0 = arith.constant 0 : i32
    %c0_i32_1 = arith.constant 0 : i32
    return %c0_i32, %c0_i32_0 : i32, i32
  }
  func.func @transform_9(%arg0: i32) -> (i32, i32) {
    %c0_i32 = arith.constant 0 : i32
    %c0_i32_0 = arith.constant 0 : i32
    %c0_i32_1 = arith.constant 0 : i32
    return %c0_i32, %c0_i32_0 : i32, i32
  }
  func.func @transform_10(%arg0: i32) -> (i32, i32) {
    %c0_i32 = arith.constant 0 : i32
    %c0_i32_0 = arith.constant 0 : i32
    %c0_i32_1 = arith.constant 0 : i32
    return %c0_i32, %c0_i32_0 : i32, i32
  }
  func.func @transform_11(%arg0: i32) -> (i32, i32) {
    %c0_i32 = arith.constant 0 : i32
    %c0_i32_0 = arith.constant 0 : i32
    %c0_i32_1 = arith.constant 0 : i32
    return %c0_i32, %c0_i32_0 : i32, i32
  }
  func.func @transform_12(%arg0: i32) -> (i32, i32) {
    %c0_i32 = arith.constant 0 : i32
    %c0_i32_0 = arith.constant 0 : i32
    %c0_i32_1 = arith.constant 0 : i32
    return %c0_i32, %c0_i32_0 : i32, i32
  }
  func.func @transform_13(%arg0: i32) -> (i32, i32) {
    %c0_i32 = arith.constant 0 : i32
    %c0_i32_0 = arith.constant 0 : i32
    return %c0_i32, %arg0 : i32, i32
  }
}

</mosaic_0001>

<bundles_post_ra>
// kernel: tpu_custom_call.1
= control target key start
LH: loop header
LB: loop body
LE: loop exit
PB: predicated region body
PF: predicated region fallthrough
CT: control target
= control target key end

     0   :  { %v10454_v2 = vmov 1   ;;  %v10458_v5 = vmov 2   ;;  %s10437_s0 = inlined_call_operand.vmem [shape: f32[4,512], index: 0, kind: input, shape index: {}]   ;;  %s10438_s1 = inlined_call_operand.vmem [shape: f32[64,4], index: 1, kind: input, shape index: {}]   ;;  %s10439_s2 = inlined_call_operand.vmem [shape: f32[64,1], index: 2, kind: input, shape index: {}]   ;;  %s10440_s3 = inlined_call_operand.vmem [shape: f32[64,1], index: 3, kind: input, shape index: {}]   ;;  %s10441_s4 = inlined_call_operand.vmem [shape: bf16[3,64,192], index: 4, kind: input, shape index: {}]   ;;  %s10442_s5 = inlined_call_operand.vmem [shape: f32[64,1], index: 5, kind: input, shape index: {}]   ;;  %s10443_s6 = inlined_call_operand.vmem [shape: f32[64,1], index: 6, kind: input, shape index: {}]   ;;  %s10444_s7 = inlined_call_operand.vmem [shape: bf16[64,64], index: 7, kind: input, shape index: {}]   ;;  %s10445_s8 = inlined_call_operand.vmem [shape: f32[64,1], index: 8, kind: input, shape index: {}]   ;;  %s10446_s9 = inlined_call_operand.vmem [shape: f32[64,1], index: 9, kind: input, shape index: {}]   ;;  %s10447_s10 = inlined_call_operand.vmem [shape: f32[8,512], index: 10, kind: input, shape index: {}]   ;;  %s10448_s11 = inlined_call_operand.vmem [shape: f32[64,64], index: 11, kind: input, shape index: {}]   ;;  %s10449_s12 = inlined_call_operand.vmem [shape: f32[64,64], index: 12, kind: input, shape index: {}]   ;;  %s10450_s13 = inlined_call_operand.hbm [shape: f32[64,512], index: 13, kind: output, shape index: {}]  }
   0x1   :  { %v72_v0 = vld [vmem:[%s10438_s1 + $0x20] sm:$0xff]  ;;  %5369 = vset.pattern.permute.xlu0 %v10454_v2  ;;  %5362 = vset.pattern.permute.xlu1 %v10454_v2  ;;  %v75_v3 = vld [vmem:[%s10438_s1 + $0x38] sm:$0xff]  ;;  %v69_v4 = vld [vmem:[%s10438_s1 + $0x8] sm:$0xff] }
   0x2   :  { %v68_v1 = vld [vmem:[%s10438_s1] sm:$0xff]  ;;  %203 = vperm.xlu0 %5369, %v72_v0   ;;  %v71_v6 = vld [vmem:[%s10438_s1 + $0x18] sm:$0xff]  ;;  %v70_v7 = vld [vmem:[%s10438_s1 + $0x10] sm:$0xff] }
   0x3   :  { %187 = vperm.xlu1 %5362, %v68_v1  }
   0x6   :  { %215 = vperm.xlu0 %5369, %v75_v3  }
   0x7   :  { %191 = vperm.xlu1 %5362, %v69_v4  }
   0xa   :  { %5375 = vset.pattern.permute.xlu0 %v10458_v5 }
   0xb   :  { %5363 = vset.pattern.permute.xlu1 %v10458_v5  ;;  %319 = vperm.xlu0 %5375, %v68_v1  }
   0xc   :  { %323 = vperm.xlu1 %5363, %v69_v4  }
   0xd   :  { %18 = vsyncpa [#allocation3], 0  ;;  %v10452_v8 = vmov 0   ;;  %v74_v9 = vld [vmem:[%s10438_s1 + $0x30] sm:$0xff]  ;;  %v10456_v10 = vmov 3   ;;  %v73_v11 = vld [vmem:[%s10438_s1 + $0x28] sm:$0xff]  ;;  %v10451_v16 = vlaneseq }
   0xe   :  { %v46_v24 = vld [vmem:[%s10437_s0] sm:$0xff]  ;;  %v47_v28 = vld [vmem:[%s10437_s0 + $0x8] sm:$0xff]  ;;  %vm753_vm0 = vcmask 523264   ;;  %vm726_vm1 = vcmask 7168   ;;  %vm735_vm2 = vcmask 15360   ;;  %vm744_vm3 = vcmask 23552  }
   0xf   :  { %331 = vperm.xlu0 %5375, %v71_v6   ;;  %v119_v19 = vshrl.u32 %v10451_v16, 7  ;;  %s5580_s17 = smov 2   ;;  %s5581_s18 = smov 126  }
  0x10   :  { %5364 = vset.pattern.permute.xlu1 %v10452_v8  ;;  %s5582_s19 = smov 1   ;;  %s5583_s20 = smov 127  }
  0x11   :  { %88 = vperm.xlu1 %5364, %v70_v7   ;;  %v5722_v22 = vsub.s32 1, %v119_v19  ;;  %v5724_v23 = vsub.s32 5, %v119_v19  ;;  %v5729_v25 = vsub.s32 2, %v119_v19  ;;  %v5731_v26 = vsub.s32 6, %v119_v19  ;;  %s5584_s21 = smov 17   ;;  %s5585_s22 = smov 16  }
  0x12   :  { %v5738_v29 = vsub.s32 0, %v119_v19  ;;  %v5740_v30 = vsub.s32 4, %v119_v19  ;;  %v5742_v32 = vsub.s32 3, %v119_v19  ;;  %v5744_v33 = vsub.s32 7, %v119_v19  ;;  %s5586_s23 = smov 15   ;;  %s5589_s1 = smov 111  }
  0x13   :  { %343 = vperm.xlu0 %5375, %v74_v9   ;;  %10804 = vst [vmem:[#allocation7_spill] sm:$0xff] %v5722_v22  ;;  %10805 = vst [vmem:[#allocation8_spill] sm:$0xff] %v5724_v23  ;;  %v221_v34 = vrot.slane %v46_v24, %v5722_v22  ;;  %v225_v35 = vrot.slane %v46_v24, %v5724_v23  ;;  %v229_v36 = vrot.slane %v47_v28, %v5722_v22 }
  0x14   :  { %10806 = vst [vmem:[#allocation9_spill] sm:$0xff] %v5729_v25  ;;  %10807 = vst [vmem:[#allocation10_spill] sm:$0xff] %v5731_v26  ;;  %v233_v37 = vrot.slane %v47_v28, %v5724_v23  ;;  %v353_v38 = vrot.slane %v46_v24, %v5729_v25  ;;  %v357_v39 = vrot.slane %v46_v24, %v5731_v26 }
  0x15   :  { %5365 = vset.pattern.permute.xlu1 %v10454_v2  ;;  %10809 = vst [vmem:[#allocation12_spill] sm:$0xff] %v5738_v29  ;;  %10810 = vst [vmem:[#allocation13_spill] sm:$0xff] %v5740_v30  ;;  %v361_v40 = vrot.slane %v47_v28, %v5729_v25  ;;  %v365_v41 = vrot.slane %v47_v28, %v5731_v26  ;;  %v121_v42 = vrot.slane %v46_v24, %v5738_v29 }
  0x16   :  { %195 = vperm.xlu1 %5365, %v70_v7   ;;  %10811 = vst [vmem:[#allocation14_spill] sm:$0xff] %v5742_v32  ;;  %10812 = vst [vmem:[#allocation15_spill] sm:$0xff] %v5744_v33  ;;  %v125_v43 = vrot.slane %v46_v24, %v5740_v30  ;;  %v129_v45 = vrot.slane %v47_v28, %v5738_v29  ;;  %v133_v46 = vrot.slane %v47_v28, %v5740_v30 }
  0x17   :  { %5377 = vset.pattern.permute.xlu0 %v10456_v10  ;;  %v485_v48 = vrot.slane %v46_v24, %v5742_v32  ;;  %v489_v49 = vrot.slane %v46_v24, %v5744_v33  ;;  %v5765_v50 = vrot.slane %v221_v34, %v5722_v22  ;;  %v5768_v51 = vrot.slane %v225_v35, %v5722_v22 }
  0x18   :  { %451 = vperm.xlu0 %5377, %v68_v1   ;;  %v493_v52 = vrot.slane %v47_v28, %v5742_v32  ;;  %v497_v53 = vrot.slane %v47_v28, %v5744_v33  ;;  %v5773_v54 = vrot.slane %v229_v36, %v5722_v22  ;;  %v5776_v55 = vrot.slane %v233_v37, %v5722_v22 }
  0x19   :  { %10813 = vst [vmem:[#allocation16_spill] sm:$0xff] %v5765_v50  ;;  %10814 = vst [vmem:[#allocation17_spill] sm:$0xff] %v5768_v51  ;;  %v5779_v56 = vrot.slane %v353_v38, %v5729_v25  ;;  %v5782_v57 = vrot.slane %v357_v39, %v5729_v25  ;;  %v5785_v58 = vrot.slane %v361_v40, %v5729_v25 }
  0x1a   :  { %199 = vperm.xlu1 %5365, %v71_v6   ;;  %v5788_v59 = vrot.slane %v365_v41, %v5729_v25  ;;  %v5791_v60 = vrot.slane %v121_v42, %v5738_v29  ;;  %v5794_v61 = vrot.slane %v125_v43, %v5738_v29  ;;  %v5799_v63 = vrot.slane %v129_v45, %v5738_v29 }
  0x1b   :  { %10815 = vst [vmem:[#allocation18_spill] sm:$0xff] %v5782_v57  ;;  %10816 = vst [vmem:[#allocation19_spill] sm:$0xff] %v5785_v58 }
  0x1c   :  { %463 = vperm.xlu0 %5377, %v71_v6  }
  0x1e   :  { %5366 = vset.pattern.permute.xlu1 %v10456_v10 }
  0x1f   :  { %455 = vperm.xlu1 %5366, %v69_v4  }
  0x20   :  { %479 = vperm.xlu0 %5377, %v75_v3  }
  0x23   :  { %5367 = vset.pattern.permute.xlu1 %v10458_v5 }
  0x24   :  { %327 = vperm.xlu1 %5367, %v70_v7   ;;  %5380 = vset.pattern.permute.xlu0 %v10452_v8 }
  0x25   :  { %78 = vperm.xlu0 %5380, %v68_v1   ;;  %v5805_v1 = vrot.slane %v485_v48, %v5742_v32 }
  0x28   :  { %5368 = vset.pattern.permute.xlu1 %v10452_v8 }
  0x29   :  { %98 = vperm.xlu1 %5368, %v72_v0   ;;  %83 = vperm.xlu0 %5380, %v69_v4  }
  0x2d   :  { %103 = vperm.xlu1 %5368, %v73_v11   ;;  %93 = vperm.xlu0 %5380, %v71_v6  }
  0x31   :  { %5370 = vset.pattern.permute.xlu1 %v10454_v2  ;;  %108 = vperm.xlu0 %5380, %v74_v9  }
  0x32   :  { %207 = vperm.xlu1 %5370, %v73_v11  }
  0x36   :  { %5371 = vset.pattern.permute.xlu1 %v10456_v10 }
  0x37   :  { %459 = vperm.xlu1 %5371, %v70_v7  }
  0x3b   :  { %5372 = vset.pattern.permute.xlu1 %v10458_v5 }
  0x3c   :  { %335 = vperm.xlu1 %5372, %v72_v0  }
  0x40   :  { %339 = vperm.xlu1 %5372, %v73_v11  }
  0x44   :  { %5373 = vset.pattern.permute.xlu1 %v10452_v8 }
  0x45   :  { %113 = vperm.xlu1 %5373, %v75_v3  }
  0x49   :  { %5374 = vset.pattern.permute.xlu1 %v10454_v2 }
  0x4a   :  { %211 = vperm.xlu1 %5374, %v74_v9  }
  0x4e   :  { %5376 = vset.pattern.permute.xlu1 %v10456_v10 }
  0x4f   :  { %467 = vperm.xlu1 %5376, %v72_v0   ;;  %v5802_v0 = vrot.slane %v133_v46, %v5738_v29 }
  0x53   :  { %471 = vperm.xlu1 %5376, %v73_v11   ;;  %v5818_v11 = vrot.slane %v497_v53, %v5742_v32 }
  0x57   :  { %5378 = vset.pattern.permute.xlu1 %v10458_v5 }
  0x58   :  { %347 = vperm.xlu1 %5378, %v75_v3   ;;  %v5808_v3 = vrot.slane %v489_v49, %v5742_v32 }
  0x5c   :  { %5379 = vset.pattern.permute.xlu1 %v10456_v10 }
  0x5d   :  { %475 = vperm.xlu1 %5379, %v74_v9   ;;  %v5815_v9 = vrot.slane %v493_v52, %v5742_v32 }
  0x61   :  { %5381 = vset.pattern.permute.xlu1 %v10452_v8 }
  0x81   :  { %v5707_v13 = vpop.permute.xlu0 %203 }
  0x82   :  { %v188_v12 = vpop.permute.xlu1 %187  ;;  %10802 = vst [vmem:[#allocation5_spill] sm:$0xff] %v5707_v13 }
  0x83   :  { %v254_v4 = vmul.f32 %v5765_v50, %v188_v12  ;;  %v255_v6 = vmul.f32 %v5768_v51, %v188_v12  ;;  %v256_v19 = vmul.f32 %v5773_v54, %v188_v12  ;;  %v257_v24 = vmul.f32 %v5776_v55, %v188_v12 }
  0x85   :  { %v5711_v15 = vpop.permute.xlu0 %215 }
  0x86   :  { %v5709_v14 = vpop.permute.xlu1 %191  ;;  %10803 = vst [vmem:[#allocation6_spill] sm:$0xff] %v5711_v15 }
  0x87   :  { %v258_v28 = vmul.f32 %v5765_v50, %v5709_v14  ;;  %v259_v34 = vmul.f32 %v5768_v51, %v5709_v14  ;;  %v260_v35 = vmul.f32 %v5773_v54, %v5709_v14  ;;  %v261_v36 = vmul.f32 %v5776_v55, %v5709_v14 }
  0x8a   :  { %v5713_v17 = vpop.permute.xlu0 %319 }
  0x8b   :  { %v5715_v18 = vpop.permute.xlu1 %323  ;;  %v386_v37 = vmul.f32 %v5779_v56, %v5713_v17  ;;  %v387_v38 = vmul.f32 %v5782_v57, %v5713_v17  ;;  %v388_v12 = vmul.f32 %v5785_v58, %v5713_v17  ;;  %v389_v40 = vmul.f32 %v5788_v59, %v5713_v17 }
  0x8c   :  { %v390_v14 = vmul.f32 %v5779_v56, %v5715_v18  ;;  %v391_v43 = vmul.f32 %v5782_v57, %v5715_v18  ;;  %v392_v45 = vmul.f32 %v5785_v58, %v5715_v18  ;;  %v393_v46 = vmul.f32 %v5788_v59, %v5715_v18 }
  0x8e   :  { %v5718_v20 = vpop.permute.xlu0 %331 }
  0x8f   :  { %v5860_v16 = vmul.f32 %v5779_v56, %v5718_v20  ;;  %v5864_v8 = vmul.f32 %v5782_v57, %v5718_v20  ;;  %v5868_v18 = vmul.f32 %v5785_v58, %v5718_v20  ;;  %v5872_v2 = vmul.f32 %v5788_v59, %v5718_v20 }
  0x90   :  { %v5720_v21 = vpop.permute.xlu1 %88 }
  0x91   :  { %v162_v48 = vmul.f32 %v5791_v60, %v5720_v21  ;;  %v163_v17 = vmul.f32 %v5794_v61, %v5720_v21  ;;  %v165_v10 = vmul.f32 %v5802_v0, %v5720_v21 }
  0x92   :  { %v5733_v27 = vpop.permute.xlu0 %343 }
  0x93   :  { %10808 = vst [vmem:[#allocation11_spill] sm:$0xff] %v5733_v27 }
  0x95   :  { %v196_v31 = vpop.permute.xlu1 %195 }
  0x96   :  { %v262_v41 = vmul.f32 %v5765_v50, %v196_v31  ;;  %v263_v42 = vmul.f32 %v5768_v51, %v196_v31  ;;  %v264_v49 = vmul.f32 %v5773_v54, %v196_v31  ;;  %v265_v52 = vmul.f32 %v5776_v55, %v196_v31 }
  0x97   :  { %v5756_v44 = vpop.permute.xlu0 %451  ;;  %v164_v31 = vmul.f32 %v5799_v63, %v5720_v21 }
  0x98   :  { %v5878_v33 = vadd.f32 %v262_v41, %v162_v48  ;;  %v5880_v26 = vadd.f32 %v263_v42, %v163_v17  ;;  %v518_v29 = vmul.f32 %v5805_v1, %v5756_v44  ;;  %v519_v30 = vmul.f32 %v5808_v3, %v5756_v44 }
  0x99   :  { %v5760_v47 = vpop.permute.xlu1 %199  ;;  %v5890_v21 = vadd.f32 %v264_v49, %v164_v31  ;;  %v5892_v41 = vadd.f32 %v265_v52, %v165_v10  ;;  %v520_v13 = vmul.f32 %v5815_v9, %v5756_v44  ;;  %v521_v10 = vmul.f32 %v5818_v11, %v5756_v44 }
  0x9a   :  { %v266_v27 = vmul.f32 %v5765_v50, %v5760_v47  ;;  %v268_v44 = vmul.f32 %v5773_v54, %v5760_v47 }
  0x9b   :  { %v5796_v62 = vpop.permute.xlu0 %463  ;;  %10818 = vst [vmem:[#allocation21_spill] sm:$0xff] %v5892_v41 }
  0x9e   :  { %v5812_v7 = vpop.permute.xlu1 %455 }
  0x9f   :  { %v5834_v39 = vpop.permute.xlu0 %479  ;;  %v522_v41 = vmul.f32 %v5805_v1, %v5812_v7 }
  0xa0   :  { %10817 = vst [vmem:[#allocation20_spill] sm:$0xff] %v5834_v39 }
  0xa3   :  { %v5856_v53 = vpop.permute.xlu1 %327 }
  0xa4   :  { %v79_v5 = vpop.permute.xlu0 %78 }
  0xa5   :  { %v154_v23 = vmul.f32 %v5791_v60, %v79_v5  ;;  %v155_v25 = vmul.f32 %v5794_v61, %v79_v5  ;;  %v156_v22 = vmul.f32 %v5799_v63, %v79_v5  ;;  %v157_v20 = vmul.f32 %v5802_v0, %v79_v5 }
  0xa6   :  { %v267_v5 = vmul.f32 %v5768_v51, %v5760_v47 }
  0xa7   :  { %v286_v48 = vadd.f32 %v254_v4, %v154_v23  ;;  %v287_v17 = vadd.f32 %v255_v6, %v155_v25  ;;  %v288_v32 = vadd.f32 %v256_v19, %v156_v22  ;;  %v289_v39 = vadd.f32 %v257_v24, %v157_v20 }
  0xa8   :  { %v5894_v42 = vpop.permute.xlu1 %98  ;;  %v84_v15 = vpop.permute.xlu0 %83 }
  0xa9   :  { %10819 = vst [vmem:[#allocation22_spill] sm:$0xff] %v5894_v42  ;;  %v158_v49 = vmul.f32 %v5791_v60, %v84_v15  ;;  %v159_v23 = vmul.f32 %v5794_v61, %v84_v15  ;;  %v160_v22 = vmul.f32 %v5799_v63, %v84_v15  ;;  %v161_v25 = vmul.f32 %v5802_v0, %v84_v15 }
  0xaa   :  { %v418_v4 = vadd.f32 %v386_v37, %v286_v48  ;;  %v419_v6 = vadd.f32 %v387_v38, %v287_v17  ;;  %v420_v19 = vadd.f32 %v388_v12, %v288_v32  ;;  %v421_v24 = vadd.f32 %v389_v40, %v289_v39 }
  0xab   :  { %v290_v31 = vadd.f32 %v258_v28, %v158_v49  ;;  %v291_v20 = vadd.f32 %v259_v34, %v159_v23  ;;  %v292_v42 = vadd.f32 %v260_v35, %v160_v22  ;;  %v293_v51 = vadd.f32 %v261_v36, %v161_v25 }
  0xac   :  { %v5908_v52 = vpop.permute.xlu1 %103  ;;  %v94_v50 = vpop.permute.xlu0 %93  ;;  %v523_v15 = vmul.f32 %v5808_v3, %v5812_v7  ;;  %v524_v32 = vmul.f32 %v5815_v9, %v5812_v7  ;;  %v5922_v36 = vadd.f32 %v518_v29, %v418_v4  ;;  %v5924_v38 = vadd.f32 %v519_v30, %v419_v6 }
  0xad   :  { %v166_v37 = vmul.f32 %v5791_v60, %v94_v50  ;;  %v167_v28 = vmul.f32 %v5794_v61, %v94_v50  ;;  %v168_v34 = vmul.f32 %v5799_v63, %v94_v50  ;;  %v169_v35 = vmul.f32 %v5802_v0, %v94_v50 }
  0xae   :  { %10820 = vst [vmem:[#allocation23_spill] sm:$0xff] %v5922_v36  ;;  %10821 = vst [vmem:[#allocation24_spill] sm:$0xff] %v5924_v38  ;;  %v422_v39 = vadd.f32 %v390_v14, %v290_v31  ;;  %v423_v12 = vadd.f32 %v391_v43, %v291_v20  ;;  %v5926_v40 = vadd.f32 %v520_v13, %v420_v19 }
  0xaf   :  { %v5928_v48 = vadd.f32 %v521_v10, %v421_v24  ;;  %v424_v17 = vadd.f32 %v392_v45, %v292_v42  ;;  %v425_v49 = vadd.f32 %v393_v46, %v293_v51  ;;  %v630_v23 = vadd.f32 %v5924_v38, %v5922_v36 }
  0xb0   :  { %10822 = vst [vmem:[#allocation25_spill] sm:$0xff] %v5926_v40  ;;  %v5934_v25 = vadd.f32 %v522_v41, %v422_v39  ;;  %v5936_v50 = vadd.f32 %v523_v15, %v423_v12  ;;  %v298_v29 = vadd.f32 %v266_v27, %v166_v37  ;;  %v394_v30 = vmul.f32 %v5779_v56, %v5856_v53 }
  0xb1   :  { %10823 = vst [vmem:[#allocation26_spill] sm:$0xff] %v5928_v48  ;;  %v5932_v22 = vpop.permute.xlu1 %207  ;;  %v395_v13 = vmul.f32 %v5782_v57, %v5856_v53  ;;  %v396_v14 = vmul.f32 %v5785_v58, %v5856_v53  ;;  %v525_v51 = vmul.f32 %v5818_v11, %v5812_v7  ;;  %v269_v43 = vmul.f32 %v5776_v55, %v5760_v47 }
  0xb2   :  { %10824 = vst [vmem:[#allocation27_spill] sm:$0xff] %v5934_v25  ;;  %10825 = vst [vmem:[#allocation28_spill] sm:$0xff] %v5936_v50  ;;  %v397_v45 = vmul.f32 %v5788_v59, %v5856_v53  ;;  %631 = vadd.xlane.f32.xlu1 %v630_v23  ;;  %v530_v27 = vmul.f32 %v5805_v1, %v5796_v62  ;;  %v531_v46 = vmul.f32 %v5808_v3, %v5796_v62 }
  0xb3   :  { %v633_v41 = vadd.f32 %v5936_v50, %v5934_v25  ;;  %v654_v42 = vadd.f32 %v5928_v48, %v5926_v40  ;;  %v5958_v7 = vadd.f32 %v524_v32, %v424_v17  ;;  %v5960_v10 = vadd.f32 %v525_v51, %v425_v49  ;;  %v10838_v51 = vld [vmem:[#allocation16_spill] sm:$0xff] }
  0xb4   :  { %v299_v47 = vadd.f32 %v267_v5, %v167_v28  ;;  %v430_v53 = vadd.f32 %v5860_v16, %v298_v29  ;;  %v300_v4 = vadd.f32 %v268_v44, %v168_v34  ;;  %v301_v6 = vadd.f32 %v269_v43, %v169_v35 }
  0xb5   :  { %10826 = vst [vmem:[#allocation29_spill] sm:$0xff] %v5958_v7  ;;  %10827 = vst [vmem:[#allocation30_spill] sm:$0xff] %v5960_v10  ;;  %634 = vadd.xlane.f32.xlu0 %v633_v41  ;;  %v657_v24 = vadd.f32 %v5960_v10, %v5958_v7  ;;  %v426_v31 = vadd.f32 %v394_v30, %v5878_v33  ;;  %v427_v20 = vadd.f32 %v395_v13, %v5880_v26  ;;  %v10840_v41 = vld [vmem:[#allocation6_spill] sm:$0xff] }
  0xb6   :  { %v460_v19 = vpop.permute.xlu1 %459  ;;  %v428_v15 = vadd.f32 %v396_v14, %v5890_v21  ;;  %655 = vadd.xlane.f32.xlu1 %v654_v42  ;;  %v431_v32 = vadd.f32 %v5864_v8, %v299_v47  ;;  %v5969_v37 = vadd.f32 %v530_v27, %v430_v53  ;;  %v432_v44 = vadd.f32 %v5868_v18, %v300_v4  ;;  %v10832_v8 = vld [vmem:[#allocation21_spill] sm:$0xff] }
  0xb7   :  { %v526_v16 = vmul.f32 %v5805_v1, %v460_v19  ;;  %v527_v5 = vmul.f32 %v5808_v3, %v460_v19  ;;  %v433_v28 = vadd.f32 %v5872_v2, %v301_v6  ;;  %v528_v34 = vmul.f32 %v5815_v9, %v460_v19  ;;  %v10837_v14 = vld [vmem:[#allocation5_spill] sm:$0xff] }
  0xb8   :  { %10828 = vst [vmem:[#allocation31_spill] sm:$0xff] %v5969_v37  ;;  %v529_v33 = vmul.f32 %v5818_v11, %v460_v19  ;;  %v5977_v26 = vadd.f32 %v531_v46, %v431_v32  ;;  %v429_v39 = vadd.f32 %v397_v45, %v10832_v8  ;;  %v532_v12 = vmul.f32 %v5815_v9, %v5796_v62 }
  0xb9   :  { %v5979_v21 = vadd.f32 %v526_v16, %v426_v31  ;;  %v5981_v35 = vadd.f32 %v527_v5, %v427_v20  ;;  %658 = vadd.xlane.f32.xlu0 %v657_v24  ;;  %v533_v18 = vmul.f32 %v5818_v11, %v5796_v62  ;;  %v5992_v49 = vadd.f32 %v528_v34, %v428_v15  ;;  %v10839_v62 = vld [vmem:[#allocation17_spill] sm:$0xff]  ;;  %v10844_v20 = vld [vmem:[#allocation11_spill] sm:$0xff] }
  0xba   :  { %10829 = vst [vmem:[#allocation32_spill] sm:$0xff] %v5977_v26  ;;  %v5994_v23 = vadd.f32 %v529_v33, %v429_v39  ;;  %v639_v29 = vadd.f32 %v5977_v26, %v5969_v37  ;;  %v5998_v30 = vadd.f32 %v532_v12, %v432_v44  ;;  %v6004_v43 = vmul.f32 %v10838_v51, %v10837_v14  ;;  %v10849_v33 = vld [vmem:[#allocation22_spill] sm:$0xff] }
  0xbb   :  { %10830 = vst [vmem:[#allocation33_spill] sm:$0xff] %v5979_v21  ;;  %10831 = vst [vmem:[#allocation34_spill] sm:$0xff] %v5981_v35  ;;  %v5988_v2 = vpop.permute.xlu1 %335  ;;  %v636_v17 = vadd.f32 %v5981_v35, %v5979_v21  ;;  %v6000_v13 = vadd.f32 %v533_v18, %v433_v28  ;;  %v6008_v45 = vmul.f32 %v10839_v62, %v10837_v14 }
  0xbc   :  { %10833 = vst [vmem:[#allocation21_spill] sm:$0xff] %v5992_v49  ;;  %10834 = vst [vmem:[#allocation35_spill] sm:$0xff] %v5994_v23  ;;  %v6012_v27 = vmul.f32 %v5773_v54, %v10837_v14  ;;  %v6016_v46 = vmul.f32 %v5776_v55, %v10837_v14  ;;  %v6020_v42 = vmul.f32 %v10838_v51, %v10840_v41 }
  0xbd   :  { %10835 = vst [vmem:[#allocation36_spill] sm:$0xff] %v5998_v30  ;;  %10836 = vst [vmem:[#allocation37_spill] sm:$0xff] %v6000_v13  ;;  %637 = vadd.xlane.f32.xlu1 %v636_v17  ;;  %v6024_v47 = vmul.f32 %v10839_v62, %v10840_v41  ;;  %v6028_v53 = vmul.f32 %v5773_v54, %v10840_v41  ;;  %640 = vadd.xlane.f32.xlu0 %v639_v29  ;;  %v109_v29 = vpop.permute.xlu0 %108 }
  0xbe   :  { %v6032_v4 = vmul.f32 %v5776_v55, %v10840_v41  ;;  %v660_v19 = vadd.f32 %v5994_v23, %v5992_v49  ;;  %v598_v24 = vmul.f32 %v5922_v36, %v5922_v36  ;;  %v599_v31 = vmul.f32 %v5924_v38, %v5924_v38 }
  0xbf   :  { %10841 = vst [vmem:[#allocation5_spill] sm:$0xff] %v6024_v47  ;;  %10842 = vst [vmem:[#allocation16_spill] sm:$0xff] %v6028_v53  ;;  %v340_v6 = vpop.permute.xlu1 %339  ;;  %v6042_v15 = vmul.f32 %v5779_v56, %v10844_v20  ;;  %v663_v32 = vadd.f32 %v6000_v13, %v5998_v30  ;;  %v602_v16 = vmul.f32 %v5934_v25, %v5934_v25 }
  0xc0   :  { %10843 = vst [vmem:[#allocation17_spill] sm:$0xff] %v6032_v4  ;;  %v603_v5 = vmul.f32 %v5936_v50, %v5936_v50  ;;  %v6052_v44 = vmul.f32 %v5782_v57, %v10844_v20  ;;  %v6056_v28 = vmul.f32 %v5785_v58, %v10844_v20  ;;  %v6060_v34 = vmul.f32 %v5788_v59, %v10844_v20 }
  0xc1   :  { %10845 = vst [vmem:[#allocation6_spill] sm:$0xff] %v6042_v15  ;;  %v170_v8 = vmul.f32 %v5791_v60, %v10849_v33  ;;  %661 = vadd.xlane.f32.xlu1 %v660_v19  ;;  %v171_v39 = vmul.f32 %v5794_v61, %v10849_v33  ;;  %v172_v12 = vmul.f32 %v5799_v63, %v10849_v33 }
  0xc2   :  { %10846 = vst [vmem:[#allocation11_spill] sm:$0xff] %v6052_v44  ;;  %10847 = vst [vmem:[#allocation38_spill] sm:$0xff] %v6056_v28  ;;  %v173_v18 = vmul.f32 %v5802_v0, %v10849_v33  ;;  %v174_v17 = vmul.f32 %v5791_v60, %v5908_v52  ;;  %664 = vadd.xlane.f32.xlu0 %v663_v32  ;;  %v175_v14 = vmul.f32 %v5794_v61, %v5908_v52 }
  0xc3   :  { %10848 = vst [vmem:[#allocation39_spill] sm:$0xff] %v6060_v34  ;;  %v678_v41 = vadd.f32 %v599_v31, %v598_v24  ;;  %v600_v19 = vmul.f32 %v5926_v40, %v5926_v40  ;;  %v601_v20 = vmul.f32 %v5928_v48, %v5928_v48  ;;  %v6080_v36 = vmul.f32 %v5799_v63, %v5908_v52 }
  0xc4   :  { %v6082_v33 = vpop.permute.xlu1 %113  ;;  %v681_v38 = vadd.f32 %v603_v5, %v602_v16  ;;  %v604_v32 = vmul.f32 %v5958_v7, %v5958_v7  ;;  %v605_v50 = vmul.f32 %v5960_v10, %v5960_v10  ;;  %v6090_v24 = vmul.f32 %v5802_v0, %v5908_v52 }
  0xc5   :  { %v6093_v31 = vmul.f32 %v5791_v60, %v109_v29  ;;  %v6096_v48 = vmul.f32 %v5794_v61, %v109_v29  ;;  %v6099_v40 = vmul.f32 %v5799_v63, %v109_v29  ;;  %679 = vadd.xlane.f32.xlu1 %v678_v41  ;;  %v6102_v16 = vmul.f32 %v5802_v0, %v109_v29 }
  0xc6   :  { %v274_v5 = vmul.f32 %v10838_v51, %v5932_v22  ;;  %v275_v52 = vmul.f32 %v10839_v62, %v5932_v22  ;;  %v276_v10 = vmul.f32 %v5773_v54, %v5932_v22  ;;  %682 = vadd.xlane.f32.xlu0 %v681_v38  ;;  %v702_v7 = vadd.f32 %v601_v20, %v600_v19 }
  0xc7   :  { %10850 = vst [vmem:[#allocation22_spill] sm:$0xff] %v6099_v40  ;;  %10851 = vst [vmem:[#allocation40_spill] sm:$0xff] %v6102_v16  ;;  %v610_v25 = vmul.f32 %v5969_v37, %v5969_v37  ;;  %v606_v41 = vmul.f32 %v5979_v21, %v5979_v21  ;;  %v607_v29 = vmul.f32 %v5981_v35, %v5981_v35 }
  0xc8   :  { %v705_v34 = vadd.f32 %v605_v50, %v604_v32  ;;  %v611_v28 = vmul.f32 %v5977_v26, %v5977_v26  ;;  %v612_v4 = vmul.f32 %v5998_v30, %v5998_v30  ;;  %v613_v38 = vmul.f32 %v6000_v13, %v6000_v13 }
  0xc9   :  { %v277_v19 = vmul.f32 %v5776_v55, %v5932_v22  ;;  %v402_v20 = vmul.f32 %v5779_v56, %v5988_v2  ;;  %v212_v21 = vpop.permute.xlu1 %211  ;;  %703 = vadd.xlane.f32.xlu1 %v702_v7  ;;  %v608_v50 = vmul.f32 %v5992_v49, %v5992_v49  ;;  %v609_v32 = vmul.f32 %v5994_v23, %v5994_v23 }
  0xca   :  { %v403_v35 = vmul.f32 %v5782_v57, %v5988_v2  ;;  %v404_v13 = vmul.f32 %v5785_v58, %v5988_v2  ;;  %v405_v22 = vmul.f32 %v5788_v59, %v5988_v2  ;;  %v406_v30 = vmul.f32 %v5779_v56, %v340_v6  ;;  %706 = vadd.xlane.f32.xlu0 %v705_v34 }
  0xcb   :  { %v407_v7 = vmul.f32 %v5782_v57, %v340_v6  ;;  %v408_v26 = vmul.f32 %v5785_v58, %v340_v6  ;;  %v409_v49 = vmul.f32 %v5788_v59, %v340_v6  ;;  %v684_v37 = vadd.f32 %v607_v29, %v606_v41 }
  0xcc   :  { %v687_v23 = vadd.f32 %v611_v28, %v610_v25  ;;  %v711_v53 = vadd.f32 %v613_v38, %v612_v4  ;;  %v302_v44 = vadd.f32 %v6004_v43, %v170_v8  ;;  %v303_v16 = vadd.f32 %v6008_v45, %v171_v39 }
  0xcd   :  { %685 = vadd.xlane.f32.xlu1 %v684_v37  ;;  %v708_v15 = vadd.f32 %v609_v32, %v608_v50  ;;  %v306_v40 = vadd.f32 %v274_v5, %v174_v17  ;;  %v307_v2 = vadd.f32 %v275_v52, %v175_v14  ;;  %v304_v47 = vadd.f32 %v6012_v27, %v172_v12  ;;  %v10853_v50 = vld [vmem:[#allocation5_spill] sm:$0xff] }
  0xce   :  { %v182_v34 = vmul.f32 %v5791_v60, %v6082_v33  ;;  %688 = vadd.xlane.f32.xlu0 %v687_v23  ;;  %v468_v58 = vpop.permute.xlu1 %467  ;;  %v434_v57 = vadd.f32 %v402_v20, %v302_v44  ;;  %v435_v6 = vadd.f32 %v403_v35, %v303_v16  ;;  %v305_v25 = vadd.f32 %v6016_v46, %v173_v18 }
  0xcf   :  { %v534_v4 = vmul.f32 %v5805_v1, %v468_v58  ;;  %v535_v43 = vmul.f32 %v5808_v3, %v468_v58  ;;  %v536_v37 = vmul.f32 %v5815_v9, %v468_v58  ;;  %v537_v45 = vmul.f32 %v5818_v11, %v468_v58 }
  0xd0   :  { %v183_v27 = vmul.f32 %v5794_v61, %v6082_v33  ;;  %v6154_v60 = vmul.f32 %v5799_v63, %v6082_v33  ;;  %v436_v23 = vadd.f32 %v404_v13, %v304_v47  ;;  %v437_v44 = vadd.f32 %v405_v22, %v305_v25  ;;  %v10854_v22 = vld [vmem:[#allocation22_spill] sm:$0xff] }
  0xd1   :  { %709 = vadd.xlane.f32.xlu1 %v708_v15  ;;  %v6156_v35 = vadd.f32 %v534_v4, %v434_v57  ;;  %v6158_v46 = vadd.f32 %v535_v43, %v435_v6  ;;  %v438_v28 = vadd.f32 %v406_v30, %v306_v40  ;;  %v439_v8 = vadd.f32 %v407_v7, %v307_v2  ;;  %v10855_v6 = vld [vmem:[#allocation6_spill] sm:$0xff]  ;;  %v10856_v4 = vld [vmem:[#allocation40_spill] sm:$0xff] }
  0xd2   :  { %v278_v39 = vmul.f32 %v10838_v51, %v212_v21  ;;  %712 = vadd.xlane.f32.xlu0 %v711_v53  ;;  %v472_v58 = vpop.permute.xlu1 %471  ;;  %v6161_v12 = vadd.f32 %v536_v37, %v436_v23  ;;  %v6163_v61 = vadd.f32 %v537_v45, %v437_v44  ;;  %v308_v63 = vadd.f32 %v276_v10, %v6080_v36  ;;  %v10857_v37 = vld [vmem:[#allocation19_spill] sm:$0xff] }
  0xd3   :  { %v642_v13 = vadd.f32 %v6158_v46, %v6156_v35  ;;  %v538_v57 = vmul.f32 %v5805_v1, %v472_v58  ;;  %v539_v47 = vmul.f32 %v5808_v3, %v472_v58  ;;  %v309_v40 = vadd.f32 %v277_v19, %v6090_v24  ;;  %v10858_v23 = vld [vmem:[#allocation11_spill] sm:$0xff] }
  0xd4   :  { %v279_v30 = vmul.f32 %v10839_v62, %v212_v21  ;;  %v440_v51 = vadd.f32 %v408_v26, %v308_v63  ;;  %v540_v53 = vmul.f32 %v5815_v9, %v472_v58  ;;  %v541_v15 = vmul.f32 %v5818_v11, %v472_v58 }
  0xd5   :  { %v280_v18 = vmul.f32 %v5773_v54, %v212_v21  ;;  %643 = vadd.xlane.f32.xlu1 %v642_v13  ;;  %v6175_v36 = vadd.f32 %v538_v57, %v438_v28  ;;  %v6177_v10 = vadd.f32 %v539_v47, %v439_v8  ;;  %v441_v17 = vadd.f32 %v409_v49, %v309_v40 }
  0xd6   :  { %v281_v14 = vmul.f32 %v5776_v55, %v212_v21  ;;  %v666_v24 = vadd.f32 %v6163_v61, %v6161_v12  ;;  %v614_v26 = vmul.f32 %v6156_v35, %v6156_v35  ;;  %v310_v62 = vadd.f32 %v278_v39, %v6093_v31 }
  0xd7   :  { %v348_v16 = vpop.permute.xlu1 %347  ;;  %v645_v54 = vadd.f32 %v6177_v10, %v6175_v36  ;;  %v6187_v5 = vadd.f32 %v540_v53, %v440_v51  ;;  %v6189_v52 = vadd.f32 %v541_v15, %v441_v17  ;;  %v615_v49 = vmul.f32 %v6158_v46, %v6158_v46  ;;  %v10860_v15 = vld [vmem:[#allocation16_spill] sm:$0xff]  ;;  %v10861_v17 = vld [vmem:[#allocation17_spill] sm:$0xff] }
  0xd8   :  { %v185_v55 = vmul.f32 %v5802_v0, %v6082_v33  ;;  %v616_v21 = vmul.f32 %v6161_v12, %v6161_v12  ;;  %v617_v31 = vmul.f32 %v6163_v61, %v6163_v61  ;;  %v311_v41 = vadd.f32 %v279_v30, %v6096_v48  ;;  %v10852_v33 = vld [vmem:[#allocation18_spill] sm:$0xff]  ;;  %v10859_v30 = vld [vmem:[#allocation20_spill] sm:$0xff] }
  0xd9   :  { %646 = vadd.xlane.f32.xlu0 %v645_v54  ;;  %667 = vadd.xlane.f32.xlu1 %v666_v24  ;;  %v618_v29 = vmul.f32 %v6175_v36, %v6175_v36  ;;  %v619_v38 = vmul.f32 %v6177_v10, %v6177_v10  ;;  %v314_v19 = vadd.f32 %v6020_v42, %v182_v34  ;;  %v10862_v24 = vld [vmem:[#allocation38_spill] sm:$0xff] }
  0xda   :  { %v414_v0 = vmul.f32 %v5779_v56, %v348_v16  ;;  %v415_v20 = vmul.f32 %v10852_v33, %v348_v16  ;;  %v315_v32 = vadd.f32 %v10853_v50, %v183_v27  ;;  %v312_v7 = vadd.f32 %v280_v18, %v10854_v22 }
  0xdb   :  { %v669_v48 = vadd.f32 %v6189_v52, %v6187_v5  ;;  %v690_v2 = vadd.f32 %v615_v49, %v614_v26  ;;  %v442_v25 = vadd.f32 %v10855_v6, %v310_v62  ;;  %v313_v43 = vadd.f32 %v281_v14, %v10856_v4  ;;  %v10863_v62 = vld [vmem:[#allocation39_spill] sm:$0xff] }
  0xdc   :  { %v416_v45 = vmul.f32 %v10857_v37, %v348_v16  ;;  %v417_v42 = vmul.f32 %v5788_v59, %v348_v16  ;;  %v476_v34 = vpop.permute.xlu1 %475  ;;  %v714_v56 = vadd.f32 %v617_v31, %v616_v21  ;;  %v443_v44 = vadd.f32 %v10858_v23, %v311_v41  ;;  %v52_v37 = vld [vmem:[%s10448_s11] sm:$0xff]  ;;  %v591_v23 = vld [vmem:[%s10440_s3 + $0x8] sm:$0xff] }
  0xdd   :  { %670 = vadd.xlane.f32.xlu0 %v669_v48  ;;  %691 = vadd.xlane.f32.xlu1 %v690_v2  ;;  %v693_v27 = vadd.f32 %v619_v38, %v618_v29  ;;  %v542_v28 = vmul.f32 %v5805_v1, %v476_v34  ;;  %v543_v8 = vmul.f32 %v5808_v3, %v476_v34 }
  0xde   :  { %v620_v39 = vmul.f32 %v6187_v5, %v6187_v5  ;;  %v621_v58 = vmul.f32 %v6189_v52, %v6189_v52  ;;  %v446_v63 = vadd.f32 %v414_v0, %v314_v19  ;;  %v447_v13 = vadd.f32 %v415_v20, %v315_v32  ;;  %5157 = vmatprep.mubr.msk.f32.mxu0 %vm753_vm0, %v52_v37 }
  0xdf   :  { %v6222_v59 = vadd.f32 %v542_v28, %v442_v25  ;;  %v6224_v57 = vadd.f32 %v543_v8, %v443_v44  ;;  %v544_v47 = vmul.f32 %v5815_v9, %v476_v34  ;;  %v545_v40 = vmul.f32 %v5818_v11, %v476_v34  ;;  %v587_v34 = vld [vmem:[%s10439_s2 + $0x28] sm:$0xff]  ;;  %v593_v44 = vld [vmem:[%s10440_s3 + $0x18] sm:$0xff] }
  0xe0   :  { %v546_v51 = vmul.f32 %v5805_v1, %v10859_v30  ;;  %v547_v53 = vmul.f32 %v5808_v3, %v10859_v30  ;;  %v316_v18 = vadd.f32 %v10860_v15, %v6154_v60  ;;  %v317_v14 = vadd.f32 %v10861_v17, %v185_v55  ;;  %v597_v28 = vld [vmem:[%s10440_s3 + $0x38] sm:$0xff]  ;;  %v583_v8 = vld [vmem:[%s10439_s2 + $0x8] sm:$0xff] }
  0xe1   :  { %694 = vadd.xlane.f32.xlu0 %v693_v27  ;;  %715 = vadd.xlane.f32.xlu1 %v714_v56  ;;  %v444_v26 = vadd.f32 %v10862_v24, %v312_v7  ;;  %v445_v16 = vadd.f32 %v10863_v62, %v313_v43  ;;  %v717_v31 = vadd.f32 %v621_v58, %v620_v39  ;;  %v589_v56 = vld [vmem:[%s10439_s2 + $0x38] sm:$0xff]  ;;  %v595_v27 = vld [vmem:[%s10440_s3 + $0x28] sm:$0xff]  ;;  %v584_v39 = vld [vmem:[%s10439_s2 + $0x10] sm:$0xff]  ;;  %v10864_v58 = vmov 2  }
  0xe2   :  { %v6237_v54 = vadd.f32 %v546_v51, %v446_v63  ;;  %v6239_v49 = vadd.f32 %v547_v53, %v447_v13  ;;  %v448_v21 = vadd.f32 %v416_v45, %v316_v18  ;;  %v449_v1 = vadd.f32 %v417_v42, %v317_v14  ;;  %v582_v45 = vld [vmem:[%s10439_s2] sm:$0xff]  ;;  %v585_v42 = vld [vmem:[%s10439_s2 + $0x18] sm:$0xff]  ;;  %v588_v13 = vld [vmem:[%s10439_s2 + $0x30] sm:$0xff] }
  0xe3   :  { %v648_v3 = vadd.f32 %v6224_v57, %v6222_v59  ;;  %v6243_v41 = vadd.f32 %v544_v47, %v444_v26  ;;  %v6245_v60 = vadd.f32 %v545_v40, %v445_v16  ;;  %v548_v55 = vmul.f32 %v5815_v9, %v10859_v30  ;;  %v586_v63 = vld [vmem:[%s10439_s2 + $0x20] sm:$0xff]  ;;  %v592_v40 = vld [vmem:[%s10440_s3 + $0x10] sm:$0xff]  ;;  %s5587_s2 = smov 113  }
  0xe4   :  { %v549_v29 = vmul.f32 %v5818_v11, %v10859_v30  ;;  %v651_v38 = vadd.f32 %v6239_v49, %v6237_v54  ;;  %v622_v20 = vmul.f32 %v6222_v59, %v6222_v59  ;;  %v623_v9 = vmul.f32 %v6224_v57, %v6224_v57  ;;  %v590_v47 = vld [vmem:[%s10440_s3] sm:$0xff]  ;;  %v596_v53 = vld [vmem:[%s10440_s3 + $0x30] sm:$0xff] }
  0xe5   :  { %718 = vadd.xlane.f32.xlu0 %v717_v31  ;;  %649 = vadd.xlane.f32.xlu1 %v648_v3  ;;  %v6253_v19 = vadd.f32 %v548_v55, %v448_v21  ;;  %v672_v0 = vadd.f32 %v6245_v60, %v6243_v41  ;;  %v626_v11 = vmul.f32 %v6237_v54, %v6237_v54  ;;  %v594_v30 = vld [vmem:[%s10440_s3 + $0x20] sm:$0xff]  ;;  %v10865_v14 = vmov 3   ;;  %s5588_s3 = smov 112  }
  0xe6   :  { %v6257_v33 = vadd.f32 %v549_v29, %v449_v1  ;;  %v627_v50 = vmul.f32 %v6239_v49, %v6239_v49  ;;  %v696_v22 = vadd.f32 %v623_v9, %v622_v20  ;;  %v624_v7 = vmul.f32 %v6243_v41, %v6243_v41 }
  0xe7   :  { %v625_v48 = vmul.f32 %v6245_v60, %v6245_v60  ;;  %v628_v25 = vmul.f32 %v6253_v19, %v6253_v19 }
  0xe8   :  { %v675_v32 = vadd.f32 %v6257_v33, %v6253_v19  ;;  %v699_v2 = vadd.f32 %v627_v50, %v626_v11  ;;  %v629_v4 = vmul.f32 %v6257_v33, %v6257_v33 }
  0xe9   :  { %652 = vadd.xlane.f32.xlu0 %v651_v38  ;;  %673 = vadd.xlane.f32.xlu1 %v672_v0  ;;  %v720_v6 = vadd.f32 %v625_v48, %v624_v7 }
  0xea   :  { %v723_v43 = vadd.f32 %v629_v4, %v628_v25 }
  0xed   :  { %676 = vadd.xlane.f32.xlu0 %v675_v32  ;;  %697 = vadd.xlane.f32.xlu1 %v696_v22 }
  0xf1   :  { %700 = vadd.xlane.f32.xlu0 %v699_v2  ;;  %721 = vadd.xlane.f32.xlu1 %v720_v6 }
  0xf5   :  { %724 = vadd.xlane.f32.xlu0 %v723_v43 }
 0x102   :  { %970 = vperm.xlu1 %5381, %v583_v8  }
 0x106   :  { %975 = vperm.xlu1 %5381, %v584_v39  }
 0x10a   :  { %985 = vperm.xlu1 %5381, %v586_v63  }
 0x10b   :  { %965 = vperm.xlu0 %5380, %v582_v45  }
 0x10e   :  { %995 = vperm.xlu1 %5381, %v588_v13  }
 0x10f   :  { %980 = vperm.xlu0 %5380, %v585_v42  }
 0x112   :  { %1053 = vperm.xlu1 %5381, %v590_v47  }
 0x113   :  { %990 = vperm.xlu0 %5380, %v587_v34  }
 0x116   :  { %1063 = vperm.xlu1 %5381, %v592_v40  }
 0x117   :  { %1000 = vperm.xlu0 %5380, %v589_v56  }
 0x11a   :  { %1073 = vperm.xlu1 %5381, %v594_v30  }
 0x11b   :  { %1058 = vperm.xlu0 %5380, %v591_v23  }
 0x11e   :  { %1083 = vperm.xlu1 %5381, %v596_v53  }
 0x11f   :  { %1068 = vperm.xlu0 %5380, %v593_v44  }
 0x122   :  { %5383 = vset.pattern.permute.xlu1 %v10865_v14 }
 0x123   :  { %1078 = vperm.xlu0 %5380, %v595_v27  }
 0x127   :  { %1088 = vperm.xlu0 %5380, %v597_v28  }
 0x12b   :  { %5382 = vset.pattern.permute.xlu0 %v10864_v58 }
 0x13f   :  { %v632_v51 = vpop.xlane.xlu1 %631 }
 0x142   :  { %v635_v15 = vpop.xlane.xlu0 %634 }
 0x143   :  { %v656_v18 = vpop.xlane.xlu1 %655 }
 0x144   :  { %v727_v31 = vsel %vm726_vm1, %v632_v51, %v656_v18 }
 0x146   :  { %v659_v17 = vpop.xlane.xlu0 %658 }
 0x147   :  { %v728_v3 = vsel %vm726_vm1, %v635_v15, %v659_v17 }
 0x14a   :  { %v638_v24 = vpop.xlane.xlu1 %637  ;;  %v641_v26 = vpop.xlane.xlu0 %640 }
 0x14e   :  { %v662_v62 = vpop.xlane.xlu1 %661 }
 0x14f   :  { %v665_v16 = vpop.xlane.xlu0 %664  ;;  %v729_v22 = vsel %vm726_vm1, %v638_v24, %v662_v62 }
 0x150   :  { %v730_v7 = vsel %vm726_vm1, %v641_v26, %v665_v16 }
 0x152   :  { %v680_v21 = vpop.xlane.xlu1 %679 }
 0x153   :  { %v683_v1 = vpop.xlane.xlu0 %682  ;;  %v736_v55 = vsel %vm735_vm2, %v727_v31, %v680_v21 }
 0x154   :  { %v737_v38 = vsel %vm735_vm2, %v728_v3, %v683_v1 }
 0x156   :  { %v704_v29 = vpop.xlane.xlu1 %703 }
 0x157   :  { %v707_v0 = vpop.xlane.xlu0 %706  ;;  %v745_v20 = vsel %vm744_vm3, %v736_v55, %v704_v29 }
 0x158   :  { %v746_v9 = vsel %vm744_vm3, %v737_v38, %v707_v0  ;;  %v53_v38 = vld [vmem:[%s10448_s11 + $0x8] sm:$0xff]  ;;  %v54_v0 = vld [vmem:[%s10448_s11 + $0x10] sm:$0xff] }
 0x159   :  { %v5225_v11 = vpack.c.bf16 %v746_v9, %v745_v20  ;;  %v55_v20 = vld [vmem:[%s10448_s11 + $0x18] sm:$0xff]  ;;  %v56_v9 = vld [vmem:[%s10448_s11 + $0x20] sm:$0xff] }
 0x15a   :  { %v686_v50 = vpop.xlane.xlu1 %685 }
 0x15b   :  { %v689_v32 = vpop.xlane.xlu0 %688  ;;  %5226 = vmatprep.subr.bf16.mxu0 %v5225_v11  ;;  %v738_v48 = vsel %vm735_vm2, %v729_v22, %v686_v50  ;;  %v58_v50 = vld [vmem:[%s10448_s11 + $0x30] sm:$0xff] }
 0x15c   :  { %5228 = vmatpush3.bf16.msra.mxu0 %v5225_v11  ;;  %v739_v6 = vsel %vm735_vm2, %v730_v7, %v689_v32  ;;  %v57_v11 = vld [vmem:[%s10448_s11 + $0x28] sm:$0xff]  ;;  %v59_v32 = vld [vmem:[%s10448_s11 + $0x38] sm:$0xff] }
 0x15e   :  { %v710_v2 = vpop.xlane.xlu1 %709 }
 0x15f   :  { %v713_v25 = vpop.xlane.xlu0 %712  ;;  %v747_v4 = vsel %vm744_vm3, %v738_v48, %v710_v2 }
 0x160   :  { %v748_v43 = vsel %vm744_vm3, %v739_v6, %v713_v25 }
 0x161   :  { %v5229_v37 = vpack.c.bf16 %v748_v43, %v747_v4 }
 0x162   :  { %v644_v45 = vpop.xlane.xlu1 %643 }
 0x163   :  { %5230 = vmatprep.subr.bf16.mxu0 %v5229_v37 }
 0x164   :  { %5232 = vmatpush3.bf16.msra.mxu0 %v5229_v37 }
 0x166   :  { %v647_v42 = vpop.xlane.xlu0 %646  ;;  %v668_v34 = vpop.xlane.xlu1 %667 }
 0x167   :  { %v731_v28 = vsel %vm726_vm1, %v644_v45, %v668_v34 }
 0x16a   :  { %v671_v56 = vpop.xlane.xlu0 %670  ;;  %v692_v23 = vpop.xlane.xlu1 %691 }
 0x16b   :  { %v732_v8 = vsel %vm726_vm1, %v647_v42, %v671_v56  ;;  %v740_v39 = vsel %vm735_vm2, %v731_v28, %v692_v23 }
 0x16e   :  { %v695_v44 = vpop.xlane.xlu0 %694  ;;  %v716_v27 = vpop.xlane.xlu1 %715 }
 0x16f   :  { %v741_v63 = vsel %vm735_vm2, %v732_v8, %v695_v44  ;;  %v749_v40 = vsel %vm744_vm3, %v740_v39, %v716_v27 }
 0x172   :  { %v719_v13 = vpop.xlane.xlu0 %718  ;;  %v650_v47 = vpop.xlane.xlu1 %649 }
 0x173   :  { %v750_v30 = vsel %vm744_vm3, %v741_v63, %v719_v13 }
 0x174   :  { %v5233_v51 = vpack.c.bf16 %v750_v30, %v749_v40 }
 0x176   :  { %v653_v53 = vpop.xlane.xlu0 %652  ;;  %5234 = vmatprep.subr.bf16.mxu0 %v5233_v51  ;;  %v674_v15 = vpop.xlane.xlu1 %673 }
 0x177   :  { %5236 = vmatpush3.bf16.msra.mxu0 %v5233_v51  ;;  %v733_v62 = vsel %vm726_vm1, %v650_v47, %v674_v15 }
 0x17a   :  { %v677_v18 = vpop.xlane.xlu0 %676  ;;  %v698_v17 = vpop.xlane.xlu1 %697 }
 0x17b   :  { %v734_v16 = vsel %vm726_vm1, %v653_v53, %v677_v18  ;;  %v742_v21 = vsel %vm735_vm2, %v733_v62, %v698_v17 }
 0x17e   :  { %v701_v24 = vpop.xlane.xlu0 %700  ;;  %v722_v26 = vpop.xlane.xlu1 %721 }
 0x17f   :  { %v743_v1 = vsel %vm735_vm2, %v734_v16, %v701_v24  ;;  %v751_v3 = vsel %vm744_vm3, %v742_v21, %v722_v26 }
 0x182   :  { %v725_v31 = vpop.xlane.xlu0 %724  ;;  %v971_v53 = vpop.permute.xlu1 %970 }
 0x183   :  { %v752_v55 = vsel %vm744_vm3, %v743_v1, %v725_v31 }
 0x184   :  { %v5237_v29 = vpack.c.bf16 %v752_v55, %v751_v3 }
 0x186   :  { %5238 = vmatprep.subr.bf16.mxu0 %v5237_v29  ;;  %v6423_v18 = vpop.permute.xlu1 %975 }
 0x187   :  { %5240 = vmatpush3.bf16.msra.mxu0 %v5237_v29 }
 0x18a   :  { %5158 = vmatmul.mubr.msk.f32.vlgmr.msra.gmra.mrb[0].mxu0 %vm753_vm0, %v53_v38  ;;  %v966_v51 = vpop.permute.xlu0 %965  ;;  %v6427_v24 = vpop.permute.xlu1 %985 }
 0x18b   :  { %5160 = vmatprep.mubr.msk.f32.mxu0 %vm753_vm0, %v54_v0 }
 0x18e   :  { %5161 = vmatmul.mubr.msk.f32.gmra.mrb[2].mxu0 %vm753_vm0, %v55_v20  ;;  %v981_v15 = vpop.permute.xlu0 %980  ;;  %v6431_v62 = vpop.permute.xlu1 %995 }
 0x18f   :  { %5163 = vmatprep.mubr.msk.f32.mxu0 %vm753_vm0, %v56_v9 }
 0x192   :  { %5164 = vmatmul.mubr.msk.f32.gmra.mrb[4].mxu0 %vm753_vm0, %v57_v11  ;;  %v6425_v17 = vpop.permute.xlu0 %990  ;;  %v6435_v21 = vpop.permute.xlu1 %1053 }
 0x193   :  { %5166 = vmatprep.mubr.msk.f32.mxu0 %vm753_vm0, %v58_v50 }
 0x196   :  { %5167 = vmatmul.mubr.msk.f32.gmra.mrb[6].mxu0 %vm753_vm0, %v59_v32  ;;  %v6429_v26 = vpop.permute.xlu0 %1000  ;;  %v6439_v31 = vpop.permute.xlu1 %1063 }
 0x19a   :  { %v6433_v16 = vpop.permute.xlu0 %1058  ;;  %v6443_v55 = vpop.permute.xlu1 %1073 }
 0x19e   :  { %v6437_v1 = vpop.permute.xlu0 %1068  ;;  %v6447_v38 = vpop.permute.xlu1 %1083 }
 0x1a2   :  { %v6441_v3 = vpop.permute.xlu0 %1078 }
 0x1a6   :  { %v6445_v29 = vpop.permute.xlu0 %1088 }
 0x25d   :  { %v5159_v22 = vpop.f32.mrb[0].mxu0 }
 0x25e   :  { %v6383_v7 = vmul.f32 0.0009765625, %v5159_v22  ;;  %v844_v48 = vpop.f32.mrb[1].mxu0 }
 0x25f   :  { %v6385_v2 = vmul.f32 0.0009765625, %v844_v48 }
 0x260   :  { %v892_v6 = vmul.f32 %v6383_v7, %v6383_v7 }
 0x261   :  { %v5162_v25 = vpop.f32.mrb[2].mxu0  ;;  %v891_v4 = vmul.f32 %v6385_v2, %v6385_v2 }
 0x262   :  { %909 = vrot.lane.b32.xlu0 %v892_v6, %s5580_s17  ;;  %v6392_v43 = vmul.f32 0.0009765625, %v5162_v25  ;;  %v854_v37 = vpop.f32.mrb[3].mxu0 }
 0x263   :  { %907 = vrot.lane.b32.xlu1 %v891_v4, %s5580_s17  ;;  %v6395_v45 = vmul.f32 0.0009765625, %v854_v37 }
 0x264   :  { %v894_v42 = vmul.f32 %v6392_v43, %v6392_v43 }
 0x265   :  { %v5165_v34 = vpop.f32.mrb[4].mxu0  ;;  %v893_v27 = vmul.f32 %v6395_v45, %v6395_v45 }
 0x266   :  { %v864_v56 = vpop.f32.mrb[5].mxu0  ;;  %v6399_v23 = vmul.f32 0.0009765625, %v5165_v34 }
 0x267   :  { %v6401_v44 = vmul.f32 0.0009765625, %v864_v56  ;;  %913 = vrot.lane.b32.xlu1 %v894_v42, %s5580_s17 }
 0x268   :  { %v896_v47 = vmul.f32 %v6399_v23, %v6399_v23 }
 0x269   :  { %v5168_v28 = vpop.f32.mrb[6].mxu0  ;;  %v895_v8 = vmul.f32 %v6401_v44, %v6401_v44 }
 0x26a   :  { %v6408_v39 = vmul.f32 0.0009765625, %v5168_v28  ;;  %v874_v63 = vpop.f32.mrb[7].mxu0 }
 0x26b   :  { %911 = vrot.lane.b32.xlu1 %v893_v27, %s5580_s17  ;;  %915 = vrot.lane.b32.xlu0 %v895_v8, %s5580_s17  ;;  %v6412_v13 = vmul.f32 0.0009765625, %v874_v63 }
 0x26c   :  { %v898_v40 = vmul.f32 %v6408_v39, %v6408_v39 }
 0x26d   :  { %v897_v30 = vmul.f32 %v6412_v13, %v6412_v13 }
 0x26f   :  { %917 = vrot.lane.b32.xlu1 %v896_v47, %s5580_s17  ;;  %921 = vrot.lane.b32.xlu0 %v898_v40, %s5580_s17 }
 0x273   :  { %919 = vrot.lane.b32.xlu1 %v897_v30, %s5580_s17 }
 0x2d4   :  { %v910_v0 = vpop.permute.xlu0 %909 }
 0x2d5   :  { %v932_v20 = vsub.f32 %v6383_v7, %v910_v0  ;;  %v908_v9 = vpop.permute.xlu1 %907 }
 0x2d6   :  { %v931_v11 = vsub.f32 %v6385_v2, %v908_v9 }
 0x2d7   :  { %v940_v50 = vmax.f32 %v932_v20, 0.0 }
 0x2d8   :  { %v939_v32 = vmax.f32 %v931_v11, 0.0 }
 0x2d9   :  { %v948_v22 = vadd.f32 1e-05, %v940_v50  ;;  %v914_v48 = vpop.permute.xlu1 %913 }
 0x2da   :  { %v947_v6 = vadd.f32 1e-05, %v939_v32  ;;  %v934_v25 = vsub.f32 %v6392_v43, %v914_v48 }
 0x2db   :  { %5494 = vrsqrt.f32 %v948_v22 }
 0x2dc   :  { %v942_v4 = vmax.f32 %v934_v25, 0.0  ;;  %5496 = vrsqrt.f32 %v947_v6 }
 0x2dd   :  { %v912_v37 = vpop.permute.xlu1 %911  ;;  %v916_v27 = vpop.permute.xlu0 %915 }
 0x2de   :  { %v950_v42 = vadd.f32 1e-05, %v942_v4  ;;  %v933_v34 = vsub.f32 %v6395_v45, %v912_v37  ;;  %v935_v30 = vsub.f32 %v6401_v44, %v916_v27 }
 0x2e0   :  { %v941_v56 = vmax.f32 %v933_v34, 0.0  ;;  %5498 = vrsqrt.f32 %v950_v42  ;;  %v943_v50 = vmax.f32 %v935_v30, 0.0 }
 0x2e1   :  { %v918_v28 = vpop.permute.xlu1 %917  ;;  %v922_v11 = vpop.permute.xlu0 %921 }
 0x2e2   :  { %v949_v8 = vadd.f32 1e-05, %v941_v56  ;;  %v936_v63 = vsub.f32 %v6399_v23, %v918_v28  ;;  %v938_v32 = vsub.f32 %v6408_v39, %v922_v11  ;;  %v951_v6 = vadd.f32 1e-05, %v943_v50 }
 0x2e4   :  { %v944_v47 = vmax.f32 %v936_v63, 0.0  ;;  %5500 = vrsqrt.f32 %v949_v8  ;;  %v946_v25 = vmax.f32 %v938_v32, 0.0 }
 0x2e5   :  { %v5495_v40 = vpop.eup %5494  ;;  %v920_v56 = vpop.permute.xlu1 %919 }
 0x2e6   :  { %v952_v0 = vadd.f32 1e-05, %v944_v47  ;;  %v1004_v20 = vmul.f32 %v5495_v40, %v971_v53  ;;  %v5497_v9 = vpop.eup %5496  ;;  %v954_v37 = vadd.f32 1e-05, %v946_v25  ;;  %v937_v28 = vsub.f32 %v6412_v13, %v920_v56 }
 0x2e7   :  { %v1003_v22 = vmul.f32 %v5497_v9, %v966_v51  ;;  %v10867_v40 = vmov 0  }
 0x2e8   :  { %1224 = vperm.xlu1 %5383, %v1004_v20   ;;  %1021 = vrot.lane.b32.xlu0 %v1004_v20, %s5581_s18  ;;  %5502 = vrsqrt.f32 %v952_v0  ;;  %v945_v8 = vmax.f32 %v937_v28, 0.0 }
 0x2e9   :  { %5504 = vrsqrt.f32 %v951_v6 }
 0x2ea   :  { %v5499_v48 = vpop.eup %5498  ;;  %5506 = vrsqrt.f32 %v954_v37  ;;  %v953_v63 = vadd.f32 1e-05, %v945_v8 }
 0x2eb   :  { %v1006_v53 = vmul.f32 %v5499_v48, %v981_v15 }
 0x2ec   :  { %1104 = vperm.xlu0 %5382, %v1004_v20   ;;  %1019 = vrot.lane.b32.xlu1 %v1003_v22, %s5581_s18  ;;  %5508 = vrsqrt.f32 %v953_v63  ;;  %v10868_v63 = vld [vmem:[#allocation27_spill] sm:$0xff] }
 0x2ed   :  { %5384 = vset.pattern.permute.xlu1 %v10864_v58 }
 0x2ee   :  { %v5501_v4 = vpop.eup %5500 }
 0x2ef   :  { %v1005_v42 = vmul.f32 %v5501_v4, %v6423_v18 }
 0x2f0   :  { %1100 = vperm.xlu1 %5384, %v1003_v22   ;;  %1025 = vrot.lane.b32.xlu0 %v1006_v53, %s5581_s18 }
 0x2f1   :  { %5389 = vset.pattern.permute.xlu0 %v10865_v14 }
 0x2f2   :  { %v5503_v51 = vpop.eup %5502 }
 0x2f3   :  { %v1008_v34 = vmul.f32 %v5503_v51, %v6425_v17  ;;  %v5505_v15 = vpop.eup %5504 }
 0x2f4   :  { %5385 = vset.pattern.permute.xlu1 %v10865_v14  ;;  %1228 = vperm.xlu0 %5389, %v1005_v42   ;;  %v1007_v18 = vmul.f32 %v5505_v15, %v6427_v24  ;;  %v5507_v27 = vpop.eup %5506  ;;  %v10866_v24 = vmov 1  }
 0x2f5   :  { %1220 = vperm.xlu1 %5385, %v1003_v22   ;;  %v1010_v17 = vmul.f32 %v5507_v27, %v6429_v26 }
 0x2f6   :  { %v5509_v47 = vpop.eup %5508 }
 0x2f7   :  { %v1009_v26 = vmul.f32 %v5509_v47, %v6431_v62 }
 0x2f8   :  { %1029 = vrot.lane.b32.xlu0 %v1008_v34, %s5581_s18 }
 0x2f9   :  { %5386 = vset.pattern.permute.xlu1 %v10864_v58 }
 0x2fa   :  { %1112 = vperm.xlu1 %5386, %v1006_v53  }
 0x2fc   :  { %1240 = vperm.xlu0 %5389, %v1008_v34  }
 0x2fe   :  { %5387 = vset.pattern.permute.xlu1 %v10865_v14 }
 0x2ff   :  { %1232 = vperm.xlu1 %5387, %v1006_v53  }
 0x300   :  { %5390 = vset.pattern.permute.xlu0 %v10864_v58 }
 0x301   :  { %1116 = vperm.xlu0 %5390, %v1007_v18  }
 0x303   :  { %1023 = vrot.lane.b32.xlu1 %v1005_v42, %s5581_s18 }
 0x304   :  { %5388 = vset.pattern.permute.xlu1 %v10864_v58 }
 0x305   :  { %1033 = vrot.lane.b32.xlu0 %v1010_v17, %s5581_s18 }
 0x307   :  { %1108 = vperm.xlu1 %5388, %v1005_v42  }
 0x309   :  { %1128 = vperm.xlu0 %5390, %v1010_v17  }
 0x30b   :  { %1120 = vperm.xlu1 %5388, %v1008_v34  }
 0x30d   :  { %5395 = vset.pattern.permute.xlu0 %v10866_v24 }
 0x30f   :  { %1027 = vrot.lane.b32.xlu1 %v1007_v18, %s5581_s18 }
 0x310   :  { %5391 = vset.pattern.permute.xlu1 %v10865_v14 }
 0x313   :  { %1236 = vperm.xlu1 %5391, %v1007_v18  }
 0x317   :  { %1248 = vperm.xlu1 %5391, %v1010_v17  }
 0x31b   :  { %1031 = vrot.lane.b32.xlu1 %v1009_v26, %s5581_s18 }
 0x31c   :  { %5392 = vset.pattern.permute.xlu1 %v10864_v58  ;;  %v10889_v58 = vld [vmem:[#allocation36_spill] sm:$0xff] }
 0x31f   :  { %1124 = vperm.xlu1 %5392, %v1009_v26  }
 0x323   :  { %5393 = vset.pattern.permute.xlu1 %v10865_v14 }
 0x324   :  { %1244 = vperm.xlu1 %5393, %v1009_v26  }
 0x328   :  { %5394 = vset.pattern.permute.xlu1 %v10867_v40 }
 0x35a   :  { %v1022_v30 = vpop.permute.xlu0 %1021 }
 0x35b   :  { %v1044_v0 = vmul.f32 %v1022_v30, %v6383_v7  ;;  %v10869_v30 = vld [vmem:[#allocation28_spill] sm:$0xff] }
 0x35d   :  { %v1092_v20 = vsub.f32 %v6433_v16, %v1044_v0 }
 0x35f   :  { %1272 = vperm.xlu0 %5395, %v1092_v20   ;;  %1154 = vperm.xlu1 %5394, %v1092_v20  }
 0x363   :  { %5396 = vset.pattern.permute.xlu0 %v10867_v40  ;;  %5397 = vset.pattern.permute.xlu1 %v10866_v24 }
 0x367   :  { %v6486_v62 = vpop.permute.xlu1 %1224 }
 0x36b   :  { %v1105_v9 = vpop.permute.xlu0 %1104  ;;  %v1020_v11 = vpop.permute.xlu1 %1019 }
 0x36c   :  { %v1043_v50 = vmul.f32 %v1020_v11, %v6385_v2  ;;  %v1133_v47 = vmul.f32 %v1105_v9, %v10868_v63  ;;  %v1134_v0 = vmul.f32 %v1105_v9, %v10869_v30 }
 0x36e   :  { %v1091_v32 = vsub.f32 %v6435_v21, %v1043_v50 }
 0x36f   :  { %v1026_v22 = vpop.permute.xlu0 %1025  ;;  %v6490_v48 = vpop.permute.xlu1 %1100 }
 0x370   :  { %v1046_v7 = vmul.f32 %v1026_v22, %v6392_v43  ;;  %1268 = vperm.xlu1 %5397, %v1091_v32   ;;  %1149 = vperm.xlu0 %5396, %v1091_v32   ;;  %v10871_v32 = vld [vmem:[#allocation29_spill] sm:$0xff] }
 0x371   :  { %v1253_v22 = vmul.f32 %v6486_v62, %v10871_v32 }
 0x372   :  { %v1094_v16 = vsub.f32 %v6437_v1, %v1046_v7 }
 0x373   :  { %v6496_v25 = vpop.permute.xlu0 %1228 }
 0x374   :  { %1280 = vperm.xlu1 %5397, %v1094_v16   ;;  %1164 = vperm.xlu0 %5396, %v1094_v16   ;;  %v6494_v6 = vpop.permute.xlu1 %1220 }
 0x377   :  { %v1030_v21 = vpop.permute.xlu0 %1029 }
 0x378   :  { %5398 = vset.pattern.permute.xlu1 %v10867_v40  ;;  %5403 = vset.pattern.permute.xlu0 %v10866_v24  ;;  %v1048_v15 = vmul.f32 %v1030_v21, %v6399_v23  ;;  %v10873_v21 = vld [vmem:[#allocation30_spill] sm:$0xff] }
 0x379   :  { %v6500_v2 = vpop.permute.xlu1 %1112 }
 0x37a   :  { %v1096_v27 = vsub.f32 %v6441_v3, %v1048_v15  ;;  %v10876_v15 = vld [vmem:[#allocation24_spill] sm:$0xff] }
 0x37b   :  { %v6504_v43 = vpop.permute.xlu0 %1240 }
 0x37e   :  { %v6502_v53 = vpop.permute.xlu1 %1232 }
 0x37f   :  { %v1257_v14 = vmul.f32 %v6502_v53, %v10889_v58 }
 0x380   :  { %v6510_v51 = vpop.permute.xlu0 %1116 }
 0x382   :  { %v1024_v4 = vpop.permute.xlu1 %1023 }
 0x383   :  { %v1045_v1 = vmul.f32 %v1024_v4, %v6395_v45  ;;  %v1254_v4 = vmul.f32 %v6486_v62, %v10873_v21  ;;  %v10877_v62 = vld [vmem:[#allocation25_spill] sm:$0xff] }
 0x384   :  { %v1034_v56 = vpop.permute.xlu0 %1033 }
 0x385   :  { %v1093_v37 = vsub.f32 %v6439_v31, %v1045_v1  ;;  %v1050_v31 = vmul.f32 %v1034_v56, %v6408_v39  ;;  %v1132_v56 = vmul.f32 %v6490_v48, %v10876_v15 }
 0x386   :  { %v6508_v42 = vpop.permute.xlu1 %1108 }
 0x387   :  { %1159 = vperm.xlu1 %5398, %v1093_v37   ;;  %v1098_v23 = vsub.f32 %v6445_v29, %v1050_v31 }
 0x388   :  { %v6538_v26 = vpop.permute.xlu0 %1128 }
 0x38a   :  { %v6512_v34 = vpop.permute.xlu1 %1120 }
 0x38b   :  { %5399 = vset.pattern.permute.xlu1 %v10866_v24 }
 0x38c   :  { %1276 = vperm.xlu1 %5399, %v1093_v37  }
 0x38e   :  { %v1028_v18 = vpop.permute.xlu1 %1027 }
 0x38f   :  { %v1047_v45 = vmul.f32 %v1028_v18, %v6401_v44 }
 0x390   :  { %5400 = vset.pattern.permute.xlu1 %v10867_v40 }
 0x391   :  { %v1095_v28 = vsub.f32 %v6443_v55, %v1047_v45  ;;  %1174 = vperm.xlu1 %5400, %v1096_v27   ;;  %v1251_v45 = vmul.f32 %v6494_v6, %v10877_v62  ;;  %v10884_v62 = vld [vmem:[#allocation31_spill] sm:$0xff] }
 0x392   :  { %v6521_v17 = vpop.permute.xlu1 %1236 }
 0x393   :  { %1284 = vperm.xlu0 %5403, %v1095_v28  }
 0x395   :  { %5401 = vset.pattern.permute.xlu1 %v10866_v24 }
 0x396   :  { %1288 = vperm.xlu1 %5401, %v1096_v27   ;;  %v6525_v8 = vpop.permute.xlu1 %1248 }
 0x397   :  { %1296 = vperm.xlu0 %5403, %v1098_v23  }
 0x39a   :  { %5402 = vset.pattern.permute.xlu1 %v10867_v40  ;;  %v1032_v44 = vpop.permute.xlu1 %1031 }
 0x39b   :  { %v1049_v3 = vmul.f32 %v1032_v44, %v6412_v13  ;;  %1169 = vperm.xlu1 %5402, %v1095_v28   ;;  %5404 = vset.pattern.permute.xlu0 %v10867_v40  ;;  %v10879_v44 = vld [vmem:[#allocation26_spill] sm:$0xff] }
 0x39d   :  { %v1097_v39 = vsub.f32 %v6447_v38, %v1049_v3  ;;  %v1252_v3 = vmul.f32 %v6494_v6, %v10879_v44  ;;  %v10882_v6 = vld [vmem:[#allocation23_spill] sm:$0xff] }
 0x39e   :  { %v6533_v55 = vpop.permute.xlu1 %1124 }
 0x39f   :  { %1184 = vperm.xlu1 %5402, %v1098_v23   ;;  %1179 = vperm.xlu0 %5404, %v1097_v39  }
 0x3a3   :  { %5405 = vset.pattern.permute.xlu1 %v10866_v24  ;;  %v6535_v29 = vpop.permute.xlu1 %1244 }
 0x3a4   :  { %1292 = vperm.xlu1 %5405, %v1097_v39  }
 0x3a8   :  { %5406 = vset.pattern.permute.xlu1 %v10867_v40 }
 0x3de   :  { %v1155_v13 = vpop.permute.xlu1 %1154  ;;  %v1273_v50 = vpop.permute.xlu0 %1272 }
 0x3df   :  { %v1189_v20 = vadd.f32 %v1155_v13, %v1133_v47  ;;  %v1190_v38 = vadd.f32 %v1155_v13, %v1134_v0  ;;  %v1301_v7 = vadd.f32 %v1273_v50, %v1253_v22  ;;  %v1302_v9 = vadd.f32 %v1273_v50, %v1254_v4 }
 0x3e0   :  { %v1131_v13 = vmul.f32 %v6490_v48, %v10882_v6 }
 0x3e1   :  { %v6541_v11 = vmax.f32 %v1189_v20, 0.0  ;;  %v6547_v16 = vmax.f32 %v1190_v38, 0.0  ;;  %v6553_v1 = vmax.f32 %v1301_v7, 0.0  ;;  %v6557_v37 = vmax.f32 %v1302_v9, 0.0 }
 0x3e3   :  { %10870 = vst [vmem:[#allocation18_spill] sm:$0xff] %v6541_v11  ;;  %1826 = vrot.lane.b32.xlu1 %v6541_v11, %s5582_s19  ;;  %10872 = vst [vmem:[#allocation5_spill] sm:$0xff] %v6547_v16 }
 0x3e4   :  { %10874 = vst [vmem:[#allocation22_spill] sm:$0xff] %v6553_v1  ;;  %10875 = vst [vmem:[#allocation6_spill] sm:$0xff] %v6557_v37 }
 0x3e7   :  { %1842 = vrot.lane.b32.xlu1 %v6547_v16, %s5582_s19 }
 0x3eb   :  { %1858 = vrot.lane.b32.xlu1 %v6553_v1, %s5582_s19 }
 0x3ef   :  { %v1150_v18 = vpop.permute.xlu0 %1149  ;;  %1874 = vrot.lane.b32.xlu1 %v6557_v37, %s5582_s19  ;;  %v1269_v27 = vpop.permute.xlu1 %1268 }
 0x3f0   :  { %v1188_v31 = vadd.f32 %v1150_v18, %v1132_v56  ;;  %v1299_v23 = vadd.f32 %v1269_v27, %v1251_v45  ;;  %v1300_v39 = vadd.f32 %v1269_v27, %v1252_v3  ;;  %v1187_v30 = vadd.f32 %v1150_v18, %v1131_v13  ;;  %v10885_v3 = vld [vmem:[#allocation32_spill] sm:$0xff] }
 0x3f1   :  { %v1137_v45 = vmul.f32 %v6500_v2, %v10884_v62 }
 0x3f2   :  { %v6565_v28 = vmax.f32 %v1188_v31, 0.0  ;;  %v6573_v63 = vmax.f32 %v1299_v23, 0.0  ;;  %v6579_v47 = vmax.f32 %v1300_v39, 0.0  ;;  %v6595_v0 = vmax.f32 %v1187_v30, 0.0 }
 0x3f3   :  { %2019 = vrot.lane.b32.xlu1 %v6547_v16, %s5583_s20  ;;  %v6633_v48 = vpop.permute.xlu1 %1280  ;;  %v1165_v4 = vpop.permute.xlu0 %1164  ;;  %v1138_v39 = vmul.f32 %v6500_v2, %v10885_v3  ;;  %v10890_v2 = vld [vmem:[#allocation33_spill] sm:$0xff] }
 0x3f4   :  { %10878 = vst [vmem:[#allocation40_spill] sm:$0xff] %v6565_v28  ;;  %1840 = vrot.lane.b32.xlu0 %v6565_v28, %s5582_s19  ;;  %10880 = vst [vmem:[#allocation19_spill] sm:$0xff] %v6573_v63  ;;  %v1193_v31 = vadd.f32 %v1165_v4, %v1137_v45  ;;  %v10888_v45 = vlaneseq  ;;  %v1135_v3 = vmul.f32 %v6508_v42, %v10890_v2  ;;  %v6756_v2 = vld [vmem:[%s10447_s10 + $0x10] sm:$0xff] }
 0x3f5   :  { %10881 = vst [vmem:[#allocation11_spill] sm:$0xff] %v6579_v47  ;;  %10883 = vst [vmem:[#allocation20_spill] sm:$0xff] %v6595_v0  ;;  %v1194_v6 = vadd.f32 %v1165_v4, %v1138_v39  ;;  %v6748_v39 = vld [vmem:[%s10447_s10 + $0x18] sm:$0xff] }
 0x3f6   :  { %v6725_v13 = vmax.f32 %v1193_v31, 0.0  ;;  %v6732_v24 = vand.u32 127, %v10888_v45  ;;  %v1305_v31 = vadd.f32 %v6633_v48, %v1257_v14  ;;  %10892 = vst [vmem:[#allocation39_spill] sm:$0xff] %v6748_v39  ;;  %10894 = vst [vmem:[#allocation28_spill] sm:$0xff] %v6756_v2 }
 0x3f7   :  { %2035 = vrot.lane.b32.xlu1 %v6553_v1, %s5583_s20  ;;  %v6742_v4 = vmax.f32 %v1194_v6, 0.0  ;;  %v10895_v6 = vld [vmem:[#allocation37_spill] sm:$0xff] }
 0x3f8   :  { %1856 = vrot.lane.b32.xlu0 %v6573_v63, %s5582_s19  ;;  %10886 = vst [vmem:[#allocation16_spill] sm:$0xff] %v6725_v13  ;;  %vm1888_vm4 = vcmp.lt.s32.totalorder %v6732_v24, 1  ;;  %v1258_v14 = vmul.f32 %v6502_v53, %v10895_v6  ;;  %v6775_v53 = vmax.f32 %v1305_v31, 0.0  ;;  %vm2065_vm5 = vcmp.lt.s32.totalorder %v6732_v24, 127 }
 0x3f9   :  { %10891 = vst [vmem:[#allocation38_spill] sm:$0xff] %v6742_v4  ;;  %vm1397_vm6 = vcmp.lt.s32.totalorder %v6732_v24, 17  ;;  %vm1558_vm7 = vcmp.lt.s32.totalorder %v6732_v24, 16  ;;  %vm1719_vm8 = vcmp.lt.s32.totalorder %v6732_v24, 15  ;;  %vm2623_vm9 = vcmp.lt.s32.totalorder %v6732_v24, 113 }
 0x3fa   :  { %10898 = vst [vmem:[#allocation29_spill] sm:$0xff] %v6775_v53  ;;  %vm2784_vm10 = vcmp.lt.s32.totalorder %v6732_v24, 112  ;;  %vm2945_vm11 = vcmp.lt.s32.totalorder %v6732_v24, 111  ;;  %v5478_v24 = vld [vmem:[%s10441_s4 + $0x80] ss:$8 sps:$4 sm:$0xff]  }
 0x3fb   :  { %2003 = vrot.lane.b32.xlu1 %v6541_v11, %s5583_s20 }
 0x3fc   :  { %1872 = vrot.lane.b32.xlu0 %v6579_v47, %s5582_s19 }
 0x3ff   :  { %2051 = vrot.lane.b32.xlu1 %v6557_v37, %s5583_s20 }
 0x400   :  { %2017 = vrot.lane.b32.xlu0 %v6565_v28, %s5583_s20 }
 0x403   :  { %1333 = vrot.lane.b32.xlu1 %v6541_v11, %s5584_s21 }
 0x404   :  { %2033 = vrot.lane.b32.xlu0 %v6573_v63, %s5583_s20 }
 0x406   :  { %v6639_v20 = vpop.permute.xlu1 %1159 }
 0x407   :  { %1349 = vrot.lane.b32.xlu1 %v6547_v16, %s5584_s21  ;;  %v1191_v58 = vadd.f32 %v6639_v20, %v1135_v3 }
 0x408   :  { %2001 = vrot.lane.b32.xlu0 %v6595_v0, %s5583_s20 }
 0x40b   :  { %1365 = vrot.lane.b32.xlu1 %v6553_v1, %s5584_s21  ;;  %v6645_v38 = vpop.permute.xlu1 %1276 }
 0x40c   :  { %2049 = vrot.lane.b32.xlu0 %v6579_v47, %s5583_s20 }
 0x40f   :  { %1381 = vrot.lane.b32.xlu1 %v6557_v37, %s5584_s21 }
 0x410   :  { %1331 = vrot.lane.b32.xlu0 %v6595_v0, %s5584_s21  ;;  %v6655_v50 = vpop.permute.xlu1 %1174 }
 0x412   :  { %v6697_v15 = vpop.permute.xlu0 %1284 }
 0x413   :  { %1496 = vrot.lane.b32.xlu1 %v6541_v11, %s5585_s22 }
 0x414   :  { %1347 = vrot.lane.b32.xlu0 %v6565_v28, %s5584_s21 }
 0x415   :  { %v6661_v32 = vpop.permute.xlu1 %1288 }
 0x416   :  { %v6707_v27 = vpop.permute.xlu0 %1296 }
 0x417   :  { %1512 = vrot.lane.b32.xlu1 %v6547_v16, %s5585_s22 }
 0x418   :  { %1363 = vrot.lane.b32.xlu0 %v6573_v63, %s5584_s21 }
 0x41a   :  { %v6671_v22 = vpop.permute.xlu1 %1169 }
 0x41b   :  { %1528 = vrot.lane.b32.xlu1 %v6553_v1, %s5585_s22 }
 0x41c   :  { %1379 = vrot.lane.b32.xlu0 %v6579_v47, %s5584_s21 }
 0x41e   :  { %v6677_v7 = vpop.permute.xlu1 %1184  ;;  %v6717_v44 = vpop.permute.xlu0 %1179 }
 0x41f   :  { %1544 = vrot.lane.b32.xlu1 %v6557_v37, %s5585_s22 }
 0x420   :  { %1494 = vrot.lane.b32.xlu0 %v6595_v0, %s5585_s22 }
 0x423   :  { %1657 = vrot.lane.b32.xlu1 %v6541_v11, %s5586_s23  ;;  %v6687_v21 = vpop.permute.xlu1 %1292 }
 0x424   :  { %1510 = vrot.lane.b32.xlu0 %v6565_v28, %s5585_s22 }
 0x427   :  { %1673 = vrot.lane.b32.xlu1 %v6547_v16, %s5586_s23 }
 0x428   :  { %1526 = vrot.lane.b32.xlu0 %v6573_v63, %s5585_s22 }
 0x42b   :  { %1689 = vrot.lane.b32.xlu1 %v6553_v1, %s5586_s23 }
 0x42c   :  { %1542 = vrot.lane.b32.xlu0 %v6579_v47, %s5585_s22 }
 0x42f   :  { %1705 = vrot.lane.b32.xlu1 %v6557_v37, %s5586_s23 }
 0x430   :  { %1655 = vrot.lane.b32.xlu0 %v6595_v0, %s5586_s23 }
 0x433   :  { %2577 = vrot.lane.b32.xlu1 %v6547_v16, %s5587_s2 }
 0x434   :  { %1671 = vrot.lane.b32.xlu0 %v6565_v28, %s5586_s23 }
 0x437   :  { %2593 = vrot.lane.b32.xlu1 %v6553_v1, %s5587_s2 }
 0x438   :  { %1687 = vrot.lane.b32.xlu0 %v6573_v63, %s5586_s23 }
 0x43b   :  { %2561 = vrot.lane.b32.xlu1 %v6541_v11, %s5587_s2 }
 0x43c   :  { %1703 = vrot.lane.b32.xlu0 %v6579_v47, %s5586_s23 }
 0x43f   :  { %2609 = vrot.lane.b32.xlu1 %v6557_v37, %s5587_s2 }
 0x440   :  { %2575 = vrot.lane.b32.xlu0 %v6565_v28, %s5587_s2 }
 0x443   :  { %2738 = vrot.lane.b32.xlu1 %v6547_v16, %s5588_s3 }
 0x444   :  { %2591 = vrot.lane.b32.xlu0 %v6573_v63, %s5587_s2 }
 0x447   :  { %2754 = vrot.lane.b32.xlu1 %v6553_v1, %s5588_s3 }
 0x448   :  { %2559 = vrot.lane.b32.xlu0 %v6595_v0, %s5587_s2 }
 0x44b   :  { %2722 = vrot.lane.b32.xlu1 %v6541_v11, %s5588_s3 }
 0x44c   :  { %2607 = vrot.lane.b32.xlu0 %v6579_v47, %s5587_s2 }
 0x44f   :  { %2770 = vrot.lane.b32.xlu1 %v6557_v37, %s5588_s3 }
 0x450   :  { %2736 = vrot.lane.b32.xlu0 %v6565_v28, %s5588_s3 }
 0x453   :  { %2899 = vrot.lane.b32.xlu1 %v6547_v16, %s5589_s1 }
 0x454   :  { %2752 = vrot.lane.b32.xlu0 %v6573_v63, %s5588_s3 }
 0x455   :  { %v6693_v9 = vpop.permute.xlu1 %1826 }
 0x457   :  { %2915 = vrot.lane.b32.xlu1 %v6553_v1, %s5589_s1 }
 0x458   :  { %2720 = vrot.lane.b32.xlu0 %v6595_v0, %s5588_s3 }
 0x459   :  { %v6701_v56 = vpop.permute.xlu1 %1842 }
 0x45b   :  { %2883 = vrot.lane.b32.xlu1 %v6541_v11, %s5589_s1  ;;  %v1306_v11 = vadd.f32 %v6633_v48, %v1258_v14 }
 0x45c   :  { %2768 = vrot.lane.b32.xlu0 %v6579_v47, %s5588_s3 }
 0x45d   :  { %v1859_v18 = vpop.permute.xlu1 %1858 }
 0x45e   :  { %v1898_v48 = vsel %vm1888_vm4, %v6701_v56, %v1859_v18 }
 0x45f   :  { %2931 = vrot.lane.b32.xlu1 %v6557_v37, %s5589_s1  ;;  %v6787_v37 = vmax.f32 %v1191_v58, 0.0 }
 0x460   :  { %2897 = vrot.lane.b32.xlu0 %v6565_v28, %s5589_s1 }
 0x461   :  { %v6715_v23 = vpop.permute.xlu1 %1874  ;;  %10900 = vst [vmem:[#allocation24_spill] sm:$0xff] %v6787_v37 }
 0x463   :  { %1824 = vrot.lane.b32.xlu1 %v6595_v0, %s5582_s19 }
 0x464   :  { %2913 = vrot.lane.b32.xlu0 %v6573_v63, %s5589_s1 }
 0x465   :  { %v6727_v30 = vpop.permute.xlu1 %2019 }
 0x466   :  { %10887 = vst [vmem:[#allocation17_spill] sm:$0xff] %v6727_v30  ;;  %v6729_v62 = vpop.permute.xlu0 %1840  ;;  %v10896_v30 = vld [vmem:[#allocation34_spill] sm:$0xff] }
 0x467   :  { %1830 = vrot.lane.b32.xlu1 %v6725_v13, %s5582_s19  ;;  %v1136_v1 = vmul.f32 %v6508_v42, %v10896_v30  ;;  %v1890_v42 = vsel %vm1888_vm4, %v1859_v18, %v6715_v23  ;;  %v6806_v18 = vmax.f32 %v1306_v11, 0.0 }
 0x468   :  { %2881 = vrot.lane.b32.xlu0 %v6595_v0, %s5589_s1 }
 0x469   :  { %v6750_v45 = vpop.permute.xlu1 %2035  ;;  %v1192_v0 = vadd.f32 %v6639_v20, %v1136_v1  ;;  %10902 = vst [vmem:[#allocation25_spill] sm:$0xff] %v6806_v18 }
 0x46a   :  { %10893 = vst [vmem:[#allocation27_spill] sm:$0xff] %v6750_v45  ;;  %v1857_v40 = vpop.permute.xlu0 %1856  ;;  %v10897_v45 = vld [vmem:[#allocation14_spill] sm:$0xff] }
 0x46b   :  { %1846 = vrot.lane.b32.xlu1 %v6742_v4, %s5582_s19  ;;  %v6767_v3 = vrot.slane %v6748_v39, %v10897_v45  ;;  %v1897_v63 = vsel %vm1888_vm4, %v6729_v62, %v1857_v40  ;;  %v6779_v6 = vrot.slane %v6756_v2, %v10897_v45 }
 0x46c   :  { %2929 = vrot.lane.b32.xlu0 %v6579_v47, %s5589_s1 }
 0x46d   :  { %v6784_v30 = vpop.permute.xlu1 %2003  ;;  %v1939_v14 = vmul.f32 %v6779_v6, %v1897_v63  ;;  %v1944_v20 = vmul.f32 %v6767_v3, %v1890_v42  ;;  %v1943_v63 = vmul.f32 %v6779_v6, %v1898_v48 }
 0x46e   :  { %10899 = vst [vmem:[#allocation30_spill] sm:$0xff] %v6784_v30  ;;  %v6792_v31 = vpop.permute.xlu0 %1872  ;;  %v10901_v30 = vld [vmem:[#allocation21_spill] sm:$0xff] }
 0x46f   :  { %v1889_v47 = vsel %vm1888_vm4, %v1857_v40, %v6792_v31  ;;  %1862 = vrot.lane.b32.xlu1 %v6775_v53, %s5582_s19  ;;  %v1255_v1 = vmul.f32 %v6496_v25, %v10901_v30  ;;  %v6811_v40 = vmax.f32 %v1192_v0, 0.0  ;;  %v1971_v2 = vpack.c.bf16 %v1943_v63, %v1939_v14 }
 0x470   :  { %v1940_v58 = vmul.f32 %v6767_v3, %v1889_v47  ;;  %1828 = vrot.lane.b32.xlu0 %v6787_v37, %s5582_s19  ;;  %v10905_v47 = vld [vmem:[#allocation35_spill] sm:$0xff] }
 0x471   :  { %v6809_v16 = vpop.permute.xlu1 %2051  ;;  %10904 = vst [vmem:[#allocation23_spill] sm:$0xff] %v6811_v40  ;;  %v1303_v28 = vadd.f32 %v6645_v38, %v1255_v1  ;;  %v1256_v42 = vmul.f32 %v6496_v25, %v10905_v47 }
 0x472   :  { %10903 = vst [vmem:[#allocation26_spill] sm:$0xff] %v6809_v16  ;;  %v6814_v39 = vpop.permute.xlu0 %2017  ;;  %v1972_v30 = vpack.c.bf16 %v1944_v20, %v1940_v58 }
 0x473   :  { %1878 = vrot.lane.b32.xlu1 %v6806_v18, %s5582_s19  ;;  %v1304_v0 = vadd.f32 %v6645_v38, %v1256_v42  ;;  %v6825_v48 = vmax.f32 %v1303_v28, 0.0 }
 0x474   :  { %1844 = vrot.lane.b32.xlu0 %v6811_v40, %s5582_s19  ;;  %2292 = vmatprep.subr.bf16.mxu0 %v1972_v30 }
 0x475   :  { %2293 = vmatpush1.bf16.msra.mxu0 %v1971_v2  ;;  %v6822_v11 = vpop.permute.xlu1 %1333  ;;  %10907 = vst [vmem:[#allocation32_spill] sm:$0xff] %v6825_v48  ;;  %v6835_v14 = vmax.f32 %v1304_v0, 0.0 }
 0x476   :  { %10906 = vst [vmem:[#allocation31_spill] sm:$0xff] %v6822_v11  ;;  %v6827_v1 = vpop.permute.xlu0 %2033 }
 0x477   :  { %2023 = vrot.lane.b32.xlu1 %v6742_v4, %s5583_s20  ;;  %10909 = vst [vmem:[#allocation33_spill] sm:$0xff] %v6835_v14 }
 0x478   :  { %1860 = vrot.lane.b32.xlu0 %v6825_v48, %s5582_s19 }
 0x479   :  { %v6833_v25 = vpop.permute.xlu1 %1349 }
 0x47a   :  { %10908 = vst [vmem:[#allocation36_spill] sm:$0xff] %v6833_v25  ;;  %v6837_v20 = vpop.permute.xlu0 %2001 }
 0x47b   :  { %10910 = vst [vmem:[#allocation37_spill] sm:$0xff] %v6837_v20  ;;  %2039 = vrot.lane.b32.xlu1 %v6775_v53, %s5583_s20 }
 0x47c   :  { %1876 = vrot.lane.b32.xlu0 %v6835_v14, %s5582_s19 }
 0x47d   :  { %v6843_v28 = vpop.permute.xlu1 %1365 }
 0x47e   :  { %10911 = vst [vmem:[#allocation34_spill] sm:$0xff] %v6843_v28  ;;  %v6845_v38 = vpop.permute.xlu0 %2049 }
 0x47f   :  { %10912 = vst [vmem:[#allocation14_spill] sm:$0xff] %v6845_v38  ;;  %2007 = vrot.lane.b32.xlu1 %v6725_v13, %s5583_s20 }
 0x480   :  { %2021 = vrot.lane.b32.xlu0 %v6811_v40, %s5583_s20 }
 0x481   :  { %v6851_v2 = vpop.permute.xlu1 %1381 }
 0x482   :  { %10913 = vst [vmem:[#allocation21_spill] sm:$0xff] %v6851_v2  ;;  %v6853_v58 = vpop.permute.xlu0 %1331 }
 0x483   :  { %10914 = vst [vmem:[#allocation35_spill] sm:$0xff] %v6853_v58  ;;  %2055 = vrot.lane.b32.xlu1 %v6806_v18, %s5583_s20  ;;  %v1914_v58 = vsel %vm1888_vm4, %v6715_v23, %v6693_v9 }
 0x484   :  { %2037 = vrot.lane.b32.xlu0 %v6825_v48, %s5583_s20 }
 0x485   :  { %v6859_v63 = vpop.permute.xlu1 %1496 }
 0x486   :  { %10915 = vst [vmem:[#allocation41_spill] sm:$0xff] %v6859_v63  ;;  %v6861_v30 = vpop.permute.xlu0 %1347 }
 0x487   :  { %10916 = vst [vmem:[#allocation42_spill] sm:$0xff] %v6861_v30  ;;  %1337 = vrot.lane.b32.xlu1 %v6725_v13, %s5584_s21 }
 0x488   :  { %2005 = vrot.lane.b32.xlu0 %v6787_v37, %s5583_s20 }
 0x489   :  { %v6867_v47 = vpop.permute.xlu1 %1512 }
 0x48a   :  { %10917 = vst [vmem:[#allocation43_spill] sm:$0xff] %v6867_v47  ;;  %v6869_v42 = vpop.permute.xlu0 %1363 }
 0x48b   :  { %10918 = vst [vmem:[#allocation44_spill] sm:$0xff] %v6869_v42  ;;  %1353 = vrot.lane.b32.xlu1 %v6742_v4, %s5584_s21 }
 0x48c   :  { %2053 = vrot.lane.b32.xlu0 %v6835_v14, %s5583_s20 }
 0x48d   :  { %v6875_v0 = vpop.permute.xlu1 %1528 }
 0x48e   :  { %10919 = vst [vmem:[#allocation45_spill] sm:$0xff] %v6875_v0  ;;  %v6877_v63 = vpop.permute.xlu0 %1379 }
 0x48f   :  { %10920 = vst [vmem:[#allocation46_spill] sm:$0xff] %v6877_v63  ;;  %1369 = vrot.lane.b32.xlu1 %v6775_v53, %s5584_s21 }
 0x490   :  { %1335 = vrot.lane.b32.xlu0 %v6787_v37, %s5584_s21 }
 0x491   :  { %v6883_v2 = vpop.permute.xlu1 %1544 }
 0x492   :  { %10921 = vst [vmem:[#allocation47_spill] sm:$0xff] %v6883_v2  ;;  %v6885_v47 = vpop.permute.xlu0 %1494 }
 0x493   :  { %10922 = vst [vmem:[#allocation48_spill] sm:$0xff] %v6885_v47  ;;  %1385 = vrot.lane.b32.xlu1 %v6806_v18, %s5584_s21 }
 0x494   :  { %1351 = vrot.lane.b32.xlu0 %v6811_v40, %s5584_s21 }
 0x495   :  { %v6891_v42 = vpop.permute.xlu1 %1657 }
 0x496   :  { %10923 = vst [vmem:[#allocation49_spill] sm:$0xff] %v6891_v42  ;;  %v6893_v0 = vpop.permute.xlu0 %1510 }
 0x497   :  { %10924 = vst [vmem:[#allocation50_spill] sm:$0xff] %v6893_v0  ;;  %1500 = vrot.lane.b32.xlu1 %v6725_v13, %s5585_s22 }
 0x498   :  { %1367 = vrot.lane.b32.xlu0 %v6825_v48, %s5584_s21 }
 0x499   :  { %v6899_v63 = vpop.permute.xlu1 %1673 }
 0x49a   :  { %10925 = vst [vmem:[#allocation51_spill] sm:$0xff] %v6899_v63  ;;  %v6901_v2 = vpop.permute.xlu0 %1526 }
 0x49b   :  { %10926 = vst [vmem:[#allocation52_spill] sm:$0xff] %v6901_v2  ;;  %1516 = vrot.lane.b32.xlu1 %v6742_v4, %s5585_s22 }
 0x49c   :  { %1383 = vrot.lane.b32.xlu0 %v6835_v14, %s5584_s21 }
 0x49d   :  { %v6907_v47 = vpop.permute.xlu1 %1689 }
 0x49e   :  { %10927 = vst [vmem:[#allocation53_spill] sm:$0xff] %v6907_v47  ;;  %v6909_v42 = vpop.permute.xlu0 %1542 }
 0x49f   :  { %10928 = vst [vmem:[#allocation54_spill] sm:$0xff] %v6909_v42  ;;  %1532 = vrot.lane.b32.xlu1 %v6775_v53, %s5585_s22 }
 0x4a0   :  { %1498 = vrot.lane.b32.xlu0 %v6787_v37, %s5585_s22 }
 0x4a1   :  { %v6915_v0 = vpop.permute.xlu1 %1705 }
 0x4a2   :  { %10929 = vst [vmem:[#allocation55_spill] sm:$0xff] %v6915_v0  ;;  %v6917_v63 = vpop.permute.xlu0 %1655 }
 0x4a3   :  { %10930 = vst [vmem:[#allocation56_spill] sm:$0xff] %v6917_v63  ;;  %1548 = vrot.lane.b32.xlu1 %v6806_v18, %s5585_s22 }
 0x4a4   :  { %1514 = vrot.lane.b32.xlu0 %v6811_v40, %s5585_s22 }
 0x4a5   :  { %v6923_v2 = vpop.permute.xlu1 %2577 }
 0x4a6   :  { %10931 = vst [vmem:[#allocation57_spill] sm:$0xff] %v6923_v2  ;;  %v6925_v47 = vpop.permute.xlu0 %1671 }
 0x4a7   :  { %10932 = vst [vmem:[#allocation58_spill] sm:$0xff] %v6925_v47  ;;  %1661 = vrot.lane.b32.xlu1 %v6725_v13, %s5586_s23 }
 0x4a8   :  { %1530 = vrot.lane.b32.xlu0 %v6825_v48, %s5585_s22 }
 0x4a9   :  { %v6931_v42 = vpop.permute.xlu1 %2593 }
 0x4aa   :  { %10933 = vst [vmem:[#allocation59_spill] sm:$0xff] %v6931_v42  ;;  %v6933_v0 = vpop.permute.xlu0 %1687 }
 0x4ab   :  { %10934 = vst [vmem:[#allocation60_spill] sm:$0xff] %v6933_v0  ;;  %1677 = vrot.lane.b32.xlu1 %v6742_v4, %s5586_s23 }
 0x4ac   :  { %1546 = vrot.lane.b32.xlu0 %v6835_v14, %s5585_s22 }
 0x4ad   :  { %v6939_v63 = vpop.permute.xlu1 %2561 }
 0x4ae   :  { %10935 = vst [vmem:[#allocation61_spill] sm:$0xff] %v6939_v63  ;;  %v6941_v2 = vpop.permute.xlu0 %1703 }
 0x4af   :  { %10936 = vst [vmem:[#allocation62_spill] sm:$0xff] %v6941_v2  ;;  %1693 = vrot.lane.b32.xlu1 %v6775_v53, %s5586_s23 }
 0x4b0   :  { %1659 = vrot.lane.b32.xlu0 %v6787_v37, %s5586_s23 }
 0x4b1   :  { %v6947_v47 = vpop.permute.xlu1 %2609 }
 0x4b2   :  { %10937 = vst [vmem:[#allocation63_spill] sm:$0xff] %v6947_v47  ;;  %v6949_v42 = vpop.permute.xlu0 %2575 }
 0x4b3   :  { %10938 = vst [vmem:[#allocation64_spill] sm:$0xff] %v6949_v42  ;;  %1709 = vrot.lane.b32.xlu1 %v6806_v18, %s5586_s23 }
 0x4b4   :  { %1675 = vrot.lane.b32.xlu0 %v6811_v40, %s5586_s23 }
 0x4b5   :  { %v6955_v0 = vpop.permute.xlu1 %2738 }
 0x4b6   :  { %10939 = vst [vmem:[#allocation65_spill] sm:$0xff] %v6955_v0  ;;  %v6957_v63 = vpop.permute.xlu0 %2591 }
 0x4b7   :  { %10940 = vst [vmem:[#allocation66_spill] sm:$0xff] %v6957_v63  ;;  %2581 = vrot.lane.b32.xlu1 %v6742_v4, %s5587_s2 }
 0x4b8   :  { %1691 = vrot.lane.b32.xlu0 %v6825_v48, %s5586_s23 }
 0x4b9   :  { %v6963_v2 = vpop.permute.xlu1 %2754 }
 0x4ba   :  { %10941 = vst [vmem:[#allocation67_spill] sm:$0xff] %v6963_v2  ;;  %v6965_v47 = vpop.permute.xlu0 %2559 }
 0x4bb   :  { %10942 = vst [vmem:[#allocation68_spill] sm:$0xff] %v6965_v47  ;;  %2597 = vrot.lane.b32.xlu1 %v6775_v53, %s5587_s2 }
 0x4bc   :  { %1707 = vrot.lane.b32.xlu0 %v6835_v14, %s5586_s23 }
 0x4bd   :  { %v6971_v42 = vpop.permute.xlu1 %2722 }
 0x4be   :  { %10943 = vst [vmem:[#allocation69_spill] sm:$0xff] %v6971_v42  ;;  %v6973_v0 = vpop.permute.xlu0 %2607 }
 0x4bf   :  { %10944 = vst [vmem:[#allocation70_spill] sm:$0xff] %v6973_v0  ;;  %2565 = vrot.lane.b32.xlu1 %v6725_v13, %s5587_s2 }
 0x4c0   :  { %2579 = vrot.lane.b32.xlu0 %v6811_v40, %s5587_s2 }
 0x4c1   :  { %v6979_v63 = vpop.permute.xlu1 %2770 }
 0x4c2   :  { %10945 = vst [vmem:[#allocation71_spill] sm:$0xff] %v6979_v63  ;;  %v6981_v2 = vpop.permute.xlu0 %2736 }
 0x4c3   :  { %10946 = vst [vmem:[#allocation72_spill] sm:$0xff] %v6981_v2  ;;  %2613 = vrot.lane.b32.xlu1 %v6806_v18, %s5587_s2 }
 0x4c4   :  { %2595 = vrot.lane.b32.xlu0 %v6825_v48, %s5587_s2 }
 0x4c5   :  { %v6987_v47 = vpop.permute.xlu1 %2899 }
 0x4c6   :  { %10947 = vst [vmem:[#allocation73_spill] sm:$0xff] %v6987_v47  ;;  %v6989_v42 = vpop.permute.xlu0 %2752 }
 0x4c7   :  { %10948 = vst [vmem:[#allocation74_spill] sm:$0xff] %v6989_v42  ;;  %2742 = vrot.lane.b32.xlu1 %v6742_v4, %s5588_s3  ;;  %v7012_v42 = vld [vmem:[%s10447_s10 + $0x8] sm:$0xff] }
 0x4c8   :  { %2563 = vrot.lane.b32.xlu0 %v6787_v37, %s5587_s2 }
 0x4c9   :  { %v6995_v0 = vpop.permute.xlu1 %2915 }
 0x4ca   :  { %10949 = vst [vmem:[#allocation75_spill] sm:$0xff] %v6995_v0  ;;  %v6997_v63 = vpop.permute.xlu0 %2720  ;;  %v7017_v0 = vld [vmem:[%s10447_s10] sm:$0xff] }
 0x4cb   :  { %10950 = vst [vmem:[#allocation76_spill] sm:$0xff] %v6997_v63  ;;  %2758 = vrot.lane.b32.xlu1 %v6775_v53, %s5588_s3  ;;  %v7033_v28 = vrot.slane %v7017_v0, %v10897_v45 }
 0x4cc   :  { %2611 = vrot.lane.b32.xlu0 %v6835_v14, %s5587_s2 }
 0x4cd   :  { %v7003_v2 = vpop.permute.xlu1 %2883 }
 0x4ce   :  { %10951 = vst [vmem:[#allocation77_spill] sm:$0xff] %v7003_v2  ;;  %v7005_v47 = vpop.permute.xlu0 %2768 }
 0x4cf   :  { %10952 = vst [vmem:[#allocation78_spill] sm:$0xff] %v7005_v47  ;;  %2726 = vrot.lane.b32.xlu1 %v6725_v13, %s5588_s3  ;;  %v7029_v47 = vrot.slane %v7012_v42, %v10897_v45 }
 0x4d0   :  { %2740 = vrot.lane.b32.xlu0 %v6811_v40, %s5588_s3 }
 0x4d1   :  { %v7021_v63 = vpop.permute.xlu1 %2931 }
 0x4d2   :  { %10953 = vst [vmem:[#allocation79_spill] sm:$0xff] %v7021_v63  ;;  %v7023_v2 = vpop.permute.xlu0 %2897  ;;  %v1906_v63 = vsel %vm1888_vm4, %v6693_v9, %v6701_v56  ;;  %v1941_v56 = vmul.f32 %v7033_v28, %v1914_v58 }
 0x4d3   :  { %10954 = vst [vmem:[#allocation80_spill] sm:$0xff] %v7023_v2  ;;  %2774 = vrot.lane.b32.xlu1 %v6806_v18, %s5588_s3  ;;  %v1942_v25 = vmul.f32 %v7029_v47, %v1906_v63 }
 0x4d4   :  { %2756 = vrot.lane.b32.xlu0 %v6825_v48, %s5588_s3 }
 0x4d5   :  { %v1825_v2 = vpop.permute.xlu1 %1824 }
 0x4d6   :  { %v1913_v30 = vsel %vm1888_vm4, %v6792_v31, %v1825_v2  ;;  %v7048_v45 = vpop.permute.xlu0 %2913  ;;  %v1905_v11 = vsel %vm1888_vm4, %v1825_v2, %v6729_v62  ;;  %v1141_v2 = vmul.f32 %v6512_v34, %v6175_v36 }
 0x4d7   :  { %10955 = vst [vmem:[#allocation81_spill] sm:$0xff] %v7048_v45  ;;  %2903 = vrot.lane.b32.xlu1 %v6742_v4, %s5589_s1  ;;  %v1938_v23 = vmul.f32 %v7029_v47, %v1905_v11  ;;  %v1937_v9 = vmul.f32 %v7033_v28, %v1913_v30  ;;  %v1142_v30 = vmul.f32 %v6512_v34, %v6177_v10  ;;  %v11107_v4 = vld [vmem:[#allocation30_spill] sm:$0xff] }
 0x4d8   :  { %2724 = vrot.lane.b32.xlu0 %v6787_v37, %s5588_s3  ;;  %v1139_v34 = vmul.f32 %v6510_v51, %v6156_v35  ;;  %v1262_v35 = vmul.f32 %v6504_v43, %v6189_v52 }
 0x4d9   :  { %v1831_v31 = vpop.permute.xlu1 %1830  ;;  %v1970_v45 = vpack.c.bf16 %v1942_v25, %v1938_v23  ;;  %v1969_v38 = vpack.c.bf16 %v1941_v56, %v1937_v9  ;;  %v1197_v25 = vadd.f32 %v6655_v50, %v1141_v2  ;;  %v1198_v36 = vadd.f32 %v6655_v50, %v1142_v30 }
 0x4da   :  { %v7061_v16 = vpop.permute.xlu0 %2881  ;;  %v1261_v56 = vmul.f32 %v6504_v43, %v6187_v5 }
 0x4db   :  { %10956 = vst [vmem:[#allocation82_spill] sm:$0xff] %v7061_v16  ;;  %2919 = vrot.lane.b32.xlu1 %v6775_v53, %s5589_s1  ;;  %2219 = vmatprep.subr.bf16.mxu1 %v1970_v45  ;;  %v5543_v53 = vld [vmem:[%s10447_s10 + $0x10] sm:$0xff] }
 0x4dc   :  { %2772 = vrot.lane.b32.xlu0 %v6835_v14, %s5588_s3  ;;  %2220 = vmatpush1.bf16.msra.mxu1 %v1969_v38  ;;  %v7083_v38 = vmax.f32 %v1197_v25, 0.0  ;;  %v7099_v25 = vmax.f32 %v1198_v36, 0.0  ;;  %v1309_v5 = vadd.f32 %v6661_v32, %v1261_v56  ;;  %v1310_v56 = vadd.f32 %v6661_v32, %v1262_v35 }
 0x4dd   :  { %v1847_v62 = vpop.permute.xlu1 %1846 }
 0x4de   :  { %v7067_v11 = vpop.permute.xlu0 %2929  ;;  %v1908_v45 = vsel %vm1888_vm4, %v1831_v31, %v1847_v62  ;;  %10958 = vst [vmem:[#allocation84_spill] sm:$0xff] %v7099_v25 }
 0x4df   :  { %10957 = vst [vmem:[#allocation83_spill] sm:$0xff] %v7067_v11  ;;  %2887 = vrot.lane.b32.xlu1 %v6725_v13, %s5589_s1  ;;  %v1950_v50 = vmul.f32 %v7029_v47, %v1908_v45  ;;  %v1195_v11 = vadd.f32 %v6671_v22, %v1139_v34  ;;  %v1140_v45 = vmul.f32 %v6510_v51, %v6158_v46 }
 0x4e0   :  { %2901 = vrot.lane.b32.xlu0 %v6811_v40, %s5589_s1  ;;  %v1259_v46 = vmul.f32 %v6521_v17, %v6161_v12 }
 0x4e1   :  { %v1863_v58 = vpop.permute.xlu1 %1862  ;;  %v1196_v51 = vadd.f32 %v6671_v22, %v1140_v45 }
 0x4e2   :  { %v1829_v63 = vpop.permute.xlu0 %1828  ;;  %v1900_v32 = vsel %vm1888_vm4, %v1847_v62, %v1863_v58  ;;  %v1307_v62 = vadd.f32 %v6697_v15, %v1259_v46 }
 0x4e3   :  { %2935 = vrot.lane.b32.xlu1 %v6806_v18, %s5589_s1 }
 0x4e4   :  { %2917 = vrot.lane.b32.xlu0 %v6825_v48, %s5589_s1 }
 0x4e5   :  { %v1879_v23 = vpop.permute.xlu1 %1878 }
 0x4e6   :  { %v1845_v9 = vpop.permute.xlu0 %1844  ;;  %v1916_v36 = vsel %vm1888_vm4, %v1879_v23, %v1831_v31  ;;  %v1892_v52 = vsel %vm1888_vm4, %v1863_v58, %v1879_v23  ;;  %v7127_v31 = vmax.f32 %v1195_v11, 0.0 }
 0x4e7   :  { %v1907_v10 = vsel %vm1888_vm4, %v1829_v63, %v1845_v9  ;;  %1834 = vrot.lane.b32.xlu1 %v7083_v38, %s5582_s19  ;;  %v1952_v12 = vmul.f32 %v6767_v3, %v1892_v52  ;;  %v1260_v52 = vmul.f32 %v6521_v17, %v6163_v61 }
 0x4e8   :  { %v1946_v2 = vmul.f32 %v7029_v47, %v1907_v10  ;;  %2885 = vrot.lane.b32.xlu0 %v6787_v37, %s5589_s1  ;;  %v7116_v10 = vmax.f32 %v1309_v5, 0.0  ;;  %10962 = vst [vmem:[#allocation88_spill] sm:$0xff] %v7127_v31  ;;  %v1951_v5 = vmul.f32 %v6779_v6, %v1900_v32 }
 0x4e9   :  { %v7102_v30 = vpop.permute.xlu1 %2023  ;;  %v1308_v46 = vadd.f32 %v6697_v15, %v1260_v52 }
 0x4ea   :  { %10959 = vst [vmem:[#allocation85_spill] sm:$0xff] %v7102_v30  ;;  %v1861_v16 = vpop.permute.xlu0 %1860  ;;  %v1974_v20 = vpack.c.bf16 %v1950_v50, %v1946_v2  ;;  %10960 = vst [vmem:[#allocation86_spill] sm:$0xff] %v7116_v10  ;;  %v1949_v50 = vmul.f32 %v7033_v28, %v1916_v36 }
 0x4eb   :  { %1850 = vrot.lane.b32.xlu1 %v7099_v25, %s5582_s19  ;;  %v1899_v43 = vsel %vm1888_vm4, %v1845_v9, %v1861_v16  ;;  %v7173_v17 = vmax.f32 %v1308_v46, 0.0 }
 0x4ec   :  { %2933 = vrot.lane.b32.xlu0 %v6835_v14, %s5589_s1  ;;  %2221 = vmatprep.subr.bf16.mxu1 %v1974_v20  ;;  %v1947_v22 = vmul.f32 %v6779_v6, %v1899_v43  ;;  %v11102_v14 = vld [vmem:[#allocation37_spill] sm:$0xff] }
 0x4ed   :  { %v7122_v34 = vpop.permute.xlu1 %2039  ;;  %10970 = vst [vmem:[#allocation96_spill] sm:$0xff] %v7173_v17  ;;  %v2082_v18 = vsel %vm2065_vm5, %v11102_v14, %v6814_v39 }
 0x4ee   :  { %10961 = vst [vmem:[#allocation87_spill] sm:$0xff] %v7122_v34  ;;  %v1877_v20 = vpop.permute.xlu0 %1876  ;;  %v1975_v43 = vpack.c.bf16 %v1951_v5, %v1947_v22 }
 0x4ef   :  { %v1891_v23 = vsel %vm1888_vm4, %v1861_v16, %v1877_v20  ;;  %v1915_v9 = vsel %vm1888_vm4, %v1877_v20, %v1829_v63  ;;  %1866 = vrot.lane.b32.xlu1 %v7116_v10, %s5582_s19  ;;  %v7145_v16 = vmax.f32 %v1310_v56, 0.0  ;;  %v7149_v63 = vmax.f32 %v1196_v51, 0.0 }
 0x4f0   :  { %v1945_v11 = vmul.f32 %v7033_v28, %v1915_v9  ;;  %v1948_v2 = vmul.f32 %v6767_v3, %v1891_v23  ;;  %1832 = vrot.lane.b32.xlu0 %v7127_v31, %s5582_s19  ;;  %v7163_v51 = vmax.f32 %v1307_v62, 0.0 }
 0x4f1   :  { %v7147_v58 = vpop.permute.xlu1 %2007  ;;  %10964 = vst [vmem:[#allocation90_spill] sm:$0xff] %v7149_v63 }
 0x4f2   :  { %10963 = vst [vmem:[#allocation89_spill] sm:$0xff] %v7147_v58  ;;  %v7152_v35 = vpop.permute.xlu0 %2021  ;;  %v1973_v45 = vpack.c.bf16 %v1949_v50, %v1945_v11  ;;  %v1976_v36 = vpack.c.bf16 %v1952_v12, %v1948_v2  ;;  %10967 = vst [vmem:[#allocation93_spill] sm:$0xff] %v7163_v51  ;;  %v11089_v58 = vld [vmem:[#allocation8_spill] sm:$0xff] }
 0x4f3   :  { %10965 = vst [vmem:[#allocation91_spill] sm:$0xff] %v7152_v35  ;;  %1882 = vrot.lane.b32.xlu1 %v7145_v16, %s5582_s19  ;;  %v11101_v35 = vld [vmem:[#allocation17_spill] sm:$0xff] }
 0x4f4   :  { %1848 = vrot.lane.b32.xlu0 %v7149_v63, %s5582_s19  ;;  %2222 = vmatpush1.bf16.msra.mxu1 %v1973_v45 }
 0x4f5   :  { %2294 = vmatprep.subr.bf16.mxu0 %v1976_v36  ;;  %v7160_v56 = vpop.permute.xlu1 %2055 }
 0x4f6   :  { %10966 = vst [vmem:[#allocation92_spill] sm:$0xff] %v7160_v56  ;;  %2295 = vmatpush1.bf16.msra.mxu0 %v1975_v43  ;;  %v7165_v20 = vpop.permute.xlu0 %2037 }
 0x4f7   :  { %10968 = vst [vmem:[#allocation94_spill] sm:$0xff] %v7165_v20  ;;  %2027 = vrot.lane.b32.xlu1 %v7099_v25, %s5583_s20 }
 0x4f8   :  { %1864 = vrot.lane.b32.xlu0 %v7163_v51, %s5582_s19 }
 0x4f9   :  { %v7171_v61 = vpop.permute.xlu1 %1337 }
 0x4fa   :  { %10969 = vst [vmem:[#allocation95_spill] sm:$0xff] %v7171_v61  ;;  %v7175_v32 = vpop.permute.xlu0 %2005 }
 0x4fb   :  { %10971 = vst [vmem:[#allocation97_spill] sm:$0xff] %v7175_v32  ;;  %2043 = vrot.lane.b32.xlu1 %v7116_v10, %s5583_s20 }
 0x4fc   :  { %1880 = vrot.lane.b32.xlu0 %v7173_v17, %s5582_s19 }
 0x4fd   :  { %v7181_v15 = vpop.permute.xlu1 %1353 }
 0x4fe   :  { %10972 = vst [vmem:[#allocation98_spill] sm:$0xff] %v7181_v15  ;;  %v7183_v50 = vpop.permute.xlu0 %2053  ;;  %v11077_v15 = vld [vmem:[#allocation7_spill] sm:$0xff] }
 0x4ff   :  { %10973 = vst [vmem:[#allocation99_spill] sm:$0xff] %v7183_v50  ;;  %2011 = vrot.lane.b32.xlu1 %v7083_v38, %s5583_s20  ;;  %v7680_v34 = vrot.slane %v7017_v0, %v11077_v15  ;;  %v11084_v50 = vld [vmem:[#allocation9_spill] sm:$0xff] }
 0x500   :  { %2025 = vrot.lane.b32.xlu0 %v7149_v63, %s5583_s20  ;;  %v7708_v32 = vrot.slane %v7017_v0, %v11084_v50 }
 0x501   :  { %v7189_v23 = vpop.permute.xlu1 %1369  ;;  %11082 = vst [vmem:[#allocation187_spill] sm:$0xff] %v7680_v34 }
 0x502   :  { %10974 = vst [vmem:[#allocation100_spill] sm:$0xff] %v7189_v23  ;;  %v7191_v9 = vpop.permute.xlu0 %1335  ;;  %11087 = vst [vmem:[#allocation190_spill] sm:$0xff] %v7708_v32 }
 0x503   :  { %10975 = vst [vmem:[#allocation101_spill] sm:$0xff] %v7191_v9  ;;  %2059 = vrot.lane.b32.xlu1 %v7145_v16, %s5583_s20  ;;  %v11103_v9 = vld [vmem:[#allocation15_spill] sm:$0xff] }
 0x504   :  { %2041 = vrot.lane.b32.xlu0 %v7163_v51, %s5583_s20 }
 0x505   :  { %v7197_v12 = vpop.permute.xlu1 %1385 }
 0x506   :  { %10976 = vst [vmem:[#allocation102_spill] sm:$0xff] %v7197_v12  ;;  %v7199_v22 = vpop.permute.xlu0 %1351 }
 0x507   :  { %10977 = vst [vmem:[#allocation103_spill] sm:$0xff] %v7199_v22  ;;  %1341 = vrot.lane.b32.xlu1 %v7083_v38, %s5584_s21  ;;  %v7780_v22 = vrot.slane %v7012_v42, %v11103_v9 }
 0x508   :  { %2009 = vrot.lane.b32.xlu0 %v7127_v31, %s5583_s20 }
 0x509   :  { %v7205_v11 = vpop.permute.xlu1 %1500 }
 0x50a   :  { %10978 = vst [vmem:[#allocation104_spill] sm:$0xff] %v7205_v11  ;;  %v7207_v2 = vpop.permute.xlu0 %1367 }
 0x50b   :  { %10979 = vst [vmem:[#allocation105_spill] sm:$0xff] %v7207_v2  ;;  %1357 = vrot.lane.b32.xlu1 %v7099_v25, %s5584_s21 }
 0x50c   :  { %2057 = vrot.lane.b32.xlu0 %v7173_v17, %s5583_s20 }
 0x50d   :  { %v7213_v62 = vpop.permute.xlu1 %1516 }
 0x50e   :  { %10980 = vst [vmem:[#allocation106_spill] sm:$0xff] %v7213_v62  ;;  %v7215_v5 = vpop.permute.xlu0 %1383 }
 0x50f   :  { %10981 = vst [vmem:[#allocation107_spill] sm:$0xff] %v7215_v5  ;;  %1373 = vrot.lane.b32.xlu1 %v7116_v10, %s5584_s21 }
 0x510   :  { %1339 = vrot.lane.b32.xlu0 %v7127_v31, %s5584_s21 }
 0x511   :  { %v7221_v45 = vpop.permute.xlu1 %1532 }
 0x512   :  { %10982 = vst [vmem:[#allocation108_spill] sm:$0xff] %v7221_v45  ;;  %v7223_v36 = vpop.permute.xlu0 %1498 }
 0x513   :  { %10983 = vst [vmem:[#allocation109_spill] sm:$0xff] %v7223_v36  ;;  %1389 = vrot.lane.b32.xlu1 %v7145_v16, %s5584_s21 }
 0x514   :  { %1355 = vrot.lane.b32.xlu0 %v7149_v63, %s5584_s21 }
 0x515   :  { %v7229_v52 = vpop.permute.xlu1 %1548 }
 0x516   :  { %10984 = vst [vmem:[#allocation110_spill] sm:$0xff] %v7229_v52  ;;  %v7231_v43 = vpop.permute.xlu0 %1514 }
 0x517   :  { %10985 = vst [vmem:[#allocation111_spill] sm:$0xff] %v7231_v43  ;;  %1504 = vrot.lane.b32.xlu1 %v7083_v38, %s5585_s22 }
 0x518   :  { %1371 = vrot.lane.b32.xlu0 %v7163_v51, %s5584_s21 }
 0x519   :  { %v7237_v46 = vpop.permute.xlu1 %1661 }
 0x51a   :  { %10986 = vst [vmem:[#allocation112_spill] sm:$0xff] %v7237_v46  ;;  %v7239_v45 = vpop.permute.xlu0 %1530 }
 0x51b   :  { %10987 = vst [vmem:[#allocation113_spill] sm:$0xff] %v7239_v45  ;;  %1520 = vrot.lane.b32.xlu1 %v7099_v25, %s5585_s22 }
 0x51c   :  { %1387 = vrot.lane.b32.xlu0 %v7173_v17, %s5584_s21 }
 0x51d   :  { %v7245_v36 = vpop.permute.xlu1 %1677 }
 0x51e   :  { %10988 = vst [vmem:[#allocation114_spill] sm:$0xff] %v7245_v36  ;;  %v7247_v52 = vpop.permute.xlu0 %1546 }
 0x51f   :  { %10989 = vst [vmem:[#allocation115_spill] sm:$0xff] %v7247_v52  ;;  %1536 = vrot.lane.b32.xlu1 %v7116_v10, %s5585_s22 }
 0x520   :  { %1502 = vrot.lane.b32.xlu0 %v7127_v31, %s5585_s22 }
 0x521   :  { %v7253_v43 = vpop.permute.xlu1 %1693 }
 0x522   :  { %10990 = vst [vmem:[#allocation116_spill] sm:$0xff] %v7253_v43  ;;  %v7255_v46 = vpop.permute.xlu0 %1659 }
 0x523   :  { %10991 = vst [vmem:[#allocation117_spill] sm:$0xff] %v7255_v46  ;;  %1552 = vrot.lane.b32.xlu1 %v7145_v16, %s5585_s22 }
 0x524   :  { %1518 = vrot.lane.b32.xlu0 %v7149_v63, %s5585_s22 }
 0x525   :  { %v7261_v45 = vpop.permute.xlu1 %1709 }
 0x526   :  { %10992 = vst [vmem:[#allocation118_spill] sm:$0xff] %v7261_v45  ;;  %v7263_v36 = vpop.permute.xlu0 %1675 }
 0x527   :  { %10993 = vst [vmem:[#allocation119_spill] sm:$0xff] %v7263_v36  ;;  %1665 = vrot.lane.b32.xlu1 %v7083_v38, %s5586_s23 }
 0x528   :  { %1534 = vrot.lane.b32.xlu0 %v7163_v51, %s5585_s22 }
 0x529   :  { %v7269_v52 = vpop.permute.xlu1 %2581 }
 0x52a   :  { %10994 = vst [vmem:[#allocation120_spill] sm:$0xff] %v7269_v52  ;;  %v7271_v43 = vpop.permute.xlu0 %1691 }
 0x52b   :  { %10995 = vst [vmem:[#allocation121_spill] sm:$0xff] %v7271_v43  ;;  %1681 = vrot.lane.b32.xlu1 %v7099_v25, %s5586_s23 }
 0x52c   :  { %1550 = vrot.lane.b32.xlu0 %v7173_v17, %s5585_s22 }
 0x52d   :  { %v7277_v46 = vpop.permute.xlu1 %2597 }
 0x52e   :  { %10996 = vst [vmem:[#allocation122_spill] sm:$0xff] %v7277_v46  ;;  %v7279_v45 = vpop.permute.xlu0 %1707 }
 0x52f   :  { %10997 = vst [vmem:[#allocation123_spill] sm:$0xff] %v7279_v45  ;;  %1697 = vrot.lane.b32.xlu1 %v7116_v10, %s5586_s23 }
 0x530   :  { %1663 = vrot.lane.b32.xlu0 %v7127_v31, %s5586_s23 }
 0x531   :  { %v7285_v36 = vpop.permute.xlu1 %2565 }
 0x532   :  { %10998 = vst [vmem:[#allocation124_spill] sm:$0xff] %v7285_v36  ;;  %v7287_v52 = vpop.permute.xlu0 %2579 }
 0x533   :  { %10999 = vst [vmem:[#allocation125_spill] sm:$0xff] %v7287_v52  ;;  %1713 = vrot.lane.b32.xlu1 %v7145_v16, %s5586_s23 }
 0x534   :  { %1679 = vrot.lane.b32.xlu0 %v7149_v63, %s5586_s23 }
 0x535   :  { %v7293_v43 = vpop.permute.xlu1 %2613 }
 0x536   :  { %11000 = vst [vmem:[#allocation126_spill] sm:$0xff] %v7293_v43  ;;  %v7295_v46 = vpop.permute.xlu0 %2595 }
 0x537   :  { %11001 = vst [vmem:[#allocation127_spill] sm:$0xff] %v7295_v46  ;;  %2585 = vrot.lane.b32.xlu1 %v7099_v25, %s5587_s2 }
 0x538   :  { %1695 = vrot.lane.b32.xlu0 %v7163_v51, %s5586_s23 }
 0x539   :  { %v7301_v45 = vpop.permute.xlu1 %2742 }
 0x53a   :  { %11002 = vst [vmem:[#allocation128_spill] sm:$0xff] %v7301_v45  ;;  %v7303_v36 = vpop.permute.xlu0 %2563 }
 0x53b   :  { %11003 = vst [vmem:[#allocation129_spill] sm:$0xff] %v7303_v36  ;;  %2601 = vrot.lane.b32.xlu1 %v7116_v10, %s5587_s2 }
 0x53c   :  { %1711 = vrot.lane.b32.xlu0 %v7173_v17, %s5586_s23 }
 0x53d   :  { %v7309_v52 = vpop.permute.xlu1 %2758 }
 0x53e   :  { %11004 = vst [vmem:[#allocation130_spill] sm:$0xff] %v7309_v52  ;;  %v7311_v43 = vpop.permute.xlu0 %2611 }
 0x53f   :  { %11005 = vst [vmem:[#allocation131_spill] sm:$0xff] %v7311_v43  ;;  %2569 = vrot.lane.b32.xlu1 %v7083_v38, %s5587_s2 }
 0x540   :  { %2583 = vrot.lane.b32.xlu0 %v7149_v63, %s5587_s2 }
 0x541   :  { %v7317_v46 = vpop.permute.xlu1 %2726 }
 0x542   :  { %11006 = vst [vmem:[#allocation132_spill] sm:$0xff] %v7317_v46  ;;  %v7319_v45 = vpop.permute.xlu0 %2740 }
 0x543   :  { %11007 = vst [vmem:[#allocation133_spill] sm:$0xff] %v7319_v45  ;;  %2617 = vrot.lane.b32.xlu1 %v7145_v16, %s5587_s2 }
 0x544   :  { %2599 = vrot.lane.b32.xlu0 %v7163_v51, %s5587_s2 }
 0x545   :  { %v7325_v36 = vpop.permute.xlu1 %2774 }
 0x546   :  { %11008 = vst [vmem:[#allocation134_spill] sm:$0xff] %v7325_v36  ;;  %v7327_v52 = vpop.permute.xlu0 %2756 }
 0x547   :  { %11009 = vst [vmem:[#allocation135_spill] sm:$0xff] %v7327_v52  ;;  %2746 = vrot.lane.b32.xlu1 %v7099_v25, %s5588_s3  ;;  %v1145_v52 = vmul.f32 %v6538_v26, %v6237_v54 }
 0x548   :  { %2567 = vrot.lane.b32.xlu0 %v7127_v31, %s5587_s2 }
 0x549   :  { %v7333_v43 = vpop.permute.xlu1 %2903 }
 0x54a   :  { %11010 = vst [vmem:[#allocation136_spill] sm:$0xff] %v7333_v43  ;;  %v7335_v46 = vpop.permute.xlu0 %2724  ;;  %v1201_v43 = vadd.f32 %v6677_v7, %v1145_v52 }
 0x54b   :  { %11011 = vst [vmem:[#allocation137_spill] sm:$0xff] %v7335_v46  ;;  %2762 = vrot.lane.b32.xlu1 %v7116_v10, %s5588_s3 }
 0x54c   :  { %2615 = vrot.lane.b32.xlu0 %v7173_v17, %s5587_s2 }
 0x54d   :  { %v7341_v45 = vpop.permute.xlu1 %2919 }
 0x54e   :  { %11012 = vst [vmem:[#allocation138_spill] sm:$0xff] %v7341_v45  ;;  %v7343_v36 = vpop.permute.xlu0 %2772  ;;  %v1146_v45 = vmul.f32 %v6538_v26, %v6239_v49  ;;  %v1143_v49 = vmul.f32 %v6533_v55, %v6222_v59  ;;  %v1144_v59 = vmul.f32 %v6533_v55, %v6224_v57  ;;  %v1263_v57 = vmul.f32 %v6535_v29, %v6243_v41 }
 0x54f   :  { %11013 = vst [vmem:[#allocation139_spill] sm:$0xff] %v7343_v36  ;;  %2730 = vrot.lane.b32.xlu1 %v7083_v38, %s5588_s3  ;;  %v7363_v36 = vmax.f32 %v1201_v43, 0.0 }
 0x550   :  { %2744 = vrot.lane.b32.xlu0 %v7149_v63, %s5588_s3  ;;  %v1202_v54 = vadd.f32 %v6677_v7, %v1146_v45  ;;  %v1199_v43 = vadd.f32 %v6717_v44, %v1143_v49  ;;  %v1200_v49 = vadd.f32 %v6717_v44, %v1144_v59 }
 0x551   :  { %v7352_v46 = vpop.permute.xlu1 %2887 }
 0x552   :  { %11014 = vst [vmem:[#allocation140_spill] sm:$0xff] %v7352_v46  ;;  %v7354_v11 = vpop.permute.xlu0 %2901  ;;  %v1265_v46 = vmul.f32 %v6525_v8, %v6253_v19  ;;  %v7378_v7 = vmax.f32 %v1202_v54, 0.0  ;;  %v1266_v19 = vmul.f32 %v6525_v8, %v6257_v33  ;;  %v7407_v55 = vmax.f32 %v1200_v49, 0.0 }
 0x553   :  { %11015 = vst [vmem:[#allocation141_spill] sm:$0xff] %v7354_v11  ;;  %2778 = vrot.lane.b32.xlu1 %v7145_v16, %s5588_s3 }
 0x554   :  { %2760 = vrot.lane.b32.xlu0 %v7163_v51, %s5588_s3  ;;  %v1313_v26 = vadd.f32 %v6707_v27, %v1265_v46  ;;  %v1314_v46 = vadd.f32 %v6707_v27, %v1266_v19  ;;  %v1311_v27 = vadd.f32 %v6687_v21, %v1263_v57 }
 0x555   :  { %v7365_v62 = vpop.permute.xlu1 %2935 }
 0x556   :  { %11016 = vst [vmem:[#allocation142_spill] sm:$0xff] %v7365_v62  ;;  %v7367_v52 = vpop.permute.xlu0 %2917  ;;  %v7392_v54 = vmax.f32 %v1313_v26, 0.0  ;;  %v7405_v33 = vmax.f32 %v1314_v46, 0.0  ;;  %v1264_v26 = vmul.f32 %v6535_v29, %v6245_v60  ;;  %v7419_v59 = vmax.f32 %v1311_v27, 0.0 }
 0x557   :  { %11017 = vst [vmem:[#allocation143_spill] sm:$0xff] %v7367_v52  ;;  %1838 = vrot.lane.b32.xlu1 %v7363_v36, %s5582_s19 }
 0x558   :  { %2728 = vrot.lane.b32.xlu0 %v7127_v31, %s5588_s3  ;;  %v1312_v19 = vadd.f32 %v6687_v21, %v1264_v26 }
 0x559   :  { %v1835_v45 = vpop.permute.xlu1 %1834 }
 0x55a   :  { %v7381_v62 = vpop.permute.xlu0 %2885 }
 0x55b   :  { %11018 = vst [vmem:[#allocation144_spill] sm:$0xff] %v7381_v62  ;;  %1854 = vrot.lane.b32.xlu1 %v7378_v7, %s5582_s19  ;;  %v7395_v62 = vmax.f32 %v1199_v43, 0.0 }
 0x55c   :  { %2776 = vrot.lane.b32.xlu0 %v7173_v17, %s5588_s3 }
 0x55d   :  { %v1851_v11 = vpop.permute.xlu1 %1850 }
 0x55e   :  { %v7397_v52 = vpop.permute.xlu0 %2933  ;;  %v1910_v41 = vsel %vm1888_vm4, %v1835_v45, %v1851_v11 }
 0x55f   :  { %11019 = vst [vmem:[#allocation145_spill] sm:$0xff] %v7397_v52  ;;  %1870 = vrot.lane.b32.xlu1 %v7392_v54, %s5582_s19  ;;  %v1958_v60 = vmul.f32 %v7029_v47, %v1910_v41  ;;  %v7431_v52 = vmax.f32 %v1312_v19, 0.0 }
 0x560   :  { %1836 = vrot.lane.b32.xlu0 %v7395_v62, %s5582_s19 }
 0x561   :  { %v1867_v8 = vpop.permute.xlu1 %1866 }
 0x562   :  { %v1833_v44 = vpop.permute.xlu0 %1832 }
 0x563   :  { %1886 = vrot.lane.b32.xlu1 %v7405_v33, %s5582_s19 }
 0x564   :  { %1852 = vrot.lane.b32.xlu0 %v7407_v55, %s5582_s19 }
 0x565   :  { %v1883_v43 = vpop.permute.xlu1 %1882 }
 0x566   :  { %v1849_v46 = vpop.permute.xlu0 %1848  ;;  %v1918_v26 = vsel %vm1888_vm4, %v1883_v43, %v1835_v45  ;;  %v1894_v41 = vsel %vm1888_vm4, %v1867_v8, %v1883_v43 }
 0x567   :  { %v1909_v49 = vsel %vm1888_vm4, %v1833_v44, %v1849_v46  ;;  %2031 = vrot.lane.b32.xlu1 %v7378_v7, %s5583_s20  ;;  %v1960_v43 = vmul.f32 %v6767_v3, %v1894_v41 }
 0x568   :  { %v1954_v29 = vmul.f32 %v7029_v47, %v1909_v49  ;;  %1868 = vrot.lane.b32.xlu0 %v7419_v59, %s5582_s19 }
 0x569   :  { %v7429_v57 = vpop.permute.xlu1 %2027 }
 0x56a   :  { %11020 = vst [vmem:[#allocation146_spill] sm:$0xff] %v7429_v57  ;;  %v1865_v21 = vpop.permute.xlu0 %1864  ;;  %v1978_v27 = vpack.c.bf16 %v1958_v60, %v1954_v29  ;;  %v1902_v60 = vsel %vm1888_vm4, %v1851_v11, %v1867_v8  ;;  %v1957_v29 = vmul.f32 %v7033_v28, %v1918_v26 }
 0x56b   :  { %2047 = vrot.lane.b32.xlu1 %v7392_v54, %s5583_s20  ;;  %v1901_v49 = vsel %vm1888_vm4, %v1849_v46, %v1865_v21  ;;  %v1959_v8 = vmul.f32 %v6779_v6, %v1902_v60 }
 0x56c   :  { %1884 = vrot.lane.b32.xlu0 %v7431_v52, %s5582_s19  ;;  %2223 = vmatprep.subr.bf16.mxu1 %v1978_v27  ;;  %v1955_v46 = vmul.f32 %v6779_v6, %v1901_v49 }
 0x56d   :  { %v7443_v19 = vpop.permute.xlu1 %2043 }
 0x56e   :  { %11021 = vst [vmem:[#allocation147_spill] sm:$0xff] %v7443_v19  ;;  %v1881_v5 = vpop.permute.xlu0 %1880  ;;  %v1979_v26 = vpack.c.bf16 %v1959_v8, %v1955_v46  ;;  %v5456_v8 = vld [vmem:[%s10441_s4 + $0x44] ss:$8 sps:$4 sm:$0xff]  }
 0x56f   :  { %v1893_v45 = vsel %vm1888_vm4, %v1865_v21, %v1881_v5  ;;  %v1917_v27 = vsel %vm1888_vm4, %v1881_v5, %v1833_v44  ;;  %2015 = vrot.lane.b32.xlu1 %v7363_v36, %s5583_s20  ;;  %5017 = vmatprep.mubr.msk.bf16.mxu1 %vm753_vm0, %v5456_v8 }
 0x570   :  { %v1953_v57 = vmul.f32 %v7033_v28, %v1917_v27  ;;  %v1956_v19 = vmul.f32 %v6767_v3, %v1893_v45  ;;  %2905 = vrot.lane.b32.xlu0 %v7149_v63, %s5589_s1  ;;  %5021 = vmatprep.mubr.msk.bf16.mxu0 %vm753_vm0, %v5456_v8 }
 0x571   :  { %v7460_v11 = vpop.permute.xlu1 %2011 }
 0x572   :  { %11022 = vst [vmem:[#allocation148_spill] sm:$0xff] %v7460_v11  ;;  %v7463_v21 = vpop.permute.xlu0 %2025  ;;  %v1977_v5 = vpack.c.bf16 %v1957_v29, %v1953_v57  ;;  %v1980_v44 = vpack.c.bf16 %v1960_v43, %v1956_v19 }
 0x573   :  { %11023 = vst [vmem:[#allocation149_spill] sm:$0xff] %v7463_v21  ;;  %2063 = vrot.lane.b32.xlu1 %v7405_v33, %s5583_s20  ;;  %v7662_v21 = vrot.slane %v7012_v42, %v11077_v15 }
 0x574   :  { %2921 = vrot.lane.b32.xlu0 %v7163_v51, %s5589_s1  ;;  %2224 = vmatpush1.bf16.msra.mxu1 %v1977_v5  ;;  %v7724_v51 = vrot.slane %v7012_v42, %v11089_v58 }
 0x575   :  { %2296 = vmatprep.subr.bf16.mxu0 %v1980_v44  ;;  %v7469_v41 = vpop.permute.xlu1 %2059 }
 0x576   :  { %11024 = vst [vmem:[#allocation150_spill] sm:$0xff] %v7469_v41  ;;  %2297 = vmatpush1.bf16.msra.mxu0 %v1979_v26  ;;  %v7471_v49 = vpop.permute.xlu0 %2041  ;;  %11090 = vst [vmem:[#allocation8_spill] sm:$0xff] %v7724_v51 }
 0x577   :  { %11025 = vst [vmem:[#allocation151_spill] sm:$0xff] %v7471_v49  ;;  %1345 = vrot.lane.b32.xlu1 %v7363_v36, %s5584_s21  ;;  %v11108_v49 = vld [vmem:[#allocation26_spill] sm:$0xff] }
 0x578   :  { %2889 = vrot.lane.b32.xlu0 %v7127_v31, %s5589_s1 }
 0x579   :  { %v7477_v57 = vpop.permute.xlu1 %1341 }
 0x57a   :  { %11026 = vst [vmem:[#allocation152_spill] sm:$0xff] %v7477_v57  ;;  %v7479_v19 = vpop.permute.xlu0 %2009 }
 0x57b   :  { %11027 = vst [vmem:[#allocation153_spill] sm:$0xff] %v7479_v19  ;;  %1361 = vrot.lane.b32.xlu1 %v7378_v7, %s5584_s21  ;;  %v11071_v19 = vld [vmem:[#allocation6_spill] sm:$0xff] }
 0x57c   :  { %2937 = vrot.lane.b32.xlu0 %v7173_v17, %s5589_s1 }
 0x57d   :  { %v7485_v60 = vpop.permute.xlu1 %1357 }
 0x57e   :  { %11028 = vst [vmem:[#allocation154_spill] sm:$0xff] %v7485_v60  ;;  %v7487_v29 = vpop.permute.xlu0 %2057  ;;  %v11065_v60 = vld [vmem:[#allocation39_spill] sm:$0xff] }
 0x57f   :  { %11029 = vst [vmem:[#allocation155_spill] sm:$0xff] %v7487_v29  ;;  %1377 = vrot.lane.b32.xlu1 %v7392_v54, %s5584_s21 }
 0x580   :  { %2029 = vrot.lane.b32.xlu0 %v7407_v55, %s5583_s20 }
 0x581   :  { %v7493_v45 = vpop.permute.xlu1 %1373 }
 0x582   :  { %11030 = vst [vmem:[#allocation156_spill] sm:$0xff] %v7493_v45  ;;  %v7495_v27 = vpop.permute.xlu0 %1339 }
 0x583   :  { %11031 = vst [vmem:[#allocation157_spill] sm:$0xff] %v7495_v27  ;;  %1393 = vrot.lane.b32.xlu1 %v7405_v33, %s5584_s21 }
 0x584   :  { %2045 = vrot.lane.b32.xlu0 %v7419_v59, %s5583_s20 }
 0x585   :  { %v7501_v43 = vpop.permute.xlu1 %1389 }
 0x586   :  { %11032 = vst [vmem:[#allocation158_spill] sm:$0xff] %v7501_v43  ;;  %v7503_v46 = vpop.permute.xlu0 %1355 }
 0x587   :  { %11033 = vst [vmem:[#allocation159_spill] sm:$0xff] %v7503_v46  ;;  %1508 = vrot.lane.b32.xlu1 %v7363_v36, %s5585_s22  ;;  %v11067_v46 = vld [vmem:[#allocation5_spill] sm:$0xff] }
 0x588   :  { %2013 = vrot.lane.b32.xlu0 %v7395_v62, %s5583_s20  ;;  %11078 = vst [vmem:[#allocation5_spill] sm:$0xff] %v7662_v21 }
 0x589   :  { %v7512_v5 = vpop.permute.xlu1 %1504 }
 0x58a   :  { %11034 = vst [vmem:[#allocation160_spill] sm:$0xff] %v7512_v5  ;;  %v7514_v44 = vpop.permute.xlu0 %1371 }
 0x58b   :  { %11035 = vst [vmem:[#allocation161_spill] sm:$0xff] %v7514_v44  ;;  %1524 = vrot.lane.b32.xlu1 %v7378_v7, %s5585_s22 }
 0x58c   :  { %2061 = vrot.lane.b32.xlu0 %v7431_v52, %s5583_s20 }
 0x58d   :  { %v7522_v26 = vpop.permute.xlu1 %1520 }
 0x58e   :  { %11036 = vst [vmem:[#allocation162_spill] sm:$0xff] %v7522_v26  ;;  %v7524_v43 = vpop.permute.xlu0 %1387 }
 0x58f   :  { %11037 = vst [vmem:[#allocation163_spill] sm:$0xff] %v7524_v43  ;;  %1540 = vrot.lane.b32.xlu1 %v7392_v54, %s5585_s22 }
 0x590   :  { %1343 = vrot.lane.b32.xlu0 %v7395_v62, %s5584_s21 }
 0x591   :  { %v7530_v5 = vpop.permute.xlu1 %1536 }
 0x592   :  { %11038 = vst [vmem:[#allocation164_spill] sm:$0xff] %v7530_v5  ;;  %v7532_v44 = vpop.permute.xlu0 %1502 }
 0x593   :  { %11039 = vst [vmem:[#allocation165_spill] sm:$0xff] %v7532_v44  ;;  %1556 = vrot.lane.b32.xlu1 %v7405_v33, %s5585_s22 }
 0x594   :  { %1359 = vrot.lane.b32.xlu0 %v7407_v55, %s5584_s21 }
 0x595   :  { %v7538_v8 = vpop.permute.xlu1 %1552 }
 0x596   :  { %11040 = vst [vmem:[#allocation166_spill] sm:$0xff] %v7538_v8  ;;  %v7540_v26 = vpop.permute.xlu0 %1518 }
 0x597   :  { %11041 = vst [vmem:[#allocation167_spill] sm:$0xff] %v7540_v26  ;;  %1669 = vrot.lane.b32.xlu1 %v7363_v36, %s5586_s23 }
 0x598   :  { %1375 = vrot.lane.b32.xlu0 %v7419_v59, %s5584_s21 }
 0x599   :  { %v7546_v43 = vpop.permute.xlu1 %1665 }
 0x59a   :  { %11042 = vst [vmem:[#allocation168_spill] sm:$0xff] %v7546_v43  ;;  %v7548_v5 = vpop.permute.xlu0 %1534 }
 0x59b   :  { %11043 = vst [vmem:[#allocation169_spill] sm:$0xff] %v7548_v5  ;;  %1685 = vrot.lane.b32.xlu1 %v7378_v7, %s5586_s23 }
 0x59c   :  { %1391 = vrot.lane.b32.xlu0 %v7431_v52, %s5584_s21 }
 0x59d   :  { %v7554_v44 = vpop.permute.xlu1 %1681 }
 0x59e   :  { %11044 = vst [vmem:[#allocation170_spill] sm:$0xff] %v7554_v44  ;;  %v7556_v8 = vpop.permute.xlu0 %1550 }
 0x59f   :  { %11045 = vst [vmem:[#allocation171_spill] sm:$0xff] %v7556_v8  ;;  %1701 = vrot.lane.b32.xlu1 %v7392_v54, %s5586_s23 }
 0x5a0   :  { %1506 = vrot.lane.b32.xlu0 %v7395_v62, %s5585_s22 }
 0x5a1   :  { %v7562_v26 = vpop.permute.xlu1 %1697 }
 0x5a2   :  { %11046 = vst [vmem:[#allocation172_spill] sm:$0xff] %v7562_v26  ;;  %v7564_v43 = vpop.permute.xlu0 %1663 }
 0x5a3   :  { %11047 = vst [vmem:[#allocation173_spill] sm:$0xff] %v7564_v43  ;;  %1717 = vrot.lane.b32.xlu1 %v7405_v33, %s5586_s23 }
 0x5a4   :  { %1522 = vrot.lane.b32.xlu0 %v7407_v55, %s5585_s22 }
 0x5a5   :  { %v7570_v5 = vpop.permute.xlu1 %1713 }
 0x5a6   :  { %11048 = vst [vmem:[#allocation174_spill] sm:$0xff] %v7570_v5  ;;  %v7572_v44 = vpop.permute.xlu0 %1679 }
 0x5a7   :  { %11049 = vst [vmem:[#allocation175_spill] sm:$0xff] %v7572_v44  ;;  %2589 = vrot.lane.b32.xlu1 %v7378_v7, %s5587_s2 }
 0x5a8   :  { %1538 = vrot.lane.b32.xlu0 %v7419_v59, %s5585_s22 }
 0x5a9   :  { %v7578_v8 = vpop.permute.xlu1 %2585 }
 0x5aa   :  { %11050 = vst [vmem:[#allocation176_spill] sm:$0xff] %v7578_v8  ;;  %v7580_v26 = vpop.permute.xlu0 %1695 }
 0x5ab   :  { %11051 = vst [vmem:[#allocation177_spill] sm:$0xff] %v7580_v26  ;;  %2605 = vrot.lane.b32.xlu1 %v7392_v54, %s5587_s2 }
 0x5ac   :  { %1554 = vrot.lane.b32.xlu0 %v7431_v52, %s5585_s22 }
 0x5ad   :  { %v7586_v43 = vpop.permute.xlu1 %2601 }
 0x5ae   :  { %11052 = vst [vmem:[#allocation178_spill] sm:$0xff] %v7586_v43  ;;  %v7588_v5 = vpop.permute.xlu0 %1711 }
 0x5af   :  { %11053 = vst [vmem:[#allocation179_spill] sm:$0xff] %v7588_v5  ;;  %2573 = vrot.lane.b32.xlu1 %v7363_v36, %s5587_s2 }
 0x5b0   :  { %1667 = vrot.lane.b32.xlu0 %v7395_v62, %s5586_s23 }
 0x5b1   :  { %v7594_v44 = vpop.permute.xlu1 %2569 }
 0x5b2   :  { %11054 = vst [vmem:[#allocation180_spill] sm:$0xff] %v7594_v44  ;;  %v7596_v8 = vpop.permute.xlu0 %2583  ;;  %v11059_v44 = vld [vmem:[#allocation13_spill] sm:$0xff] }
 0x5b3   :  { %11055 = vst [vmem:[#allocation181_spill] sm:$0xff] %v7596_v8  ;;  %2621 = vrot.lane.b32.xlu1 %v7405_v33, %s5587_s2  ;;  %v7615_v8 = vrot.slane %v7012_v42, %v11059_v44  ;;  %v7629_v27 = vrot.slane %v11065_v60, %v11059_v44 }
 0x5b4   :  { %1683 = vrot.lane.b32.xlu0 %v7407_v55, %s5586_s23 }
 0x5b5   :  { %v7602_v26 = vpop.permute.xlu1 %2617  ;;  %11060 = vst [vmem:[#allocation13_spill] sm:$0xff] %v7615_v8 }
 0x5b6   :  { %11056 = vst [vmem:[#allocation182_spill] sm:$0xff] %v7602_v26  ;;  %v7604_v43 = vpop.permute.xlu0 %2599  ;;  %v7621_v26 = vrot.slane %v7017_v0, %v11059_v44 }
 0x5b7   :  { %11057 = vst [vmem:[#allocation183_spill] sm:$0xff] %v7604_v43  ;;  %2750 = vrot.lane.b32.xlu1 %v7378_v7, %s5588_s3  ;;  %v11063_v43 = vld [vmem:[#allocation28_spill] sm:$0xff] }
 0x5b8   :  { %1699 = vrot.lane.b32.xlu0 %v7419_v59, %s5586_s23  ;;  %11062 = vst [vmem:[#allocation186_spill] sm:$0xff] %v7621_v26  ;;  %v7625_v57 = vrot.slane %v11063_v43, %v11059_v44  ;;  %v7668_v12 = vrot.slane %v11063_v43, %v11077_v15  ;;  %v2083_v44 = vsel %vm2065_vm5, %v11107_v4, %v11101_v35 }
 0x5b9   :  { %v7610_v5 = vpop.permute.xlu1 %2746 }
 0x5ba   :  { %11058 = vst [vmem:[#allocation184_spill] sm:$0xff] %v7610_v5  ;;  %v7617_v45 = vpop.permute.xlu0 %2567  ;;  %11064 = vst [vmem:[#allocation28_spill] sm:$0xff] %v7625_v57  ;;  %v11066_v5 = vld [vmem:[#allocation40_spill] sm:$0xff] }
 0x5bb   :  { %11061 = vst [vmem:[#allocation185_spill] sm:$0xff] %v7617_v45  ;;  %2766 = vrot.lane.b32.xlu1 %v7392_v54, %s5588_s3  ;;  %v11068_v45 = vld [vmem:[#allocation12_spill] sm:$0xff]  ;;  %11080 = vst [vmem:[#allocation6_spill] sm:$0xff] %v7668_v12 }
 0x5bc   :  { %v7638_v11 = vrot.slane %v7012_v42, %v11068_v45  ;;  %1715 = vrot.lane.b32.xlu0 %v7431_v52, %s5586_s23  ;;  %v7650_v41 = vrot.slane %v11063_v43, %v11068_v45  ;;  %v7654_v23 = vrot.slane %v7017_v0, %v11068_v45  ;;  %v7658_v61 = vrot.slane %v11065_v60, %v11068_v45 }
 0x5bd   :  { %v7664_v2 = vpop.permute.xlu1 %2762  ;;  %v7696_v45 = vrot.slane %v11063_v43, %v11084_v50  ;;  %v5542_v43 = vld [vmem:[%s10447_s10 + $0x18] sm:$0xff] }
 0x5be   :  { %11069 = vst [vmem:[#allocation39_spill] sm:$0xff] %v7638_v11  ;;  %11076 = vst [vmem:[#allocation40_spill] sm:$0xff] %v7650_v41  ;;  %v7670_v56 = vpop.permute.xlu0 %2615  ;;  %v7714_v30 = vrot.slane %v5542_v43, %v11084_v50  ;;  %v7818_v29 = vrot.slane %v5542_v43, %v11103_v9 }
 0x5bf   :  { %11079 = vst [vmem:[#allocation12_spill] sm:$0xff] %v7664_v2  ;;  %11081 = vst [vmem:[#allocation7_spill] sm:$0xff] %v7670_v56  ;;  %v7684_v2 = vrot.slane %v11065_v60, %v11077_v15  ;;  %v7688_v56 = vrot.slane %v7012_v42, %v11084_v50  ;;  %2734 = vrot.lane.b32.xlu1 %v7363_v36, %s5588_s3  ;;  %v2074_v60 = vsel %vm2065_vm5, %v6814_v39, %v6827_v1 }
 0x5c0   :  { %11086 = vst [vmem:[#allocation189_spill] sm:$0xff] %v7696_v45  ;;  %2587 = vrot.lane.b32.xlu0 %v7407_v55, %s5587_s2  ;;  %v7741_v15 = vrot.slane %v7017_v0, %v11089_v58  ;;  %v7747_v50 = vrot.slane %v5543_v53, %v11089_v58 }
 0x5c1   :  { %11083 = vst [vmem:[#allocation188_spill] sm:$0xff] %v7684_v2  ;;  %11085 = vst [vmem:[#allocation9_spill] sm:$0xff] %v7688_v56  ;;  %v7716_v48 = vpop.permute.xlu1 %2730 }
 0x5c2   :  { %11088 = vst [vmem:[#allocation191_spill] sm:$0xff] %v7716_v48  ;;  %v7726_v17 = vpop.permute.xlu0 %2744  ;;  %11092 = vst [vmem:[#allocation193_spill] sm:$0xff] %v7741_v15  ;;  %v7750_v48 = vrot.slane %v5542_v43, %v11089_v58  ;;  %v11100_v58 = vld [vmem:[#allocation27_spill] sm:$0xff] }
 0x5c3   :  { %11091 = vst [vmem:[#allocation192_spill] sm:$0xff] %v7726_v17  ;;  %11093 = vst [vmem:[#allocation194_spill] sm:$0xff] %v7747_v50  ;;  %2782 = vrot.lane.b32.xlu1 %v7405_v33, %s5588_s3  ;;  %v11095_v17 = vld [vmem:[#allocation10_spill] sm:$0xff]  ;;  %v2075_v20 = vsel %vm2065_vm5, %v11101_v35, %v11100_v58  ;;  %v2067_v39 = vsel %vm2065_vm5, %v11100_v58, %v11108_v49  ;;  %v2091_v35 = vsel %vm2065_vm5, %v11108_v49, %v11107_v4 }
 0x5c4   :  { %11094 = vst [vmem:[#allocation195_spill] sm:$0xff] %v7750_v48  ;;  %v7756_v31 = vrot.slane %v7012_v42, %v11095_v17  ;;  %v7760_v63 = vrot.slane %v7017_v0, %v11095_v17  ;;  %v7763_v37 = vrot.slane %v5543_v53, %v11095_v17  ;;  %v7766_v13 = vrot.slane %v5542_v43, %v11095_v17  ;;  %v11118_v49 = vld [vmem:[#allocation42_spill] sm:$0xff] }
 0x5c5   :  { %2603 = vrot.lane.b32.xlu0 %v7419_v59, %s5587_s2  ;;  %11104 = vst [vmem:[#allocation27_spill] sm:$0xff] %v7780_v22  ;;  %v7784_v17 = vrot.slane %v7017_v0, %v11103_v9  ;;  %v7786_v40 = vpop.permute.xlu1 %2778  ;;  %v7798_v42 = vmul.f32 %v7615_v8, %v2074_v60  ;;  %v11110_v22 = vld [vmem:[#allocation14_spill] sm:$0xff]  ;;  %v7815_v60 = vrot.slane %v5543_v53, %v11103_v9  ;;  %v11119_v53 = vld [vmem:[#allocation35_spill] sm:$0xff] }
 0x5c6   :  { %11096 = vst [vmem:[#allocation10_spill] sm:$0xff] %v7756_v31  ;;  %11097 = vst [vmem:[#allocation196_spill] sm:$0xff] %v7760_v63  ;;  %v2066_v0 = vsel %vm2065_vm5, %v6827_v1, %v11110_v22  ;;  %v7823_v1 = vmul.f32 %v7615_v8, %v2075_v20  ;;  %v2090_v4 = vsel %vm2065_vm5, %v11110_v22, %v11102_v14 }
 0x5c7   :  { %11098 = vst [vmem:[#allocation197_spill] sm:$0xff] %v7763_v37  ;;  %11099 = vst [vmem:[#allocation198_spill] sm:$0xff] %v7766_v13  ;;  %v11113_v13 = vld [vmem:[#allocation31_spill] sm:$0xff]  ;;  %2907 = vrot.lane.b32.xlu1 %v7099_v25, %s5589_s1  ;;  %v1414_v9 = vsel %vm1397_vm6, %v11119_v53, %v11118_v49  ;;  %v7839_v43 = vmul.f32 %v7621_v26, %v2083_v44  ;;  %v7842_v20 = vmul.f32 %v7625_v57, %v2067_v39  ;;  %v11125_v44 = vld [vmem:[#allocation44_spill] sm:$0xff] }
 0x5c8   :  { %11105 = vst [vmem:[#allocation17_spill] sm:$0xff] %v7784_v17  ;;  %11106 = vst [vmem:[#allocation37_spill] sm:$0xff] %v7786_v40  ;;  %v7804_v40 = vpop.permute.xlu0 %2760  ;;  %v11112_v17 = vld [vmem:[#allocation36_spill] sm:$0xff]  ;;  %v7849_v14 = vmul.f32 %v7625_v57, %v2066_v0  ;;  %v7854_v25 = vmul.f32 %v7629_v27, %v2091_v35  ;;  %v1406_v39 = vsel %vm1397_vm6, %v11118_v49, %v11125_v44  ;;  %v11129_v35 = vld [vmem:[#allocation46_spill] sm:$0xff] }
 0x5c9   :  { %11109 = vst [vmem:[#allocation15_spill] sm:$0xff] %v7798_v42  ;;  %11111 = vst [vmem:[#allocation30_spill] sm:$0xff] %v7804_v40  ;;  %v1415_v58 = vsel %vm1397_vm6, %v11113_v13, %v11112_v17  ;;  %v7826_v40 = vmul.f32 %v7621_v26, %v2082_v18  ;;  %2571 = vrot.lane.b32.xlu0 %v7395_v62, %s5587_s2  ;;  %v11122_v18 = vld [vmem:[#allocation34_spill] sm:$0xff]  ;;  %v7851_v22 = vpop.permute.xlu1 %1838  ;;  %v7868_v0 = vmul.f32 %v7629_v27, %v2090_v4  ;;  %v11134_v42 = vld [vmem:[#allocation48_spill] sm:$0xff] }
 0x5ca   :  { %11114 = vst [vmem:[#allocation26_spill] sm:$0xff] %v7815_v60  ;;  %11115 = vst [vmem:[#allocation14_spill] sm:$0xff] %v7818_v29  ;;  %v1407_v8 = vsel %vm1397_vm6, %v11112_v17, %v11122_v18  ;;  %v7857_v29 = vmul.f32 %v7638_v11, %v1415_v58  ;;  %v7871_v57 = vmul.f32 %v7638_v11, %v1414_v9  ;;  %v11131_v9 = vld [vmem:[#allocation21_spill] sm:$0xff]  ;;  %v11136_v11 = vld [vmem:[#allocation43_spill] sm:$0xff] }
 0x5cb   :  { %11116 = vst [vmem:[#allocation36_spill] sm:$0xff] %v7823_v1  ;;  %11117 = vst [vmem:[#allocation31_spill] sm:$0xff] %v7826_v40  ;;  %v1398_v58 = vsel %vm1397_vm6, %v11125_v44, %v11129_v35  ;;  %v1422_v49 = vsel %vm1397_vm6, %v11129_v35, %v11119_v53  ;;  %2923 = vrot.lane.b32.xlu1 %v7116_v10, %s5589_s1  ;;  %v7885_v4 = vmul.f32 %v7650_v41, %v1407_v8  ;;  %v11135_v1 = vld [vmem:[#allocation52_spill] sm:$0xff]  ;;  %v11137_v53 = vld [vmem:[#allocation41_spill] sm:$0xff] }
 0x5cc   :  { %11120 = vst [vmem:[#allocation42_spill] sm:$0xff] %v7839_v43  ;;  %11121 = vst [vmem:[#allocation35_spill] sm:$0xff] %v7842_v20  ;;  %v7863_v26 = vpop.permute.xlu0 %2728  ;;  %v1399_v17 = vsel %vm1397_vm6, %v11122_v18, %v11131_v9  ;;  %v1423_v44 = vsel %vm1397_vm6, %v11131_v9, %v11113_v13  ;;  %v7902_v35 = vmul.f32 %v7650_v41, %v1406_v39  ;;  %v11144_v10 = vld [vmem:[#allocation47_spill] sm:$0xff] }
 0x5cd   :  { %11123 = vst [vmem:[#allocation34_spill] sm:$0xff] %v7849_v14  ;;  %11124 = vst [vmem:[#allocation199_spill] sm:$0xff] %v7857_v29  ;;  %2619 = vrot.lane.b32.xlu0 %v7431_v52, %s5587_s2  ;;  %v7912_v9 = vpop.permute.xlu1 %1854  ;;  %v1576_v8 = vsel %vm1558_vm7, %v11137_v53, %v11136_v11  ;;  %v11138_v14 = vld [vmem:[#allocation45_spill] sm:$0xff]  ;;  %v7923_v20 = vmul.f32 %v7654_v23, %v1422_v49  ;;  %v7926_v40 = vmul.f32 %v7658_v61, %v1398_v58  ;;  %v11151_v29 = vld [vmem:[#allocation54_spill] sm:$0xff] }
 0x5ce   :  { %11126 = vst [vmem:[#allocation44_spill] sm:$0xff] %v7863_v26  ;;  %11127 = vst [vmem:[#allocation200_spill] sm:$0xff] %v7868_v0  ;;  %v11133_v26 = vld [vmem:[#allocation50_spill] sm:$0xff]  ;;  %v1568_v39 = vsel %vm1558_vm7, %v11136_v11, %v11138_v14  ;;  %v7934_v41 = vmul.f32 %v7658_v61, %v1399_v17  ;;  %v1560_v58 = vsel %vm1558_vm7, %v11138_v14, %v11144_v10 }
 0x5cf   :  { %11128 = vst [vmem:[#allocation201_spill] sm:$0xff] %v7871_v57  ;;  %11130 = vst [vmem:[#allocation46_spill] sm:$0xff] %v7885_v4  ;;  %v1575_v18 = vsel %vm1558_vm7, %v11134_v42, %v11133_v26  ;;  %v1567_v13 = vsel %vm1558_vm7, %v11133_v26, %v11135_v1  ;;  %v7931_v26 = vmul.f32 %v7654_v23, %v1423_v44  ;;  %2891 = vrot.lane.b32.xlu1 %v7083_v38, %s5589_s1  ;;  %v11149_v57 = vld [vmem:[#allocation51_spill] sm:$0xff] }
 0x5d0   :  { %11132 = vst [vmem:[#allocation21_spill] sm:$0xff] %v7902_v35  ;;  %11139 = vst [vmem:[#allocation50_spill] sm:$0xff] %v7923_v20  ;;  %v7928_v43 = vpop.permute.xlu0 %2776  ;;  %v1584_v17 = vsel %vm1558_vm7, %v11144_v10, %v11137_v53  ;;  %v7951_v44 = vmul.f32 %v7662_v21, %v1575_v18  ;;  %v7959_v49 = vmul.f32 %v7662_v21, %v1576_v8  ;;  %v11150_v10 = vld [vmem:[#allocation49_spill] sm:$0xff] }
 0x5d1   :  { %11140 = vst [vmem:[#allocation48_spill] sm:$0xff] %v7926_v40  ;;  %11141 = vst [vmem:[#allocation52_spill] sm:$0xff] %v7928_v43  ;;  %v7954_v43 = vmul.f32 %v7668_v12, %v1567_v13  ;;  %2748 = vrot.lane.b32.xlu0 %v7407_v55, %s5588_s3  ;;  %v7964_v11 = vmul.f32 %v7668_v12, %v1568_v39  ;;  %v1737_v53 = vsel %vm1719_vm8, %v11150_v10, %v11149_v57  ;;  %v7970_v18 = vpop.permute.xlu1 %1870  ;;  %v11152_v20 = vld [vmem:[#allocation53_spill] sm:$0xff]  ;;  %v11157_v12 = vld [vmem:[#allocation62_spill] sm:$0xff] }
 0x5d2   :  { %11142 = vst [vmem:[#allocation43_spill] sm:$0xff] %v7931_v26  ;;  %11143 = vst [vmem:[#allocation41_spill] sm:$0xff] %v7934_v41  ;;  %v1559_v8 = vsel %vm1558_vm7, %v11135_v1, %v11151_v29  ;;  %v1583_v39 = vsel %vm1558_vm7, %v11151_v29, %v11134_v42  ;;  %v7988_v4 = vmul.f32 %v7680_v34, %v1584_v17  ;;  %v11153_v26 = vld [vmem:[#allocation58_spill] sm:$0xff]  ;;  %v11154_v29 = vld [vmem:[#allocation56_spill] sm:$0xff] }
 0x5d3   :  { %11145 = vst [vmem:[#allocation45_spill] sm:$0xff] %v7951_v44  ;;  %11146 = vst [vmem:[#allocation47_spill] sm:$0xff] %v7954_v43  ;;  %v7991_v13 = vmul.f32 %v7684_v2, %v1560_v58  ;;  %v1729_v1 = vsel %vm1719_vm8, %v11149_v57, %v11152_v20  ;;  %v1736_v42 = vsel %vm1719_vm8, %v11154_v29, %v11153_v26  ;;  %2939 = vrot.lane.b32.xlu1 %v7145_v16, %s5589_s1  ;;  %v11155_v17 = vld [vmem:[#allocation60_spill] sm:$0xff] }
 0x5d4   :  { %11147 = vst [vmem:[#allocation202_spill] sm:$0xff] %v7959_v49  ;;  %11148 = vst [vmem:[#allocation203_spill] sm:$0xff] %v7964_v11  ;;  %v7982_v14 = vpop.permute.xlu0 %1836  ;;  %v8004_v35 = vmul.f32 %v7688_v56, %v1737_v53  ;;  %v1728_v40 = vsel %vm1719_vm8, %v11153_v26, %v11155_v17  ;;  %v8017_v41 = vmul.f32 %v7680_v34, %v1583_v39  ;;  %v11159_v39 = vld [vmem:[#allocation55_spill] sm:$0xff] }
 0x5d5   :  { %2764 = vrot.lane.b32.xlu0 %v7419_v59, %s5588_s3  ;;  %v8020_v53 = vmul.f32 %v7684_v2, %v1559_v8  ;;  %v1744_v58 = vsel %vm1719_vm8, %v11157_v12, %v11154_v29  ;;  %v1912_v26 = vsel %vm1888_vm4, %v7851_v22, %v7912_v9  ;;  %v1887_v43 = vpop.permute.xlu1 %1886  ;;  %v8031_v11 = vmul.f32 %v7696_v45, %v1729_v1  ;;  %v11160_v49 = vld [vmem:[#allocation59_spill] sm:$0xff]  ;;  %v11161_v2 = vld [vmem:[#allocation57_spill] sm:$0xff] }
 0x5d6   :  { %11156 = vst [vmem:[#allocation51_spill] sm:$0xff] %v8017_v41  ;;  %v1745_v8 = vsel %vm1719_vm8, %v11159_v39, %v11150_v10  ;;  %v8038_v57 = vmul.f32 %v7688_v56, %v1736_v42  ;;  %v1720_v29 = vsel %vm1719_vm8, %v11155_v17, %v11157_v12  ;;  %v1721_v1 = vsel %vm1719_vm8, %v11152_v20, %v11159_v39  ;;  %v11163_v12 = vld [vmem:[#allocation61_spill] sm:$0xff]  ;;  %v11170_v41 = vld [vmem:[#allocation64_spill] sm:$0xff] }
 0x5d7   :  { %11158 = vst [vmem:[#allocation49_spill] sm:$0xff] %v8031_v11  ;;  %v2633_v34 = vsel %vm2623_vm9, %v11161_v2, %v11160_v49  ;;  %v8053_v10 = vmul.f32 %v7696_v45, %v1728_v40  ;;  %2911 = vrot.lane.b32.xlu1 %v7378_v7, %s5589_s1  ;;  %v2641_v20 = vsel %vm2623_vm9, %v11163_v12, %v11161_v2  ;;  %v11175_v11 = vld [vmem:[#allocation65_spill] sm:$0xff] }
 0x5d8   :  { %v1853_v44 = vpop.permute.xlu0 %1852  ;;  %v8065_v17 = vmul.f32 %v7708_v32, %v1744_v58  ;;  %v1966_v39 = vmul.f32 %v7029_v47, %v1912_v26  ;;  %v8074_v56 = vmul.f32 %v7708_v32, %v1745_v8  ;;  %v8077_v21 = vmul.f32 %v7714_v30, %v1720_v29  ;;  %v11169_v32 = vld [vmem:[#allocation66_spill] sm:$0xff]  ;;  %v11171_v58 = vld [vmem:[#allocation68_spill] sm:$0xff] }
 0x5d9   :  { %11162 = vst [vmem:[#allocation54_spill] sm:$0xff] %v8053_v10  ;;  %v1911_v42 = vsel %vm1888_vm4, %v7982_v14, %v1853_v44  ;;  %2732 = vrot.lane.b32.xlu0 %v7395_v62, %s5588_s3  ;;  %v8079_v2 = vpop.permute.xlu1 %2031  ;;  %v8084_v26 = vmul.f32 %v7714_v30, %v1721_v1  ;;  %v8094_v45 = vmul.f32 %v7741_v15, %v2641_v20 }
 0x5da   :  { %11164 = vst [vmem:[#allocation53_spill] sm:$0xff] %v8065_v17  ;;  %v1962_v40 = vmul.f32 %v7029_v47, %v1911_v42  ;;  %11165 = vst [vmem:[#allocation58_spill] sm:$0xff] %v8074_v56  ;;  %v8087_v47 = vmul.f32 %v7724_v51, %v2633_v34  ;;  %v2632_v1 = vsel %vm2623_vm9, %v11170_v41, %v11169_v32 }
 0x5db   :  { %11166 = vst [vmem:[#allocation56_spill] sm:$0xff] %v8077_v21  ;;  %11168 = vst [vmem:[#allocation62_spill] sm:$0xff] %v8094_v45  ;;  %v2640_v34 = vsel %vm2623_vm9, %v11171_v58, %v11170_v41  ;;  %2927 = vrot.lane.b32.xlu1 %v7392_v54, %s5589_s1  ;;  %v1920_v29 = vsel %vm1888_vm4, %v1887_v43, %v7851_v22  ;;  %v8131_v10 = vmul.f32 %v7724_v51, %v2632_v1  ;;  %v11185_v21 = vld [vmem:[#allocation72_spill] sm:$0xff] }
 0x5dc   :  { %11167 = vst [vmem:[#allocation60_spill] sm:$0xff] %v8087_v47  ;;  %v1869_v42 = vpop.permute.xlu0 %1868  ;;  %v1982_v0 = vpack.c.bf16 %v1966_v39, %v1962_v40  ;;  %v11172_v40 = vld [vmem:[#allocation63_spill] sm:$0xff]  ;;  %v1896_v39 = vsel %vm1888_vm4, %v7970_v18, %v1887_v43  ;;  %v11177_v43 = vld [vmem:[#allocation70_spill] sm:$0xff]  ;;  %v1904_v1 = vsel %vm1888_vm4, %v7912_v9, %v7970_v18  ;;  %v1965_v22 = vmul.f32 %v7033_v28, %v1920_v29 }
 0x5dd   :  { %v2625_v20 = vsel %vm2623_vm9, %v11160_v49, %v11172_v40  ;;  %2780 = vrot.lane.b32.xlu0 %v7431_v52, %s5588_s3  ;;  %v2649_v41 = vsel %vm2623_vm9, %v11172_v40, %v11163_v12  ;;  %v1903_v49 = vsel %vm1888_vm4, %v1853_v44, %v1869_v42  ;;  %v8126_v8 = vpop.permute.xlu1 %2047  ;;  %11173 = vst [vmem:[#allocation55_spill] sm:$0xff] %v8131_v10 }
 0x5de   :  { %2225 = vmatprep.subr.bf16.mxu1 %v1982_v0  ;;  %v11174_v0 = vld [vmem:[#allocation67_spill] sm:$0xff]  ;;  %v8138_v40 = vmul.f32 %v7741_v15, %v2640_v34  ;;  %v2624_v44 = vsel %vm2623_vm9, %v11169_v32, %v11177_v43  ;;  %v1968_v32 = vmul.f32 %v6767_v3, %v1896_v39  ;;  %v1963_v15 = vmul.f32 %v6779_v6, %v1903_v49 }
 0x5df   :  { %v2794_v12 = vsel %vm2784_vm10, %v11175_v11, %v11174_v0  ;;  %2895 = vrot.lane.b32.xlu1 %v7363_v36, %s5589_s1  ;;  %v8163_v18 = vmul.f32 %v7747_v50, %v2625_v20  ;;  %v1967_v29 = vmul.f32 %v6779_v6, %v1904_v1  ;;  %v11203_v6 = vld [vmem:[#allocation198_spill] sm:$0xff] }
 0x5e0   :  { %11176 = vst [vmem:[#allocation59_spill] sm:$0xff] %v8138_v40  ;;  %v1885_v17 = vpop.permute.xlu0 %1884  ;;  %v8185_v49 = vmul.f32 %v7756_v31, %v2794_v12  ;;  %v11187_v12 = vld [vmem:[#allocation78_spill] sm:$0xff]  ;;  %v11273_v40 = vpack.c.bf16 %v7363_v36, %v7395_v62 }
 0x5e1   :  { %v1895_v56 = vsel %vm1888_vm4, %v1869_v42, %v1885_v17  ;;  %v1919_v34 = vsel %vm1888_vm4, %v1885_v17, %v7982_v14  ;;  %2909 = vrot.lane.b32.xlu0 %v7407_v55, %s5589_s1  ;;  %11178 = vst [vmem:[#allocation57_spill] sm:$0xff] %v8163_v18  ;;  %v8166_v42 = vmul.f32 %v7750_v48, %v2649_v41  ;;  %v11180_v14 = vld [vmem:[#allocation69_spill] sm:$0xff] }
 0x5e2   :  { %v1961_v51 = vmul.f32 %v7033_v28, %v1919_v34  ;;  %v1964_v9 = vmul.f32 %v6767_v3, %v1895_v56  ;;  %v2802_v17 = vsel %vm2784_vm10, %v11180_v14, %v11175_v11  ;;  %v2648_v28 = vsel %vm2623_vm9, %v11177_v43, %v11171_v58  ;;  %v8176_v3 = vpop.permute.xlu1 %2015  ;;  %11183 = vst [vmem:[#allocation68_spill] sm:$0xff] %v8185_v49  ;;  %v11184_v34 = vld [vmem:[#allocation74_spill] sm:$0xff] }
 0x5e3   :  { %11179 = vst [vmem:[#allocation61_spill] sm:$0xff] %v8166_v42  ;;  %v8179_v56 = vmul.f32 %v7747_v50, %v2624_v44  ;;  %v2793_v58 = vsel %vm2784_vm10, %v11185_v21, %v11184_v34  ;;  %2943 = vrot.lane.b32.xlu1 %v7405_v33, %s5589_s1  ;;  %v2785_v43 = vsel %vm2784_vm10, %v11184_v34, %v11187_v12  ;;  %v11195_v34 = vld [vmem:[#allocation73_spill] sm:$0xff] }
 0x5e4   :  { %v8182_v39 = vpop.permute.xlu0 %2905  ;;  %v1981_v20 = vpack.c.bf16 %v1965_v22, %v1961_v51  ;;  %v1984_v41 = vpack.c.bf16 %v1968_v32, %v1964_v9  ;;  %v11186_v51 = vld [vmem:[#allocation76_spill] sm:$0xff]  ;;  %v1983_v44 = vpack.c.bf16 %v1967_v29, %v1963_v15  ;;  %v8209_v1 = vmul.f32 %v7760_v63, %v2802_v17  ;;  %v11191_v17 = vld [vmem:[#allocation71_spill] sm:$0xff] }
 0x5e5   :  { %11181 = vst [vmem:[#allocation66_spill] sm:$0xff] %v8179_v56  ;;  %11182 = vst [vmem:[#allocation64_spill] sm:$0xff] %v8182_v39  ;;  %v2801_v22 = vsel %vm2784_vm10, %v11186_v51, %v11185_v21  ;;  %2925 = vrot.lane.b32.xlu0 %v7419_v59, %s5589_s1  ;;  %v8212_v32 = vmul.f32 %v7750_v48, %v2648_v28  ;;  %v2809_v21 = vsel %vm2784_vm10, %v11187_v12, %v11186_v51  ;;  %v11199_v29 = vld [vmem:[#allocation80_spill] sm:$0xff] }
 0x5e6   :  { %2226 = vmatpush1.bf16.msra.mxu1 %v1981_v20  ;;  %11188 = vst [vmem:[#allocation63_spill] sm:$0xff] %v8209_v1  ;;  %2298 = vmatprep.subr.bf16.mxu0 %v1984_v41  ;;  %v11190_v9 = vpack.c.bf16 %v11067_v46, %v11066_v5  ;;  %v8221_v15 = vpop.permute.xlu1 %2063  ;;  %v2786_v28 = vsel %vm2784_vm10, %v11174_v0, %v11191_v17  ;;  %v11194_v5 = vld [vmem:[#allocation75_spill] sm:$0xff]  ;;  %v11245_v1 = vld [vmem:[#allocation29_spill] sm:$0xff] }
 0x5e7   :  { %11189 = vst [vmem:[#allocation67_spill] sm:$0xff] %v8212_v32  ;;  %v2810_v20 = vsel %vm2784_vm10, %v11191_v17, %v11180_v14  ;;  %v8234_v41 = vmul.f32 %v7756_v31, %v2793_v58  ;;  %2299 = vmatpush1.bf16.msra.mxu0 %v1983_v44  ;;  %v2955_v51 = vsel %vm2945_vm11, %v11195_v34, %v11194_v5  ;;  %v11200_v58 = vld [vmem:[#allocation11_spill] sm:$0xff]  ;;  %v11202_v17 = vld [vmem:[#allocation77_spill] sm:$0xff]  ;;  %v11212_v31 = vld [vmem:[#allocation38_spill] sm:$0xff] }
 0x5e8   :  { %2227 = vmatprep.subr.bf16.mxu1 %v11190_v9  ;;  %v8236_v46 = vpop.permute.xlu0 %2921  ;;  %v8243_v12 = vmul.f32 %v7760_v63, %v2801_v22  ;;  %v8246_v0 = vmul.f32 %v7763_v37, %v2785_v43  ;;  %v11198_v9 = vld [vmem:[#allocation81_spill] sm:$0xff]  ;;  %v11201_v44 = vpack.c.bf16 %v11071_v19, %v11200_v58  ;;  %v2963_v11 = vsel %vm2945_vm11, %v11202_v17, %v11195_v34  ;;  %v11205_v43 = vld [vmem:[#allocation82_spill] sm:$0xff]  ;;  %v11207_v63 = vld [vmem:[#allocation20_spill] sm:$0xff] }
 0x5e9   :  { %11192 = vst [vmem:[#allocation65_spill] sm:$0xff] %v8234_v41  ;;  %11193 = vst [vmem:[#allocation70_spill] sm:$0xff] %v8236_v46  ;;  %v2954_v14 = vsel %vm2945_vm11, %v11199_v29, %v11198_v9  ;;  %v8260_v22 = vmul.f32 %v11203_v6, %v2809_v21  ;;  %v2962_v39 = vsel %vm2945_vm11, %v11205_v43, %v11199_v29  ;;  %2893 = vrot.lane.b32.xlu0 %v7395_v62, %s5589_s1  ;;  %v11206_v46 = vld [vmem:[#allocation18_spill] sm:$0xff]  ;;  %v11211_v21 = vld [vmem:[#allocation79_spill] sm:$0xff] }
 0x5ea   :  { %11196 = vst [vmem:[#allocation69_spill] sm:$0xff] %v8243_v12  ;;  %11197 = vst [vmem:[#allocation74_spill] sm:$0xff] %v8246_v0  ;;  %2300 = vmatprep.subr.bf16.mxu0 %v11201_v44  ;;  %v11208_v19 = vpack.c.bf16 %v11206_v46, %v11207_v63  ;;  %v8272_v58 = vmul.f32 %v7763_v37, %v2786_v28  ;;  %v8275_v34 = vmul.f32 %v11203_v6, %v2810_v20  ;;  %v11213_v29 = vld [vmem:[#allocation23_spill] sm:$0xff]  ;;  %v8284_v18 = vpop.permute.xlu1 %1345  ;;  %v11222_v63 = vld [vmem:[#allocation17_spill] sm:$0xff] }
 0x5eb   :  { %11204 = vst [vmem:[#allocation72_spill] sm:$0xff] %v8260_v22  ;;  %v2947_v44 = vsel %vm2945_vm11, %v11194_v5, %v11211_v21  ;;  %v11214_v56 = vpack.c.bf16 %v11212_v31, %v11213_v29  ;;  %v11215_v46 = vld [vmem:[#allocation27_spill] sm:$0xff]  ;;  %v2971_v20 = vsel %vm2945_vm11, %v11211_v21, %v11202_v17  ;;  %v11218_v5 = vld [vmem:[#allocation22_spill] sm:$0xff]  ;;  %v8308_v6 = vmul.f32 %v11222_v63, %v2963_v11  ;;  %v11225_v21 = vld [vmem:[#allocation25_spill] sm:$0xff] }
 0x5ec   :  { %2228 = vmatpush1.bf16.msra.mxu1 %v11208_v19  ;;  %11209 = vst [vmem:[#allocation76_spill] sm:$0xff] %v8272_v58  ;;  %11210 = vst [vmem:[#allocation78_spill] sm:$0xff] %v8275_v34  ;;  %v8289_v28 = vmul.f32 %v11215_v46, %v2955_v51  ;;  %v8296_v19 = vmul.f32 %v11215_v46, %v2954_v14  ;;  %v11219_v37 = vld [vmem:[#allocation19_spill] sm:$0xff]  ;;  %v8313_v14 = vmul.f32 %v11222_v63, %v2962_v39  ;;  %v11229_v29 = vld [vmem:[#allocation94_spill] sm:$0xff] }
 0x5ed   :  { %2229 = vmatprep.subr.bf16.mxu1 %v11214_v56  ;;  %v11220_v31 = vpack.c.bf16 %v11218_v5, %v11219_v37  ;;  %v8301_v56 = vpop.permute.xlu0 %2889  ;;  %11223 = vst [vmem:[#allocation81_spill] sm:$0xff] %v8308_v6  ;;  %v11226_v37 = vld [vmem:[#allocation33_spill] sm:$0xff]  ;;  %2941 = vrot.lane.b32.xlu0 %v7431_v52, %s5589_s1  ;;  %v11231_v11 = vld [vmem:[#allocation16_spill] sm:$0xff]  ;;  %v11238_v0 = vld [vmem:[#allocation99_spill] sm:$0xff] }
 0x5ee   :  { %11216 = vst [vmem:[#allocation71_spill] sm:$0xff] %v8289_v28  ;;  %11217 = vst [vmem:[#allocation75_spill] sm:$0xff] %v8296_v19  ;;  %v11227_v5 = vpack.c.bf16 %v11225_v21, %v11226_v37  ;;  %v11232_v17 = vld [vmem:[#allocation24_spill] sm:$0xff]  ;;  %v11234_v21 = vld [vmem:[#allocation14_spill] sm:$0xff] }
 0x5ef   :  { %2301 = vmatpush1.bf16.msra.mxu0 %v11220_v31  ;;  %11221 = vst [vmem:[#allocation73_spill] sm:$0xff] %v8301_v56  ;;  %11224 = vst [vmem:[#allocation80_spill] sm:$0xff] %v8313_v14  ;;  %v8319_v31 = vmul.f32 %v7815_v60, %v2947_v44  ;;  %v11230_v56 = vld [vmem:[#allocation91_spill] sm:$0xff]  ;;  %v11233_v46 = vpack.c.bf16 %v11231_v11, %v11232_v17  ;;  %v8333_v37 = vmul.f32 %v11234_v21, %v2971_v20  ;;  %v11237_v63 = vld [vmem:[#allocation97_spill] sm:$0xff]  ;;  %v8350_v20 = vpop.permute.xlu1 %1361 }
 0x5f0   :  { %2302 = vmatprep.subr.bf16.mxu0 %v11227_v5  ;;  %v2076_v51 = vsel %vm2065_vm5, %v11230_v56, %v11229_v29  ;;  %v11236_v44 = vld [vmem:[#allocation83_spill] sm:$0xff]  ;;  %v11239_v17 = vld [vmem:[#allocation84_spill] sm:$0xff]  ;;  %v11240_v11 = vld [vmem:[#allocation90_spill] sm:$0xff] }
 0x5f1   :  { %11228 = vst [vmem:[#allocation11_spill] sm:$0xff] %v8319_v31  ;;  %2230 = vmatpush1.bf16.msra.mxu1 %v11233_v46  ;;  %11235 = vst [vmem:[#allocation77_spill] sm:$0xff] %v8333_v37  ;;  %v2946_v5 = vsel %vm2945_vm11, %v11198_v9, %v11236_v44  ;;  %v2084_v31 = vsel %vm2065_vm5, %v11237_v63, %v11230_v56  ;;  %v2068_v46 = vsel %vm2065_vm5, %v11229_v29, %v11238_v0  ;;  %v11242_v37 = vld [vmem:[#allocation87_spill] sm:$0xff]  ;;  %v11243_v58 = vld [vmem:[#allocation85_spill] sm:$0xff] }
 0x5f2   :  { %v11241_v39 = vpack.c.bf16 %v11239_v17, %v11240_v11  ;;  %v2077_v9 = vsel %vm2065_vm5, %v11243_v58, %v11242_v37  ;;  %v11244_v12 = vld [vmem:[#allocation89_spill] sm:$0xff]  ;;  %v2092_v29 = vsel %vm2065_vm5, %v11238_v0, %v11237_v63  ;;  %v11246_v17 = vld [vmem:[#allocation32_spill] sm:$0xff]  ;;  %v8367_v11 = vpop.permute.xlu0 %2937  ;;  %v8388_v22 = vmul.f32 %v7815_v60, %v2946_v5  ;;  %v11266_v19 = vld [vmem:[#allocation103_spill] sm:$0xff] }
 0x5f3   :  { %v2085_v56 = vsel %vm2065_vm5, %v11244_v12, %v11243_v58  ;;  %11248 = vst [vmem:[#allocation82_spill] sm:$0xff] %v8367_v11  ;;  %v8377_v58 = vsel %vm2945_vm11, %v11236_v44, %v11205_v43  ;;  %v11249_v41 = vld [vmem:[#allocation92_spill] sm:$0xff]  ;;  %v11250_v0 = vld [vmem:[#allocation13_spill] sm:$0xff]  ;;  %v11254_v44 = vld [vmem:[#allocation186_spill] sm:$0xff] }
 0x5f4   :  { %2231 = vmatprep.subr.bf16.mxu1 %v11241_v39  ;;  %v11247_v39 = vpack.c.bf16 %v11245_v1, %v11246_v17  ;;  %v2069_v1 = vsel %vm2065_vm5, %v11242_v37, %v11249_v41  ;;  %v2123_v63 = vmul.f32 %v11250_v0, %v2076_v51  ;;  %v11251_v17 = vld [vmem:[#allocation96_spill] sm:$0xff]  ;;  %11253 = vst [vmem:[#allocation18_spill] sm:$0xff] %v8388_v22  ;;  %v11267_v28 = vld [vmem:[#allocation101_spill] sm:$0xff] }
 0x5f5   :  { %v2093_v43 = vsel %vm2065_vm5, %v11249_v41, %v11244_v12  ;;  %v8395_v34 = vmul.f32 %v11254_v44, %v2084_v31  ;;  %v11255_v14 = vld [vmem:[#allocation28_spill] sm:$0xff]  ;;  %v8405_v5 = vmul.f32 %v11254_v44, %v2085_v56  ;;  %v2125_v12 = vmul.f32 %v7629_v27, %v2092_v29  ;;  %v11264_v29 = vld [vmem:[#allocation93_spill] sm:$0xff] }
 0x5f6   :  { %2303 = vmatpush1.bf16.msra.mxu0 %v11247_v39  ;;  %v11252_v39 = vpack.c.bf16 %v7145_v16, %v11251_v17  ;;  %v8398_v6 = vmul.f32 %v11255_v14, %v2068_v46  ;;  %v11256_v51 = vld [vmem:[#allocation88_spill] sm:$0xff]  ;;  %v2127_v16 = vmul.f32 %v11250_v0, %v2077_v9  ;;  %v11258_v17 = vld [vmem:[#allocation98_spill] sm:$0xff]  ;;  %v11260_v31 = vpack.c.bf16 %v7378_v7, %v7407_v55  ;;  %v8415_v46 = vpop.permute.xlu1 %1377  ;;  %v11268_v60 = vld [vmem:[#allocation105_spill] sm:$0xff] }
 0x5f7   :  { %v11257_v37 = vpack.c.bf16 %v7083_v38, %v11256_v51  ;;  %v8418_v38 = vmul.f32 %v11255_v14, %v2069_v1  ;;  %v11261_v9 = vld [vmem:[#allocation100_spill] sm:$0xff]  ;;  %v11262_v51 = vld [vmem:[#allocation102_spill] sm:$0xff]  ;;  %v2030_v1 = vpop.permute.xlu0 %2029  ;;  %v2129_v11 = vmul.f32 %v7629_v27, %v2093_v43  ;;  %v11272_v22 = vld [vmem:[#allocation149_spill] sm:$0xff] }
 0x5f8   :  { %2304 = vmatprep.subr.bf16.mxu0 %v11252_v39  ;;  %v11259_v39 = vld [vmem:[#allocation95_spill] sm:$0xff]  ;;  %v1409_v56 = vsel %vm1397_vm6, %v11258_v17, %v11261_v9  ;;  %v11263_v55 = vld [vmem:[#allocation86_spill] sm:$0xff]  ;;  %v11287_v32 = vld [vmem:[#allocation104_spill] sm:$0xff] }
 0x5f9   :  { %2232 = vmatpush1.bf16.msra.mxu1 %v11257_v37  ;;  %v1417_v41 = vsel %vm1397_vm6, %v11259_v39, %v11258_v17  ;;  %v1401_v37 = vsel %vm1397_vm6, %v11261_v9, %v11262_v51  ;;  %v1425_v7 = vsel %vm1397_vm6, %v11262_v51, %v11259_v39  ;;  %v1416_v17 = vsel %vm1397_vm6, %v11267_v28, %v11266_v19 }
 0x5fa   :  { %2233 = vmatprep.subr.bf16.mxu1 %v11260_v31  ;;  %v11265_v31 = vpack.c.bf16 %v11263_v55, %v11264_v29  ;;  %v1408_v9 = vsel %vm1397_vm6, %v11266_v19, %v11268_v60  ;;  %v11269_v39 = vpack.c.bf16 %v7405_v33, %v7431_v52  ;;  %v2151_v51 = vpack.c.bf16 %v2127_v16, %v2123_v63  ;;  %v11270_v55 = vld [vmem:[#allocation39_spill] sm:$0xff]  ;;  %v11274_v33 = vld [vmem:[#allocation40_spill] sm:$0xff] }
 0x5fb   :  { %v8448_v29 = vmul.f32 %v11270_v55, %v1417_v41  ;;  %v2152_v43 = vpack.c.bf16 %v8418_v38, %v8398_v6  ;;  %v2150_v52 = vpack.c.bf16 %v8405_v5, %v8395_v34  ;;  %v8462_v19 = vmul.f32 %v11274_v33, %v1409_v56  ;;  %v11275_v16 = vld [vmem:[#allocation36_spill] sm:$0xff]  ;;  %v11276_v41 = vld [vmem:[#allocation15_spill] sm:$0xff]  ;;  %v11279_v5 = vld [vmem:[#allocation146_spill] sm:$0xff] }
 0x5fc   :  { %2305 = vmatpush1.bf16.msra.mxu0 %v11265_v31  ;;  %v11271_v31 = vld [vmem:[#allocation151_spill] sm:$0xff]  ;;  %v8465_v63 = vmul.f32 %v7654_v23, %v1425_v7  ;;  %v8468_v6 = vmul.f32 %v7658_v61, %v1401_v37  ;;  %v11277_v38 = vpack.c.bf16 %v11275_v16, %v11276_v41  ;;  %v2153_v62 = vpack.c.bf16 %v2129_v11, %v2125_v12  ;;  %v11280_v37 = vld [vmem:[#allocation153_spill] sm:$0xff]  ;;  %v2046_v11 = vpop.permute.xlu0 %2045 }
 0x5fd   :  { %2306 = vmatprep.subr.bf16.mxu0 %v11269_v39  ;;  %v2078_v49 = vsel %vm2065_vm5, %v11272_v22, %v11271_v31  ;;  %2234 = vmatpush1.bf16.msra.mxu1 %v11273_v40  ;;  %v8473_v39 = vpop.permute.xlu1 %1393  ;;  %v8476_v36 = vmul.f32 %v11270_v55, %v1416_v17  ;;  %v8479_v40 = vmul.f32 %v11274_v33, %v1408_v9  ;;  %v11278_v34 = vld [vmem:[#allocation147_spill] sm:$0xff] }
 0x5fe   :  { %2235 = vmatprep.subr.bf16.mxu1 %v11277_v38  ;;  %v2079_v56 = vsel %vm2065_vm5, %v11279_v5, %v11278_v34  ;;  %v11281_v7 = vld [vmem:[#allocation155_spill] sm:$0xff]  ;;  %v11282_v41 = vpack.c.bf16 %v7392_v54, %v7419_v59  ;;  %v2131_v9 = vmul.f32 %v11250_v0, %v2078_v49  ;;  %v2086_v38 = vsel %vm2065_vm5, %v11280_v37, %v11272_v22  ;;  %v11284_v54 = vld [vmem:[#allocation200_spill] sm:$0xff] }
 0x5ff   :  { %v2094_v16 = vsel %vm2065_vm5, %v11281_v7, %v11280_v37  ;;  %v11283_v12 = vld [vmem:[#allocation107_spill] sm:$0xff]  ;;  %v2070_v45 = vsel %vm2065_vm5, %v11271_v31, %v11281_v7  ;;  %v11285_v59 = vpack.c.bf16 %v7854_v25, %v11284_v54  ;;  %v11288_v22 = vld [vmem:[#allocation148_spill] sm:$0xff]  ;;  %v11289_v37 = vld [vmem:[#allocation150_spill] sm:$0xff]  ;;  %v2080_v31 = vsel %vm2065_vm5, %v2030_v1, %v2046_v11 }
 0x600   :  { %2307 = vmatpush1.bf16.msra.mxu0 %v11282_v41  ;;  %v1424_v17 = vsel %vm1397_vm6, %v11283_v12, %v11267_v28  ;;  %v11286_v41 = vld [vmem:[#allocation106_spill] sm:$0xff]  ;;  %v1400_v49 = vsel %vm1397_vm6, %v11268_v60, %v11283_v12  ;;  %v2095_v42 = vsel %vm2065_vm5, %v11289_v37, %v11288_v22  ;;  %v11291_v7 = vld [vmem:[#allocation31_spill] sm:$0xff]  ;;  %v2087_v10 = vsel %vm2065_vm5, %v11288_v22, %v11279_v5 }
 0x601   :  { %2308 = vmatprep.subr.bf16.mxu0 %v11285_v59  ;;  %v1578_v28 = vsel %vm1558_vm7, %v11287_v32, %v11286_v41  ;;  %v11290_v25 = vld [vmem:[#allocation42_spill] sm:$0xff]  ;;  %v2135_v59 = vmul.f32 %v11250_v0, %v2079_v56  ;;  %v2071_v60 = vsel %vm2065_vm5, %v11278_v34, %v11289_v37  ;;  %v2133_v12 = vmul.f32 %v7629_v27, %v2094_v16  ;;  %v8535_v47 = vpop.permute.xlu1 %1508  ;;  %v11293_v22 = vld [vmem:[#allocation35_spill] sm:$0xff]  ;;  %v2014_v16 = vpop.permute.xlu0 %2013 }
 0x602   :  { %v11292_v54 = vpack.c.bf16 %v11290_v25, %v11291_v7  ;;  %v8538_v25 = vmul.f32 %v7654_v23, %v1424_v17  ;;  %v2130_v56 = vmul.f32 %v11254_v44, %v2086_v38  ;;  %v2132_v7 = vmul.f32 %v11255_v14, %v2070_v45 }
 0x603   :  { %v2081_v5 = vsel %vm2065_vm5, %v8079_v2, %v8126_v8  ;;  %v2139_v37 = vmul.f32 %v11250_v0, %v2080_v31  ;;  %v2088_v17 = vsel %vm2065_vm5, %v2014_v16, %v2030_v1  ;;  %v2155_v38 = vpack.c.bf16 %v2135_v59, %v2131_v9 }
 0x604   :  { %2236 = vmatpush1.bf16.msra.mxu1 %v11292_v54  ;;  %v11294_v54 = vld [vmem:[#allocation34_spill] sm:$0xff]  ;;  %v8554_v45 = vmul.f32 %v7658_v61, %v1400_v49  ;;  %v2134_v48 = vmul.f32 %v11254_v44, %v2087_v10  ;;  %v2136_v50 = vmul.f32 %v11255_v14, %v2071_v60  ;;  %v2073_v1 = vsel %vm2065_vm5, %v8126_v8, %v8221_v15  ;;  %v11296_v49 = vld [vmem:[#allocation108_spill] sm:$0xff] }
 0x605   :  { %2237 = vmatprep.subr.bf16.mxu1 %v2151_v51  ;;  %v11295_v34 = vpack.c.bf16 %v11293_v22, %v11294_v54  ;;  %v2137_v51 = vmul.f32 %v7629_v27, %v2095_v42  ;;  %v2089_v22 = vsel %vm2065_vm5, %v8176_v3, %v8079_v2  ;;  %v2143_v42 = vmul.f32 %v11250_v0, %v2081_v5  ;;  %v2062_v31 = vpop.permute.xlu0 %2061 }
 0x606   :  { %v2097_v10 = vsel %vm2065_vm5, %v8221_v15, %v8176_v3  ;;  %v1570_v2 = vsel %vm1558_vm7, %v11286_v41, %v11296_v49  ;;  %v2156_v0 = vpack.c.bf16 %v2136_v50, %v2132_v7  ;;  %v2154_v8 = vpack.c.bf16 %v2134_v48, %v2130_v56  ;;  %v11298_v56 = vld [vmem:[#allocation111_spill] sm:$0xff]  ;;  %v11299_v7 = vld [vmem:[#allocation109_spill] sm:$0xff] }
 0x607   :  { %2309 = vmatpush1.bf16.msra.mxu0 %v11295_v34  ;;  %v2157_v9 = vpack.c.bf16 %v2137_v51, %v2133_v12  ;;  %v2142_v59 = vmul.f32 %v11254_v44, %v2089_v22  ;;  %v2072_v3 = vsel %vm2065_vm5, %v2046_v11, %v2062_v31  ;;  %v2096_v15 = vsel %vm2065_vm5, %v2062_v31, %v2014_v16 }
 0x608   :  { %2310 = vmatprep.subr.bf16.mxu0 %v2153_v62  ;;  %2238 = vmatpush1.bf16.msra.mxu1 %v2150_v52  ;;  %v8571_v62 = vpop.permute.xlu1 %1524  ;;  %v2138_v52 = vmul.f32 %v11254_v44, %v2088_v17  ;;  %v2159_v60 = vpack.c.bf16 %v2143_v42, %v2139_v37  ;;  %v2144_v12 = vmul.f32 %v11255_v14, %v2073_v1  ;;  %v11297_v44 = vld [vmem:[#allocation110_spill] sm:$0xff]  ;;  %v11301_v17 = vld [vmem:[#allocation5_spill] sm:$0xff] }
 0x609   :  { %2239 = vmatprep.subr.bf16.mxu1 %v2155_v38  ;;  %v2145_v41 = vmul.f32 %v7629_v27, %v2097_v10  ;;  %v2140_v50 = vmul.f32 %v11255_v14, %v2072_v3  ;;  %v1484_v48 = vpack.c.bf16 %v8462_v19, %v8479_v40  ;;  %v1586_v11 = vsel %vm1558_vm7, %v11297_v44, %v11287_v32  ;;  %v11300_v14 = vld [vmem:[#allocation113_spill] sm:$0xff]  ;;  %v8605_v51 = vpop.permute.xlu0 %1343  ;;  %v11302_v42 = vld [vmem:[#allocation6_spill] sm:$0xff]  ;;  %v11309_v3 = vld [vmem:[#allocation199_spill] sm:$0xff] }
 0x60a   :  { %v1577_v5 = vsel %vm1558_vm7, %v11299_v7, %v11298_v56  ;;  %v1569_v34 = vsel %vm1558_vm7, %v11298_v56, %v11300_v14  ;;  %v2158_v32 = vpack.c.bf16 %v2142_v59, %v2138_v52  ;;  %v8608_v38 = vmul.f32 %v11301_v17, %v1578_v28  ;;  %v11303_v28 = vld [vmem:[#allocation187_spill] sm:$0xff]  ;;  %v11307_v52 = vld [vmem:[#allocation152_spill] sm:$0xff] }
 0x60b   :  { %2311 = vmatpush1.bf16.msra.mxu0 %v2152_v43  ;;  %v2141_v43 = vmul.f32 %v7629_v27, %v2096_v15  ;;  %v1483_v27 = vpack.c.bf16 %v8448_v29, %v8476_v36  ;;  %v2160_v16 = vpack.c.bf16 %v2144_v12, %v2140_v50  ;;  %v1482_v22 = vpack.c.bf16 %v8465_v63, %v8538_v25  ;;  %v5454_v29 = vld [vmem:[%s10441_s4 + $0x40] ss:$8 sps:$4 sm:$0xff]   ;;  %v11304_v63 = vld [vmem:[#allocation159_spill] sm:$0xff] }
 0x60c   :  { %2312 = vmatprep.subr.bf16.mxu0 %v2157_v9  ;;  %2240 = vmatpush1.bf16.msra.mxu1 %v2154_v8  ;;  %v8597_v54 = vpop.permute.xlu1 %1540  ;;  %v8613_v1 = vmul.f32 %v11302_v42, %v1570_v2  ;;  %v1485_v36 = vpack.c.bf16 %v8468_v6, %v8554_v45  ;;  %v8624_v10 = vsel %vm1558_vm7, %v11296_v49, %v11297_v44  ;;  %v11305_v25 = vld [vmem:[#allocation157_spill] sm:$0xff]  ;;  %v5457_v6 = vld [vmem:[%s10441_s4 + $0x54] ss:$8 sps:$4 sm:$0xff]  }
 0x60d   :  { %2241 = vmatprep.subr.bf16.mxu1 %v2159_v60  ;;  %v2161_v37 = vpack.c.bf16 %v2145_v41, %v2141_v43  ;;  %v8627_v9 = vmul.f32 %v11303_v28, %v1586_v11  ;;  %v1418_v2 = vsel %vm1397_vm6, %v11305_v25, %v11304_v63  ;;  %v8637_v45 = vmul.f32 %v11301_v17, %v1577_v5  ;;  %v11308_v8 = vld [vmem:[#allocation156_spill] sm:$0xff]  ;;  %v11310_v15 = vld [vmem:[#allocation201_spill] sm:$0xff]  ;;  %v11312_v41 = vld [vmem:[#allocation115_spill] sm:$0xff] }
 0x60e   :  { %v8640_v49 = vmul.f32 %v11302_v42, %v1569_v34  ;;  %v11311_v60 = vpack.c.bf16 %v11309_v3, %v11310_v15  ;;  %v1561_v50 = vsel %vm1558_vm7, %v11300_v14, %v11312_v41  ;;  %v1585_v43 = vsel %vm1558_vm7, %v11312_v41, %v11299_v7  ;;  %v11313_v44 = vld [vmem:[#allocation161_spill] sm:$0xff]  ;;  %v11314_v56 = vld [vmem:[#allocation163_spill] sm:$0xff]  ;;  %v1360_v34 = vpop.permute.xlu0 %1359 }
 0x60f   :  { %2313 = vmatpush1.bf16.msra.mxu0 %v2156_v0  ;;  %v11306_v0 = vld [vmem:[#allocation154_spill] sm:$0xff]  ;;  %v1410_v11 = vsel %vm1397_vm6, %v11304_v63, %v11313_v44  ;;  %v1402_v5 = vsel %vm1397_vm6, %v11313_v44, %v11314_v56  ;;  %v1426_v7 = vsel %vm1397_vm6, %v11314_v56, %v11305_v25  ;;  %v11316_v63 = vld [vmem:[#allocation41_spill] sm:$0xff] }
 0x610   :  { %2242 = vmatpush1.bf16.msra.mxu1 %v2158_v32  ;;  %2314 = vmatprep.subr.bf16.mxu0 %v2161_v37  ;;  %v1419_v31 = vsel %vm1397_vm6, %v11307_v52, %v11306_v0  ;;  %v1411_v59 = vsel %vm1397_vm6, %v11306_v0, %v11308_v8  ;;  %v8653_v12 = vpop.permute.xlu1 %1556  ;;  %v11315_v32 = vld [vmem:[#allocation158_spill] sm:$0xff]  ;;  %v1463_v37 = vmul.f32 %v11270_v55, %v1418_v2  ;;  %v11317_v0 = vld [vmem:[#allocation48_spill] sm:$0xff] }
 0x611   :  { %2413 = vmatprep.subr.bf16.mxu1 %v11311_v60  ;;  %v1403_v14 = vsel %vm1397_vm6, %v11308_v8, %v11315_v32  ;;  %v11318_v3 = vpack.c.bf16 %v11316_v63, %v11317_v0  ;;  %v1468_v15 = vmul.f32 %v11274_v33, %v1411_v59  ;;  %v1420_v8 = vsel %vm1397_vm6, %v8605_v51, %v1360_v34  ;;  %v11319_v60 = vld [vmem:[#allocation43_spill] sm:$0xff]  ;;  %v11320_v2 = vld [vmem:[#allocation50_spill] sm:$0xff] }
 0x612   :  { %v11321_v41 = vpack.c.bf16 %v11319_v60, %v11320_v2  ;;  %v1427_v25 = vsel %vm1397_vm6, %v11315_v32, %v11307_v52  ;;  %v1464_v44 = vmul.f32 %v11274_v33, %v1410_v11  ;;  %v1469_v56 = vmul.f32 %v7658_v61, %v1403_v14  ;;  %v11323_v60 = vld [vmem:[#allocation21_spill] sm:$0xff]  ;;  %v1376_v11 = vpop.permute.xlu0 %1375  ;;  %v5459_v14 = vld [vmem:[%s10441_s4 + $0x50] ss:$8 sps:$4 sm:$0xff]  }
 0x613   :  { %2315 = vmatpush1.bf16.msra.mxu0 %v2160_v16  ;;  %2252 = vmatmul.mubr.bf16.vlgmr.msra.gmra.mrb[0].mxu1 %v5454_v29  ;;  %v1467_v16 = vmul.f32 %v11270_v55, %v1419_v31  ;;  %v1465_v31 = vmul.f32 %v7658_v61, %v1402_v5  ;;  %v1462_v63 = vmul.f32 %v7654_v23, %v1426_v7  ;;  %v11325_v7 = vld [vmem:[#allocation114_spill] sm:$0xff] }
 0x614   :  { %2486 = vmatprep.subr.bf16.mxu0 %v11318_v3  ;;  %2414 = vmatpush1.bf16.msra.mxu1 %v11321_v41  ;;  %v8698_v59 = vpop.permute.xlu1 %1669  ;;  %v1421_v0 = vsel %vm1397_vm6, %v8284_v18, %v8350_v20  ;;  %v11322_v3 = vld [vmem:[#allocation46_spill] sm:$0xff]  ;;  %v1471_v5 = vmul.f32 %v11270_v55, %v1420_v8  ;;  %v8727_v41 = vmul.f32 %v11303_v28, %v1585_v43 }
 0x615   :  { %5018 = vmatprep.mubr.msk.bf16.mxu1 %vm753_vm0, %v5457_v6  ;;  %2415 = vmatprep.subr.bf16.mxu1 %v1483_v27  ;;  %v11324_v52 = vpack.c.bf16 %v11322_v3, %v11323_v60  ;;  %v1405_v27 = vsel %vm1397_vm6, %v8415_v46, %v8473_v39  ;;  %v1487_v32 = vpack.c.bf16 %v1467_v16, %v1463_v37  ;;  %v11327_v3 = vld [vmem:[#allocation188_spill] sm:$0xff] }
 0x616   :  { %2325 = vmatmul.mubr.bf16.vlgmr.msra.gmra.mrb[8].mxu0 %v5454_v29  ;;  %v1429_v29 = vsel %vm1397_vm6, %v8473_v39, %v8284_v18  ;;  %v8730_v60 = vmul.f32 %v11327_v3, %v1561_v50  ;;  %v1466_v18 = vmul.f32 %v7654_v23, %v1427_v25  ;;  %v5460_v39 = vld [vmem:[%s10441_s4 + $0x64] ss:$8 sps:$4 sm:$0xff]   ;;  %v1475_v37 = vmul.f32 %v11270_v55, %v1421_v0  ;;  %v1392_v55 = vpop.permute.xlu0 %1391 }
 0x617   :  { %2487 = vmatpush1.bf16.msra.mxu0 %v11324_v52  ;;  %5022 = vmatprep.mubr.msk.bf16.mxu0 %vm753_vm0, %v5457_v6  ;;  %v11326_v6 = vld [vmem:[#allocation112_spill] sm:$0xff]  ;;  %v1412_v16 = vsel %vm1397_vm6, %v1360_v34, %v1376_v11  ;;  %v1489_v43 = vpack.c.bf16 %v1469_v56, %v1465_v31  ;;  %v1474_v50 = vmul.f32 %v7654_v23, %v1429_v29 }
 0x618   :  { %2488 = vmatprep.subr.bf16.mxu0 %v1485_v36  ;;  %v1739_v2 = vsel %vm1719_vm8, %v11326_v6, %v11325_v7  ;;  %2416 = vmatpush1.bf16.msra.mxu1 %v1482_v22  ;;  %v1488_v36 = vpack.c.bf16 %v1468_v15, %v1464_v44  ;;  %v8739_v8 = vpop.permute.xlu1 %1685  ;;  %v1486_v52 = vpack.c.bf16 %v1466_v18, %v1462_v63  ;;  %v11334_v18 = vld [vmem:[#allocation118_spill] sm:$0xff] }
 0x619   :  { %2417 = vmatprep.subr.bf16.mxu1 %v1487_v32  ;;  %v1413_v22 = vsel %vm1397_vm6, %v8350_v20, %v8415_v46  ;;  %v1477_v25 = vmul.f32 %v7658_v61, %v1405_v27  ;;  %v1404_v34 = vsel %vm1397_vm6, %v1376_v11, %v1392_v55  ;;  %v1428_v15 = vsel %vm1397_vm6, %v1392_v55, %v8605_v51  ;;  %v11329_v27 = vld [vmem:[#allocation116_spill] sm:$0xff]  ;;  %v11332_v32 = vld [vmem:[#allocation167_spill] sm:$0xff] }
 0x61a   :  { %v1491_v44 = vpack.c.bf16 %v1475_v37, %v1471_v5  ;;  %v1472_v20 = vmul.f32 %v11274_v33, %v1412_v16  ;;  %v1470_v46 = vmul.f32 %v7654_v23, %v1428_v15  ;;  %v1473_v31 = vmul.f32 %v7658_v61, %v1404_v34  ;;  %v8768_v61 = vpop.permute.xlu0 %1506  ;;  %v5462_v5 = vld [vmem:[%s10441_s4 + $0x60] ss:$8 sps:$4 sm:$0xff]   ;;  %v11336_v16 = vld [vmem:[#allocation160_spill] sm:$0xff] }
 0x61b   :  { %2489 = vmatpush1.bf16.msra.mxu0 %v1484_v48  ;;  %2262 = vmatmul.mubr.bf16.gmra.mrb[4].mxu1 %v5459_v14  ;;  %v1622_v19 = vmul.f32 %v11327_v3, %v8624_v10  ;;  %v1645_v40 = vpack.c.bf16 %v8613_v1, %v8640_v49  ;;  %v1644_v51 = vpack.c.bf16 %v8608_v38, %v8637_v45  ;;  %v11328_v10 = vld [vmem:[#allocation9_spill] sm:$0xff]  ;;  %v11335_v37 = vld [vmem:[#allocation162_spill] sm:$0xff] }
 0x61c   :  { %2490 = vmatprep.subr.bf16.mxu0 %v1489_v43  ;;  %2418 = vmatpush1.bf16.msra.mxu1 %v1486_v52  ;;  %v8763_v48 = vpop.permute.xlu1 %1701  ;;  %v1476_v23 = vmul.f32 %v11274_v33, %v1413_v22  ;;  %v1490_v56 = vpack.c.bf16 %v1474_v50, %v1470_v46  ;;  %v1493_v63 = vpack.c.bf16 %v1477_v25, %v1473_v31  ;;  %v11330_v33 = vld [vmem:[#allocation119_spill] sm:$0xff]  ;;  %v11331_v45 = vld [vmem:[#allocation117_spill] sm:$0xff]  ;;  %v11337_v43 = vld [vmem:[#allocation164_spill] sm:$0xff] }
 0x61d   :  { %5019 = vmatprep.mubr.msk.bf16.mxu1 %vm753_vm0, %v5460_v39  ;;  %2419 = vmatprep.subr.bf16.mxu1 %v1491_v44  ;;  %v8772_v0 = vmul.f32 %v11328_v10, %v1739_v2  ;;  %v1643_v11 = vpack.c.bf16 %v8627_v9, %v8727_v41  ;;  %v8780_v38 = vsel %vm1719_vm8, %v11325_v7, %v11329_v27  ;;  %v5463_v41 = vld [vmem:[%s10441_s4 + $0x74] ss:$8 sps:$4 sm:$0xff]   ;;  %v11338_v22 = vld [vmem:[#allocation202_spill] sm:$0xff]  ;;  %v11339_v50 = vld [vmem:[#allocation45_spill] sm:$0xff] }
 0x61e   :  { %2335 = vmatmul.mubr.bf16.gmra.mrb[12].mxu0 %v5459_v14  ;;  %v1738_v29 = vsel %vm1719_vm8, %v11331_v45, %v11330_v33  ;;  %v11333_v14 = vld [vmem:[#allocation165_spill] sm:$0xff]  ;;  %v1492_v2 = vpack.c.bf16 %v1476_v23, %v1472_v20  ;;  %v1646_v7 = vpack.c.bf16 %v1622_v19, %v8730_v60  ;;  %v1580_v60 = vsel %vm1558_vm7, %v11336_v16, %v11335_v37  ;;  %v11343_v46 = vld [vmem:[#allocation171_spill] sm:$0xff]  ;;  %v1523_v19 = vpop.permute.xlu0 %1522  ;;  %v11344_v23 = vld [vmem:[#allocation166_spill] sm:$0xff] }
 0x61f   :  { %2491 = vmatpush1.bf16.msra.mxu0 %v1488_v36  ;;  %5023 = vmatprep.mubr.msk.bf16.mxu0 %vm753_vm0, %v5460_v39  ;;  %v1579_v9 = vsel %vm1558_vm7, %v11333_v14, %v11332_v32  ;;  %v8801_v39 = vsel %vm1719_vm8, %v11329_v27, %v11334_v18  ;;  %v8807_v36 = vsel %vm1719_vm8, %v11334_v18, %v11326_v6  ;;  %v11341_v6 = vld [vmem:[#allocation121_spill] sm:$0xff]  ;;  %v11353_v49 = vld [vmem:[#allocation190_spill] sm:$0xff] }
 0x620   :  { %2420 = vmatpush1.bf16.msra.mxu1 %v1490_v56  ;;  %2492 = vmatprep.subr.bf16.mxu0 %v1493_v63  ;;  %v1572_v52 = vsel %vm1558_vm7, %v11335_v37, %v11337_v43  ;;  %v11340_v25 = vpack.c.bf16 %v11338_v22, %v11339_v50  ;;  %v8820_v55 = vpop.permute.xlu1 %1717  ;;  %v8823_v34 = vmul.f32 %v11328_v10, %v1738_v29  ;;  %v11342_v44 = vld [vmem:[#allocation169_spill] sm:$0xff]  ;;  %v11349_v22 = vld [vmem:[#allocation47_spill] sm:$0xff] }
 0x621   :  { %v1730_v15 = vsel %vm1719_vm8, %v11330_v33, %v11341_v6  ;;  %v1571_v20 = vsel %vm1558_vm7, %v11332_v32, %v11342_v44  ;;  %v1563_v31 = vsel %vm1558_vm7, %v11342_v44, %v11343_v46  ;;  %v1564_v56 = vsel %vm1558_vm7, %v11337_v43, %v11344_v23 }
 0x622   :  { %2421 = vmatprep.subr.bf16.mxu1 %v11340_v25  ;;  %v1624_v63 = vmul.f32 %v11301_v17, %v1579_v9  ;;  %v1587_v27 = vsel %vm1558_vm7, %v11343_v46, %v11333_v14  ;;  %v11345_v33 = vpack.c.bf16 %v7991_v13, %v8020_v53  ;;  %v1628_v29 = vmul.f32 %v11301_v17, %v1580_v60  ;;  %v11346_v9 = vld [vmem:[#allocation51_spill] sm:$0xff]  ;;  %v1539_v50 = vpop.permute.xlu0 %1538  ;;  %v11351_v46 = vld [vmem:[#allocation189_spill] sm:$0xff] }
 0x623   :  { %2493 = vmatpush1.bf16.msra.mxu0 %v1492_v2  ;;  %2272 = vmatmul.mubr.bf16.gmra.mrb[8].mxu1 %v5462_v5  ;;  %v1629_v32 = vmul.f32 %v11302_v42, %v1572_v52  ;;  %v1581_v2 = vsel %vm1558_vm7, %v8768_v61, %v1523_v19  ;;  %v11347_v18 = vpack.c.bf16 %v7988_v4, %v11346_v9  ;;  %v11348_v52 = vld [vmem:[#allocation203_spill] sm:$0xff] }
 0x624   :  { %2494 = vmatprep.subr.bf16.mxu0 %v11345_v33  ;;  %5020 = vmatprep.mubr.msk.bf16.mxu1 %vm753_vm0, %v5463_v41  ;;  %v1588_v13 = vsel %vm1558_vm7, %v11344_v23, %v11336_v16  ;;  %v1625_v53 = vmul.f32 %v11302_v42, %v1571_v20  ;;  %v1626_v14 = vmul.f32 %v11327_v3, %v1563_v31  ;;  %v8864_v37 = vpop.permute.xlu1 %2589  ;;  %v5465_v20 = vld [vmem:[%s10441_s4 + $0x70] ss:$8 sps:$4 sm:$0xff]  }
 0x625   :  { %2422 = vmatpush1.bf16.msra.mxu1 %v11347_v18  ;;  %v1630_v60 = vmul.f32 %v11327_v3, %v1564_v56  ;;  %v1623_v4 = vmul.f32 %v11303_v28, %v1587_v27  ;;  %v1582_v43 = vsel %vm1558_vm7, %v8535_v47, %v8571_v62  ;;  %v11350_v16 = vpack.c.bf16 %v11348_v52, %v11349_v22  ;;  %v11352_v31 = vld [vmem:[#allocation123_spill] sm:$0xff]  ;;  %v11355_v52 = vld [vmem:[#allocation173_spill] sm:$0xff] }
 0x626   :  { %2423 = vmatprep.subr.bf16.mxu1 %v1644_v51  ;;  %2345 = vmatmul.mubr.bf16.gmra.mrb[16].mxu0 %v5462_v5  ;;  %v1566_v51 = vsel %vm1558_vm7, %v8597_v54, %v8653_v12  ;;  %v1590_v5 = vsel %vm1558_vm7, %v8653_v12, %v8535_v47  ;;  %v1632_v25 = vmul.f32 %v11301_v17, %v1581_v2 }
 0x627   :  { %2495 = vmatpush1.bf16.msra.mxu0 %v11350_v16  ;;  %5024 = vmatprep.mubr.msk.bf16.mxu0 %vm753_vm0, %v5463_v41  ;;  %v1648_v44 = vpack.c.bf16 %v1628_v29, %v1624_v63  ;;  %v8889_v41 = vmul.f32 %v11351_v46, %v1730_v15  ;;  %v1722_v23 = vsel %vm1719_vm8, %v11341_v6, %v11352_v31 }
 0x628   :  { %2496 = vmatprep.subr.bf16.mxu0 %v1646_v7  ;;  %v1746_v47 = vsel %vm1719_vm8, %v11352_v31, %v11331_v45  ;;  %v1627_v12 = vmul.f32 %v11303_v28, %v1588_v13  ;;  %v5468_v7 = vld [vmem:[%s10441_s4 + $0x4] ss:$8 sps:$4 sm:$0xff]   ;;  %v1649_v56 = vpack.c.bf16 %v1629_v32, %v1625_v53  ;;  %v1636_v15 = vmul.f32 %v11301_v17, %v1582_v43  ;;  %v8906_v6 = vpop.permute.xlu1 %2605  ;;  %v1555_v17 = vpop.permute.xlu0 %1554  ;;  %v11354_v43 = vld [vmem:[#allocation175_spill] sm:$0xff] }
 0x629   :  { %2424 = vmatpush1.bf16.msra.mxu1 %v1643_v11  ;;  %v1573_v63 = vsel %vm1558_vm7, %v1523_v19, %v1539_v50  ;;  %v1650_v27 = vpack.c.bf16 %v1630_v60, %v1626_v14  ;;  %v1574_v11 = vsel %vm1558_vm7, %v8571_v62, %v8597_v54  ;;  %v1635_v45 = vmul.f32 %v11303_v28, %v1590_v5  ;;  %v11360_v5 = vld [vmem:[#allocation125_spill] sm:$0xff] }
 0x62a   :  { %2425 = vmatprep.subr.bf16.mxu1 %v1648_v44  ;;  %v1647_v33 = vpack.c.bf16 %v1627_v12, %v1623_v4  ;;  %v1638_v29 = vmul.f32 %v11327_v3, %v1566_v51  ;;  %v1565_v19 = vsel %vm1558_vm7, %v1539_v50, %v1555_v17  ;;  %v1589_v32 = vsel %vm1558_vm7, %v1555_v17, %v8768_v61  ;;  %v11357_v50 = vld [vmem:[#allocation120_spill] sm:$0xff]  ;;  %v11359_v51 = vld [vmem:[#allocation127_spill] sm:$0xff] }
 0x62b   :  { %2497 = vmatpush1.bf16.msra.mxu0 %v1645_v40  ;;  %v1652_v2 = vpack.c.bf16 %v1636_v15, %v1632_v25  ;;  %2282 = vmatmul.mubr.bf16.gmra.mrb[12].mxu1 %v5465_v20  ;;  %v1633_v62 = vmul.f32 %v11302_v42, %v1573_v63  ;;  %v1631_v54 = vmul.f32 %v11303_v28, %v1589_v32  ;;  %v11367_v63 = vld [vmem:[#allocation129_spill] sm:$0xff]  ;;  %v11370_v32 = vld [vmem:[#allocation8_spill] sm:$0xff] }
 0x62c   :  { %2498 = vmatprep.subr.bf16.mxu0 %v1650_v27  ;;  %v1634_v9 = vmul.f32 %v11327_v3, %v1565_v19  ;;  %5033 = vmatprep.mubr.msk.bf16.mxu1 %vm753_vm0, %v5468_v7  ;;  %v8928_v1 = vmul.f32 %v11351_v46, %v8780_v38  ;;  %v8931_v40 = vmul.f32 %v11353_v49, %v1746_v47  ;;  %v8934_v18 = vpop.permute.xlu1 %2573  ;;  %v8937_v3 = vpop.permute.xlu0 %1667  ;;  %v11364_v47 = vld [vmem:[#allocation168_spill] sm:$0xff] }
 0x62d   :  { %2426 = vmatpush1.bf16.msra.mxu1 %v1647_v33  ;;  %v1779_v61 = vmul.f32 %v7714_v30, %v1722_v23  ;;  %v1637_v28 = vmul.f32 %v11302_v42, %v1574_v11  ;;  %v1651_v13 = vpack.c.bf16 %v1635_v45, %v1631_v54  ;;  %v8942_v38 = vmul.f32 %v11234_v21, %v8377_v58  ;;  %v11356_v58 = vld [vmem:[#allocation122_spill] sm:$0xff]  ;;  %v11372_v54 = vld [vmem:[#allocation172_spill] sm:$0xff] }
 0x62e   :  { %2427 = vmatprep.subr.bf16.mxu1 %v1652_v2  ;;  %2355 = vmatmul.mubr.bf16.gmra.mrb[20].mxu0 %v5465_v20  ;;  %v1654_v53 = vpack.c.bf16 %v1638_v29, %v1634_v9  ;;  %v1780_v14 = vmul.f32 %v11353_v49, %v8807_v36  ;;  %v1783_v60 = vmul.f32 %v7714_v30, %v8801_v39  ;;  %v11363_v23 = vld [vmem:[#allocation170_spill] sm:$0xff]  ;;  %v11368_v29 = vld [vmem:[#allocation56_spill] sm:$0xff] }
 0x62f   :  { %2499 = vmatpush1.bf16.msra.mxu0 %v1649_v56  ;;  %5037 = vmatprep.mubr.msk.bf16.mxu0 %vm753_vm0, %v5468_v7  ;;  %v1805_v42 = vpack.c.bf16 %v8772_v0, %v8823_v34  ;;  %v1806_v4 = vpack.c.bf16 %v8928_v1, %v8889_v41  ;;  %v1740_v22 = vsel %vm1719_vm8, %v11355_v52, %v11354_v43  ;;  %v11358_v0 = vld [vmem:[#allocation124_spill] sm:$0xff]  ;;  %v11362_v41 = vld [vmem:[#allocation126_spill] sm:$0xff]  ;;  %v11365_v7 = vld [vmem:[#allocation179_spill] sm:$0xff] }
 0x630   :  { %v1653_v16 = vpack.c.bf16 %v1637_v28, %v1633_v62  ;;  %2500 = vmatprep.subr.bf16.mxu0 %v1654_v53  ;;  %v8960_v36 = vsel %vm2623_vm9, %v11357_v50, %v11356_v58  ;;  %v1804_v39 = vpack.c.bf16 %v1780_v14, %v8931_v40  ;;  %v8967_v34 = vsel %vm2623_vm9, %v11358_v0, %v11357_v50  ;;  %v8976_v20 = vpop.permute.xlu1 %2621  ;;  %v11366_v56 = vld [vmem:[#allocation177_spill] sm:$0xff]  ;;  %v11371_v62 = vld [vmem:[#allocation174_spill] sm:$0xff] }
 0x631   :  { %2428 = vmatpush1.bf16.msra.mxu1 %v1651_v13  ;;  %v2634_v25 = vsel %vm2623_vm9, %v11360_v5, %v11359_v51  ;;  %v11361_v44 = vpack.c.bf16 %v8004_v35, %v8038_v57  ;;  %v2627_v31 = vsel %vm2623_vm9, %v11356_v58, %v11362_v41  ;;  %v1741_v12 = vsel %vm1719_vm8, %v11364_v47, %v11363_v23  ;;  %v1684_v35 = vpop.permute.xlu0 %1683  ;;  %v11373_v40 = vld [vmem:[#allocation58_spill] sm:$0xff]  ;;  %v11377_v50 = vld [vmem:[#allocation49_spill] sm:$0xff] }
 0x632   :  { %v1724_v15 = vsel %vm1719_vm8, %v11366_v56, %v11365_v7  ;;  %v1807_v57 = vpack.c.bf16 %v1783_v60, %v1779_v61  ;;  %v2642_v27 = vsel %vm2623_vm9, %v11367_v63, %v11360_v5  ;;  %v1785_v33 = vmul.f32 %v11328_v10, %v1740_v22 }
 0x633   :  { %2429 = vmatprep.subr.bf16.mxu1 %v11361_v44  ;;  %2501 = vmatpush1.bf16.msra.mxu0 %v1653_v16  ;;  %v1732_v11 = vsel %vm1719_vm8, %v11354_v43, %v11366_v56  ;;  %v1748_v45 = vsel %vm1719_vm8, %v11365_v7, %v11355_v52  ;;  %v11369_v17 = vpack.c.bf16 %v8084_v26, %v11368_v29  ;;  %v11374_v26 = vld [vmem:[#allocation53_spill] sm:$0xff] }
 0x634   :  { %v2651_v19 = vsel %vm2623_vm9, %v11362_v41, %v11358_v0  ;;  %v9011_v2 = vmul.f32 %v11370_v32, %v2634_v25  ;;  %v1725_v9 = vsel %vm1719_vm8, %v11372_v54, %v11371_v62  ;;  %v1742_v1 = vsel %vm1719_vm8, %v8937_v3, %v1684_v35  ;;  %v9033_v60 = vpop.permute.xlu1 %2750  ;;  %v11376_v43 = vld [vmem:[#allocation193_spill] sm:$0xff]  ;;  %v11378_v0 = vld [vmem:[#allocation54_spill] sm:$0xff] }
 0x635   :  { %2502 = vmatprep.subr.bf16.mxu0 %v11369_v17  ;;  %v11375_v61 = vpack.c.bf16 %v11373_v40, %v11374_v26  ;;  %v1789_v28 = vmul.f32 %v11328_v10, %v1741_v12  ;;  %v1733_v13 = vsel %vm1719_vm8, %v11363_v23, %v11372_v54  ;;  %v1749_v53 = vsel %vm1719_vm8, %v11371_v62, %v11364_v47  ;;  %v1700_v25 = vpop.permute.xlu0 %1699  ;;  %v11382_v40 = vld [vmem:[#allocation195_spill] sm:$0xff] }
 0x636   :  { %v1787_v14 = vmul.f32 %v7714_v30, %v1724_v15  ;;  %v9036_v52 = vmul.f32 %v11376_v43, %v2642_v27  ;;  %v1786_v22 = vmul.f32 %v11351_v46, %v1732_v11  ;;  %v1784_v16 = vmul.f32 %v11353_v49, %v1748_v45  ;;  %v11381_v11 = vld [vmem:[#allocation194_spill] sm:$0xff] }
 0x637   :  { %2430 = vmatpush1.bf16.msra.mxu1 %v11375_v61  ;;  %v1743_v58 = vsel %vm1719_vm8, %v8698_v59, %v8739_v8  ;;  %v11379_v5 = vpack.c.bf16 %v11377_v50, %v11378_v0  ;;  %v1791_v41 = vmul.f32 %v7714_v30, %v1725_v9  ;;  %v1793_v23 = vmul.f32 %v11328_v10, %v1742_v1  ;;  %v11387_v50 = vld [vmem:[#allocation178_spill] sm:$0xff]  ;;  %v11388_v0 = vld [vmem:[#allocation176_spill] sm:$0xff] }
 0x638   :  { %2431 = vmatprep.subr.bf16.mxu1 %v1805_v42  ;;  %v11380_v42 = vld [vmem:[#allocation131_spill] sm:$0xff]  ;;  %v1809_v47 = vpack.c.bf16 %v1789_v28, %v1785_v33  ;;  %v1790_v7 = vmul.f32 %v11351_v46, %v1733_v13  ;;  %v1788_v56 = vmul.f32 %v11353_v49, %v1749_v53  ;;  %v1797_v15 = vmul.f32 %v11328_v10, %v1743_v58  ;;  %v9070_v27 = vpop.permute.xlu1 %2766  ;;  %v11383_v53 = vld [vmem:[#allocation130_spill] sm:$0xff] }
 0x639   :  { %2503 = vmatpush1.bf16.msra.mxu0 %v11379_v5  ;;  %v2626_v44 = vsel %vm2623_vm9, %v11359_v51, %v11380_v42  ;;  %v2650_v12 = vsel %vm2623_vm9, %v11380_v42, %v11367_v63  ;;  %v1751_v51 = vsel %vm1719_vm8, %v8820_v55, %v8698_v59  ;;  %v1734_v63 = vsel %vm1719_vm8, %v1684_v35, %v1700_v25  ;;  %v5469_v42 = vld [vmem:[%s10441_s4 + $0x14] ss:$8 sps:$4 sm:$0xff]  }
 0x63a   :  { %2504 = vmatprep.subr.bf16.mxu0 %v1807_v57  ;;  %v1727_v57 = vsel %vm1719_vm8, %v8763_v48, %v8820_v55  ;;  %v1811_v33 = vpack.c.bf16 %v1791_v41, %v1787_v14  ;;  %v9073_v45 = vmul.f32 %v11381_v11, %v2626_v44  ;;  %v1810_v29 = vpack.c.bf16 %v1790_v7, %v1786_v22  ;;  %v11384_v14 = vld [vmem:[#allocation128_spill] sm:$0xff]  ;;  %v11385_v22 = vld [vmem:[#allocation183_spill] sm:$0xff]  ;;  %v11390_v41 = vld [vmem:[#allocation134_spill] sm:$0xff] }
 0x63b   :  { %2432 = vmatpush1.bf16.msra.mxu1 %v1804_v39  ;;  %v1808_v59 = vpack.c.bf16 %v1788_v56, %v1784_v16  ;;  %v1735_v10 = vsel %vm1719_vm8, %v8739_v8, %v8763_v48  ;;  %v1716_v39 = vpop.permute.xlu0 %1715  ;;  %v1796_v55 = vmul.f32 %v11353_v49, %v1751_v51  ;;  %v1813_v62 = vpack.c.bf16 %v1797_v15, %v1793_v23  ;;  %v11386_v16 = vld [vmem:[#allocation181_spill] sm:$0xff]  ;;  %v11389_v44 = vld [vmem:[#allocation132_spill] sm:$0xff]  ;;  %v11393_v56 = vld [vmem:[#allocation55_spill] sm:$0xff] }
 0x63c   :  { %2433 = vmatprep.subr.bf16.mxu1 %v1809_v47  ;;  %v1726_v35 = vsel %vm1719_vm8, %v1700_v25, %v1716_v39  ;;  %v1750_v17 = vsel %vm1719_vm8, %v1716_v39, %v8937_v3  ;;  %v1799_v54 = vmul.f32 %v7714_v30, %v1727_v57  ;;  %v1794_v9 = vmul.f32 %v11351_v46, %v1734_v63  ;;  %v9099_v61 = vpop.permute.xlu1 %2734  ;;  %v11391_v47 = vld [vmem:[#allocation180_spill] sm:$0xff]  ;;  %v11395_v63 = vld [vmem:[#allocation182_spill] sm:$0xff] }
 0x63d   :  { %2505 = vmatpush1.bf16.msra.mxu0 %v1806_v4  ;;  %v1792_v1 = vmul.f32 %v11353_v49, %v1750_v17  ;;  %v1795_v8 = vmul.f32 %v7714_v30, %v1726_v35  ;;  %v2685_v48 = vmul.f32 %v11370_v32, %v8960_v36  ;;  %v9093_v4 = vmul.f32 %v11376_v43, %v8967_v34  ;;  %v11392_v7 = vld [vmem:[#allocation60_spill] sm:$0xff] }
 0x63e   :  { %2506 = vmatprep.subr.bf16.mxu0 %v1811_v33  ;;  %v9096_v3 = vmul.f32 %v11381_v11, %v2627_v31  ;;  %v2683_v26 = vmul.f32 %v11382_v40, %v2650_v12  ;;  %v2687_v49 = vmul.f32 %v11382_v40, %v2651_v19  ;;  %v1798_v30 = vmul.f32 %v11351_v46, %v1735_v10  ;;  %v5466_v46 = vld [vmem:[%s10441_s4] ss:$8 sps:$4 sm:$0xff]   ;;  %v11397_v10 = vld [vmem:[#allocation7_spill] sm:$0xff] }
 0x63f   :  { %2434 = vmatpush1.bf16.msra.mxu1 %v1808_v59  ;;  %v1812_v28 = vpack.c.bf16 %v1796_v55, %v1792_v1  ;;  %v2588_v13 = vpop.permute.xlu0 %2587  ;;  %v1815_v36 = vpack.c.bf16 %v1799_v54, %v1795_v8  ;;  %v2708_v34 = vpack.c.bf16 %v9093_v4, %v9036_v52  ;;  %v9109_v31 = vsel %vm2784_vm10, %v11384_v14, %v11383_v53  ;;  %v11398_v54 = vld [vmem:[#allocation61_spill] sm:$0xff] }
 0x640   :  { %2435 = vmatprep.subr.bf16.mxu1 %v1813_v62  ;;  %v2636_v19 = vsel %vm2623_vm9, %v11386_v16, %v11385_v22  ;;  %v2709_v58 = vpack.c.bf16 %v2685_v48, %v9011_v2  ;;  %v2710_v52 = vpack.c.bf16 %v9096_v3, %v9073_v45  ;;  %v2637_v5 = vsel %vm2623_vm9, %v11388_v0, %v11387_v50  ;;  %v9147_v15 = vpop.permute.xlu1 %2782  ;;  %v11401_v3 = vld [vmem:[#allocation62_spill] sm:$0xff] }
 0x641   :  { %2507 = vmatpush1.bf16.msra.mxu0 %v1810_v29  ;;  %v1814_v25 = vpack.c.bf16 %v1798_v30, %v1794_v9  ;;  %v9132_v2 = vsel %vm2784_vm10, %v11389_v44, %v11384_v14  ;;  %v9138_v23 = vsel %vm2784_vm10, %v11383_v53, %v11390_v41  ;;  %v2645_v12 = vsel %vm2623_vm9, %v11391_v47, %v11388_v0  ;;  %v11396_v29 = vld [vmem:[#allocation185_spill] sm:$0xff]  ;;  %v11399_v9 = vld [vmem:[#allocation67_spill] sm:$0xff] }
 0x642   :  { %2508 = vmatprep.subr.bf16.mxu0 %v1815_v36  ;;  %v11394_v51 = vpack.c.bf16 %v11392_v7, %v11393_v56  ;;  %v2711_v57 = vpack.c.bf16 %v2687_v49, %v2683_v26  ;;  %v2653_v33 = vsel %vm2623_vm9, %v11395_v63, %v11391_v47  ;;  %v2689_v45 = vmul.f32 %v11370_v32, %v2636_v19  ;;  %v11402_v26 = vld [vmem:[#allocation59_spill] sm:$0xff]  ;;  %v11405_v19 = vld [vmem:[#allocation66_spill] sm:$0xff]  ;;  %v11408_v47 = vld [vmem:[#allocation133_spill] sm:$0xff] }
 0x643   :  { %2436 = vmatpush1.bf16.msra.mxu1 %v1812_v28  ;;  %v2644_v59 = vsel %vm2623_vm9, %v11396_v29, %v11386_v16  ;;  %v2652_v39 = vsel %vm2623_vm9, %v11397_v10, %v11396_v29  ;;  %v2604_v55 = vpop.permute.xlu0 %2603  ;;  %v9166_v35 = vsel %vm2784_vm10, %v11390_v41, %v11389_v44  ;;  %v2693_v17 = vmul.f32 %v11370_v32, %v2637_v5  ;;  %v11404_v16 = vld [vmem:[#allocation57_spill] sm:$0xff]  ;;  %v11407_v41 = vld [vmem:[#allocation135_spill] sm:$0xff] }
 0x644   :  { %3099 = vmatprep.subr.bf16.mxu1 %v11394_v51  ;;  %v2628_v62 = vsel %vm2623_vm9, %v11385_v22, %v11397_v10  ;;  %v11400_v1 = vpack.c.bf16 %v11398_v54, %v11399_v9  ;;  %v2692_v8 = vmul.f32 %v11376_v43, %v2645_v12  ;;  %v2629_v48 = vsel %vm2623_vm9, %v11387_v50, %v11395_v63  ;;  %v9190_v53 = vpop.permute.xlu1 %2907  ;;  %v11409_v12 = vld [vmem:[#allocation137_spill] sm:$0xff]  ;;  %v11410_v7 = vld [vmem:[#allocation139_spill] sm:$0xff] }
 0x645   :  { %2509 = vmatpush1.bf16.msra.mxu0 %v1814_v25  ;;  %v2638_v4 = vsel %vm2623_vm9, %v2588_v13, %v2604_v55  ;;  %v11403_v49 = vpack.c.bf16 %v11401_v3, %v11402_v26  ;;  %v2695_v30 = vmul.f32 %v11382_v40, %v2653_v33  ;;  %v2688_v28 = vmul.f32 %v11376_v43, %v2644_v59  ;;  %v5472_v51 = vld [vmem:[%s10441_s4 + $0x24] ss:$8 sps:$4 sm:$0xff]  }
 0x646   :  { %3172 = vmatprep.subr.bf16.mxu0 %v11400_v1  ;;  %2446 = vmatmul.mubr.bf16.vlgmr.msra.gmra.mrb[0].mxu1 %v5466_v46  ;;  %v2691_v36 = vmul.f32 %v11382_v40, %v2652_v39  ;;  %v2690_v14 = vmul.f32 %v11381_v11, %v2628_v62  ;;  %v2639_v22 = vsel %vm2623_vm9, %v8864_v37, %v8906_v6  ;;  %v11412_v1 = vld [vmem:[#allocation196_spill] sm:$0xff] }
 0x647   :  { %3100 = vmatpush1.bf16.msra.mxu1 %v11403_v49  ;;  %5034 = vmatprep.mubr.msk.bf16.mxu1 %vm753_vm0, %v5469_v42  ;;  %v11406_v50 = vpack.c.bf16 %v11404_v16, %v11405_v19  ;;  %v2572_v0 = vpop.permute.xlu0 %2571  ;;  %v2713_v5 = vpack.c.bf16 %v2693_v17, %v2689_v45  ;;  %v2697_v25 = vmul.f32 %v11370_v32, %v2638_v4  ;;  %v5474_v16 = vld [vmem:[%s10441_s4 + $0x20] ss:$8 sps:$4 sm:$0xff]  }
 0x648   :  { %2519 = vmatmul.mubr.bf16.vlgmr.msra.gmra.mrb[8].mxu0 %v5466_v46  ;;  %3101 = vmatprep.subr.bf16.mxu1 %v2709_v58  ;;  %v2647_v46 = vsel %vm2623_vm9, %v8934_v18, %v8864_v37  ;;  %v2631_v58 = vsel %vm2623_vm9, %v8906_v6, %v8976_v20  ;;  %v2646_v44 = vsel %vm2623_vm9, %v2572_v0, %v2588_v13  ;;  %v9236_v45 = vpop.permute.xlu1 %2923  ;;  %v11416_v19 = vld [vmem:[#allocation197_spill] sm:$0xff] }
 0x649   :  { %3173 = vmatpush1.bf16.msra.mxu0 %v11406_v50  ;;  %5038 = vmatprep.mubr.msk.bf16.mxu0 %vm753_vm0, %v5469_v42  ;;  %v5471_v42 = vld [vmem:[%s10441_s4 + $0x10] ss:$8 sps:$4 sm:$0xff]   ;;  %v2795_v37 = vsel %vm2784_vm10, %v11408_v47, %v11407_v41  ;;  %v2803_v6 = vsel %vm2784_vm10, %v11409_v12, %v11408_v47  ;;  %v2811_v13 = vsel %vm2784_vm10, %v11410_v7, %v11409_v12  ;;  %v11423_v12 = vld [vmem:[#allocation37_spill] sm:$0xff] }
 0x64a   :  { %3174 = vmatprep.subr.bf16.mxu0 %v2711_v57  ;;  %v2694_v56 = vmul.f32 %v11381_v11, %v2629_v48  ;;  %v2712_v57 = vpack.c.bf16 %v2692_v8, %v2688_v28  ;;  %v2701_v63 = vmul.f32 %v11370_v32, %v2639_v22  ;;  %v2655_v33 = vsel %vm2623_vm9, %v8976_v20, %v8934_v18 }
 0x64b   :  { %3102 = vmatpush1.bf16.msra.mxu1 %v2708_v34  ;;  %v2715_v29 = vpack.c.bf16 %v2695_v30, %v2691_v36  ;;  %v2700_v10 = vmul.f32 %v11376_v43, %v2647_v46  ;;  %v2702_v34 = vmul.f32 %v11381_v11, %v2631_v58  ;;  %v2696_v39 = vmul.f32 %v11376_v43, %v2646_v44  ;;  %v2620_v17 = vpop.permute.xlu0 %2619  ;;  %v11411_v43 = vld [vmem:[#allocation10_spill] sm:$0xff]  ;;  %v5475_v46 = vld [vmem:[%s10441_s4 + $0x34] ss:$8 sps:$4 sm:$0xff]  }
 0x64c   :  { %3103 = vmatprep.subr.bf16.mxu1 %v2713_v5  ;;  %v2714_v59 = vpack.c.bf16 %v2694_v56, %v2690_v14  ;;  %v2630_v32 = vsel %vm2623_vm9, %v2604_v55, %v2620_v17  ;;  %v2654_v62 = vsel %vm2623_vm9, %v2620_v17, %v2572_v0  ;;  %v2717_v18 = vpack.c.bf16 %v2701_v63, %v2697_v25  ;;  %v9257_v48 = vpop.permute.xlu1 %2891  ;;  %v11413_v30 = vld [vmem:[#allocation198_spill] sm:$0xff]  ;;  %v11415_v14 = vld [vmem:[#allocation192_spill] sm:$0xff] }
 0x64d   :  { %3175 = vmatpush1.bf16.msra.mxu0 %v2710_v52  ;;  %v2703_v20 = vmul.f32 %v11382_v40, %v2655_v33  ;;  %v2698_v54 = vmul.f32 %v11381_v11, %v2630_v32  ;;  %v2699_v9 = vmul.f32 %v11382_v40, %v2654_v62  ;;  %v2842_v52 = vmul.f32 %v11411_v43, %v2795_v37  ;;  %v11414_v36 = vld [vmem:[#allocation30_spill] sm:$0xff]  ;;  %v11417_v0 = vld [vmem:[#allocation12_spill] sm:$0xff] }
 0x64e   :  { %3176 = vmatprep.subr.bf16.mxu0 %v2715_v29  ;;  %2456 = vmatmul.mubr.bf16.gmra.mrb[4].mxu1 %v5471_v42  ;;  %v9251_v8 = vmul.f32 %v11412_v1, %v2803_v6  ;;  %v2787_v55 = vsel %vm2784_vm10, %v11407_v41, %v11410_v7  ;;  %v2716_v11 = vpack.c.bf16 %v2700_v10, %v2696_v39  ;;  %v11418_v5 = vld [vmem:[#allocation184_spill] sm:$0xff] }
 0x64f   :  { %3104 = vmatpush1.bf16.msra.mxu1 %v2712_v57  ;;  %5035 = vmatprep.mubr.msk.bf16.mxu1 %vm753_vm0, %v5472_v51  ;;  %v2718_v4 = vpack.c.bf16 %v2702_v34, %v2698_v54  ;;  %v2749_v40 = vpop.permute.xlu0 %2748  ;;  %v2719_v3 = vpack.c.bf16 %v2703_v20, %v2699_v9  ;;  %v2846_v26 = vmul.f32 %v11411_v43, %v9109_v31  ;;  %v11420_v44 = vld [vmem:[#allocation68_spill] sm:$0xff]  ;;  %v11430_v20 = vld [vmem:[#allocation69_spill] sm:$0xff] }
 0x650   :  { %3105 = vmatprep.subr.bf16.mxu1 %v2717_v18  ;;  %2529 = vmatmul.mubr.bf16.gmra.mrb[12].mxu0 %v5471_v42  ;;  %v2845_v49 = vmul.f32 %v11412_v1, %v9132_v2  ;;  %v2844_v28 = vmul.f32 %v11413_v30, %v2811_v13  ;;  %v2797_v22 = vsel %vm2784_vm10, %v11415_v14, %v11414_v36  ;;  %v11421_v42 = vld [vmem:[#allocation65_spill] sm:$0xff]  ;;  %v9292_v47 = vpop.permute.xlu1 %2939  ;;  %v11424_v13 = vld [vmem:[#allocation44_spill] sm:$0xff]  ;;  %v11429_v18 = vld [vmem:[#allocation63_spill] sm:$0xff] }
 0x651   :  { %3177 = vmatpush1.bf16.msra.mxu0 %v2714_v59  ;;  %5039 = vmatprep.mubr.msk.bf16.mxu0 %vm753_vm0, %v5472_v51  ;;  %v2847_v50 = vmul.f32 %v11416_v19, %v9138_v23  ;;  %v2848_v31 = vmul.f32 %v11413_v30, %v9166_v35  ;;  %v2798_v2 = vsel %vm2784_vm10, %v11418_v5, %v11417_v0  ;;  %v11419_v23 = vld [vmem:[#allocation191_spill] sm:$0xff]  ;;  %v11425_v51 = vld [vmem:[#allocation52_spill] sm:$0xff]  ;;  %v11426_v59 = vld [vmem:[#allocation78_spill] sm:$0xff] }
 0x652   :  { %3178 = vmatprep.subr.bf16.mxu0 %v2719_v3  ;;  %v2869_v58 = vpack.c.bf16 %v2845_v49, %v9251_v8  ;;  %v2843_v25 = vmul.f32 %v11416_v19, %v2787_v55  ;;  %v2806_v35 = vsel %vm2784_vm10, %v11419_v23, %v11418_v5  ;;  %v11422_v41 = vpack.c.bf16 %v11420_v44, %v11421_v42  ;;  %v11427_v10 = vld [vmem:[#allocation72_spill] sm:$0xff]  ;;  %v11435_v5 = vld [vmem:[#allocation138_spill] sm:$0xff] }
 0x653   :  { %3106 = vmatpush1.bf16.msra.mxu1 %v2716_v11  ;;  %v2870_v37 = vpack.c.bf16 %v2846_v26, %v2842_v52  ;;  %v2814_v6 = vsel %vm2784_vm10, %v11423_v12, %v11419_v23  ;;  %v2850_v7 = vmul.f32 %v11411_v43, %v2797_v22  ;;  %v2805_v56 = vsel %vm2784_vm10, %v11424_v13, %v11415_v14  ;;  %v2765_v63 = vpop.permute.xlu0 %2764  ;;  %v11432_v3 = vld [vmem:[#allocation76_spill] sm:$0xff]  ;;  %v11433_v26 = vld [vmem:[#allocation74_spill] sm:$0xff]  ;;  %v11437_v23 = vld [vmem:[#allocation143_spill] sm:$0xff] }
 0x654   :  { %3107 = vmatprep.subr.bf16.mxu1 %v11422_v41  ;;  %v2813_v57 = vsel %vm2784_vm10, %v11425_v51, %v11424_v13  ;;  %v2854_v33 = vmul.f32 %v11411_v43, %v2798_v2  ;;  %v2789_v29 = vsel %vm2784_vm10, %v11414_v36, %v11425_v51  ;;  %v11428_v34 = vpack.c.bf16 %v11426_v59, %v11427_v10  ;;  %v9329_v55 = vpop.permute.xlu1 %2911  ;;  %v11436_v2 = vld [vmem:[#allocation136_spill] sm:$0xff]  ;;  %v11442_v10 = vld [vmem:[#allocation145_spill] sm:$0xff] }
 0x655   :  { %3179 = vmatpush1.bf16.msra.mxu0 %v2718_v4  ;;  %v2872_v39 = vpack.c.bf16 %v2848_v31, %v2844_v28  ;;  %v2853_v17 = vmul.f32 %v11412_v1, %v2806_v35  ;;  %v2790_v32 = vsel %vm2784_vm10, %v11417_v0, %v11423_v12  ;;  %v2799_v62 = vsel %vm2784_vm10, %v2749_v40, %v2765_v63  ;;  %v5477_v0 = vld [vmem:[%s10441_s4 + $0x30] ss:$8 sps:$4 sm:$0xff]   ;;  %v11438_v35 = vld [vmem:[#allocation141_spill] sm:$0xff] }
 0x656   :  { %3180 = vmatprep.subr.bf16.mxu0 %v11428_v34  ;;  %2466 = vmatmul.mubr.bf16.gmra.mrb[8].mxu1 %v5474_v16  ;;  %v11431_v54 = vpack.c.bf16 %v11429_v18, %v11430_v20  ;;  %v2856_v9 = vmul.f32 %v11413_v30, %v2814_v6  ;;  %v2849_v52 = vmul.f32 %v11412_v1, %v2805_v56  ;;  %v11441_v59 = vld [vmem:[#allocation144_spill] sm:$0xff] }
 0x657   :  { %5036 = vmatprep.mubr.msk.bf16.mxu1 %vm753_vm0, %v5475_v46  ;;  %v2852_v8 = vmul.f32 %v11413_v30, %v2813_v57  ;;  %v2851_v11 = vmul.f32 %v11416_v19, %v2789_v29  ;;  %v2800_v4 = vsel %vm2784_vm10, %v9033_v60, %v9070_v27  ;;  %v11434_v49 = vpack.c.bf16 %v11432_v3, %v11433_v26  ;;  %v2733_v28 = vpop.permute.xlu0 %2732  ;;  %v11446_v3 = vld [vmem:[#allocation77_spill] sm:$0xff] }
 0x658   :  { %3108 = vmatpush1.bf16.msra.mxu1 %v11431_v54  ;;  %2539 = vmatmul.mubr.bf16.gmra.mrb[16].mxu0 %v5474_v16  ;;  %v2874_v36 = vpack.c.bf16 %v2854_v33, %v2850_v7  ;;  %v2808_v14 = vsel %vm2784_vm10, %v9099_v61, %v9033_v60  ;;  %v2792_v22 = vsel %vm2784_vm10, %v9070_v27, %v9147_v15  ;;  %v9374_v7 = vpop.permute.xlu1 %2927  ;;  %v11440_v33 = vld [vmem:[#allocation142_spill] sm:$0xff]  ;;  %v11445_v54 = vld [vmem:[#allocation27_spill] sm:$0xff] }
 0x659   :  { %3109 = vmatprep.subr.bf16.mxu1 %v2870_v37  ;;  %3181 = vmatpush1.bf16.msra.mxu0 %v11434_v49  ;;  %v2858_v16 = vmul.f32 %v11411_v43, %v2799_v62  ;;  %v2807_v31 = vsel %vm2784_vm10, %v2733_v28, %v2749_v40  ;;  %v2957_v60 = vsel %vm2945_vm11, %v11436_v2, %v11435_v5  ;;  %v5480_v40 = vld [vmem:[%s10441_s4 + $0x84] ss:$8 sps:$4 sm:$0xff]   ;;  %v11444_v62 = vld [vmem:[#allocation11_spill] sm:$0xff] }
 0x65a   :  { %5040 = vmatprep.mubr.msk.bf16.mxu0 %vm753_vm0, %v5475_v46  ;;  %3182 = vmatprep.subr.bf16.mxu0 %v2872_v39  ;;  %v2871_v46 = vpack.c.bf16 %v2847_v50, %v2843_v25  ;;  %v2956_v27 = vsel %vm2945_vm11, %v11438_v35, %v11437_v23  ;;  %v2855_v44 = vmul.f32 %v11416_v19, %v2790_v32  ;;  %v11443_v32 = vld [vmem:[#allocation18_spill] sm:$0xff] }
 0x65b   :  { %v2873_v42 = vpack.c.bf16 %v2853_v17, %v2849_v52  ;;  %v2862_v41 = vmul.f32 %v11411_v43, %v2800_v4  ;;  %v2816_v50 = vsel %vm2784_vm10, %v9147_v15, %v9099_v61  ;;  %v2876_v25 = vpack.c.bf16 %v2856_v9, %v2852_v8  ;;  %v2781_v13 = vpop.permute.xlu0 %2780 }
 0x65c   :  { %3110 = vmatpush1.bf16.msra.mxu1 %v2869_v58  ;;  %v2875_v37 = vpack.c.bf16 %v2855_v44, %v2851_v11  ;;  %v2861_v12 = vmul.f32 %v11412_v1, %v2808_v14  ;;  %v2863_v6 = vmul.f32 %v11416_v19, %v2792_v22  ;;  %v2857_v58 = vmul.f32 %v11412_v1, %v2807_v31  ;;  %v11439_v1 = vld [vmem:[#allocation140_spill] sm:$0xff]  ;;  %v2896_v4 = vpop.permute.xlu1 %2895  ;;  %v11448_v14 = vld [vmem:[#allocation26_spill] sm:$0xff]  ;;  %v11449_v31 = vld [vmem:[#allocation71_spill] sm:$0xff] }
 0x65d   :  { %3111 = vmatprep.subr.bf16.mxu1 %v2874_v36  ;;  %3183 = vmatpush1.bf16.msra.mxu0 %v2871_v46  ;;  %v2791_v43 = vsel %vm2784_vm10, %v2765_v63, %v2781_v13  ;;  %v2815_v56 = vsel %vm2784_vm10, %v2781_v13, %v2733_v28  ;;  %v2878_v61 = vpack.c.bf16 %v2862_v41, %v2858_v16  ;;  %v11447_v28 = vld [vmem:[#allocation17_spill] sm:$0xff]  ;;  %v11457_v13 = vld [vmem:[#allocation80_spill] sm:$0xff] }
 0x65e   :  { %3184 = vmatprep.subr.bf16.mxu0 %v2876_v25  ;;  %2476 = vmatmul.mubr.bf16.gmra.mrb[12].mxu1 %v5477_v0  ;;  %v2864_v15 = vmul.f32 %v11413_v30, %v2816_v50  ;;  %v2859_v51 = vmul.f32 %v11416_v19, %v2791_v43  ;;  %v2860_v57 = vmul.f32 %v11413_v30, %v2815_v56  ;;  %v11454_v25 = vld [vmem:[#allocation73_spill] sm:$0xff] }
 0x65f   :  { %5057 = vmatprep.mubr.msk.bf16.mxu1 %vm753_vm0, %v5480_v40  ;;  %v2965_v63 = vsel %vm2945_vm11, %v11439_v1, %v11436_v2  ;;  %v2949_v29 = vsel %vm2945_vm11, %v11435_v5, %v11440_v33  ;;  %v2972_v19 = vsel %vm2945_vm11, %v11442_v10, %v11441_v59  ;;  %v2877_v30 = vpack.c.bf16 %v2861_v12, %v2857_v58  ;;  %v2910_v39 = vpop.permute.xlu0 %2909  ;;  %v11456_v58 = vld [vmem:[#allocation81_spill] sm:$0xff] }
 0x660   :  { %3112 = vmatpush1.bf16.msra.mxu1 %v2873_v42  ;;  %2549 = vmatmul.mubr.bf16.gmra.mrb[20].mxu0 %v5477_v0  ;;  %v2879_v34 = vpack.c.bf16 %v2863_v6, %v2859_v51  ;;  %v2880_v17 = vpack.c.bf16 %v2864_v15, %v2860_v57  ;;  %v3028_v18 = vpack.c.bf16 %v11444_v62, %v11443_v32  ;;  %v11450_v0 = vld [vmem:[#allocation75_spill] sm:$0xff] }
 0x661   :  { %3113 = vmatprep.subr.bf16.mxu1 %v2878_v61  ;;  %3185 = vmatpush1.bf16.msra.mxu0 %v2875_v37  ;;  %v2973_v20 = vsel %vm2945_vm11, %v11440_v33, %v11439_v1  ;;  %v3003_v9 = vmul.f32 %v11445_v54, %v2956_v27  ;;  %v2964_v52 = vsel %vm2945_vm11, %v11441_v59, %v11438_v35  ;;  %v11453_v35 = vld [vmem:[#allocation64_spill] sm:$0xff]  ;;  %v11455_v37 = vld [vmem:[#allocation82_spill] sm:$0xff]  ;;  %v2944_v1 = vpop.permute.xlu1 %2943 }
 0x662   :  { %5061 = vmatprep.mubr.msk.bf16.mxu0 %vm753_vm0, %v5480_v40  ;;  %v3005_v8 = vmul.f32 %v11234_v21, %v2972_v19  ;;  %v2959_v11 = vsel %vm2945_vm11, %v9190_v53, %v9236_v45  ;;  %3186 = vmatprep.subr.bf16.mxu0 %v2880_v17  ;;  %v3029_v26 = vpack.c.bf16 %v11446_v3, %v8942_v38  ;;  %v11452_v38 = vld [vmem:[#allocation70_spill] sm:$0xff] }
 0x663   :  { %v3007_v49 = vmul.f32 %v11445_v54, %v2957_v60  ;;  %v3006_v36 = vmul.f32 %v11447_v28, %v2965_v63  ;;  %v3008_v22 = vmul.f32 %v11448_v14, %v2949_v29  ;;  %v2948_v16 = vsel %vm2945_vm11, %v11437_v23, %v11442_v10  ;;  %v2926_v23 = vpop.permute.xlu0 %2925 }
 0x664   :  { %3114 = vmatpush1.bf16.msra.mxu1 %v2877_v30  ;;  %v11451_v5 = vpack.c.bf16 %v11449_v31, %v11450_v0  ;;  %v3009_v2 = vmul.f32 %v11234_v21, %v2973_v20  ;;  %v3002_v46 = vmul.f32 %v11447_v28, %v2964_v52  ;;  %v2958_v60 = vsel %vm2945_vm11, %v11453_v35, %v11452_v38  ;;  %v5486_v31 = vld [vmem:[%s10441_s4 + $0xa0] ss:$8 sps:$4 sm:$0xff]   ;;  %v5487_v0 = vld [vmem:[%s10441_s4 + $0xb4] ss:$8 sps:$4 sm:$0xff]  }
 0x665   :  { %v2975_v27 = vsel %vm2945_vm11, %v9292_v47, %v9257_v48  ;;  %3187 = vmatpush1.bf16.msra.mxu0 %v2879_v34  ;;  %v3015_v44 = vmul.f32 %v11445_v54, %v2959_v11  ;;  %v2967_v40 = vsel %vm2945_vm11, %v9257_v48, %v9190_v53  ;;  %v2951_v42 = vsel %vm2945_vm11, %v9236_v45, %v9292_v47 }
 0x666   :  { %3115 = vmatprep.subr.bf16.mxu1 %v11451_v5  ;;  %3188 = vmatprep.subr.bf16.mxu0 %v3029_v26  ;;  %v3031_v41 = vpack.c.bf16 %v3007_v49, %v3003_v9  ;;  %v3004_v50 = vmul.f32 %v11448_v14, %v2948_v16  ;;  %v2974_v12 = vsel %vm2945_vm11, %v11455_v37, %v11454_v25  ;;  %v5481_v16 = vld [vmem:[%s10441_s4 + $0x94] ss:$8 sps:$4 sm:$0xff]   ;;  %v5489_v5 = vld [vmem:[%s10441_s4 + $0xb0] ss:$8 sps:$4 sm:$0xff]  }
 0x667   :  { %v2960_v6 = vsel %vm2945_vm11, %v2910_v39, %v2926_v23  ;;  %v11458_v53 = vpack.c.bf16 %v11456_v58, %v11457_v13  ;;  %v3033_v48 = vpack.c.bf16 %v3009_v2, %v3005_v8  ;;  %v3011_v43 = vmul.f32 %v11445_v54, %v2958_v60  ;;  %v2894_v63 = vpop.permute.xlu0 %2893  ;;  %v5544_v2 = vld [vmem:[%s10448_s11] sm:$0xff] }
 0x668   :  { %v2966_v45 = vsel %vm2945_vm11, %v11454_v25, %v11453_v35  ;;  %v2950_v47 = vsel %vm2945_vm11, %v11452_v38, %v11455_v37  ;;  %v3017_v56 = vmul.f32 %v11234_v21, %v2975_v27  ;;  %v3030_v61 = vpack.c.bf16 %v3006_v36, %v3002_v46 }
 0x669   :  { %3116 = vmatpush1.bf16.msra.mxu1 %v11458_v53  ;;  %v3014_v15 = vmul.f32 %v11447_v28, %v2967_v40  ;;  %v3016_v51 = vmul.f32 %v11448_v14, %v2951_v42  ;;  %v2961_v57 = vsel %vm2945_vm11, %v9329_v55, %v9374_v7  ;;  %3189 = vmatpush1.bf16.msra.mxu0 %v3028_v18  ;;  %v11459_v46 = vmov 0  }
 0x66a   :  { %3117 = vmatprep.subr.bf16.mxu1 %v3031_v41  ;;  %v3013_v33 = vmul.f32 %v11234_v21, %v2974_v12  ;;  %v3019_v29 = vmul.f32 %v11445_v54, %v2960_v6  ;;  %v2968_v59 = vsel %vm2945_vm11, %v2894_v63, %v2910_v39  ;;  %3190 = vmatprep.subr.bf16.mxu0 %v3033_v48 }
 0x66b   :  { %v3035_v10 = vpack.c.bf16 %v3015_v44, %v3011_v43  ;;  %v3032_v19 = vpack.c.bf16 %v3008_v22, %v3004_v50  ;;  %v3010_v30 = vmul.f32 %v11447_v28, %v2966_v45  ;;  %v3012_v34 = vmul.f32 %v11448_v14, %v2950_v47  ;;  %v2942_v8 = vpop.permute.xlu0 %2941 }
 0x66c   :  { %v2969_v17 = vsel %vm2945_vm11, %v2896_v4, %v9329_v55  ;;  %v3023_v32 = vmul.f32 %v11445_v54, %v2961_v57  ;;  %v2953_v62 = vsel %vm2945_vm11, %v9374_v7, %v2944_v1  ;;  %v2977_v39 = vsel %vm2945_vm11, %v2944_v1, %v2896_v4 }
 0x66d   :  { %3118 = vmatpush1.bf16.msra.mxu1 %v3030_v61  ;;  %v3037_v18 = vpack.c.bf16 %v3017_v56, %v3013_v33  ;;  %v3034_v20 = vpack.c.bf16 %v3014_v15, %v3010_v30  ;;  %v3036_v9 = vpack.c.bf16 %v3016_v51, %v3012_v34  ;;  %v3018_v52 = vmul.f32 %v11447_v28, %v2968_v59 }
 0x66e   :  { %3119 = vmatprep.subr.bf16.mxu1 %v3035_v10  ;;  %3191 = vmatpush1.bf16.msra.mxu0 %v3032_v19  ;;  %v3022_v55 = vmul.f32 %v11447_v28, %v2969_v17  ;;  %v2952_v54 = vsel %vm2945_vm11, %v2926_v23, %v2942_v8  ;;  %v2976_v11 = vsel %vm2945_vm11, %v2942_v8, %v2894_v63 }
 0x66f   :  { %3192 = vmatprep.subr.bf16.mxu0 %v3037_v18  ;;  %v3039_v7 = vpack.c.bf16 %v3023_v32, %v3019_v29  ;;  %v3024_v4 = vmul.f32 %v11448_v14, %v2953_v62  ;;  %v3025_v3 = vmul.f32 %v11234_v21, %v2977_v39  ;;  %v3020_v26 = vmul.f32 %v11448_v14, %v2952_v54  ;;  %v5484_v14 = vld [vmem:[%s10441_s4 + $0xa4] ss:$8 sps:$4 sm:$0xff]  }
 0x670   :  { %v3021_v49 = vmul.f32 %v11234_v21, %v2976_v11  ;;  %v3038_v36 = vpack.c.bf16 %v3022_v55, %v3018_v52  ;;  %v5483_v21 = vld [vmem:[%s10441_s4 + $0x90] ss:$8 sps:$4 sm:$0xff]  }
 0x671   :  { %3120 = vmatpush1.bf16.msra.mxu1 %v3034_v20  ;;  %v3040_v28 = vpack.c.bf16 %v3024_v4, %v3020_v26 }
 0x672   :  { %3121 = vmatprep.subr.bf16.mxu1 %v3039_v7  ;;  %3193 = vmatpush1.bf16.msra.mxu0 %v3036_v9  ;;  %v3041_v22 = vpack.c.bf16 %v3025_v3, %v3021_v49 }
 0x674   :  { %3194 = vmatprep.subr.bf16.mxu0 %v3041_v22 }
 0x675   :  { %3122 = vmatpush1.bf16.msra.mxu1 %v3038_v36 }
 0x676   :  { %3195 = vmatpush1.bf16.msra.mxu0 %v3040_v28 }
 0x678   :  { %3132 = vmatmul.mubr.bf16.vlgmr.msra.gmra.mrb[0].mxu1 %v5478_v24 }
 0x679   :  { %5058 = vmatprep.mubr.msk.bf16.mxu1 %vm753_vm0, %v5481_v16  ;;  %3205 = vmatmul.mubr.bf16.vlgmr.msra.gmra.mrb[8].mxu0 %v5478_v24 }
 0x67a   :  { %5062 = vmatprep.mubr.msk.bf16.mxu0 %vm753_vm0, %v5481_v16 }
 0x680   :  { %3142 = vmatmul.mubr.bf16.gmra.mrb[4].mxu1 %v5483_v21 }
 0x681   :  { %5059 = vmatprep.mubr.msk.bf16.mxu1 %vm753_vm0, %v5484_v14  ;;  %3215 = vmatmul.mubr.bf16.gmra.mrb[12].mxu0 %v5483_v21 }
 0x682   :  { %5063 = vmatprep.mubr.msk.bf16.mxu0 %vm753_vm0, %v5484_v14 }
 0x688   :  { %3152 = vmatmul.mubr.bf16.gmra.mrb[8].mxu1 %v5486_v31 }
 0x689   :  { %5060 = vmatprep.mubr.msk.bf16.mxu1 %vm753_vm0, %v5487_v0  ;;  %3225 = vmatmul.mubr.bf16.gmra.mrb[16].mxu0 %v5486_v31 }
 0x68a   :  { %5064 = vmatprep.mubr.msk.bf16.mxu0 %vm753_vm0, %v5487_v0 }
 0x690   :  { %3162 = vmatmul.mubr.bf16.gmra.mrb[12].mxu1 %v5489_v5 }
 0x691   :  { %5185 = vmatprep.mubr.msk.f32.mxu1 %vm753_vm0, %v5544_v2  ;;  %3235 = vmatmul.mubr.bf16.gmra.mrb[20].mxu0 %v5489_v5 }
 0x692   :  { %4086 = vmatprep.mubr.bf16.mxu0 %v11459_v46 }
 0x74b   :  { %v9527_v38 = vpop.f32.mrb[0].mxu1 }
 0x74c   :  { %v3293_v35 = vmul.f32 %v9527_v38, %v9527_v38  ;;  %v9531_v60 = vpop.f32.mrb[1].mxu1  ;;  %v9537_v44 = vpop.f32.mrb[8].mxu0 }
 0x74d   :  { %v3294_v27 = vmul.f32 %v9531_v60, %v9531_v60  ;;  %v3325_v23 = vadd.f32 %v9531_v60, %v9527_v38  ;;  %v9539_v40 = vpop.f32.mrb[2].mxu1  ;;  %v3295_v42 = vmul.f32 %v9537_v44, %v9537_v44  ;;  %v9545_v50 = vpop.f32.mrb[9].mxu0 }
 0x74e   :  { %v3297_v41 = vmul.f32 %v9539_v40, %v9539_v40  ;;  %v9547_v25 = vpop.f32.mrb[3].mxu1  ;;  %v3296_v37 = vmul.f32 %v9545_v50, %v9545_v50  ;;  %v3349_v12 = vadd.f32 %v9545_v50, %v9537_v44  ;;  %v9557_v13 = vpop.f32.mrb[10].mxu0 }
 0x74f   :  { %v3298_v6 = vmul.f32 %v9547_v25, %v9547_v25  ;;  %v3328_v58 = vadd.f32 %v9547_v25, %v9539_v40  ;;  %3326 = vadd.xlane.f32.xlu0 %v3325_v23  ;;  %v3299_v53 = vmul.f32 %v9557_v13, %v9557_v13  ;;  %v9561_v48 = vpop.f32.mrb[11].mxu0  ;;  %v3373_v43 = vadd.f32 %v3294_v27, %v3293_v35 }
 0x750   :  { %v3300_v45 = vmul.f32 %v9561_v48, %v9561_v48  ;;  %v3352_v47 = vadd.f32 %v9561_v48, %v9557_v13  ;;  %v3397_v56 = vadd.f32 %v3296_v37, %v3295_v42 }
 0x751   :  { %3329 = vadd.xlane.f32.xlu1 %v3328_v58  ;;  %v3376_v61 = vadd.f32 %v3298_v6, %v3297_v41 }
 0x752   :  { %v3400_v51 = vadd.f32 %v3300_v45, %v3299_v53 }
 0x753   :  { %v9567_v15 = vpop.f32.mrb[4].mxu1  ;;  %3350 = vadd.xlane.f32.xlu0 %v3349_v12 }
 0x754   :  { %v3301_v57 = vmul.f32 %v9567_v15, %v9567_v15  ;;  %v9571_v1 = vpop.f32.mrb[5].mxu1  ;;  %v9577_v29 = vpop.f32.mrb[12].mxu0 }
 0x755   :  { %v3302_v63 = vmul.f32 %v9571_v1, %v9571_v1  ;;  %v3331_v33 = vadd.f32 %v9571_v1, %v9567_v15  ;;  %3374 = vadd.xlane.f32.xlu1 %v3373_v43  ;;  %v9579_v59 = vpop.f32.mrb[6].mxu1  ;;  %v3303_v10 = vmul.f32 %v9577_v29, %v9577_v29  ;;  %v9585_v30 = vpop.f32.mrb[13].mxu0 }
 0x756   :  { %v3305_v19 = vmul.f32 %v9579_v59, %v9579_v59  ;;  %v9587_v34 = vpop.f32.mrb[7].mxu1  ;;  %v3304_v17 = vmul.f32 %v9585_v30, %v9585_v30  ;;  %v3355_v32 = vadd.f32 %v9585_v30, %v9577_v29  ;;  %v9597_v18 = vpop.f32.mrb[14].mxu0 }
 0x757   :  { %v3306_v62 = vmul.f32 %v9587_v34, %v9587_v34  ;;  %v3334_v39 = vadd.f32 %v9587_v34, %v9579_v59  ;;  %3353 = vadd.xlane.f32.xlu0 %v3352_v47  ;;  %v3307_v20 = vmul.f32 %v9597_v18, %v9597_v18  ;;  %v9601_v9 = vpop.f32.mrb[15].mxu0  ;;  %v3379_v52 = vadd.f32 %v3302_v63, %v3301_v57 }
 0x758   :  { %v3308_v8 = vmul.f32 %v9601_v9, %v9601_v9  ;;  %v3358_v55 = vadd.f32 %v9601_v9, %v9597_v18  ;;  %v3403_v54 = vadd.f32 %v3304_v17, %v3303_v10 }
 0x759   :  { %3398 = vadd.xlane.f32.xlu1 %v3397_v56  ;;  %v3382_v11 = vadd.f32 %v3306_v62, %v3305_v19 }
 0x75a   :  { %v3406_v4 = vadd.f32 %v3308_v8, %v3307_v20 }
 0x75b   :  { %v9607_v7 = vpop.f32.mrb[8].mxu1  ;;  %3377 = vadd.xlane.f32.xlu0 %v3376_v61 }
 0x75c   :  { %v3309_v3 = vmul.f32 %v9607_v7, %v9607_v7  ;;  %v9611_v26 = vpop.f32.mrb[9].mxu1  ;;  %v9617_v28 = vpop.f32.mrb[16].mxu0 }
 0x75d   :  { %v3310_v49 = vmul.f32 %v9611_v26, %v9611_v26  ;;  %v3337_v36 = vadd.f32 %v9611_v26, %v9607_v7  ;;  %v9619_v22 = vpop.f32.mrb[10].mxu1  ;;  %3332 = vadd.xlane.f32.xlu1 %v3331_v33  ;;  %v3311_v24 = vmul.f32 %v9617_v28, %v9617_v28  ;;  %v9625_v21 = vpop.f32.mrb[17].mxu0 }
 0x75e   :  { %v3313_v16 = vmul.f32 %v9619_v22, %v9619_v22  ;;  %v9627_v14 = vpop.f32.mrb[11].mxu1  ;;  %v3312_v31 = vmul.f32 %v9625_v21, %v9625_v21  ;;  %v3361_v0 = vadd.f32 %v9625_v21, %v9617_v28  ;;  %v9637_v35 = vpop.f32.mrb[18].mxu0 }
 0x75f   :  { %v3314_v5 = vmul.f32 %v9627_v14, %v9627_v14  ;;  %v3340_v2 = vadd.f32 %v9627_v14, %v9619_v22  ;;  %3401 = vadd.xlane.f32.xlu0 %v3400_v51  ;;  %v3315_v27 = vmul.f32 %v9637_v35, %v9637_v35  ;;  %v9641_v23 = vpop.f32.mrb[19].mxu0  ;;  %v3385_v42 = vadd.f32 %v3310_v49, %v3309_v3 }
 0x760   :  { %v3316_v41 = vmul.f32 %v9641_v23, %v9641_v23  ;;  %v3364_v37 = vadd.f32 %v9641_v23, %v9637_v35  ;;  %v3409_v12 = vadd.f32 %v3312_v31, %v3311_v24 }
 0x761   :  { %3356 = vadd.xlane.f32.xlu1 %v3355_v32  ;;  %v3388_v6 = vadd.f32 %v3314_v5, %v3313_v16 }
 0x762   :  { %v3412_v53 = vadd.f32 %v3316_v41, %v3315_v27 }
 0x763   :  { %v9647_v58 = vpop.f32.mrb[12].mxu1  ;;  %3335 = vadd.xlane.f32.xlu0 %v3334_v39 }
 0x764   :  { %v3317_v43 = vmul.f32 %v9647_v58, %v9647_v58  ;;  %v9651_v45 = vpop.f32.mrb[13].mxu1  ;;  %v9657_v61 = vpop.f32.mrb[20].mxu0 }
 0x765   :  { %v3318_v47 = vmul.f32 %v9651_v45, %v9651_v45  ;;  %v3343_v56 = vadd.f32 %v9651_v45, %v9647_v58  ;;  %11460 = vst [vmem:[#allocation20_spill] sm:$0xff] %v9657_v61  ;;  %v9659_v51 = vpop.f32.mrb[14].mxu1  ;;  %3380 = vadd.xlane.f32.xlu1 %v3379_v52  ;;  %v3319_v57 = vmul.f32 %v9657_v61, %v9657_v61  ;;  %v9665_v33 = vpop.f32.mrb[21].mxu0 }
 0x766   :  { %v3321_v63 = vmul.f32 %v9659_v51, %v9659_v51  ;;  %11461 = vst [vmem:[#allocation79_spill] sm:$0xff] %v9665_v33  ;;  %v9667_v10 = vpop.f32.mrb[15].mxu1  ;;  %v3320_v19 = vmul.f32 %v9665_v33, %v9665_v33  ;;  %v3367_v17 = vadd.f32 %v9665_v33, %v9657_v61  ;;  %v9677_v39 = vpop.f32.mrb[22].mxu0 }
 0x767   :  { %v3322_v32 = vmul.f32 %v9667_v10, %v9667_v10  ;;  %v3346_v62 = vadd.f32 %v9667_v10, %v9659_v51  ;;  %3359 = vadd.xlane.f32.xlu0 %v3358_v55  ;;  %v3323_v20 = vmul.f32 %v9677_v39, %v9677_v39  ;;  %v9681_v52 = vpop.f32.mrb[23].mxu0  ;;  %v3391_v8 = vadd.f32 %v3318_v47, %v3317_v43  ;;  %v3278_v55 = vld [vmem:[%s10442_s5 + $0x8] sm:$0xff] }
 0x768   :  { %v3324_v3 = vmul.f32 %v9681_v52, %v9681_v52  ;;  %v3370_v49 = vadd.f32 %v9681_v52, %v9677_v39  ;;  %v3415_v24 = vadd.f32 %v3320_v19, %v3319_v57 }
 0x769   :  { %3404 = vadd.xlane.f32.xlu1 %v3403_v54  ;;  %v3394_v16 = vadd.f32 %v3322_v32, %v3321_v63 }
 0x76a   :  { %v3418_v31 = vadd.f32 %v3324_v3, %v3323_v20 }
 0x76b   :  { %3383 = vadd.xlane.f32.xlu0 %v3382_v11 }
 0x76d   :  { %3338 = vadd.xlane.f32.xlu1 %v3337_v36 }
 0x76f   :  { %3407 = vadd.xlane.f32.xlu0 %v3406_v4 }
 0x771   :  { %3362 = vadd.xlane.f32.xlu1 %v3361_v0 }
 0x773   :  { %3341 = vadd.xlane.f32.xlu0 %v3340_v2 }
 0x775   :  { %3386 = vadd.xlane.f32.xlu1 %v3385_v42 }
 0x777   :  { %3365 = vadd.xlane.f32.xlu0 %v3364_v37 }
 0x779   :  { %3410 = vadd.xlane.f32.xlu1 %v3409_v12 }
 0x77b   :  { %3389 = vadd.xlane.f32.xlu0 %v3388_v6 }
 0x77d   :  { %3344 = vadd.xlane.f32.xlu1 %v3343_v56 }
 0x77f   :  { %3413 = vadd.xlane.f32.xlu0 %v3412_v53 }
 0x781   :  { %3368 = vadd.xlane.f32.xlu1 %v3367_v17 }
 0x783   :  { %3347 = vadd.xlane.f32.xlu0 %v3346_v62 }
 0x785   :  { %3392 = vadd.xlane.f32.xlu1 %v3391_v8 }
 0x787   :  { %3371 = vadd.xlane.f32.xlu0 %v3370_v49 }
 0x789   :  { %3416 = vadd.xlane.f32.xlu1 %v3415_v24 }
 0x78b   :  { %3395 = vadd.xlane.f32.xlu0 %v3394_v16 }
 0x78f   :  { %3419 = vadd.xlane.f32.xlu0 %v3418_v31 }
 0x79a   :  { %3637 = vperm.xlu1 %5406, %v3278_v55  }
 0x7dc   :  { %v3327_v54 = vpop.xlane.xlu0 %3326 }
 0x7de   :  { %v3330_v11 = vpop.xlane.xlu1 %3329 }
 0x7e0   :  { %v3351_v4 = vpop.xlane.xlu0 %3350 }
 0x7e1   :  { %v3421_v27 = vsel %vm726_vm1, %v3327_v54, %v3351_v4 }
 0x7e2   :  { %v3375_v36 = vpop.xlane.xlu1 %3374 }
 0x7e3   :  { %v3429_v37 = vsel %vm735_vm2, %v3421_v27, %v3375_v36 }
 0x7e4   :  { %v3354_v0 = vpop.xlane.xlu0 %3353 }
 0x7e5   :  { %v3422_v41 = vsel %vm726_vm1, %v3330_v11, %v3354_v0 }
 0x7e6   :  { %v3399_v5 = vpop.xlane.xlu1 %3398 }
 0x7e7   :  { %v3437_v53 = vsel %vm744_vm3, %v3429_v37, %v3399_v5 }
 0x7e8   :  { %v3378_v2 = vpop.xlane.xlu0 %3377 }
 0x7e9   :  { %v3430_v12 = vsel %vm735_vm2, %v3422_v41, %v3378_v2 }
 0x7ea   :  { %v3333_v42 = vpop.xlane.xlu1 %3332 }
 0x7ec   :  { %v3402_v6 = vpop.xlane.xlu0 %3401 }
 0x7ed   :  { %v3438_v43 = vsel %vm744_vm3, %v3430_v12, %v3402_v6 }
 0x7ee   :  { %v5241_v47 = vpack.c.bf16 %v3438_v43, %v3437_v53  ;;  %v3357_v56 = vpop.xlane.xlu1 %3356 }
 0x7ef   :  { %v3423_v20 = vsel %vm726_vm1, %v3333_v42, %v3357_v56 }
 0x7f0   :  { %v3336_v57 = vpop.xlane.xlu0 %3335  ;;  %5242 = vmatprep.subr.bf16.mxu1 %v5241_v47 }
 0x7f1   :  { %5244 = vmatpush3.bf16.msra.mxu1 %v5241_v47 }
 0x7f2   :  { %v3381_v63 = vpop.xlane.xlu1 %3380 }
 0x7f3   :  { %v3431_v3 = vsel %vm735_vm2, %v3423_v20, %v3381_v63 }
 0x7f4   :  { %v3360_v19 = vpop.xlane.xlu0 %3359 }
 0x7f5   :  { %v3424_v8 = vsel %vm726_vm1, %v3336_v57, %v3360_v19 }
 0x7f6   :  { %v3405_v17 = vpop.xlane.xlu1 %3404 }
 0x7f7   :  { %v3439_v16 = vsel %vm744_vm3, %v3431_v3, %v3405_v17 }
 0x7f8   :  { %v3384_v32 = vpop.xlane.xlu0 %3383 }
 0x7f9   :  { %v3432_v49 = vsel %vm735_vm2, %v3424_v8, %v3384_v32 }
 0x7fa   :  { %v3339_v62 = vpop.xlane.xlu1 %3338 }
 0x7fc   :  { %v3408_v24 = vpop.xlane.xlu0 %3407 }
 0x7fd   :  { %v3440_v31 = vsel %vm744_vm3, %v3432_v49, %v3408_v24 }
 0x7fe   :  { %v5245_v55 = vpack.c.bf16 %v3440_v31, %v3439_v16  ;;  %v3363_v54 = vpop.xlane.xlu1 %3362  ;;  %v5545_v31 = vld [vmem:[%s10448_s11 + $0x8] sm:$0xff] }
 0x7ff   :  { %v3425_v27 = vsel %vm726_vm1, %v3339_v62, %v3363_v54  ;;  %v5547_v54 = vld [vmem:[%s10448_s11 + $0x18] sm:$0xff] }
 0x800   :  { %v3342_v11 = vpop.xlane.xlu0 %3341  ;;  %5246 = vmatprep.subr.bf16.mxu1 %v5245_v55 }
 0x801   :  { %5248 = vmatpush3.bf16.msra.mxu1 %v5245_v55  ;;  %v5546_v55 = vld [vmem:[%s10448_s11 + $0x10] sm:$0xff] }
 0x802   :  { %v3387_v4 = vpop.xlane.xlu1 %3386 }
 0x803   :  { %v3433_v41 = vsel %vm735_vm2, %v3425_v27, %v3387_v4  ;;  %v5549_v4 = vld [vmem:[%s10448_s11 + $0x28] sm:$0xff] }
 0x804   :  { %v3366_v36 = vpop.xlane.xlu0 %3365 }
 0x805   :  { %v3426_v42 = vsel %vm726_vm1, %v3342_v11, %v3366_v36  ;;  %v5548_v11 = vld [vmem:[%s10448_s11 + $0x20] sm:$0xff]  ;;  %v5550_v36 = vld [vmem:[%s10448_s11 + $0x30] sm:$0xff] }
 0x806   :  { %v3411_v0 = vpop.xlane.xlu1 %3410 }
 0x807   :  { %v3441_v6 = vsel %vm744_vm3, %v3433_v41, %v3411_v0  ;;  %v5551_v0 = vld [vmem:[%s10448_s11 + $0x38] sm:$0xff] }
 0x808   :  { %v3390_v5 = vpop.xlane.xlu0 %3389 }
 0x809   :  { %v3434_v37 = vsel %vm735_vm2, %v3426_v42, %v3390_v5 }
 0x80a   :  { %v3345_v2 = vpop.xlane.xlu1 %3344 }
 0x80c   :  { %v3414_v12 = vpop.xlane.xlu0 %3413 }
 0x80d   :  { %v3442_v53 = vsel %vm744_vm3, %v3434_v37, %v3414_v12 }
 0x80e   :  { %v5249_v43 = vpack.c.bf16 %v3442_v53, %v3441_v6  ;;  %v3369_v47 = vpop.xlane.xlu1 %3368 }
 0x80f   :  { %v3427_v32 = vsel %vm726_vm1, %v3345_v2, %v3369_v47  ;;  %v3277_v47 = vld [vmem:[%s10442_s5] sm:$0xff] }
 0x810   :  { %v3348_v56 = vpop.xlane.xlu0 %3347  ;;  %5250 = vmatprep.subr.bf16.mxu1 %v5249_v43 }
 0x811   :  { %5252 = vmatpush3.bf16.msra.mxu1 %v5249_v43 }
 0x812   :  { %v3393_v57 = vpop.xlane.xlu1 %3392 }
 0x813   :  { %v3435_v20 = vsel %vm735_vm2, %v3427_v32, %v3393_v57 }
 0x814   :  { %v3372_v63 = vpop.xlane.xlu0 %3371 }
 0x815   :  { %v3428_v62 = vsel %vm726_vm1, %v3348_v56, %v3372_v63 }
 0x816   :  { %v3417_v17 = vpop.xlane.xlu1 %3416 }
 0x817   :  { %v3443_v49 = vsel %vm744_vm3, %v3435_v20, %v3417_v17 }
 0x818   :  { %v3396_v19 = vpop.xlane.xlu0 %3395 }
 0x819   :  { %v3436_v8 = vsel %vm735_vm2, %v3428_v62, %v3396_v19 }
 0x81c   :  { %v3420_v3 = vpop.xlane.xlu0 %3419 }
 0x81d   :  { %v3444_v24 = vsel %vm744_vm3, %v3436_v8, %v3420_v3 }
 0x81e   :  { %v5253_v16 = vpack.c.bf16 %v3444_v24, %v3443_v49 }
 0x820   :  { %5254 = vmatprep.subr.bf16.mxu1 %v5253_v16 }
 0x821   :  { %5256 = vmatpush3.bf16.msra.mxu1 %v5253_v16 }
 0x824   :  { %5186 = vmatmul.mubr.msk.f32.vlgmr.msra.gmra.mrb[16].mxu1 %vm753_vm0, %v5545_v31 }
 0x825   :  { %5188 = vmatprep.mubr.msk.f32.mxu1 %vm753_vm0, %v5546_v55  ;;  %v3280_v55 = vld [vmem:[%s10442_s5 + $0x18] sm:$0xff] }
 0x828   :  { %5189 = vmatmul.mubr.msk.f32.gmra.mrb[18].mxu1 %vm753_vm0, %v5547_v54  ;;  %v3282_v54 = vld [vmem:[%s10442_s5 + $0x28] sm:$0xff] }
 0x829   :  { %5191 = vmatprep.mubr.msk.f32.mxu1 %vm753_vm0, %v5548_v11  ;;  %v3279_v11 = vld [vmem:[%s10442_s5 + $0x10] sm:$0xff] }
 0x82c   :  { %5192 = vmatmul.mubr.msk.f32.gmra.mrb[20].mxu1 %vm753_vm0, %v5549_v4  ;;  %v3284_v4 = vld [vmem:[%s10442_s5 + $0x38] sm:$0xff] }
 0x82d   :  { %5194 = vmatprep.mubr.msk.f32.mxu1 %vm753_vm0, %v5550_v36  ;;  %v3281_v36 = vld [vmem:[%s10442_s5 + $0x20] sm:$0xff] }
 0x830   :  { %5195 = vmatmul.mubr.msk.f32.gmra.mrb[22].mxu1 %vm753_vm0, %v5551_v0  ;;  %v3286_v0 = vld [vmem:[%s10443_s6 + $0x8] sm:$0xff] }
 0x831   :  { %4159 = vmatprep.mubr.bf16.mxu1 %v11459_v46 }
 0x8f7   :  { %v5187_v5 = vpop.f32.mrb[16].mxu1 }
 0x8f8   :  { %v9743_v2 = vmul.f32 0.0009765625, %v5187_v5  ;;  %v3511_v27 = vpop.f32.mrb[17].mxu1  ;;  %v3283_v5 = vld [vmem:[%s10442_s5 + $0x30] sm:$0xff] }
 0x8f9   :  { %v9745_v42 = vmul.f32 0.0009765625, %v3511_v27  ;;  %v3288_v27 = vld [vmem:[%s10443_s6 + $0x18] sm:$0xff] }
 0x8fa   :  { %v3559_v41 = vmul.f32 %v9743_v2, %v9743_v2 }
 0x8fb   :  { %v3558_v37 = vmul.f32 %v9745_v42, %v9745_v42  ;;  %v5190_v12 = vpop.f32.mrb[18].mxu1 }
 0x8fc   :  { %3576 = vrot.lane.b32.xlu0 %v3559_v41, %s5580_s17  ;;  %v9752_v6 = vmul.f32 0.0009765625, %v5190_v12  ;;  %v3521_v53 = vpop.f32.mrb[19].mxu1  ;;  %v3285_v41 = vld [vmem:[%s10443_s6] sm:$0xff]  ;;  %v3287_v12 = vld [vmem:[%s10443_s6 + $0x10] sm:$0xff] }
 0x8fd   :  { %3574 = vrot.lane.b32.xlu1 %v3558_v37, %s5580_s17  ;;  %v9755_v43 = vmul.f32 0.0009765625, %v3521_v53  ;;  %v3290_v37 = vld [vmem:[%s10443_s6 + $0x28] sm:$0xff]  ;;  %v3292_v53 = vld [vmem:[%s10443_s6 + $0x38] sm:$0xff] }
 0x8fe   :  { %v3561_v56 = vmul.f32 %v9752_v6, %v9752_v6 }
 0x8ff   :  { %v5193_v57 = vpop.f32.mrb[20].mxu1  ;;  %v3560_v19 = vmul.f32 %v9755_v43, %v9755_v43 }
 0x900   :  { %3632 = vperm.xlu0 %5404, %v3277_v47   ;;  %v3531_v63 = vpop.f32.mrb[21].mxu1  ;;  %v9764_v17 = vmul.f32 0.0009765625, %v5193_v57  ;;  %v3289_v47 = vld [vmem:[%s10443_s6 + $0x20] sm:$0xff]  ;;  %v11462_v57 = vmov 3  }
 0x901   :  { %v9766_v32 = vmul.f32 0.0009765625, %v3531_v63  ;;  %3580 = vrot.lane.b32.xlu1 %v3561_v56, %s5580_s17  ;;  %v3291_v56 = vld [vmem:[%s10443_s6 + $0x30] sm:$0xff]  ;;  %v3638_v63 = vpop.permute.xlu1 %3637 }
 0x902   :  { %v3563_v49 = vmul.f32 %v9764_v17, %v9764_v17 }
 0x903   :  { %v3562_v62 = vmul.f32 %v9766_v32, %v9766_v32  ;;  %v5196_v20 = vpop.f32.mrb[22].mxu1 }
 0x904   :  { %v9771_v8 = vmul.f32 0.0009765625, %v5196_v20  ;;  %v3541_v3 = vpop.f32.mrb[23].mxu1 }
 0x905   :  { %3578 = vrot.lane.b32.xlu1 %v3560_v19, %s5580_s17  ;;  %3582 = vrot.lane.b32.xlu0 %v3562_v62, %s5580_s17  ;;  %v9777_v24 = vmul.f32 0.0009765625, %v3541_v3 }
 0x906   :  { %v3565_v16 = vmul.f32 %v9771_v8, %v9771_v8 }
 0x907   :  { %v3564_v31 = vmul.f32 %v9777_v24, %v9777_v24 }
 0x909   :  { %3584 = vrot.lane.b32.xlu1 %v3563_v49, %s5580_s17  ;;  %3588 = vrot.lane.b32.xlu0 %v3565_v16, %s5580_s17 }
 0x90d   :  { %3647 = vperm.xlu0 %5404, %v3280_v55   ;;  %3586 = vrot.lane.b32.xlu1 %v3564_v31, %s5580_s17 }
 0x911   :  { %3657 = vperm.xlu0 %5404, %v3282_v54   ;;  %3642 = vperm.xlu1 %5406, %v3279_v11  }
 0x915   :  { %3667 = vperm.xlu0 %5404, %v3284_v4   ;;  %3652 = vperm.xlu1 %5406, %v3281_v36  }
 0x919   :  { %3725 = vperm.xlu0 %5404, %v3286_v0   ;;  %3662 = vperm.xlu1 %5406, %v3283_v5  }
 0x91d   :  { %3735 = vperm.xlu0 %5404, %v3288_v27   ;;  %3720 = vperm.xlu1 %5406, %v3285_v41  }
 0x921   :  { %3745 = vperm.xlu0 %5404, %v3290_v37   ;;  %3730 = vperm.xlu1 %5406, %v3287_v12  }
 0x925   :  { %3755 = vperm.xlu0 %5404, %v3292_v53   ;;  %3740 = vperm.xlu1 %5406, %v3289_v47  }
 0x929   :  { %3750 = vperm.xlu1 %5406, %v3291_v56   ;;  %5411 = vset.pattern.permute.xlu0 %v11462_v57 }
 0x92d   :  { %5407 = vset.pattern.permute.xlu1 %v11462_v57 }
 0x96e   :  { %v3577_v19 = vpop.permute.xlu0 %3576 }
 0x96f   :  { %v3599_v62 = vsub.f32 %v9743_v2, %v3577_v19  ;;  %v3575_v20 = vpop.permute.xlu1 %3574 }
 0x970   :  { %v3598_v3 = vsub.f32 %v9745_v42, %v3575_v20 }
 0x971   :  { %v3607_v49 = vmax.f32 %v3599_v62, 0.0 }
 0x972   :  { %v3606_v16 = vmax.f32 %v3598_v3, 0.0 }
 0x973   :  { %v3615_v31 = vadd.f32 1e-05, %v3607_v49  ;;  %v3581_v55 = vpop.permute.xlu1 %3580 }
 0x974   :  { %v3614_v54 = vadd.f32 1e-05, %v3606_v16  ;;  %v3601_v11 = vsub.f32 %v9752_v6, %v3581_v55  ;;  %v11463_v55 = vmov 2  }
 0x975   :  { %5510 = vrsqrt.f32 %v3615_v31 }
 0x976   :  { %5512 = vrsqrt.f32 %v3614_v54  ;;  %v3609_v36 = vmax.f32 %v3601_v11, 0.0 }
 0x977   :  { %v3579_v4 = vpop.permute.xlu1 %3578 }
 0x978   :  { %v3600_v0 = vsub.f32 %v9755_v43, %v3579_v4  ;;  %v3617_v27 = vadd.f32 1e-05, %v3609_v36 }
 0x97a   :  { %v3608_v41 = vmax.f32 %v3600_v0, 0.0  ;;  %5514 = vrsqrt.f32 %v3617_v27 }
 0x97b   :  { %v3585_v5 = vpop.permute.xlu1 %3584 }
 0x97c   :  { %v3603_v37 = vsub.f32 %v9764_v17, %v3585_v5  ;;  %v3616_v19 = vadd.f32 1e-05, %v3608_v41 }
 0x97e   :  { %v3611_v62 = vmax.f32 %v3603_v37, 0.0  ;;  %5516 = vrsqrt.f32 %v3616_v19 }
 0x97f   :  { %v5511_v12 = vpop.eup %5510  ;;  %v3633_v53 = vpop.permute.xlu0 %3632 }
 0x980   :  { %v3671_v47 = vmul.f32 %v5511_v12, %v3638_v63  ;;  %v5513_v56 = vpop.eup %5512  ;;  %v3619_v16 = vadd.f32 1e-05, %v3611_v62  ;;  %v3587_v54 = vpop.permute.xlu1 %3586 }
 0x981   :  { %v3670_v3 = vmul.f32 %v5513_v56, %v3633_v53  ;;  %v3604_v36 = vsub.f32 %v9777_v24, %v3587_v54 }
 0x982   :  { %3891 = vperm.xlu1 %5407, %v3671_v47   ;;  %3688 = vrot.lane.b32.xlu0 %v3671_v47, %s5581_s18  ;;  %5518 = vrsqrt.f32 %v3619_v16 }
 0x983   :  { %v3583_v20 = vpop.permute.xlu0 %3582  ;;  %v3612_v12 = vmax.f32 %v3604_v36, 0.0 }
 0x984   :  { %v3602_v49 = vsub.f32 %v9766_v32, %v3583_v20  ;;  %v5515_v0 = vpop.eup %5514 }
 0x985   :  { %v3620_v20 = vadd.f32 1e-05, %v3612_v12 }
 0x986   :  { %3686 = vrot.lane.b32.xlu1 %v3670_v3, %s5581_s18  ;;  %v3610_v11 = vmax.f32 %v3602_v49, 0.0 }
 0x987   :  { %v3589_v31 = vpop.permute.xlu0 %3588  ;;  %5408 = vset.pattern.permute.xlu1 %v11463_v55 }
 0x988   :  { %v3605_v63 = vsub.f32 %v9771_v8, %v3589_v31  ;;  %v3618_v41 = vadd.f32 1e-05, %v3610_v11  ;;  %v5517_v53 = vpop.eup %5516 }
 0x98a   :  { %v3613_v4 = vmax.f32 %v3605_v63, 0.0  ;;  %3767 = vperm.xlu1 %5408, %v3670_v3  }
 0x98c   :  { %v3621_v5 = vadd.f32 1e-05, %v3613_v4  ;;  %v3648_v27 = vpop.permute.xlu0 %3647  ;;  %v5519_v49 = vpop.eup %5518 }
 0x98d   :  { %v3673_v37 = vmul.f32 %v5515_v0, %v3648_v27  ;;  %v11464_v27 = vmov 1  }
 0x98e   :  { %5520 = vrsqrt.f32 %v3621_v5  ;;  %5409 = vset.pattern.permute.xlu1 %v11462_v57 }
 0x98f   :  { %3887 = vperm.xlu1 %5409, %v3670_v3   ;;  %3692 = vrot.lane.b32.xlu0 %v3673_v37, %s5581_s18  ;;  %5522 = vrsqrt.f32 %v3618_v41 }
 0x990   :  { %v3643_v56 = vpop.permute.xlu1 %3642  ;;  %v3658_v62 = vpop.permute.xlu0 %3657  ;;  %5524 = vrsqrt.f32 %v3620_v20 }
 0x991   :  { %v3672_v19 = vmul.f32 %v5517_v53, %v3643_v56  ;;  %v3675_v16 = vmul.f32 %v5519_v49, %v3658_v62 }
 0x993   :  { %5410 = vset.pattern.permute.xlu1 %v11463_v55  ;;  %3895 = vperm.xlu0 %5411, %v3672_v19  }
 0x994   :  { %3779 = vperm.xlu1 %5410, %v3673_v37   ;;  %v3668_v54 = vpop.permute.xlu0 %3667  ;;  %v3653_v63 = vpop.permute.xlu1 %3652 }
 0x997   :  { %3696 = vrot.lane.b32.xlu0 %v3675_v16, %s5581_s18 }
 0x998   :  { %v5521_v31 = vpop.eup %5520  ;;  %3690 = vrot.lane.b32.xlu1 %v3672_v19, %s5581_s18  ;;  %v3663_v36 = vpop.permute.xlu1 %3662 }
 0x999   :  { %v3677_v3 = vmul.f32 %v5521_v31, %v3668_v54  ;;  %v5523_v11 = vpop.eup %5522 }
 0x99a   :  { %v3674_v4 = vmul.f32 %v5523_v11, %v3653_v63  ;;  %v5525_v0 = vpop.eup %5524 }
 0x99b   :  { %3700 = vrot.lane.b32.xlu0 %v3677_v3, %s5581_s18  ;;  %v3676_v5 = vmul.f32 %v5525_v0, %v3663_v36 }
 0x99c   :  { %3775 = vperm.xlu1 %5410, %v3672_v19   ;;  %v3721_v12 = vpop.permute.xlu1 %3720 }
 0x99f   :  { %3907 = vperm.xlu0 %5411, %v3675_v16  }
 0x9a0   :  { %3694 = vrot.lane.b32.xlu1 %v3674_v4, %s5581_s18  ;;  %v3731_v56 = vpop.permute.xlu1 %3730 }
 0x9a1   :  { %5412 = vset.pattern.permute.xlu1 %v11462_v57 }
 0x9a3   :  { %5415 = vset.pattern.permute.xlu0 %v11463_v55 }
 0x9a4   :  { %3771 = vperm.xlu0 %5415, %v3671_v47   ;;  %3698 = vrot.lane.b32.xlu1 %v3676_v5, %s5581_s18  ;;  %v3726_v47 = vpop.permute.xlu0 %3725  ;;  %v3741_v20 = vpop.permute.xlu1 %3740 }
 0x9a8   :  { %3783 = vperm.xlu0 %5415, %v3674_v4   ;;  %3899 = vperm.xlu1 %5412, %v3673_v37   ;;  %v3736_v41 = vpop.permute.xlu0 %3735 }
 0x9ac   :  { %3795 = vperm.xlu0 %5415, %v3677_v3   ;;  %5413 = vset.pattern.permute.xlu1 %v11463_v55  ;;  %v3746_v37 = vpop.permute.xlu0 %3745 }
 0x9ad   :  { %3787 = vperm.xlu1 %5413, %v3675_v16   ;;  %v3751_v16 = vpop.permute.xlu1 %3750 }
 0x9b0   :  { %5419 = vset.pattern.permute.xlu0 %v11464_v27  ;;  %v3756_v53 = vpop.permute.xlu0 %3755 }
 0x9b1   :  { %5414 = vset.pattern.permute.xlu1 %v11462_v57 }
 0x9b2   :  { %3903 = vperm.xlu1 %5414, %v3674_v4  }
 0x9b6   :  { %3915 = vperm.xlu1 %5414, %v3677_v3  }
 0x9ba   :  { %5416 = vset.pattern.permute.xlu1 %v11463_v55 }
 0x9bb   :  { %3791 = vperm.xlu1 %5416, %v3676_v5  }
 0x9bf   :  { %5417 = vset.pattern.permute.xlu1 %v11462_v57 }
 0x9c0   :  { %3911 = vperm.xlu1 %5417, %v3676_v5  }
 0x9c4   :  { %5418 = vset.pattern.permute.xlu1 %v11459_v46 }
 0x9f4   :  { %v3689_v19 = vpop.permute.xlu0 %3688 }
 0x9f5   :  { %v3711_v62 = vmul.f32 %v3689_v19, %v9743_v2 }
 0x9f7   :  { %v3759_v49 = vsub.f32 %v3726_v47, %v3711_v62 }
 0x9f9   :  { %3939 = vperm.xlu0 %5419, %v3759_v49   ;;  %3821 = vperm.xlu1 %5418, %v3759_v49  }
 0x9fd   :  { %5420 = vset.pattern.permute.xlu0 %v11459_v46  ;;  %5421 = vset.pattern.permute.xlu1 %v11464_v27 }
 0xa01   :  { %v9860_v31 = vpop.permute.xlu1 %3891  ;;  %v3693_v54 = vpop.permute.xlu0 %3692 }
 0xa02   :  { %v3713_v11 = vmul.f32 %v3693_v54, %v9752_v6 }
 0xa04   :  { %v3761_v2 = vsub.f32 %v3736_v41, %v3713_v11 }
 0xa05   :  { %v3687_v3 = vpop.permute.xlu1 %3686 }
 0xa06   :  { %v3710_v63 = vmul.f32 %v3687_v3, %v9745_v42 }
 0xa08   :  { %v3758_v4 = vsub.f32 %v3721_v12, %v3710_v63 }
 0xa09   :  { %v9864_v36 = vpop.permute.xlu1 %3767 }
 0xa0a   :  { %3935 = vperm.xlu1 %5421, %v3758_v4   ;;  %3816 = vperm.xlu0 %5420, %v3758_v4  }
 0xa0e   :  { %3947 = vperm.xlu1 %5421, %v3761_v2   ;;  %3831 = vperm.xlu0 %5420, %v3761_v2   ;;  %v3888_v0 = vpop.permute.xlu1 %3887 }
 0xa12   :  { %5422 = vset.pattern.permute.xlu1 %v11459_v46  ;;  %5427 = vset.pattern.permute.xlu0 %v11464_v27  ;;  %v9870_v47 = vpop.permute.xlu0 %3895 }
 0xa13   :  { %v9868_v5 = vpop.permute.xlu1 %3779 }
 0xa16   :  { %v3697_v62 = vpop.permute.xlu0 %3696 }
 0xa17   :  { %v3691_v42 = vpop.permute.xlu1 %3690  ;;  %v3715_v49 = vmul.f32 %v3697_v62, %v9764_v17 }
 0xa18   :  { %v3712_v6 = vmul.f32 %v3691_v42, %v9755_v43 }
 0xa19   :  { %v3763_v11 = vsub.f32 %v3746_v37, %v3715_v49  ;;  %v3920_v49 = vmul.f32 %v9860_v31, %v9557_v13 }
 0xa1a   :  { %v3760_v12 = vsub.f32 %v3731_v56, %v3712_v6  ;;  %v3701_v43 = vpop.permute.xlu0 %3700 }
 0xa1b   :  { %v9873_v19 = vpop.permute.xlu1 %3775  ;;  %v3717_v2 = vmul.f32 %v3701_v43, %v9771_v8  ;;  %v3798_v43 = vmul.f32 %v9864_v36, %v9527_v38 }
 0xa1c   :  { %3826 = vperm.xlu1 %5422, %v3760_v12  }
 0xa1d   :  { %v3765_v17 = vsub.f32 %v3756_v53, %v3717_v2  ;;  %v3918_v2 = vmul.f32 %v3888_v0, %v9537_v44 }
 0xa1f   :  { %v3695_v41 = vpop.permute.xlu1 %3694 }
 0xa20   :  { %v3714_v54 = vmul.f32 %v3695_v41, %v9766_v32  ;;  %5423 = vset.pattern.permute.xlu1 %v11464_v27 }
 0xa21   :  { %3943 = vperm.xlu1 %5423, %v3760_v12  }
 0xa22   :  { %v3762_v3 = vsub.f32 %v3741_v20, %v3714_v54 }
 0xa23   :  { %v3699_v63 = vpop.permute.xlu1 %3698 }
 0xa24   :  { %v3716_v4 = vmul.f32 %v3699_v63, %v9777_v24  ;;  %3951 = vperm.xlu0 %5427, %v3762_v3   ;;  %v9890_v24 = vpop.permute.xlu0 %3907 }
 0xa25   :  { %5424 = vset.pattern.permute.xlu1 %v11459_v46 }
 0xa26   :  { %v3764_v56 = vsub.f32 %v3751_v16, %v3716_v4  ;;  %3841 = vperm.xlu1 %5424, %v3763_v11  }
 0xa27   :  { %v3900_v32 = vpop.permute.xlu1 %3899 }
 0xa28   :  { %5428 = vset.pattern.permute.xlu0 %v11459_v46  ;;  %v3772_v53 = vpop.permute.xlu0 %3771 }
 0xa29   :  { %3846 = vperm.xlu0 %5428, %v3764_v56   ;;  %v3800_v54 = vmul.f32 %v3772_v53, %v9539_v40  ;;  %v3801_v63 = vmul.f32 %v3772_v53, %v9547_v25 }
 0xa2a   :  { %5425 = vset.pattern.permute.xlu1 %v11464_v27 }
 0xa2b   :  { %3955 = vperm.xlu1 %5425, %v3763_v11  }
 0xa2c   :  { %v9888_v8 = vpop.permute.xlu1 %3787  ;;  %v9896_v16 = vpop.permute.xlu0 %3783 }
 0xa2d   :  { %5430 = vset.pattern.permute.xlu0 %v11464_v27 }
 0xa2e   :  { %3963 = vperm.xlu0 %5430, %v3765_v17  }
 0xa2f   :  { %5426 = vset.pattern.permute.xlu1 %v11459_v46 }
 0xa30   :  { %3836 = vperm.xlu1 %5426, %v3762_v3   ;;  %v9900_v6 = vpop.permute.xlu0 %3795  ;;  %v3921_v3 = vmul.f32 %v9860_v31, %v9561_v48 }
 0xa31   :  { %v9892_v37 = vpop.permute.xlu1 %3903 }
 0xa32   :  { %5431 = vset.pattern.permute.xlu0 %v11459_v46 }
 0xa34   :  { %3851 = vperm.xlu1 %5426, %v3765_v17   ;;  %v3919_v17 = vmul.f32 %v3888_v0, %v9545_v50 }
 0xa35   :  { %v9894_v20 = vpop.permute.xlu1 %3915 }
 0xa38   :  { %5429 = vset.pattern.permute.xlu1 %v11464_v27 }
 0xa39   :  { %3959 = vperm.xlu1 %5429, %v3764_v56   ;;  %v3799_v56 = vmul.f32 %v9864_v36, %v9531_v60 }
 0xa3a   :  { %v9898_v42 = vpop.permute.xlu1 %3791 }
 0xa3d   :  { %5432 = vset.pattern.permute.xlu1 %v11459_v46 }
 0xa3f   :  { %v9902_v12 = vpop.permute.xlu1 %3911 }
 0xa40   :  { %11465 = vst [vmem:[#allocation38_spill] sm:$0xff] %v9902_v12 }
 0xa78   :  { %v3940_v62 = vpop.permute.xlu0 %3939  ;;  %v3822_v41 = vpop.permute.xlu1 %3821 }
 0xa79   :  { %v3968_v11 = vadd.f32 %v3940_v62, %v3920_v49  ;;  %v3856_v4 = vadd.f32 %v3822_v41, %v3800_v54  ;;  %v3969_v13 = vadd.f32 %v3940_v62, %v3921_v3  ;;  %v3857_v27 = vadd.f32 %v3822_v41, %v3801_v63 }
 0xa7a   :  { %v3802_v41 = vmul.f32 %v9873_v19, %v9567_v15  ;;  %v3924_v63 = vmul.f32 %v3900_v32, %v9597_v18  ;;  %v3923_v15 = vmul.f32 %v9870_v47, %v9585_v30  ;;  %v3926_v30 = vmul.f32 %v9892_v37, %v9617_v28 }
 0xa7b   :  { %v3984_v53 = vmax.f32 %v3968_v11, 0.0  ;;  %v3872_v49 = vmax.f32 %v3856_v4, 0.0  ;;  %v3985_v12 = vmax.f32 %v3969_v13, 0.0  ;;  %v3873_v60 = vmax.f32 %v3857_v27, 0.0 }
 0xa7c   :  { %v3803_v27 = vmul.f32 %v9873_v19, %v9571_v1  ;;  %v3925_v11 = vmul.f32 %v3900_v32, %v9601_v9  ;;  %v3809_v28 = vmul.f32 %v9888_v8, %v9627_v14  ;;  %v3810_v14 = vmul.f32 %v9898_v42, %v9647_v58 }
 0xa89   :  { %v3817_v40 = vpop.permute.xlu0 %3816  ;;  %v3936_v55 = vpop.permute.xlu1 %3935 }
 0xa8a   :  { %v3854_v57 = vadd.f32 %v3817_v40, %v3798_v43  ;;  %v3855_v48 = vadd.f32 %v3817_v40, %v3799_v56  ;;  %v3966_v31 = vadd.f32 %v3936_v55, %v3918_v2  ;;  %v3967_v25 = vadd.f32 %v3936_v55, %v3919_v17 }
 0xa8b   :  { %v3804_v55 = vmul.f32 %v9868_v5, %v9579_v59 }
 0xa8c   :  { %v3870_v54 = vmax.f32 %v3854_v57, 0.0  ;;  %v3871_v46 = vmax.f32 %v3855_v48, 0.0  ;;  %v3982_v38 = vmax.f32 %v3966_v31, 0.0  ;;  %v3983_v33 = vmax.f32 %v3967_v25, 0.0 }
 0xa8d   :  { %v3832_v0 = vpop.permute.xlu0 %3831  ;;  %v3948_v62 = vpop.permute.xlu1 %3947  ;;  %v3805_v57 = vmul.f32 %v9868_v5, %v9587_v34  ;;  %v3922_v34 = vmul.f32 %v9870_v47, %v9577_v29  ;;  %v3927_v47 = vmul.f32 %v9892_v37, %v9625_v21 }
 0xa8e   :  { %v4006_v36 = vpack.c.bf16 %v3872_v49, %v3870_v54  ;;  %v4008_v44 = vpack.c.bf16 %v3984_v53, %v3982_v38  ;;  %v4007_v61 = vpack.c.bf16 %v3873_v60, %v3871_v46  ;;  %v4009_v50 = vpack.c.bf16 %v3985_v12, %v3983_v33 }
 0xa8f   :  { %v3860_v46 = vadd.f32 %v3832_v0, %v3804_v55  ;;  %v3861_v33 = vadd.f32 %v3832_v0, %v3805_v57  ;;  %v3972_v1 = vadd.f32 %v3948_v62, %v3924_v63  ;;  %v3973_v5 = vadd.f32 %v3948_v62, %v3925_v11 }
 0xa90   :  { %4054 = vmatprep.subr.bf16.mxu0 %v4007_v61  ;;  %4127 = vmatprep.subr.bf16.mxu1 %v4009_v50  ;;  %v3928_v38 = vmul.f32 %v9890_v24, %v9637_v35  ;;  %v3929_v60 = vmul.f32 %v9890_v24, %v9641_v23  ;;  %v3806_v35 = vmul.f32 %v9896_v16, %v9607_v7 }
 0xa91   :  { %4055 = vmatpush1.bf16.msra.mxu0 %v4006_v36  ;;  %4128 = vmatpush1.bf16.msra.mxu1 %v4008_v44  ;;  %v3876_v4 = vmax.f32 %v3860_v46, 0.0  ;;  %v3877_v59 = vmax.f32 %v3861_v33, 0.0  ;;  %v3988_v18 = vmax.f32 %v3972_v1, 0.0  ;;  %v3989_v9 = vmax.f32 %v3973_v5, 0.0  ;;  %v11466_v5 = vld [vmem:[#allocation20_spill] sm:$0xff] }
 0xa92   :  { %v3808_v44 = vmul.f32 %v9888_v8, %v9619_v22  ;;  %v3807_v23 = vmul.f32 %v9896_v16, %v9611_v26  ;;  %v3811_v8 = vmul.f32 %v9898_v42, %v9651_v45  ;;  %v3813_v7 = vmul.f32 %v9900_v6, %v9667_v10 }
 0xa93   :  { %v3933_v10 = vmul.f32 %v9894_v20, %v9681_v52  ;;  %v5490_v52 = vld [vmem:[%s10444_s7] sm:$0xff]  }
 0xa9b   :  { %v3827_v61 = vpop.permute.xlu1 %3826 }
 0xa9c   :  { %v3858_v12 = vadd.f32 %v3827_v61, %v3802_v41  ;;  %v3859_v3 = vadd.f32 %v3827_v61, %v3803_v27 }
 0xa9e   :  { %v3874_v43 = vmax.f32 %v3858_v12, 0.0  ;;  %v3875_v56 = vmax.f32 %v3859_v3, 0.0  ;;  %v3812_v12 = vmul.f32 %v9900_v6, %v9659_v51  ;;  %v3932_v51 = vmul.f32 %v9894_v20, %v9677_v39 }
 0xaa0   :  { %v4010_v19 = vpack.c.bf16 %v3876_v4, %v3874_v43  ;;  %v3944_v2 = vpop.permute.xlu1 %3943  ;;  %v4011_v17 = vpack.c.bf16 %v3877_v59, %v3875_v56 }
 0xaa1   :  { %v3970_v13 = vadd.f32 %v3944_v2, %v3922_v34  ;;  %v3971_v40 = vadd.f32 %v3944_v2, %v3923_v15 }
 0xaa2   :  { %4056 = vmatprep.subr.bf16.mxu0 %v4011_v17  ;;  %v11468_v17 = vld [vmem:[#allocation79_spill] sm:$0xff] }
 0xaa3   :  { %v3986_v32 = vmax.f32 %v3970_v13, 0.0  ;;  %v3987_v48 = vmax.f32 %v3971_v40, 0.0  ;;  %4057 = vmatpush1.bf16.msra.mxu0 %v4010_v19  ;;  %v3952_v25 = vpop.permute.xlu0 %3951  ;;  %v11467_v19 = vld [vmem:[#allocation38_spill] sm:$0xff] }
 0xaa4   :  { %v3974_v49 = vadd.f32 %v3952_v25, %v3926_v30  ;;  %v3975_v54 = vadd.f32 %v3952_v25, %v3927_v47  ;;  %v3930_v2 = vmul.f32 %v11467_v19, %v11466_v5  ;;  %v3931_v13 = vmul.f32 %v11467_v19, %v11468_v17 }
 0xaa5   :  { %v4012_v31 = vpack.c.bf16 %v3988_v18, %v3986_v32  ;;  %v3842_v53 = vpop.permute.xlu1 %3841  ;;  %v4013_v29 = vpack.c.bf16 %v3989_v9, %v3987_v48 }
 0xaa6   :  { %v3990_v21 = vmax.f32 %v3974_v49, 0.0  ;;  %v3991_v37 = vmax.f32 %v3975_v54, 0.0  ;;  %v3864_v62 = vadd.f32 %v3842_v53, %v3808_v44  ;;  %v3865_v55 = vadd.f32 %v3842_v53, %v3809_v28  ;;  %v5491_v54 = vld [vmem:[%s10444_s7 + $0x8] sm:$0xff]  }
 0xaa7   :  { %4129 = vmatprep.subr.bf16.mxu1 %v4013_v29  ;;  %v11469_v49 = vmov 0  }
 0xaa8   :  { %4130 = vmatpush1.bf16.msra.mxu1 %v4012_v31  ;;  %v3847_v24 = vpop.permute.xlu0 %3846  ;;  %v3880_v3 = vmax.f32 %v3864_v62, 0.0  ;;  %v3881_v26 = vmax.f32 %v3865_v55, 0.0 }
 0xaa9   :  { %v3866_v16 = vadd.f32 %v3847_v24, %v3810_v14  ;;  %v3867_v63 = vadd.f32 %v3847_v24, %v3811_v8 }
 0xaaa   :  { %v3956_v36 = vpop.permute.xlu1 %3955 }
 0xaab   :  { %v3976_v50 = vadd.f32 %v3956_v36, %v3928_v38  ;;  %v3977_v0 = vadd.f32 %v3956_v36, %v3929_v60  ;;  %v3882_v6 = vmax.f32 %v3866_v16, 0.0  ;;  %v3883_v34 = vmax.f32 %v3867_v63, 0.0  ;;  %v5492_v38 = vld [vmem:[%s10444_s7 + $0x10] sm:$0xff]   ;;  %v5493_v60 = vld [vmem:[%s10444_s7 + $0x18] sm:$0xff]  }
 0xaad   :  { %v3992_v57 = vmax.f32 %v3976_v50, 0.0  ;;  %v3993_v41 = vmax.f32 %v3977_v0, 0.0  ;;  %v3964_v59 = vpop.permute.xlu0 %3963 }
 0xaae   :  { %v3980_v40 = vadd.f32 %v3964_v59, %v3932_v51  ;;  %v3981_v18 = vadd.f32 %v3964_v59, %v3933_v10 }
 0xaaf   :  { %v4016_v27 = vpack.c.bf16 %v3992_v57, %v3990_v21  ;;  %v3837_v22 = vpop.permute.xlu1 %3836  ;;  %v4017_v46 = vpack.c.bf16 %v3993_v41, %v3991_v37 }
 0xab0   :  { %v3862_v33 = vadd.f32 %v3837_v22, %v3806_v35  ;;  %v3863_v61 = vadd.f32 %v3837_v22, %v3807_v23  ;;  %v3996_v20 = vmax.f32 %v3980_v40, 0.0  ;;  %v3997_v25 = vmax.f32 %v3981_v18, 0.0 }
 0xab1   :  { %4131 = vmatprep.subr.bf16.mxu1 %v4017_v46 }
 0xab2   :  { %v3878_v11 = vmax.f32 %v3862_v33, 0.0  ;;  %v3879_v4 = vmax.f32 %v3863_v61, 0.0  ;;  %4132 = vmatpush1.bf16.msra.mxu1 %v4016_v27 }
 0xab3   :  { %v3852_v58 = vpop.permute.xlu1 %3851 }
 0xab4   :  { %v4014_v43 = vpack.c.bf16 %v3880_v3, %v3878_v11  ;;  %v3868_v45 = vadd.f32 %v3852_v58, %v3812_v12  ;;  %v3869_v42 = vadd.f32 %v3852_v58, %v3813_v7  ;;  %v4015_v56 = vpack.c.bf16 %v3881_v26, %v3879_v4 }
 0xab6   :  { %v3884_v15 = vmax.f32 %v3868_v45, 0.0  ;;  %v3885_v1 = vmax.f32 %v3869_v42, 0.0  ;;  %4058 = vmatprep.subr.bf16.mxu0 %v4015_v56 }
 0xab7   :  { %4059 = vmatpush1.bf16.msra.mxu0 %v4014_v43 }
 0xab8   :  { %v4018_v9 = vpack.c.bf16 %v3884_v15, %v3882_v6  ;;  %v3960_v32 = vpop.permute.xlu1 %3959  ;;  %v4019_v39 = vpack.c.bf16 %v3885_v1, %v3883_v34 }
 0xab9   :  { %v3978_v48 = vadd.f32 %v3960_v32, %v3930_v2  ;;  %v3979_v31 = vadd.f32 %v3960_v32, %v3931_v13 }
 0xaba   :  { %4060 = vmatprep.subr.bf16.mxu0 %v4019_v39 }
 0xabb   :  { %v3994_v53 = vmax.f32 %v3978_v48, 0.0  ;;  %v3995_v29 = vmax.f32 %v3979_v31, 0.0  ;;  %4061 = vmatpush1.bf16.msra.mxu0 %v4018_v9 }
 0xabd   :  { %v4020_v30 = vpack.c.bf16 %v3996_v20, %v3994_v53  ;;  %v4021_v47 = vpack.c.bf16 %v3997_v25, %v3995_v29 }
 0xabe   :  { %5077 = vmatmul.mubr.msk.bf16.vlgmr.msra.gmra.mrb[24].mxu0 %vm753_vm0, %v5490_v52 }
 0xabf   :  { %4133 = vmatprep.subr.bf16.mxu1 %v4021_v47  ;;  %4096 = vmatprep.mubr.bf16.mxu0 %v11469_v49 }
 0xac0   :  { %4134 = vmatpush1.bf16.msra.mxu1 %v4020_v30 }
 0xac3   :  { %5081 = vmatmul.mubr.msk.bf16.vlgmr.msra.gmra.mrb[24].mxu1 %vm753_vm0, %v5490_v52 }
 0xac4   :  { %4169 = vmatprep.mubr.bf16.mxu1 %v11469_v49 }
 0xac6   :  { %5078 = vmatmul.mubr.msk.bf16.gmra.mrb[28].mxu0 %vm753_vm0, %v5491_v54 }
 0xac7   :  { %4106 = vmatprep.mubr.bf16.mxu0 %v11469_v49 }
 0xacb   :  { %5082 = vmatmul.mubr.msk.bf16.gmra.mrb[28].mxu1 %vm753_vm0, %v5491_v54 }
 0xacc   :  { %4179 = vmatprep.mubr.bf16.mxu1 %v11469_v49 }
 0xace   :  { %5079 = vmatmul.mubr.msk.bf16.gmra.mrb[32].mxu0 %vm753_vm0, %v5492_v38 }
 0xacf   :  { %4116 = vmatprep.mubr.bf16.mxu0 %v11469_v49 }
 0xad3   :  { %5083 = vmatmul.mubr.msk.bf16.gmra.mrb[32].mxu1 %vm753_vm0, %v5492_v38 }
 0xad4   :  { %4189 = vmatprep.mubr.bf16.mxu1 %v11469_v49 }
 0xad6   :  { %5080 = vmatmul.mubr.msk.bf16.gmra.mrb[36].mxu0 %vm753_vm0, %v5493_v60 }
 0xadb   :  { %5084 = vmatmul.mubr.msk.bf16.gmra.mrb[36].mxu1 %vm753_vm0, %v5493_v60 }
 0xb91   :  { %v9988_v36 = vpop.f32.mrb[24].mxu0 }
 0xb92   :  { %v4216_v44 = vmul.f32 %v9988_v36, %v9988_v36  ;;  %v9992_v28 = vpop.f32.mrb[25].mxu0 }
 0xb93   :  { %v4217_v50 = vmul.f32 %v9992_v28, %v9992_v28  ;;  %v4248_v0 = vadd.f32 %v9992_v28, %v9988_v36  ;;  %v9998_v21 = vpop.f32.mrb[26].mxu0 }
 0xb94   :  { %v4220_v37 = vmul.f32 %v9998_v21, %v9998_v21  ;;  %v10002_v62 = vpop.f32.mrb[27].mxu0 }
 0xb95   :  { %v4221_v55 = vmul.f32 %v10002_v62, %v10002_v62  ;;  %v4251_v57 = vadd.f32 %v10002_v62, %v9998_v21  ;;  %4249 = vadd.xlane.f32.xlu1 %v4248_v0  ;;  %v4296_v41 = vadd.f32 %v4217_v50, %v4216_v44 }
 0xb96   :  { %v10008_v35 = vpop.f32.mrb[24].mxu1 }
 0xb97   :  { %v4218_v23 = vmul.f32 %v10008_v35, %v10008_v35  ;;  %v10012_v24 = vpop.f32.mrb[25].mxu1  ;;  %4252 = vadd.xlane.f32.xlu0 %v4251_v57  ;;  %v4299_v27 = vadd.f32 %v4221_v55, %v4220_v37 }
 0xb98   :  { %v4219_v22 = vmul.f32 %v10012_v24, %v10012_v24  ;;  %v4272_v46 = vadd.f32 %v10012_v24, %v10008_v35  ;;  %v10018_v14 = vpop.f32.mrb[26].mxu1 }
 0xb99   :  { %v4222_v8 = vmul.f32 %v10018_v14, %v10018_v14  ;;  %v10022_v33 = vpop.f32.mrb[27].mxu1  ;;  %v10024_v61 = vpop.f32.mrb[28].mxu0 }
 0xb9a   :  { %v4223_v12 = vmul.f32 %v10022_v33, %v10022_v33  ;;  %v4275_v7 = vadd.f32 %v10022_v33, %v10018_v14  ;;  %4273 = vadd.xlane.f32.xlu1 %v4272_v46  ;;  %v4224_v3 = vmul.f32 %v10024_v61, %v10024_v61  ;;  %v4320_v26 = vadd.f32 %v4219_v22, %v4218_v23  ;;  %v10032_v16 = vpop.f32.mrb[29].mxu0 }
 0xb9b   :  { %v4225_v63 = vmul.f32 %v10032_v16, %v10032_v16  ;;  %v4254_v11 = vadd.f32 %v10032_v16, %v10024_v61  ;;  %v10038_v4 = vpop.f32.mrb[30].mxu0 }
 0xb9c   :  { %4276 = vadd.xlane.f32.xlu0 %v4275_v7  ;;  %v4228_v58 = vmul.f32 %v10038_v4, %v10038_v4  ;;  %v4323_v59 = vadd.f32 %v4223_v12, %v4222_v8  ;;  %v10042_v43 = vpop.f32.mrb[31].mxu0 }
 0xb9d   :  { %v4229_v45 = vmul.f32 %v10042_v43, %v10042_v43  ;;  %v4257_v42 = vadd.f32 %v10042_v43, %v10038_v4  ;;  %v4302_v56 = vadd.f32 %v4225_v63, %v4224_v3 }
 0xb9e   :  { %4297 = vadd.xlane.f32.xlu1 %v4296_v41  ;;  %v10048_v51 = vpop.f32.mrb[28].mxu1 }
 0xb9f   :  { %v4226_v10 = vmul.f32 %v10048_v51, %v10048_v51  ;;  %v10052_v6 = vpop.f32.mrb[29].mxu1  ;;  %v4305_v34 = vadd.f32 %v4229_v45, %v4228_v58 }
 0xba0   :  { %4300 = vadd.xlane.f32.xlu0 %v4299_v27  ;;  %v4227_v15 = vmul.f32 %v10052_v6, %v10052_v6  ;;  %v4278_v1 = vadd.f32 %v10052_v6, %v10048_v51  ;;  %v10058_v5 = vpop.f32.mrb[30].mxu1 }
 0xba1   :  { %v4230_v19 = vmul.f32 %v10058_v5, %v10058_v5  ;;  %v10062_v2 = vpop.f32.mrb[31].mxu1  ;;  %v10064_v17 = vpop.f32.mrb[32].mxu0 }
 0xba2   :  { %4321 = vadd.xlane.f32.xlu1 %v4320_v26  ;;  %v4231_v13 = vmul.f32 %v10062_v2, %v10062_v2  ;;  %v4281_v40 = vadd.f32 %v10062_v2, %v10058_v5  ;;  %v4232_v18 = vmul.f32 %v10064_v17, %v10064_v17  ;;  %v4326_v9 = vadd.f32 %v4227_v15, %v4226_v10  ;;  %v10072_v32 = vpop.f32.mrb[33].mxu0 }
 0xba3   :  { %v4233_v39 = vmul.f32 %v10072_v32, %v10072_v32  ;;  %v4260_v48 = vadd.f32 %v10072_v32, %v10064_v17  ;;  %v10078_v31 = vpop.f32.mrb[34].mxu0 }
 0xba4   :  { %4324 = vadd.xlane.f32.xlu0 %v4323_v59  ;;  %v4236_v52 = vmul.f32 %v10078_v31, %v10078_v31  ;;  %v4329_v20 = vadd.f32 %v4231_v13, %v4230_v19  ;;  %v10082_v25 = vpop.f32.mrb[35].mxu0 }
 0xba5   :  { %v4237_v53 = vmul.f32 %v10082_v25, %v10082_v25  ;;  %v4263_v29 = vadd.f32 %v10082_v25, %v10078_v31  ;;  %v4308_v30 = vadd.f32 %v4233_v39, %v4232_v18 }
 0xba6   :  { %4255 = vadd.xlane.f32.xlu1 %v4254_v11  ;;  %v10088_v47 = vpop.f32.mrb[32].mxu1 }
 0xba7   :  { %v4234_v54 = vmul.f32 %v10088_v47, %v10088_v47  ;;  %v10092_v38 = vpop.f32.mrb[33].mxu1  ;;  %v4311_v60 = vadd.f32 %v4237_v53, %v4236_v52  ;;  %v4200_v53 = vld [vmem:[%s10445_s8] sm:$0xff] }
 0xba8   :  { %4258 = vadd.xlane.f32.xlu0 %v4257_v42  ;;  %v4235_v44 = vmul.f32 %v10092_v38, %v10092_v38  ;;  %v4284_v50 = vadd.f32 %v10092_v38, %v10088_v47  ;;  %v10098_v0 = vpop.f32.mrb[34].mxu1 }
 0xba9   :  { %v4238_v37 = vmul.f32 %v10098_v0, %v10098_v0  ;;  %v10102_v55 = vpop.f32.mrb[35].mxu1  ;;  %v10104_v57 = vpop.f32.mrb[36].mxu0 }
 0xbaa   :  { %4279 = vadd.xlane.f32.xlu1 %v4278_v1  ;;  %v4239_v41 = vmul.f32 %v10102_v55, %v10102_v55  ;;  %v4287_v23 = vadd.f32 %v10102_v55, %v10098_v0  ;;  %v4240_v27 = vmul.f32 %v10104_v57, %v10104_v57  ;;  %v4332_v22 = vadd.f32 %v4235_v44, %v4234_v54  ;;  %v10112_v46 = vpop.f32.mrb[37].mxu0 }
 0xbab   :  { %v4241_v8 = vmul.f32 %v10112_v46, %v10112_v46  ;;  %v4266_v12 = vadd.f32 %v10112_v46, %v10104_v57  ;;  %v10118_v7 = vpop.f32.mrb[38].mxu0 }
 0xbac   :  { %4282 = vadd.xlane.f32.xlu0 %v4281_v40  ;;  %v4244_v3 = vmul.f32 %v10118_v7, %v10118_v7  ;;  %v4335_v26 = vadd.f32 %v4239_v41, %v4238_v37  ;;  %v10122_v63 = vpop.f32.mrb[39].mxu0 }
 0xbad   :  { %v4245_v11 = vmul.f32 %v10122_v63, %v10122_v63  ;;  %v4269_v58 = vadd.f32 %v10122_v63, %v10118_v7  ;;  %v4314_v59 = vadd.f32 %v4241_v8, %v4240_v27 }
 0xbae   :  { %4303 = vadd.xlane.f32.xlu1 %v4302_v56  ;;  %v10128_v45 = vpop.f32.mrb[36].mxu1 }
 0xbaf   :  { %v4242_v42 = vmul.f32 %v10128_v45, %v10128_v45  ;;  %v10132_v10 = vpop.f32.mrb[37].mxu1  ;;  %v4317_v15 = vadd.f32 %v4245_v11, %v4244_v3 }
 0xbb0   :  { %4306 = vadd.xlane.f32.xlu0 %v4305_v34  ;;  %v4243_v1 = vmul.f32 %v10132_v10, %v10132_v10  ;;  %v4290_v19 = vadd.f32 %v10132_v10, %v10128_v45  ;;  %v10138_v13 = vpop.f32.mrb[38].mxu1 }
 0xbb1   :  { %v4246_v56 = vmul.f32 %v10138_v13, %v10138_v13  ;;  %v10142_v40 = vpop.f32.mrb[39].mxu1 }
 0xbb2   :  { %4327 = vadd.xlane.f32.xlu1 %v4326_v9  ;;  %v4247_v18 = vmul.f32 %v10142_v40, %v10142_v40  ;;  %v4293_v34 = vadd.f32 %v10142_v40, %v10138_v13  ;;  %v4338_v39 = vadd.f32 %v4243_v1, %v4242_v42  ;;  %v60_v9 = vld [vmem:[%s10449_s12] sm:$0xff] }
 0xbb3   :  { %5213 = vmatprep.mubr.msk.f32.mxu0 %vm753_vm0, %v60_v9 }
 0xbb4   :  { %4330 = vadd.xlane.f32.xlu0 %v4329_v20  ;;  %v4341_v52 = vadd.f32 %v4247_v18, %v4246_v56  ;;  %v4201_v20 = vld [vmem:[%s10445_s8 + $0x8] sm:$0xff] }
 0xbb6   :  { %4261 = vadd.xlane.f32.xlu1 %v4260_v48  ;;  %v64_v48 = vld [vmem:[%s10449_s12 + $0x20] sm:$0xff] }
 0xbb7   :  { %5219 = vmatprep.mubr.msk.f32.mxu1 %vm753_vm0, %v64_v48 }
 0xbb8   :  { %4264 = vadd.xlane.f32.xlu0 %v4263_v29 }
 0xbba   :  { %4285 = vadd.xlane.f32.xlu1 %v4284_v50 }
 0xbbc   :  { %4288 = vadd.xlane.f32.xlu0 %v4287_v23 }
 0xbbe   :  { %4309 = vadd.xlane.f32.xlu1 %v4308_v30 }
 0xbc0   :  { %4312 = vadd.xlane.f32.xlu0 %v4311_v60 }
 0xbc2   :  { %4333 = vadd.xlane.f32.xlu1 %v4332_v22 }
 0xbc4   :  { %4336 = vadd.xlane.f32.xlu0 %v4335_v26 }
 0xbc6   :  { %4267 = vadd.xlane.f32.xlu1 %v4266_v12 }
 0xbc8   :  { %4270 = vadd.xlane.f32.xlu0 %v4269_v58 }
 0xbca   :  { %4291 = vadd.xlane.f32.xlu1 %v4290_v19 }
 0xbcc   :  { %4294 = vadd.xlane.f32.xlu0 %v4293_v34 }
 0xbce   :  { %4315 = vadd.xlane.f32.xlu1 %v4314_v59 }
 0xbd0   :  { %4318 = vadd.xlane.f32.xlu0 %v4317_v15 }
 0xbd2   :  { %4339 = vadd.xlane.f32.xlu1 %v4338_v39 }
 0xbd4   :  { %4342 = vadd.xlane.f32.xlu0 %v4341_v52 }
 0xbe3   :  { %4584 = vperm.xlu1 %5432, %v4201_v20  }
 0xbea   :  { %4579 = vperm.xlu0 %5431, %v4200_v53  }
 0xc22   :  { %v4250_v29 = vpop.xlane.xlu1 %4249 }
 0xc24   :  { %v4253_v30 = vpop.xlane.xlu0 %4252 }
 0xc27   :  { %v4274_v54 = vpop.xlane.xlu1 %4273 }
 0xc28   :  { %v4344_v41 = vsel %vm726_vm1, %v4250_v29, %v4274_v54 }
 0xc29   :  { %v4277_v60 = vpop.xlane.xlu0 %4276 }
 0xc2a   :  { %v4345_v23 = vsel %vm726_vm1, %v4253_v30, %v4277_v60 }
 0xc2b   :  { %v4298_v44 = vpop.xlane.xlu1 %4297 }
 0xc2c   :  { %v4352_v27 = vsel %vm735_vm2, %v4344_v41, %v4298_v44 }
 0xc2d   :  { %v4301_v50 = vpop.xlane.xlu0 %4300 }
 0xc2e   :  { %v4353_v22 = vsel %vm735_vm2, %v4345_v23, %v4301_v50 }
 0xc2f   :  { %v4322_v37 = vpop.xlane.xlu1 %4321 }
 0xc30   :  { %v4360_v12 = vsel %vm744_vm3, %v4352_v27, %v4322_v37 }
 0xc31   :  { %v4325_v8 = vpop.xlane.xlu0 %4324 }
 0xc32   :  { %v4361_v3 = vsel %vm744_vm3, %v4353_v22, %v4325_v8 }
 0xc33   :  { %v5257_v26 = vpack.c.bf16 %v4361_v3, %v4360_v12  ;;  %v4256_v11 = vpop.xlane.xlu1 %4255 }
 0xc35   :  { %v4259_v58 = vpop.xlane.xlu0 %4258  ;;  %5258 = vmatprep.subr.bf16.mxu0 %v5257_v26  ;;  %5273 = vmatprep.subr.bf16.mxu1 %v5257_v26 }
 0xc36   :  { %5260 = vmatpush3.bf16.msra.mxu0 %v5257_v26  ;;  %5277 = vmatpush3.bf16.msra.mxu1 %v5257_v26 }
 0xc37   :  { %v4280_v59 = vpop.xlane.xlu1 %4279 }
 0xc38   :  { %v4346_v56 = vsel %vm726_vm1, %v4256_v11, %v4280_v59 }
 0xc39   :  { %v4283_v42 = vpop.xlane.xlu0 %4282 }
 0xc3a   :  { %v4347_v18 = vsel %vm726_vm1, %v4259_v58, %v4283_v42 }
 0xc3b   :  { %v4304_v15 = vpop.xlane.xlu1 %4303 }
 0xc3c   :  { %v4354_v34 = vsel %vm735_vm2, %v4346_v56, %v4304_v15 }
 0xc3d   :  { %v4307_v1 = vpop.xlane.xlu0 %4306 }
 0xc3e   :  { %v4355_v39 = vsel %vm735_vm2, %v4347_v18, %v4307_v1 }
 0xc3f   :  { %v4328_v19 = vpop.xlane.xlu1 %4327 }
 0xc40   :  { %v4362_v9 = vsel %vm744_vm3, %v4354_v34, %v4328_v19 }
 0xc41   :  { %v4331_v52 = vpop.xlane.xlu0 %4330 }
 0xc42   :  { %v4363_v48 = vsel %vm744_vm3, %v4355_v39, %v4331_v52 }
 0xc43   :  { %v5261_v20 = vpack.c.bf16 %v4363_v48, %v4362_v9  ;;  %v4262_v53 = vpop.xlane.xlu1 %4261 }
 0xc45   :  { %v4265_v29 = vpop.xlane.xlu0 %4264  ;;  %5262 = vmatprep.subr.bf16.mxu0 %v5261_v20  ;;  %5274 = vmatprep.subr.bf16.mxu1 %v5261_v20 }
 0xc46   :  { %5264 = vmatpush3.bf16.msra.mxu0 %v5261_v20  ;;  %5278 = vmatpush3.bf16.msra.mxu1 %v5261_v20  ;;  %v61_v20 = vld [vmem:[%s10449_s12 + $0x8] sm:$0xff] }
 0xc47   :  { %v4286_v30 = vpop.xlane.xlu1 %4285 }
 0xc48   :  { %v4348_v37 = vsel %vm726_vm1, %v4262_v53, %v4286_v30  ;;  %v65_v53 = vld [vmem:[%s10449_s12 + $0x28] sm:$0xff]  ;;  %v62_v30 = vld [vmem:[%s10449_s12 + $0x10] sm:$0xff] }
 0xc49   :  { %v4289_v54 = vpop.xlane.xlu0 %4288 }
 0xc4a   :  { %v4349_v41 = vsel %vm726_vm1, %v4265_v29, %v4289_v54  ;;  %v66_v29 = vld [vmem:[%s10449_s12 + $0x30] sm:$0xff]  ;;  %v67_v54 = vld [vmem:[%s10449_s12 + $0x38] sm:$0xff] }
 0xc4b   :  { %v4310_v60 = vpop.xlane.xlu1 %4309 }
 0xc4c   :  { %v4356_v23 = vsel %vm735_vm2, %v4348_v37, %v4310_v60  ;;  %v63_v60 = vld [vmem:[%s10449_s12 + $0x18] sm:$0xff] }
 0xc4d   :  { %v4313_v44 = vpop.xlane.xlu0 %4312 }
 0xc4e   :  { %v4357_v27 = vsel %vm735_vm2, %v4349_v41, %v4313_v44 }
 0xc4f   :  { %v4334_v50 = vpop.xlane.xlu1 %4333 }
 0xc50   :  { %v4364_v8 = vsel %vm744_vm3, %v4356_v23, %v4334_v50 }
 0xc51   :  { %v4337_v22 = vpop.xlane.xlu0 %4336 }
 0xc52   :  { %v4365_v12 = vsel %vm744_vm3, %v4357_v27, %v4337_v22 }
 0xc53   :  { %v5265_v3 = vpack.c.bf16 %v4365_v12, %v4364_v8  ;;  %v4268_v26 = vpop.xlane.xlu1 %4267 }
 0xc55   :  { %v4271_v11 = vpop.xlane.xlu0 %4270  ;;  %5266 = vmatprep.subr.bf16.mxu0 %v5265_v3  ;;  %5275 = vmatprep.subr.bf16.mxu1 %v5265_v3 }
 0xc56   :  { %5268 = vmatpush3.bf16.msra.mxu0 %v5265_v3  ;;  %5279 = vmatpush3.bf16.msra.mxu1 %v5265_v3 }
 0xc57   :  { %v4292_v58 = vpop.xlane.xlu1 %4291 }
 0xc58   :  { %v4350_v19 = vsel %vm726_vm1, %v4268_v26, %v4292_v58 }
 0xc59   :  { %v4295_v59 = vpop.xlane.xlu0 %4294 }
 0xc5a   :  { %v4351_v56 = vsel %vm726_vm1, %v4271_v11, %v4295_v59 }
 0xc5b   :  { %v4316_v42 = vpop.xlane.xlu1 %4315 }
 0xc5c   :  { %v4358_v18 = vsel %vm735_vm2, %v4350_v19, %v4316_v42 }
 0xc5d   :  { %v4319_v15 = vpop.xlane.xlu0 %4318 }
 0xc5e   :  { %v4359_v34 = vsel %vm735_vm2, %v4351_v56, %v4319_v15 }
 0xc5f   :  { %v4340_v1 = vpop.xlane.xlu1 %4339 }
 0xc60   :  { %v4366_v52 = vsel %vm744_vm3, %v4358_v18, %v4340_v1 }
 0xc61   :  { %v4343_v39 = vpop.xlane.xlu0 %4342 }
 0xc62   :  { %v4367_v9 = vsel %vm744_vm3, %v4359_v34, %v4343_v39 }
 0xc63   :  { %v5269_v48 = vpack.c.bf16 %v4367_v9, %v4366_v52  ;;  %v4203_v52 = vld [vmem:[%s10445_s8 + $0x18] sm:$0xff] }
 0xc65   :  { %5270 = vmatprep.subr.bf16.mxu0 %v5269_v48  ;;  %5276 = vmatprep.subr.bf16.mxu1 %v5269_v48 }
 0xc66   :  { %5272 = vmatpush3.bf16.msra.mxu0 %v5269_v48  ;;  %5280 = vmatpush3.bf16.msra.mxu1 %v5269_v48 }
 0xc69   :  { %5214 = vmatmul.mubr.msk.f32.vlgmr.msra.gmra.mrb[40].mxu0 %vm753_vm0, %v61_v20  ;;  %5220 = vmatmul.mubr.msk.f32.vlgmr.msra.gmra.mrb[40].mxu1 %vm753_vm0, %v65_v53  ;;  %v4205_v20 = vld [vmem:[%s10445_s8 + $0x28] sm:$0xff]  ;;  %v4207_v53 = vld [vmem:[%s10445_s8 + $0x38] sm:$0xff] }
 0xc6a   :  { %5222 = vmatprep.mubr.msk.f32.mxu1 %vm753_vm0, %v66_v29  ;;  %5216 = vmatprep.mubr.msk.f32.mxu0 %vm753_vm0, %v62_v30  ;;  %v4202_v29 = vld [vmem:[%s10445_s8 + $0x10] sm:$0xff]  ;;  %v4209_v30 = vld [vmem:[%s10446_s9 + $0x8] sm:$0xff] }
 0xc6d   :  { %5223 = vmatmul.mubr.msk.f32.gmra.mrb[42].mxu1 %vm753_vm0, %v67_v54  ;;  %5217 = vmatmul.mubr.msk.f32.gmra.mrb[42].mxu0 %vm753_vm0, %v63_v60  ;;  %v4204_v54 = vld [vmem:[%s10445_s8 + $0x20] sm:$0xff]  ;;  %v4211_v60 = vld [vmem:[%s10446_s9 + $0x18] sm:$0xff] }
 0xd3c   :  { %v5215_v44 = vpop.f32.mrb[40].mxu0  ;;  %v5221_v50 = vpop.f32.mrb[40].mxu1 }
 0xd3d   :  { %v10210_v37 = vmul.f32 0.0009765625, %v5215_v44  ;;  %v10212_v41 = vmul.f32 0.0009765625, %v5221_v50  ;;  %v4458_v23 = vpop.f32.mrb[41].mxu0  ;;  %v4478_v27 = vpop.f32.mrb[41].mxu1  ;;  %v4206_v44 = vld [vmem:[%s10445_s8 + $0x30] sm:$0xff]  ;;  %v4213_v50 = vld [vmem:[%s10446_s9 + $0x28] sm:$0xff] }
 0xd3e   :  { %v10214_v22 = vmul.f32 0.0009765625, %v4478_v27  ;;  %v10220_v3 = vmul.f32 0.0009765625, %v4458_v23  ;;  %v4208_v23 = vld [vmem:[%s10446_s9] sm:$0xff]  ;;  %v4215_v27 = vld [vmem:[%s10446_s9 + $0x38] sm:$0xff] }
 0xd3f   :  { %v4506_v8 = vmul.f32 %v10210_v37, %v10210_v37  ;;  %v4510_v12 = vmul.f32 %v10212_v41, %v10212_v41 }
 0xd40   :  { %v5224_v26 = vpop.f32.mrb[42].mxu1  ;;  %v5218_v11 = vpop.f32.mrb[42].mxu0  ;;  %v4509_v58 = vmul.f32 %v10214_v22, %v10214_v22  ;;  %v4505_v19 = vmul.f32 %v10220_v3, %v10220_v3 }
 0xd41   :  { %4531 = vrot.lane.b32.xlu1 %v4510_v12, %s5580_s17  ;;  %4523 = vrot.lane.b32.xlu0 %v4506_v8, %s5580_s17  ;;  %v10226_v59 = vmul.f32 0.0009765625, %v5218_v11  ;;  %v4488_v42 = vpop.f32.mrb[43].mxu1  ;;  %v4468_v15 = vpop.f32.mrb[43].mxu0  ;;  %v10238_v34 = vmul.f32 0.0009765625, %v5224_v26  ;;  %v4210_v8 = vld [vmem:[%s10446_s9 + $0x10] sm:$0xff]  ;;  %v4212_v12 = vld [vmem:[%s10446_s9 + $0x20] sm:$0xff] }
 0xd42   :  { %v10228_v1 = vmul.f32 0.0009765625, %v4488_v42  ;;  %v10242_v39 = vmul.f32 0.0009765625, %v4468_v15  ;;  %v11470_v26 = vmov 3   ;;  %v4214_v11 = vld [vmem:[%s10446_s9 + $0x30] sm:$0xff]  ;;  %v4580_v42 = vpop.permute.xlu0 %4579  ;;  %v4585_v15 = vpop.permute.xlu1 %4584  ;;  %s5590_s9 = smov [#allocation2]  }
 0xd43   :  { %v4508_v56 = vmul.f32 %v10226_v59, %v10226_v59  ;;  %v4512_v9 = vmul.f32 %v10238_v34, %v10238_v34 }
 0xd44   :  { %v4511_v18 = vmul.f32 %v10228_v1, %v10228_v1  ;;  %v4507_v48 = vmul.f32 %v10242_v39, %v10242_v39 }
 0xd45   :  { %4529 = vrot.lane.b32.xlu0 %v4509_v58, %s5580_s17  ;;  %4521 = vrot.lane.b32.xlu1 %v4505_v19, %s5580_s17  ;;  %v11471_v58 = vmov 2  }
 0xd49   :  { %4533 = vrot.lane.b32.xlu0 %v4511_v18, %s5580_s17  ;;  %4527 = vrot.lane.b32.xlu1 %v4508_v56, %s5580_s17 }
 0xd4d   :  { %4594 = vperm.xlu0 %5431, %v4203_v52   ;;  %4535 = vrot.lane.b32.xlu1 %v4512_v9, %s5580_s17 }
 0xd51   :  { %4604 = vperm.xlu0 %5431, %v4205_v20   ;;  %4525 = vrot.lane.b32.xlu1 %v4507_v48, %s5580_s17 }
 0xd55   :  { %4614 = vperm.xlu0 %5431, %v4207_v53   ;;  %4589 = vperm.xlu1 %5432, %v4202_v29  }
 0xd59   :  { %4672 = vperm.xlu0 %5431, %v4209_v30   ;;  %4599 = vperm.xlu1 %5432, %v4204_v54  }
 0xd5d   :  { %4682 = vperm.xlu0 %5431, %v4211_v60   ;;  %4609 = vperm.xlu1 %5432, %v4206_v44  }
 0xd61   :  { %4692 = vperm.xlu0 %5431, %v4213_v50   ;;  %4667 = vperm.xlu1 %5432, %v4208_v23  }
 0xd65   :  { %4702 = vperm.xlu0 %5431, %v4215_v27   ;;  %4677 = vperm.xlu1 %5432, %v4210_v8  }
 0xd69   :  { %4687 = vperm.xlu1 %5432, %v4212_v12   ;;  %5435 = vset.pattern.permute.xlu0 %v11470_v26 }
 0xd6d   :  { %4697 = vperm.xlu1 %5432, %v4214_v11  }
 0xd71   :  { %5433 = vset.pattern.permute.xlu1 %v11471_v58 }
 0xdb3   :  { %v4524_v19 = vpop.permute.xlu0 %4523  ;;  %v4532_v56 = vpop.permute.xlu1 %4531 }
 0xdb4   :  { %v4546_v18 = vsub.f32 %v10210_v37, %v4524_v19  ;;  %v4550_v20 = vsub.f32 %v10212_v41, %v4532_v56 }
 0xdb6   :  { %v4554_v52 = vmax.f32 %v4546_v18, 0.0  ;;  %v4558_v54 = vmax.f32 %v4550_v20, 0.0 }
 0xdb7   :  { %v4522_v9 = vpop.permute.xlu1 %4521  ;;  %v4530_v60 = vpop.permute.xlu0 %4529 }
 0xdb8   :  { %v4562_v48 = vadd.f32 1e-05, %v4554_v52  ;;  %v4545_v53 = vsub.f32 %v10220_v3, %v4522_v9  ;;  %v4549_v27 = vsub.f32 %v10214_v22, %v4530_v60  ;;  %v4566_v8 = vadd.f32 1e-05, %v4558_v54 }
 0xdba   :  { %5526 = vrsqrt.f32 %v4562_v48  ;;  %v4553_v44 = vmax.f32 %v4545_v53, 0.0  ;;  %v4557_v52 = vmax.f32 %v4549_v27, 0.0 }
 0xdbb   :  { %v4528_v29 = vpop.permute.xlu1 %4527  ;;  %5528 = vrsqrt.f32 %v4566_v8  ;;  %v4534_v48 = vpop.permute.xlu0 %4533 }
 0xdbc   :  { %v4548_v30 = vsub.f32 %v10226_v59, %v4528_v29  ;;  %v4561_v11 = vadd.f32 1e-05, %v4553_v44  ;;  %v4565_v20 = vadd.f32 1e-05, %v4557_v52  ;;  %v4551_v8 = vsub.f32 %v10228_v1, %v4534_v48 }
 0xdbe   :  { %v4556_v23 = vmax.f32 %v4548_v30, 0.0  ;;  %5530 = vrsqrt.f32 %v4561_v11  ;;  %v4559_v52 = vmax.f32 %v4551_v8, 0.0 }
 0xdbf   :  { %v4536_v50 = vpop.permute.xlu1 %4535 }
 0xdc0   :  { %v4552_v12 = vsub.f32 %v10238_v34, %v4536_v50  ;;  %v4564_v18 = vadd.f32 1e-05, %v4556_v23  ;;  %v4567_v48 = vadd.f32 1e-05, %v4559_v52 }
 0xdc2   :  { %v4560_v9 = vmax.f32 %v4552_v12, 0.0  ;;  %5532 = vrsqrt.f32 %v4564_v18 }
 0xdc3   :  { %v4526_v53 = vpop.permute.xlu1 %4525  ;;  %5534 = vrsqrt.f32 %v4565_v20 }
 0xdc4   :  { %v5527_v19 = vpop.eup %5526  ;;  %v4568_v29 = vadd.f32 1e-05, %v4560_v9  ;;  %v4547_v30 = vsub.f32 %v10242_v39, %v4526_v53 }
 0xdc5   :  { %v4618_v56 = vmul.f32 %v5527_v19, %v4585_v15  ;;  %v5529_v60 = vpop.eup %5528 }
 0xdc6   :  { %5536 = vrsqrt.f32 %v4568_v29  ;;  %v4555_v44 = vmax.f32 %v4547_v30, 0.0 }
 0xdc7   :  { %4635 = vrot.lane.b32.xlu0 %v4618_v56, %s5581_s18 }
 0xdc8   :  { %v5531_v23 = vpop.eup %5530  ;;  %v4563_v12 = vadd.f32 1e-05, %v4555_v44 }
 0xdc9   :  { %v4617_v18 = vmul.f32 %v5531_v23, %v4580_v42 }
 0xdca   :  { %5538 = vrsqrt.f32 %v4563_v12 }
 0xdcb   :  { %5540 = vrsqrt.f32 %v4567_v48 }
 0xdcc   :  { %v4595_v54 = vpop.permute.xlu0 %4594  ;;  %v5533_v27 = vpop.eup %5532 }
 0xdcd   :  { %v4620_v19 = vmul.f32 %v5533_v27, %v4595_v54  ;;  %v5535_v53 = vpop.eup %5534 }
 0xdd0   :  { %v4605_v50 = vpop.permute.xlu0 %4604  ;;  %v5537_v20 = vpop.eup %5536 }
 0xdd1   :  { %v4622_v15 = vmul.f32 %v5529_v60, %v4605_v50 }
 0xdd3   :  { %4734 = vperm.xlu1 %5433, %v4622_v15   ;;  %4643 = vrot.lane.b32.xlu0 %v4622_v15, %s5581_s18 }
 0xdd4   :  { %v4590_v11 = vpop.permute.xlu1 %4589  ;;  %v4615_v9 = vpop.permute.xlu0 %4614 }
 0xdd5   :  { %v4624_v30 = vmul.f32 %v5537_v20, %v4615_v9  ;;  %v5539_v42 = vpop.eup %5538  ;;  %v11472_v9 = vmov 1  }
 0xdd6   :  { %v4619_v54 = vmul.f32 %v5539_v42, %v4590_v11  ;;  %v5541_v50 = vpop.eup %5540 }
 0xdd7   :  { %4633 = vrot.lane.b32.xlu1 %v4617_v18, %s5581_s18  ;;  %4639 = vrot.lane.b32.xlu0 %v4620_v19, %s5581_s18 }
 0xdd8   :  { %v4600_v29 = vpop.permute.xlu1 %4599 }
 0xdd9   :  { %v4621_v60 = vmul.f32 %v5535_v53, %v4600_v29 }
 0xddb   :  { %4647 = vrot.lane.b32.xlu0 %v4624_v30, %s5581_s18  ;;  %4641 = vrot.lane.b32.xlu1 %v4621_v60, %s5581_s18 }
 0xddc   :  { %v4610_v44 = vpop.permute.xlu1 %4609 }
 0xddd   :  { %v4623_v23 = vmul.f32 %v5541_v50, %v4610_v44 }
 0xddf   :  { %4838 = vperm.xlu0 %5435, %v4618_v56   ;;  %4714 = vperm.xlu1 %5433, %v4617_v18  }
 0xde3   :  { %4850 = vperm.xlu0 %5435, %v4621_v60   ;;  %4726 = vperm.xlu1 %5433, %v4620_v19  }
 0xde7   :  { %5436 = vset.pattern.permute.xlu0 %v11471_v58  ;;  %4637 = vrot.lane.b32.xlu1 %v4619_v54, %s5581_s18 }
 0xde8   :  { %4718 = vperm.xlu0 %5436, %v4618_v56   ;;  %v4673_v56 = vpop.permute.xlu0 %4672 }
 0xdeb   :  { %4645 = vrot.lane.b32.xlu1 %v4623_v23, %s5581_s18  ;;  %s4982_s18 = sshll.u32 %s5590_s9, 4  ;;  %s4983_s18 = int_to_ptr.vmem [resolvable:$true] %s4982_s18 }
 0xdec   :  { %4730 = vperm.xlu0 %5436, %v4621_v60   ;;  %v4683_v27 = vpop.permute.xlu0 %4682  ;;  %s5552_s12 = scalar_lea.vmem %s4983_s18, 4096  ;;  %p5557_p1 = scmp.lt.s32.totalorder %s4983_s18, %s4983_s18 }
 0xded   :  { %p5553_p0 = scmp.ne.s32.totalorder %s4983_s18, %s5552_s12  ;;  %p5558_p2 = scmp.lt.s32.totalorder %s5552_s12, %s5552_s12 }
 0xdef   :  { %4742 = vperm.xlu1 %5433, %v4624_v30   ;;  %p5559_p3 = por %p5558_p2, %p5557_p1 }
 0xdf0   :  { %4738 = vperm.xlu0 %5436, %v4623_v23   ;;  %v4693_v8 = vpop.permute.xlu0 %4692 }
 0xdf1   :  { %p5560_p4 = pnand %p5559_p3, %p5553_p0 }
 0xdf3   :  { %5434 = vset.pattern.permute.xlu1 %v11470_v26 }
 0xdf4   :  { %5439 = vset.pattern.permute.xlu0 %v11470_v26  ;;  %4834 = vperm.xlu1 %5434, %v4617_v18   ;;  %v4703_v12 = vpop.permute.xlu0 %4702 }
 0xdf5   :  { %4858 = vperm.xlu0 %5439, %v4623_v23  }
 0xdf8   :  { %4846 = vperm.xlu1 %5434, %v4620_v19   ;;  %v4668_v19 = vpop.permute.xlu1 %4667 }
 0xdf9   :  { %5441 = vset.pattern.permute.xlu0 %v11469_v49 }
 0xdfc   :  { %4854 = vperm.xlu1 %5434, %v4622_v15   ;;  %v4678_v15 = vpop.permute.xlu1 %4677 }
 0xe00   :  { %4862 = vperm.xlu1 %5434, %v4624_v30  }
 0xe04   :  { %5437 = vset.pattern.permute.xlu1 %v11471_v58 }
 0xe05   :  { %4722 = vperm.xlu1 %5437, %v4619_v54  }
 0xe09   :  { %5438 = vset.pattern.permute.xlu1 %v11470_v26  ;;  %v4688_v26 = vpop.permute.xlu1 %4687 }
 0xe0a   :  { %4842 = vperm.xlu1 %5438, %v4619_v54  }
 0xe0d   :  { %v4698_v29 = vpop.permute.xlu1 %4697 }
 0xe0e   :  { %5440 = vset.pattern.permute.xlu1 %v11469_v49 }
 0xe39   :  { %v4636_v11 = vpop.permute.xlu0 %4635 }
 0xe3a   :  { %v4658_v18 = vmul.f32 %v4636_v11, %v10210_v37 }
 0xe3c   :  { %v4706_v52 = vsub.f32 %v4673_v56, %v4658_v18 }
 0xe3e   :  { %4768 = vperm.xlu1 %5440, %v4706_v52  }
 0xe42   :  { %5443 = vset.pattern.permute.xlu1 %v11472_v9 }
 0xe45   :  { %v4644_v58 = vpop.permute.xlu0 %4643 }
 0xe46   :  { %v4662_v53 = vmul.f32 %v4644_v58, %v10212_v41 }
 0xe48   :  { %v4710_v20 = vsub.f32 %v4693_v8, %v4662_v53 }
 0xe49   :  { %v4640_v44 = vpop.permute.xlu0 %4639 }
 0xe4a   :  { %4788 = vperm.xlu0 %5441, %v4710_v20   ;;  %4902 = vperm.xlu1 %5443, %v4710_v20   ;;  %v4660_v8 = vmul.f32 %v4640_v44, %v10226_v59 }
 0xe4c   :  { %v4708_v18 = vsub.f32 %v4683_v27, %v4660_v8 }
 0xe4e   :  { %5442 = vset.pattern.permute.xlu0 %v11472_v9  ;;  %5445 = vset.pattern.permute.xlu1 %v11469_v49 }
 0xe4f   :  { %4886 = vperm.xlu0 %5442, %v4706_v52  }
 0xe52   :  { %v4735_v37 = vpop.permute.xlu1 %4734 }
 0xe53   :  { %v10323_v30 = vmul.f32 %v4735_v37, %v10078_v31  ;;  %v10326_v60 = vmul.f32 %v4735_v37, %v10082_v25  ;;  %5444 = vset.pattern.permute.xlu0 %v11469_v49 }
 0xe56   :  { %v4634_v41 = vpop.permute.xlu1 %4633 }
 0xe57   :  { %v4657_v48 = vmul.f32 %v4634_v41, %v10220_v3  ;;  %v4648_v3 = vpop.permute.xlu0 %4647 }
 0xe58   :  { %v4664_v59 = vmul.f32 %v4648_v3, %v10238_v34 }
 0xe59   :  { %v4705_v42 = vsub.f32 %v4668_v19, %v4657_v48 }
 0xe5a   :  { %v4642_v54 = vpop.permute.xlu1 %4641 }
 0xe5b   :  { %v4661_v50 = vmul.f32 %v4642_v54, %v10214_v22  ;;  %4763 = vperm.xlu0 %5444, %v4705_v42  }
 0xe5d   :  { %v4709_v23 = vsub.f32 %v4688_v26, %v4661_v50 }
 0xe5e   :  { %v4715_v56 = vpop.permute.xlu1 %4714 }
 0xe5f   :  { %v10333_v31 = vmul.f32 %v4715_v56, %v9988_v36  ;;  %v10336_v25 = vmul.f32 %v4715_v56, %v9992_v28  ;;  %5447 = vset.pattern.permute.xlu0 %v11472_v9  ;;  %4783 = vperm.xlu1 %5445, %v4709_v23   ;;  %v4712_v28 = vsub.f32 %v4703_v12, %v4664_v59 }
 0xe60   :  { %4898 = vperm.xlu0 %5447, %v4709_v23  }
 0xe62   :  { %v4727_v11 = vpop.permute.xlu1 %4726 }
 0xe63   :  { %v10340_v22 = vmul.f32 %v4727_v11, %v10038_v4  ;;  %v10343_v19 = vmul.f32 %v4727_v11, %v10042_v43  ;;  %5446 = vset.pattern.permute.xlu1 %v11472_v9 }
 0xe64   :  { %5448 = vset.pattern.permute.xlu0 %v11469_v49  ;;  %4882 = vperm.xlu1 %5446, %v4705_v42  }
 0xe65   :  { %4778 = vperm.xlu0 %5448, %v4708_v18  }
 0xe66   :  { %v4638_v36 = vpop.permute.xlu1 %4637 }
 0xe67   :  { %v4659_v43 = vmul.f32 %v4638_v36, %v10242_v39 }
 0xe68   :  { %5449 = vset.pattern.permute.xlu1 %v11469_v49 }
 0xe69   :  { %4798 = vperm.xlu1 %5449, %v4712_v28   ;;  %v4707_v12 = vsub.f32 %v4678_v15, %v4659_v43 }
 0xe6a   :  { %v4646_v27 = vpop.permute.xlu1 %4645 }
 0xe6b   :  { %v4663_v4 = vmul.f32 %v4646_v27, %v10228_v1 }
 0xe6d   :  { %v4711_v52 = vsub.f32 %v4698_v29, %v4663_v4  ;;  %5450 = vset.pattern.permute.xlu1 %v11472_v9  ;;  %v4839_v29 = vpop.permute.xlu0 %4838 }
 0xe6e   :  { %v4743_v34 = vpop.permute.xlu1 %4742  ;;  %4894 = vperm.xlu1 %5450, %v4708_v18   ;;  %v4867_v43 = vmul.f32 %v4839_v29, %v10018_v14 }
 0xe6f   :  { %v10353_v58 = vmul.f32 %v4743_v34, %v10118_v7  ;;  %v10356_v53 = vmul.f32 %v4743_v34, %v10122_v63  ;;  %4793 = vperm.xlu0 %5448, %v4711_v52   ;;  %v4868_v34 = vmul.f32 %v4839_v29, %v10022_v33 }
 0xe71   :  { %v4851_v37 = vpop.permute.xlu0 %4850 }
 0xe72   :  { %5451 = vset.pattern.permute.xlu1 %v11469_v49  ;;  %v4873_v33 = vmul.f32 %v4851_v37, %v10088_v47  ;;  %v4874_v29 = vmul.f32 %v4851_v37, %v10092_v38 }
 0xe73   :  { %5453 = vset.pattern.permute.xlu0 %v11472_v9  ;;  %v10360_v1 = vpop.permute.xlu1 %4834  ;;  %4773 = vperm.xlu1 %5451, %v4707_v12  }
 0xe74   :  { %4906 = vperm.xlu0 %5453, %v4711_v52   ;;  %v4865_v47 = vmul.f32 %v10360_v1, %v10008_v35 }
 0xe75   :  { %v4719_v41 = vpop.permute.xlu0 %4718 }
 0xe76   :  { %v4748_v42 = vmul.f32 %v4719_v41, %v10002_v62 }
 0xe77   :  { %v4847_v39 = vpop.permute.xlu1 %4846  ;;  %5452 = vset.pattern.permute.xlu1 %v11472_v9 }
 0xe78   :  { %v10364_v26 = vmul.f32 %v4847_v39, %v10058_v5  ;;  %v10367_v7 = vmul.f32 %v4847_v39, %v10062_v2  ;;  %4890 = vperm.xlu1 %5452, %v4707_v12   ;;  %v4747_v2 = vmul.f32 %v4719_v41, %v9998_v21 }
 0xe79   :  { %v4731_v5 = vpop.permute.xlu0 %4730 }
 0xe7b   :  { %v4855_v63 = vpop.permute.xlu1 %4854 }
 0xe7c   :  { %4910 = vperm.xlu1 %5452, %v4712_v28   ;;  %v4875_v8 = vmul.f32 %v4855_v63, %v10098_v0  ;;  %v4876_v3 = vmul.f32 %v4855_v63, %v10102_v55 }
 0xe7f   :  { %v4863_v15 = vpop.permute.xlu1 %4862 }
 0xe80   :  { %v10370_v49 = vmul.f32 %v4863_v15, %v10138_v13  ;;  %v10373_v20 = vmul.f32 %v4863_v15, %v10142_v40  ;;  %v10381_v13 = vpop.permute.xlu0 %4738 }
 0xe84   :  { %v10375_v9 = vpop.permute.xlu1 %4722  ;;  %v10383_v56 = vpop.permute.xlu0 %4858 }
 0xe89   :  { %v10377_v48 = vpop.permute.xlu1 %4842 }
 0xebd   :  { %v4769_v54 = vpop.permute.xlu1 %4768 }
 0xebe   :  { %v4803_v44 = vadd.f32 %v4769_v54, %v4747_v2  ;;  %v4804_v50 = vadd.f32 %v4769_v54, %v4748_v42  ;;  %v4753_v2 = vmul.f32 %v4731_v5, %v10064_v17  ;;  %v4754_v42 = vmul.f32 %v4731_v5, %v10072_v32 }
 0xebf   :  { %v4866_v17 = vmul.f32 %v10360_v1, %v10012_v24 }
 0xec0   :  { %v4819_v23 = vmax.f32 %v4803_v44, 0.0  ;;  %v4820_v40 = vmax.f32 %v4804_v50, 0.0 }
 0xec2   :  { %4949 = vst [vmem:[#allocation2 + $0x20] sm:$0xff] %v4819_v23  ;;  %4950 = vst [vmem:[#allocation2 + $0x28] sm:$0xff] %v4820_v40 }
 0xec9   :  { %v4789_v11 = vpop.permute.xlu0 %4788  ;;  %v4903_v18 = vpop.permute.xlu1 %4902 }
 0xeca   :  { %v4811_v21 = vadd.f32 %v4789_v11, %v10323_v30  ;;  %v4812_v62 = vadd.f32 %v4789_v11, %v10326_v60  ;;  %v4923_v59 = vadd.f32 %v4903_v18, %v4875_v8  ;;  %v4924_v36 = vadd.f32 %v4903_v18, %v4876_v3 }
 0xecc   :  { %v4827_v28 = vmax.f32 %v4811_v21, 0.0  ;;  %v4828_v27 = vmax.f32 %v4812_v62, 0.0  ;;  %v4939_v4 = vmax.f32 %v4923_v59, 0.0  ;;  %v4940_v52 = vmax.f32 %v4924_v36, 0.0 }
 0xece   :  { %4965 = vst [vmem:[#allocation2 + $0xa0] sm:$0xff] %v4827_v28  ;;  %4966 = vst [vmem:[#allocation2 + $0xa8] sm:$0xff] %v4828_v27  ;;  %v4887_v0 = vpop.permute.xlu0 %4886 }
 0xecf   :  { %4967 = vst [vmem:[#allocation2 + $0xb0] sm:$0xff] %v4939_v4  ;;  %4968 = vst [vmem:[#allocation2 + $0xb8] sm:$0xff] %v4940_v52  ;;  %v4915_v55 = vadd.f32 %v4887_v0, %v4867_v43  ;;  %v4916_v12 = vadd.f32 %v4887_v0, %v4868_v34 }
 0xed1   :  { %v4931_v30 = vmax.f32 %v4915_v55, 0.0  ;;  %v4932_v39 = vmax.f32 %v4916_v12, 0.0 }
 0xed3   :  { %4951 = vst [vmem:[#allocation2 + $0x30] sm:$0xff] %v4931_v30  ;;  %4952 = vst [vmem:[#allocation2 + $0x38] sm:$0xff] %v4932_v39 }
 0xeda   :  { %v4764_v60 = vpop.permute.xlu0 %4763 }
 0xedb   :  { %v4801_v63 = vadd.f32 %v4764_v60, %v10333_v31  ;;  %v4802_v15 = vadd.f32 %v4764_v60, %v10336_v25 }
 0xedd   :  { %v4817_v41 = vmax.f32 %v4801_v63, 0.0  ;;  %v4818_v14 = vmax.f32 %v4802_v15, 0.0 }
 0xede   :  { %v4784_v54 = vpop.permute.xlu1 %4783 }
 0xedf   :  { %4945 = vst [vmem:[#allocation2] sm:$0xff] %v4817_v41  ;;  %4946 = vst [vmem:[#allocation2 + $0x8] sm:$0xff] %v4818_v14  ;;  %v4899_v44 = vpop.permute.xlu0 %4898  ;;  %v4809_v50 = vadd.f32 %v4784_v54, %v4753_v2  ;;  %v4810_v23 = vadd.f32 %v4784_v54, %v4754_v42 }
 0xee0   :  { %v4921_v40 = vadd.f32 %v4899_v44, %v4873_v33  ;;  %v4922_v31 = vadd.f32 %v4899_v44, %v4874_v29 }
 0xee1   :  { %v4825_v8 = vmax.f32 %v4809_v50, 0.0  ;;  %v4826_v25 = vmax.f32 %v4810_v23, 0.0 }
 0xee2   :  { %v4937_v3 = vmax.f32 %v4921_v40, 0.0  ;;  %v4938_v11 = vmax.f32 %v4922_v31, 0.0 }
 0xee3   :  { %4961 = vst [vmem:[#allocation2 + $0x80] sm:$0xff] %v4825_v8  ;;  %4962 = vst [vmem:[#allocation2 + $0x88] sm:$0xff] %v4826_v25  ;;  %v4883_v32 = vpop.permute.xlu1 %4882 }
 0xee4   :  { %4963 = vst [vmem:[#allocation2 + $0x90] sm:$0xff] %v4937_v3  ;;  %4964 = vst [vmem:[#allocation2 + $0x98] sm:$0xff] %v4938_v11  ;;  %v4779_v38 = vpop.permute.xlu0 %4778  ;;  %v4913_v37 = vadd.f32 %v4883_v32, %v4865_v47  ;;  %v4914_v5 = vadd.f32 %v4883_v32, %v4866_v17 }
 0xee5   :  { %v4807_v18 = vadd.f32 %v4779_v38, %v10340_v22  ;;  %v4808_v21 = vadd.f32 %v4779_v38, %v10343_v19  ;;  %v4757_v22 = vmul.f32 %v10381_v13, %v10104_v57  ;;  %v4758_v19 = vmul.f32 %v10381_v13, %v10112_v46 }
 0xee6   :  { %v4929_v62 = vmax.f32 %v4913_v37, 0.0  ;;  %v4930_v59 = vmax.f32 %v4914_v5, 0.0  ;;  %v4877_v57 = vmul.f32 %v10383_v56, %v10128_v45  ;;  %v4878_v46 = vmul.f32 %v10383_v56, %v10132_v10 }
 0xee7   :  { %v4823_v36 = vmax.f32 %v4807_v18, 0.0  ;;  %v4824_v28 = vmax.f32 %v4808_v21, 0.0  ;;  %v4749_v13 = vmul.f32 %v10375_v9, %v10024_v61  ;;  %v4869_v61 = vmul.f32 %v10377_v48, %v10048_v51 }
 0xee8   :  { %4947 = vst [vmem:[#allocation2 + $0x10] sm:$0xff] %v4929_v62  ;;  %4948 = vst [vmem:[#allocation2 + $0x18] sm:$0xff] %v4930_v59  ;;  %v4799_v35 = vpop.permute.xlu1 %4798 }
 0xee9   :  { %4957 = vst [vmem:[#allocation2 + $0x60] sm:$0xff] %v4823_v36  ;;  %4958 = vst [vmem:[#allocation2 + $0x68] sm:$0xff] %v4824_v28  ;;  %v4815_v24 = vadd.f32 %v4799_v35, %v10353_v58  ;;  %v4816_v1 = vadd.f32 %v4799_v35, %v10356_v53 }
 0xeeb   :  { %v4831_v27 = vmax.f32 %v4815_v24, 0.0  ;;  %v4832_v4 = vmax.f32 %v4816_v1, 0.0 }
 0xeed   :  { %4973 = vst [vmem:[#allocation2 + $0xe0] sm:$0xff] %v4831_v27  ;;  %4974 = vst [vmem:[#allocation2 + $0xe8] sm:$0xff] %v4832_v4  ;;  %v4895_v52 = vpop.permute.xlu1 %4894 }
 0xeee   :  { %v4794_v43 = vpop.permute.xlu0 %4793  ;;  %v4919_v34 = vadd.f32 %v4895_v52, %v10364_v26  ;;  %v4920_v0 = vadd.f32 %v4895_v52, %v10367_v7  ;;  %v4750_v26 = vmul.f32 %v10375_v9, %v10032_v16  ;;  %v4870_v16 = vmul.f32 %v10377_v48, %v10052_v6 }
 0xeef   :  { %v4813_v55 = vadd.f32 %v4794_v43, %v4757_v22  ;;  %v4814_v58 = vadd.f32 %v4794_v43, %v4758_v19 }
 0xef0   :  { %v4935_v12 = vmax.f32 %v4919_v34, 0.0  ;;  %v4936_v53 = vmax.f32 %v4920_v0, 0.0 }
 0xef1   :  { %v4829_v30 = vmax.f32 %v4813_v55, 0.0  ;;  %v4830_v39 = vmax.f32 %v4814_v58, 0.0 }
 0xef2   :  { %4959 = vst [vmem:[#allocation2 + $0x70] sm:$0xff] %v4935_v12  ;;  %4960 = vst [vmem:[#allocation2 + $0x78] sm:$0xff] %v4936_v53  ;;  %v4774_v7 = vpop.permute.xlu1 %4773 }
 0xef3   :  { %4969 = vst [vmem:[#allocation2 + $0xc0] sm:$0xff] %v4829_v30  ;;  %4970 = vst [vmem:[#allocation2 + $0xc8] sm:$0xff] %v4830_v39  ;;  %v4907_v60 = vpop.permute.xlu0 %4906  ;;  %v4805_v63 = vadd.f32 %v4774_v7, %v4749_v13  ;;  %v4806_v15 = vadd.f32 %v4774_v7, %v4750_v26 }
 0xef4   :  { %v4925_v41 = vadd.f32 %v4907_v60, %v4877_v57  ;;  %v4926_v14 = vadd.f32 %v4907_v60, %v4878_v46 }
 0xef5   :  { %v4821_v45 = vmax.f32 %v4805_v63, 0.0  ;;  %v4822_v33 = vmax.f32 %v4806_v15, 0.0 }
 0xef6   :  { %v4941_v29 = vmax.f32 %v4925_v41, 0.0  ;;  %v4942_v10 = vmax.f32 %v4926_v14, 0.0 }
 0xef7   :  { %4953 = vst [vmem:[#allocation2 + $0x40] sm:$0xff] %v4821_v45  ;;  %4954 = vst [vmem:[#allocation2 + $0x48] sm:$0xff] %v4822_v33  ;;  %v4891_v9 = vpop.permute.xlu1 %4890 }
 0xef8   :  { %4971 = vst [vmem:[#allocation2 + $0xd0] sm:$0xff] %v4941_v29  ;;  %4972 = vst [vmem:[#allocation2 + $0xd8] sm:$0xff] %v4942_v10  ;;  %v4917_v56 = vadd.f32 %v4891_v9, %v4869_v61  ;;  %v4918_v2 = vadd.f32 %v4891_v9, %v4870_v16 }
 0xefa   :  { %v4933_v42 = vmax.f32 %v4917_v56, 0.0  ;;  %v4934_v54 = vmax.f32 %v4918_v2, 0.0 }
 0xefb   :  { %v4911_v44 = vpop.permute.xlu1 %4910 }
 0xefc   :  { %4955 = vst [vmem:[#allocation2 + $0x50] sm:$0xff] %v4933_v42  ;;  %4956 = vst [vmem:[#allocation2 + $0x58] sm:$0xff] %v4934_v54  ;;  %v4927_v50 = vadd.f32 %v4911_v44, %v10370_v49  ;;  %v4928_v51 = vadd.f32 %v4911_v44, %v10373_v20 }
 0xefe   :  { %v4943_v23 = vmax.f32 %v4927_v50, 0.0  ;;  %v4944_v6 = vmax.f32 %v4928_v51, 0.0 }
 0xf00   :  { %4975 = vst [vmem:[#allocation2 + $0xf0] sm:$0xff] %v4943_v23  ;;  %4976 = vst [vmem:[#allocation2 + $0xf8] sm:$0xff] %v4944_v6 }
 0xf01   :  { %5563 = shalt.err (!%p5560_p4)
}
 0xf02   :  { %s5564_s29 = scalar_lea.hbm %s10450_s13, 4096 }
 0xf03   :  { %p5565_p5 = scmp.ne.s32.totalorder %s10450_s13, %s5564_s29  ;;  %p5568_p6 = scmp.lt.u32.totalorder %s5564_s29, %s10450_s13 }
 0xf05   :  { %p5570_p7 = pnand %p5568_p6, %p5565_p5 }
 0xf07   :  { %5573 = shalt.err (!%p5570_p7)
}
 0xf08   :  { %s5591_s16 = smov 512   ;;  %s5592_s19 = smov 32  }
 0xf09   :  { %4988 = dma.vmem_to_hbm [thread:$0]  %s4983_s18, 4096, %s10450_s13, [#allocation3], %s5591_s16, %s5591_s16, %s5592_s19  }
 0xf0a   :  { %5574 = dma.done.wait [#allocation3], 4096  }
 0xf0b   :  { %5575 = vsyncadd [#allocation3], 4294963200 }
 0xf0c   :  { %4992 = vsyncpa [#allocation3], 1 }

</bundles_post_ra>
